<compile_context>
chip_gen: v6e
topology: v6e:2x2x1
jax: 0.10.0
libtpu: 0.0.40
codegen_flags: <defaults>
</compile_context>

<pallas_src>
import numpy as np
import jax
import jax.numpy as jnp
from jax.experimental import pallas as pl
from jax.experimental.pallas import tpu as pltpu

_WGT_DTYPE = jnp.bfloat16   # MXU inputs; accumulation is always fp32.
B_TILE = 16                 # images per grid step (good fill on v5e/v6e/v7x)


# ----------------------------------------------------------------------------
# Fused network kernel (one grid step == B_TILE images)
# ----------------------------------------------------------------------------
def _net_kernel(x_ref,
                w1_ref, b1_ref, p1t_ref,
                r1a_ref, r1ab_ref, r1b_ref, r1bb_ref,
                w2_ref, b2_ref, p2t_ref,
                r2a_ref, r2ab_ref, r2b_ref, r2bb_ref,
                fcw_ref, fcb_ref,
                o_ref):
    f32 = jnp.float32
    B = B_TILE

    def band_conv(a, w_ref, b_ref, k, ho, residual=None):
        # a: ((Hin[+2])*B, Win*Cin) fp32 ; w_ref: (k, Win*Cin, Wo*Cout) bf16
        # out[ho*B+b, wo*Cout+co] = sum_dh a[(ho+dh)*B+b, :] @ band[dh]
        # (chained accumulate maps onto the MRB on v7x / hides under MXU pushes
        #  on v5e/v6e -- intentionally NOT restructured into a tree)
        ab = a.astype(_WGT_DTYPE)
        acc = jnp.dot(ab[0:ho * B, :], w_ref[0], preferred_element_type=f32)
        for dh in range(1, k):
            acc = acc + jnp.dot(ab[dh * B:(dh + ho) * B, :], w_ref[dh],
                                preferred_element_type=f32)
        acc = acc + b_ref[...]
        if residual is not None:
            acc = acc + residual
        return jnp.maximum(acc, 0.0)

    def maxpool2x2(a, t_ref, ho, c):
        # a: (ho*B, wo*c) fp32 -> ((ho//2)*B, (wo//2)*c) fp32
        wc = a.shape[1]
        # H direction: sublane-aligned regroup + VPU max (no MXU work).
        a3 = a.reshape(ho // 2, 2 * B, wc)
        hp = jnp.maximum(a3[:, :B, :], a3[:, B:, :]).reshape((ho // 2) * B, wc)
        # W direction: adjacent max (VPU) + exact one-hot bf16 selector (MXU).
        wm = jnp.maximum(hp[:, :-c], hp[:, c:])
        return jnp.dot(wm.astype(_WGT_DTYPE), t_ref[...],
                       preferred_element_type=f32)

    def residual_block(xin, wa_ref, ba_ref, wb_ref, bb_ref, hw, wc):
        # y = relu(conv1(x)); y = conv2(y); return relu(x + y)
        # H-padding = B zero rows per side, concatenated in-register at
        # sublane-aligned (multiple-of-B) boundaries -- no scratch round trip.
        z = jnp.zeros((B, wc), f32)
        t = band_conv(jnp.concatenate([z, xin, z], axis=0),
                      wa_ref, ba_ref, k=3, ho=hw)
        return band_conv(jnp.concatenate([z, t, z], axis=0),
                         wb_ref, bb_ref, k=3, ho=hw, residual=xin)

    # conv1 (k=5, valid) + relu: LHS arrives already H-im2col'd / K-folded from
    # the wrapper as (24*B, 5*28) bf16 -> ONE MXU dot instead of 5 banded dots.
    y = jnp.dot(x_ref[0], w1_ref[...], preferred_element_type=f32)  # (24B, 384)
    y = jnp.maximum(y + b1_ref[...], 0.0)
    y = maxpool2x2(y, p1t_ref, ho=24, c=16)                         # (12B, 192)
    y = residual_block(y, r1a_ref, r1ab_ref, r1b_ref, r1bb_ref,
                       hw=12, wc=12 * 16)                           # (12B, 192)

    # conv2 (k=5, valid) + relu + maxpool + residual block 2
    y = band_conv(y, w2_ref, b2_ref, k=5, ho=8)                     # (8B, 256)
    y = maxpool2x2(y, p2t_ref, ho=8, c=32)                          # (4B, 128)
    y = residual_block(y, r2a_ref, r2ab_ref, r2b_ref, r2bb_ref,
                       hw=4, wc=4 * 32)                             # (4B, 128)

    # fc: lane-tile-aligned concat of the 4 h-slabs -> single (B,512)@(512,10)
    # dot.  PyTorch's view(N,-1) (C,H,W) order is folded into fcw at init.
    feat = jnp.concatenate([y[h * B:(h + 1) * B, :] for h in range(4)],
                           axis=1).astype(_WGT_DTYPE)               # (B, 512)
    out = jnp.dot(feat, fcw_ref[...], preferred_element_type=f32) + fcb_ref[...]
    o_ref[...] = out.astype(o_ref.dtype)


# ----------------------------------------------------------------------------
# pallas_call wrapper
# ----------------------------------------------------------------------------
_KP_ORDER = ("w1", "b1", "p1t",
             "r1a", "r1ab", "r1b", "r1bb",
             "w2", "b2", "p2t",
             "r2a", "r2ab", "r2b", "r2bb",
             "fcw", "fcb")


def _const_index_map(ndim):
    zeros = (0,) * ndim
    return lambda i: zeros


def net_forward(x_nchw, kp):
    """x_nchw: (N, 1, 28, 28) fp32; kp: dict from prepare_kernel_params()."""
    N = x_nchw.shape[0]
    B = B_TILE
    G = -(-N // B)
    Np = G * B

    x3 = x_nchw.astype(jnp.float32).reshape(N, 28, 28)
    if Np != N:
        x3 = jnp.pad(x3, ((0, Np - N), (0, 0), (0, 0)))

    # Wrapper-side layout plumbing (outside the kernel, once per forward):
    # conv1 H-im2col (K-fold of the 5 k_h taps) + batch interleave into the
    # sublane axis:  lhs[g, ho*B + b, dh*28 + w] = x[g*B + b, ho + dh, w]
    cols = jnp.stack([x3[:, dh:dh + 24, :] for dh in range(5)], axis=2)  # (Np,24,5,28)
    lhs = cols.reshape(G, B, 24, 5 * 28).transpose(0, 2, 1, 3)
    lhs = lhs.reshape(G, 24 * B, 5 * 28).astype(_WGT_DTYPE)

    consts = [kp[k] for k in _KP_ORDER]
    in_specs = [pl.BlockSpec((1, 24 * B, 5 * 28), lambda i: (i, 0, 0))]
    in_specs += [pl.BlockSpec(c.shape, _const_index_map(c.ndim)) for c in consts]

    out = pl.pallas_call(
        _net_kernel,
        out_shape=jax.ShapeDtypeStruct((Np, 10), jnp.float32),
        grid_spec=pltpu.PrefetchScalarGridSpec(
            num_scalar_prefetch=0,
            grid=(G,),
            in_specs=in_specs,
            out_specs=pl.BlockSpec((B, 10), lambda i: (i, 0)),
        ),
        compiler_params=pltpu.CompilerParams(
            dimension_semantics=("parallel",)),
    )(lhs, *consts)
    return out[:N]


# ----------------------------------------------------------------------------
# One-time weight relayout (hoisted out of the forward pass)
# ----------------------------------------------------------------------------
def _band_weights(w, win, pad):
    """(Cout,Cin,k,k) torch conv weight -> (k, Win*Cin, Wo*Cout) banded mats.

    With activation layout A[h*B+b, w*Cin+ci], the conv becomes
      out = sum_dh A_hpad[dh*B : (dh+Ho)*B, :] @ band[dh]
    (W-direction zero padding folded into the band structure)."""
    w = np.asarray(w, np.float32)
    cout, cin, k, _ = w.shape
    wo_dim = win + 2 * pad - k + 1
    band = np.zeros((k, win * cin, wo_dim * cout), np.float32)
    for dh in range(k):
        for wo in range(wo_dim):
            for dw in range(k):
                w_in = wo + dw - pad
                if 0 <= w_in < win:
                    band[dh, w_in * cin:(w_in + 1) * cin,
                         wo * cout:(wo + 1) * cout] = w[:, :, dh, dw].T
    return band


def _bias_row(b, wo_dim):
    # (Cout,) -> (1, Wo*Cout) tiled in the (w, c) lane layout. Stays fp32.
    return jnp.asarray(np.tile(np.asarray(b, np.float32), wo_dim)[None, :])


def _pool_selector_w(wo, c):
    """Exact 0/1 compaction matrix for the W direction of 2x2/stride-2
    maxpool, stored bf16 so the selection dot takes the bf16 MXU path."""
    t = np.zeros(((wo - 1) * c, (wo // 2) * c), np.float32)
    for w in range(wo // 2):
        for ch in range(c):
            t[2 * w * c + ch, w * c + ch] = 1.0
    return jnp.asarray(t, _WGT_DTYPE)


def _fc_stack(w_fc, h, w, c):
    """(10, C*H*W) torch Linear weight -> (H*W*C, 10) so a single dot contracts
    the (h*B+b, w*C+c)-layout features in PyTorch's view(N,-1) (C,H,W) order."""
    w_fc = np.asarray(w_fc, np.float32)
    out_dim = w_fc.shape[0]
    st = np.zeros((h, w * c, out_dim), np.float32)
    for hh in range(h):
        for ww in range(w):
            for cc in range(c):
                st[hh, ww * c + cc, :] = w_fc[:, cc * h * w + hh * w + ww]
    return jnp.asarray(st.reshape(h * w * c, out_dim), _WGT_DTYPE)


def prepare_kernel_params(p):
    # conv1's 5 k_h bands are folded into K: (5, 28, 384) -> (140, 384).
    w1_band = _band_weights(p["conv1_w"], win=28, pad=0)
    return {
        "w1": jnp.asarray(w1_band.reshape(5 * 28, 24 * 16), _WGT_DTYPE),
        "b1": _bias_row(p["conv1_b"], 24),
        "p1t": _pool_selector_w(24, 16),
        "r1a": jnp.asarray(_band_weights(p["rb1"]["w1"], 12, 1), _WGT_DTYPE),
        "r1ab": _bias_row(p["rb1"]["b1"], 12),
        "r1b": jnp.asarray(_band_weights(p["rb1"]["w2"], 12, 1), _WGT_DTYPE),
        "r1bb": _bias_row(p["rb1"]["b2"], 12),
        "w2": jnp.asarray(_band_weights(p["conv2_w"], 12, 0), _WGT_DTYPE),
        "b2": _bias_row(p["conv2_b"], 8),
        "p2t": _pool_selector_w(8, 32),
        "r2a": jnp.asarray(_band_weights(p["rb2"]["w1"], 4, 1), _WGT_DTYPE),
        "r2ab": _bias_row(p["rb2"]["b1"], 4),
        "r2b": jnp.asarray(_band_weights(p["rb2"]["w2"], 4, 1), _WGT_DTYPE),
        "r2bb": _bias_row(p["rb2"]["b2"], 4),
        "fcw": _fc_stack(p["fc_w"], 4, 4, 32),
        "fcb": jnp.asarray(np.asarray(p["fc_b"], np.float32)[None, :]),
    }


# ----------------------------------------------------------------------------
# Deterministic synthetic parameters (PyTorch layouts) + plain-XLA reference
# ----------------------------------------------------------------------------
def init_params(key):
    keys = jax.random.split(key, 14)

    def conv_w(k, cout, cin, ks):
        std = 1.0 / np.sqrt(cin * ks * ks)
        return std * jax.random.normal(k, (cout, cin, ks, ks), jnp.float32)

    def vec(k, n, fan_in):
        std = 1.0 / np.sqrt(fan_in)
        return std * jax.random.normal(k, (n,), jnp.float32)

    return {
        "conv1_w": conv_w(keys[0], 16, 1, 5),  "conv1_b": vec(keys[1], 16, 25),
        "conv2_w": conv_w(keys[2], 32, 16, 5), "conv2_b": vec(keys[3], 32, 400),
        "rb1": {"w1": conv_w(keys[4], 16, 16, 3), "b1": vec(keys[5], 16, 144),
                "w2": conv_w(keys[6], 16, 16, 3), "b2": vec(keys[7], 16, 144)},
        "rb2": {"w1": conv_w(keys[8], 32, 32, 3), "b1": vec(keys[9], 32, 288),
                "w2": conv_w(keys[10], 32, 32, 3), "b2": vec(keys[11], 32, 288)},
        "fc_w": (1.0 / np.sqrt(512)) * jax.random.normal(keys[12], (10, 512), jnp.float32),
        "fc_b": vec(keys[13], 10, 512),
    }


def net_reference(x_nchw, p):
    """Pure-XLA fp32 reference matching the PyTorch module."""
    def conv(x, w, b, pad=0):
        y = jax.lax.conv_general_dilated(
            x, w, window_strides=(1, 1),
            padding=[(pad, pad), (pad, pad)],
            dimension_numbers=("NCHW", "OIHW", "NCHW"))
        return y + b[None, :, None, None]

    def mp(x):
        return jax.lax.reduce_window(x, -jnp.inf, jax.lax.max,
                                     (1, 1, 2, 2), (1, 1, 2, 2), "VALID")

    x = x_nchw.astype(jnp.float32)
    x = mp(jax.nn.relu(conv(x, p["conv1_w"], p["conv1_b"])))
    y = jax.nn.relu(conv(x, p["rb1"]["w1"], p["rb1"]["b1"], 1))
    x = jax.nn.relu(x + conv(y, p["rb1"]["w2"], p["rb1"]["b2"], 1))
    x = mp(jax.nn.relu(conv(x, p["conv2_w"], p["conv2_b"])))
    y = jax.nn.relu(conv(x, p["rb2"]["w1"], p["rb2"]["b1"], 1))
    x = jax.nn.relu(x + conv(y, p["rb2"]["w2"], p["rb2"]["b2"], 1))
    x = x.reshape(x.shape[0], -1)
    return x @ p["fc_w"].T + p["fc_b"]


if __name__ == "__main__":
    key = jax.random.PRNGKey(0)
    pkey, xkey = jax.random.split(key)
    params = init_params(pkey)
    kparams = prepare_kernel_params(params)   # one-time relayout to kernel layout

    # MNIST-like input: 1 channel, 28x28 (so the flatten is 512).  Batch 32
    # -> 2 grid steps of B_TILE=16 (even grid length for v7x megacore).
    x = jax.random.normal(xkey, (32, 1, 28, 28), jnp.float32)

    fwd = jax.jit(net_forward)
    out = jax.block_until_ready(fwd(x, kparams))
    assert out.shape == (32, 10), out.shape
    assert bool(jnp.all(jnp.isfinite(out)))

    # Numerical sanity check vs plain-XLA fp32 reference (bf16 weights/acts -> loose tol).
    ref = jax.block_until_ready(jax.jit(net_reference)(x, params))
    np.testing.assert_allclose(np.asarray(out), np.asarray(ref), rtol=5e-2, atol=5e-2)

    print("KERNEL_OK")
</pallas_src>

<mosaic_0001>
module attributes {stable_mosaic.version = 11 : i64} {
  func.func @_net_kernel(%arg0: i32, %arg1: memref<1x384x140xbf16, #tpu.memory_space<vmem>>, %arg2: memref<140x384xbf16, #tpu.memory_space<vmem>>, %arg3: memref<1x384xf32, #tpu.memory_space<vmem>>, %arg4: memref<368x192xbf16, #tpu.memory_space<vmem>>, %arg5: memref<3x192x192xbf16, #tpu.memory_space<vmem>>, %arg6: memref<1x192xf32, #tpu.memory_space<vmem>>, %arg7: memref<3x192x192xbf16, #tpu.memory_space<vmem>>, %arg8: memref<1x192xf32, #tpu.memory_space<vmem>>, %arg9: memref<5x192x256xbf16, #tpu.memory_space<vmem>>, %arg10: memref<1x256xf32, #tpu.memory_space<vmem>>, %arg11: memref<224x128xbf16, #tpu.memory_space<vmem>>, %arg12: memref<3x128x128xbf16, #tpu.memory_space<vmem>>, %arg13: memref<1x128xf32, #tpu.memory_space<vmem>>, %arg14: memref<3x128x128xbf16, #tpu.memory_space<vmem>>, %arg15: memref<1x128xf32, #tpu.memory_space<vmem>>, %arg16: memref<512x10xbf16, #tpu.memory_space<vmem>>, %arg17: memref<1x10xf32, #tpu.memory_space<vmem>>, %arg18: memref<16x10xf32, #tpu.memory_space<vmem>>) attributes {dimension_semantics = [#tpu.dimension_semantics<parallel>], iteration_bounds = array<i64: 2>, scalar_prefetch = 0 : i64, scratch_operands = 0 : i64, tpu.core_type = #tpu.core_type<tc>, window_params = [{transform_indices = @transform_0, window_bounds = array<i64: 1, 384, 140>}, {pipeline_mode = #tpu.pipeline_mode<synchronous>, transform_indices = @transform_1, window_bounds = array<i64: 140, 384>}, {pipeline_mode = #tpu.pipeline_mode<synchronous>, transform_indices = @transform_2, window_bounds = array<i64: 1, 384>}, {pipeline_mode = #tpu.pipeline_mode<synchronous>, transform_indices = @transform_3, window_bounds = array<i64: 368, 192>}, {pipeline_mode = #tpu.pipeline_mode<synchronous>, transform_indices = @transform_4, window_bounds = array<i64: 3, 192, 192>}, {pipeline_mode = #tpu.pipeline_mode<synchronous>, transform_indices = @transform_5, window_bounds = array<i64: 1, 192>}, {pipeline_mode = #tpu.pipeline_mode<synchronous>, transform_indices = @transform_6, window_bounds = array<i64: 3, 192, 192>}, {pipeline_mode = #tpu.pipeline_mode<synchronous>, transform_indices = @transform_7, window_bounds = array<i64: 1, 192>}, {pipeline_mode = #tpu.pipeline_mode<synchronous>, transform_indices = @transform_8, window_bounds = array<i64: 5, 192, 256>}, {pipeline_mode = #tpu.pipeline_mode<synchronous>, transform_indices = @transform_9, window_bounds = array<i64: 1, 256>}, {pipeline_mode = #tpu.pipeline_mode<synchronous>, transform_indices = @transform_10, window_bounds = array<i64: 224, 128>}, {pipeline_mode = #tpu.pipeline_mode<synchronous>, transform_indices = @transform_11, window_bounds = array<i64: 3, 128, 128>}, {pipeline_mode = #tpu.pipeline_mode<synchronous>, transform_indices = @transform_12, window_bounds = array<i64: 1, 128>}, {pipeline_mode = #tpu.pipeline_mode<synchronous>, transform_indices = @transform_13, window_bounds = array<i64: 3, 128, 128>}, {pipeline_mode = #tpu.pipeline_mode<synchronous>, transform_indices = @transform_14, window_bounds = array<i64: 1, 128>}, {pipeline_mode = #tpu.pipeline_mode<synchronous>, transform_indices = @transform_15, window_bounds = array<i64: 512, 10>}, {pipeline_mode = #tpu.pipeline_mode<synchronous>, transform_indices = @transform_16, window_bounds = array<i64: 1, 10>}, {transform_indices = @transform_17, window_bounds = array<i64: 16, 10>}]} {
    %c0 = arith.constant 0 : index
    %c0_0 = arith.constant 0 : index
    %c0_1 = arith.constant 0 : index
    %0 = vector.load %arg1[%c0, %c0_0, %c0_1] : memref<1x384x140xbf16, #tpu.memory_space<vmem>>, vector<1x384x140xbf16>
    %1 = vector.shape_cast %0 : vector<1x384x140xbf16> to vector<384x140xbf16>
    %c0_2 = arith.constant 0 : index
    %c0_3 = arith.constant 0 : index
    %2 = vector.load %arg2[%c0_2, %c0_3] : memref<140x384xbf16, #tpu.memory_space<vmem>>, vector<140x384xbf16>
    %cst = arith.constant dense<0.000000e+00> : vector<384x384xf32>
    %3 = tpu.matmul %1, %2, %cst {dimension_numbers = #tpu.dot_dimension_numbers<[1], [0], [0], [1], [0, 0, 1, 1], [], []>} : vector<384x140xbf16>, vector<140x384xbf16>, vector<384x384xf32> -> vector<384x384xf32>
    %c0_4 = arith.constant 0 : index
    %c0_5 = arith.constant 0 : index
    %4 = vector.load %arg3[%c0_4, %c0_5] : memref<1x384xf32, #tpu.memory_space<vmem>>, vector<1x384xf32>
    %5 = vector.broadcast %4 : vector<1x384xf32> to vector<384x384xf32>
    %6 = arith.addf %3, %5 : vector<384x384xf32>
    %cst_6 = arith.constant 0.000000e+00 : f32
    %7 = vector.broadcast %cst_6 : f32 to vector<384x384xf32>
    %8 = arith.maximumf %6, %7 : vector<384x384xf32>
    %9 = vector.shape_cast %8 : vector<384x384xf32> to vector<12x32x384xf32>
    %10 = vector.extract_strided_slice %9 {offsets = [0, 0, 0], sizes = [12, 16, 384], strides = [1, 1, 1]} : vector<12x32x384xf32> to vector<12x16x384xf32>
    %11 = vector.extract_strided_slice %9 {offsets = [0, 16, 0], sizes = [12, 16, 384], strides = [1, 1, 1]} : vector<12x32x384xf32> to vector<12x16x384xf32>
    %12 = arith.maximumf %10, %11 : vector<12x16x384xf32>
    %13 = vector.shape_cast %12 : vector<12x16x384xf32> to vector<192x384xf32>
    %14 = vector.extract_strided_slice %13 {offsets = [0, 0], sizes = [192, 368], strides = [1, 1]} : vector<192x384xf32> to vector<192x368xf32>
    %15 = vector.extract_strided_slice %13 {offsets = [0, 16], sizes = [192, 368], strides = [1, 1]} : vector<192x384xf32> to vector<192x368xf32>
    %16 = arith.maximumf %14, %15 : vector<192x368xf32>
    %17 = arith.truncf %16 : vector<192x368xf32> to vector<192x368xbf16>
    %c0_7 = arith.constant 0 : index
    %c0_8 = arith.constant 0 : index
    %18 = vector.load %arg4[%c0_7, %c0_8] : memref<368x192xbf16, #tpu.memory_space<vmem>>, vector<368x192xbf16>
    %cst_9 = arith.constant dense<0.000000e+00> : vector<192x192xf32>
    %19 = tpu.matmul %17, %18, %cst_9 {dimension_numbers = #tpu.dot_dimension_numbers<[1], [0], [0], [1], [0, 0, 1, 1], [], []>} : vector<192x368xbf16>, vector<368x192xbf16>, vector<192x192xf32> -> vector<192x192xf32>
    %cst_10 = arith.constant 0.000000e+00 : f32
    %20 = vector.broadcast %cst_10 : f32 to vector<16x192xf32>
    %21 = tpu.concatenate %20, %19, %20 in 0 : vector<16x192xf32>, vector<192x192xf32>, vector<16x192xf32> -> vector<224x192xf32>
    %22 = arith.truncf %21 : vector<224x192xf32> to vector<224x192xbf16>
    %23 = vector.extract_strided_slice %22 {offsets = [0, 0], sizes = [192, 192], strides = [1, 1]} : vector<224x192xbf16> to vector<192x192xbf16>
    %c0_11 = arith.constant 0 : index
    %c0_12 = arith.constant 0 : index
    %c0_13 = arith.constant 0 : index
    %24 = vector.load %arg5[%c0_11, %c0_12, %c0_13] : memref<3x192x192xbf16, #tpu.memory_space<vmem>>, vector<1x192x192xbf16>
    %25 = vector.shape_cast %24 : vector<1x192x192xbf16> to vector<192x192xbf16>
    %cst_14 = arith.constant dense<0.000000e+00> : vector<192x192xf32>
    %26 = tpu.matmul %23, %25, %cst_14 {dimension_numbers = #tpu.dot_dimension_numbers<[1], [0], [0], [1], [0, 0, 1, 1], [], []>} : vector<192x192xbf16>, vector<192x192xbf16>, vector<192x192xf32> -> vector<192x192xf32>
    %27 = vector.extract_strided_slice %22 {offsets = [16, 0], sizes = [192, 192], strides = [1, 1]} : vector<224x192xbf16> to vector<192x192xbf16>
    %c1 = arith.constant 1 : index
    %c0_15 = arith.constant 0 : index
    %c0_16 = arith.constant 0 : index
    %28 = vector.load %arg5[%c1, %c0_15, %c0_16] : memref<3x192x192xbf16, #tpu.memory_space<vmem>>, vector<1x192x192xbf16>
    %29 = vector.shape_cast %28 : vector<1x192x192xbf16> to vector<192x192xbf16>
    %cst_17 = arith.constant dense<0.000000e+00> : vector<192x192xf32>
    %30 = tpu.matmul %27, %29, %cst_17 {dimension_numbers = #tpu.dot_dimension_numbers<[1], [0], [0], [1], [0, 0, 1, 1], [], []>} : vector<192x192xbf16>, vector<192x192xbf16>, vector<192x192xf32> -> vector<192x192xf32>
    %31 = arith.addf %26, %30 : vector<192x192xf32>
    %32 = vector.extract_strided_slice %22 {offsets = [32, 0], sizes = [192, 192], strides = [1, 1]} : vector<224x192xbf16> to vector<192x192xbf16>
    %c2 = arith.constant 2 : index
    %c0_18 = arith.constant 0 : index
    %c0_19 = arith.constant 0 : index
    %33 = vector.load %arg5[%c2, %c0_18, %c0_19] : memref<3x192x192xbf16, #tpu.memory_space<vmem>>, vector<1x192x192xbf16>
    %34 = vector.shape_cast %33 : vector<1x192x192xbf16> to vector<192x192xbf16>
    %cst_20 = arith.constant dense<0.000000e+00> : vector<192x192xf32>
    %35 = tpu.matmul %32, %34, %cst_20 {dimension_numbers = #tpu.dot_dimension_numbers<[1], [0], [0], [1], [0, 0, 1, 1], [], []>} : vector<192x192xbf16>, vector<192x192xbf16>, vector<192x192xf32> -> vector<192x192xf32>
    %36 = arith.addf %31, %35 : vector<192x192xf32>
    %c0_21 = arith.constant 0 : index
    %c0_22 = arith.constant 0 : index
    %37 = vector.load %arg6[%c0_21, %c0_22] : memref<1x192xf32, #tpu.memory_space<vmem>>, vector<1x192xf32>
    %38 = vector.broadcast %37 : vector<1x192xf32> to vector<192x192xf32>
    %39 = arith.addf %36, %38 : vector<192x192xf32>
    %cst_23 = arith.constant 0.000000e+00 : f32
    %40 = vector.broadcast %cst_23 : f32 to vector<192x192xf32>
    %41 = arith.maximumf %39, %40 : vector<192x192xf32>
    %42 = tpu.concatenate %20, %41, %20 in 0 : vector<16x192xf32>, vector<192x192xf32>, vector<16x192xf32> -> vector<224x192xf32>
    %43 = arith.truncf %42 : vector<224x192xf32> to vector<224x192xbf16>
    %44 = vector.extract_strided_slice %43 {offsets = [0, 0], sizes = [192, 192], strides = [1, 1]} : vector<224x192xbf16> to vector<192x192xbf16>
    %c0_24 = arith.constant 0 : index
    %c0_25 = arith.constant 0 : index
    %c0_26 = arith.constant 0 : index
    %45 = vector.load %arg7[%c0_24, %c0_25, %c0_26] : memref<3x192x192xbf16, #tpu.memory_space<vmem>>, vector<1x192x192xbf16>
    %46 = vector.shape_cast %45 : vector<1x192x192xbf16> to vector<192x192xbf16>
    %cst_27 = arith.constant dense<0.000000e+00> : vector<192x192xf32>
    %47 = tpu.matmul %44, %46, %cst_27 {dimension_numbers = #tpu.dot_dimension_numbers<[1], [0], [0], [1], [0, 0, 1, 1], [], []>} : vector<192x192xbf16>, vector<192x192xbf16>, vector<192x192xf32> -> vector<192x192xf32>
    %48 = vector.extract_strided_slice %43 {offsets = [16, 0], sizes = [192, 192], strides = [1, 1]} : vector<224x192xbf16> to vector<192x192xbf16>
    %c1_28 = arith.constant 1 : index
    %c0_29 = arith.constant 0 : index
    %c0_30 = arith.constant 0 : index
    %49 = vector.load %arg7[%c1_28, %c0_29, %c0_30] : memref<3x192x192xbf16, #tpu.memory_space<vmem>>, vector<1x192x192xbf16>
    %50 = vector.shape_cast %49 : vector<1x192x192xbf16> to vector<192x192xbf16>
    %cst_31 = arith.constant dense<0.000000e+00> : vector<192x192xf32>
    %51 = tpu.matmul %48, %50, %cst_31 {dimension_numbers = #tpu.dot_dimension_numbers<[1], [0], [0], [1], [0, 0, 1, 1], [], []>} : vector<192x192xbf16>, vector<192x192xbf16>, vector<192x192xf32> -> vector<192x192xf32>
    %52 = arith.addf %47, %51 : vector<192x192xf32>
    %53 = vector.extract_strided_slice %43 {offsets = [32, 0], sizes = [192, 192], strides = [1, 1]} : vector<224x192xbf16> to vector<192x192xbf16>
    %c2_32 = arith.constant 2 : index
    %c0_33 = arith.constant 0 : index
    %c0_34 = arith.constant 0 : index
    %54 = vector.load %arg7[%c2_32, %c0_33, %c0_34] : memref<3x192x192xbf16, #tpu.memory_space<vmem>>, vector<1x192x192xbf16>
    %55 = vector.shape_cast %54 : vector<1x192x192xbf16> to vector<192x192xbf16>
    %cst_35 = arith.constant dense<0.000000e+00> : vector<192x192xf32>
    %56 = tpu.matmul %53, %55, %cst_35 {dimension_numbers = #tpu.dot_dimension_numbers<[1], [0], [0], [1], [0, 0, 1, 1], [], []>} : vector<192x192xbf16>, vector<192x192xbf16>, vector<192x192xf32> -> vector<192x192xf32>
    %57 = arith.addf %52, %56 : vector<192x192xf32>
    %c0_36 = arith.constant 0 : index
    %c0_37 = arith.constant 0 : index
    %58 = vector.load %arg8[%c0_36, %c0_37] : memref<1x192xf32, #tpu.memory_space<vmem>>, vector<1x192xf32>
    %59 = vector.broadcast %58 : vector<1x192xf32> to vector<192x192xf32>
    %60 = arith.addf %57, %59 : vector<192x192xf32>
    %61 = arith.addf %60, %19 : vector<192x192xf32>
    %cst_38 = arith.constant 0.000000e+00 : f32
    %62 = vector.broadcast %cst_38 : f32 to vector<192x192xf32>
    %63 = arith.maximumf %61, %62 : vector<192x192xf32>
    %64 = arith.truncf %63 : vector<192x192xf32> to vector<192x192xbf16>
    %65 = vector.extract_strided_slice %64 {offsets = [0, 0], sizes = [128, 192], strides = [1, 1]} : vector<192x192xbf16> to vector<128x192xbf16>
    %c0_39 = arith.constant 0 : index
    %c0_40 = arith.constant 0 : index
    %c0_41 = arith.constant 0 : index
    %66 = vector.load %arg9[%c0_39, %c0_40, %c0_41] : memref<5x192x256xbf16, #tpu.memory_space<vmem>>, vector<1x192x256xbf16>
    %67 = vector.shape_cast %66 : vector<1x192x256xbf16> to vector<192x256xbf16>
    %cst_42 = arith.constant dense<0.000000e+00> : vector<128x256xf32>
    %68 = tpu.matmul %65, %67, %cst_42 {dimension_numbers = #tpu.dot_dimension_numbers<[1], [0], [0], [1], [0, 0, 1, 1], [], []>} : vector<128x192xbf16>, vector<192x256xbf16>, vector<128x256xf32> -> vector<128x256xf32>
    %69 = vector.extract_strided_slice %64 {offsets = [16, 0], sizes = [128, 192], strides = [1, 1]} : vector<192x192xbf16> to vector<128x192xbf16>
    %c1_43 = arith.constant 1 : index
    %c0_44 = arith.constant 0 : index
    %c0_45 = arith.constant 0 : index
    %70 = vector.load %arg9[%c1_43, %c0_44, %c0_45] : memref<5x192x256xbf16, #tpu.memory_space<vmem>>, vector<1x192x256xbf16>
    %71 = vector.shape_cast %70 : vector<1x192x256xbf16> to vector<192x256xbf16>
    %cst_46 = arith.constant dense<0.000000e+00> : vector<128x256xf32>
    %72 = tpu.matmul %69, %71, %cst_46 {dimension_numbers = #tpu.dot_dimension_numbers<[1], [0], [0], [1], [0, 0, 1, 1], [], []>} : vector<128x192xbf16>, vector<192x256xbf16>, vector<128x256xf32> -> vector<128x256xf32>
    %73 = arith.addf %68, %72 : vector<128x256xf32>
    %74 = vector.extract_strided_slice %64 {offsets = [32, 0], sizes = [128, 192], strides = [1, 1]} : vector<192x192xbf16> to vector<128x192xbf16>
    %c2_47 = arith.constant 2 : index
    %c0_48 = arith.constant 0 : index
    %c0_49 = arith.constant 0 : index
    %75 = vector.load %arg9[%c2_47, %c0_48, %c0_49] : memref<5x192x256xbf16, #tpu.memory_space<vmem>>, vector<1x192x256xbf16>
    %76 = vector.shape_cast %75 : vector<1x192x256xbf16> to vector<192x256xbf16>
    %cst_50 = arith.constant dense<0.000000e+00> : vector<128x256xf32>
    %77 = tpu.matmul %74, %76, %cst_50 {dimension_numbers = #tpu.dot_dimension_numbers<[1], [0], [0], [1], [0, 0, 1, 1], [], []>} : vector<128x192xbf16>, vector<192x256xbf16>, vector<128x256xf32> -> vector<128x256xf32>
    %78 = arith.addf %73, %77 : vector<128x256xf32>
    %79 = vector.extract_strided_slice %64 {offsets = [48, 0], sizes = [128, 192], strides = [1, 1]} : vector<192x192xbf16> to vector<128x192xbf16>
    %c3 = arith.constant 3 : index
    %c0_51 = arith.constant 0 : index
    %c0_52 = arith.constant 0 : index
    %80 = vector.load %arg9[%c3, %c0_51, %c0_52] : memref<5x192x256xbf16, #tpu.memory_space<vmem>>, vector<1x192x256xbf16>
    %81 = vector.shape_cast %80 : vector<1x192x256xbf16> to vector<192x256xbf16>
    %cst_53 = arith.constant dense<0.000000e+00> : vector<128x256xf32>
    %82 = tpu.matmul %79, %81, %cst_53 {dimension_numbers = #tpu.dot_dimension_numbers<[1], [0], [0], [1], [0, 0, 1, 1], [], []>} : vector<128x192xbf16>, vector<192x256xbf16>, vector<128x256xf32> -> vector<128x256xf32>
    %83 = arith.addf %78, %82 : vector<128x256xf32>
    %84 = vector.extract_strided_slice %64 {offsets = [64, 0], sizes = [128, 192], strides = [1, 1]} : vector<192x192xbf16> to vector<128x192xbf16>
    %c4 = arith.constant 4 : index
    %c0_54 = arith.constant 0 : index
    %c0_55 = arith.constant 0 : index
    %85 = vector.load %arg9[%c4, %c0_54, %c0_55] : memref<5x192x256xbf16, #tpu.memory_space<vmem>>, vector<1x192x256xbf16>
    %86 = vector.shape_cast %85 : vector<1x192x256xbf16> to vector<192x256xbf16>
    %cst_56 = arith.constant dense<0.000000e+00> : vector<128x256xf32>
    %87 = tpu.matmul %84, %86, %cst_56 {dimension_numbers = #tpu.dot_dimension_numbers<[1], [0], [0], [1], [0, 0, 1, 1], [], []>} : vector<128x192xbf16>, vector<192x256xbf16>, vector<128x256xf32> -> vector<128x256xf32>
    %88 = arith.addf %83, %87 : vector<128x256xf32>
    %c0_57 = arith.constant 0 : index
    %c0_58 = arith.constant 0 : index
    %89 = vector.load %arg10[%c0_57, %c0_58] : memref<1x256xf32, #tpu.memory_space<vmem>>, vector<1x256xf32>
    %90 = vector.broadcast %89 : vector<1x256xf32> to vector<128x256xf32>
    %91 = arith.addf %88, %90 : vector<128x256xf32>
    %cst_59 = arith.constant 0.000000e+00 : f32
    %92 = vector.broadcast %cst_59 : f32 to vector<128x256xf32>
    %93 = arith.maximumf %91, %92 : vector<128x256xf32>
    %94 = vector.shape_cast %93 : vector<128x256xf32> to vector<4x32x256xf32>
    %95 = vector.extract_strided_slice %94 {offsets = [0, 0, 0], sizes = [4, 16, 256], strides = [1, 1, 1]} : vector<4x32x256xf32> to vector<4x16x256xf32>
    %96 = vector.extract_strided_slice %94 {offsets = [0, 16, 0], sizes = [4, 16, 256], strides = [1, 1, 1]} : vector<4x32x256xf32> to vector<4x16x256xf32>
    %97 = arith.maximumf %95, %96 : vector<4x16x256xf32>
    %98 = vector.shape_cast %97 : vector<4x16x256xf32> to vector<64x256xf32>
    %99 = vector.extract_strided_slice %98 {offsets = [0, 0], sizes = [64, 224], strides = [1, 1]} : vector<64x256xf32> to vector<64x224xf32>
    %100 = vector.extract_strided_slice %98 {offsets = [0, 32], sizes = [64, 224], strides = [1, 1]} : vector<64x256xf32> to vector<64x224xf32>
    %101 = arith.maximumf %99, %100 : vector<64x224xf32>
    %102 = arith.truncf %101 : vector<64x224xf32> to vector<64x224xbf16>
    %c0_60 = arith.constant 0 : index
    %c0_61 = arith.constant 0 : index
    %103 = vector.load %arg11[%c0_60, %c0_61] : memref<224x128xbf16, #tpu.memory_space<vmem>>, vector<224x128xbf16>
    %cst_62 = arith.constant dense<0.000000e+00> : vector<64x128xf32>
    %104 = tpu.matmul %102, %103, %cst_62 {dimension_numbers = #tpu.dot_dimension_numbers<[1], [0], [0], [1], [0, 0, 1, 1], [], []>} : vector<64x224xbf16>, vector<224x128xbf16>, vector<64x128xf32> -> vector<64x128xf32>
    %cst_63 = arith.constant 0.000000e+00 : f32
    %105 = vector.broadcast %cst_63 : f32 to vector<16x128xf32>
    %106 = tpu.concatenate %105, %104, %105 in 0 : vector<16x128xf32>, vector<64x128xf32>, vector<16x128xf32> -> vector<96x128xf32>
    %107 = arith.truncf %106 : vector<96x128xf32> to vector<96x128xbf16>
    %108 = vector.extract_strided_slice %107 {offsets = [0, 0], sizes = [64, 128], strides = [1, 1]} : vector<96x128xbf16> to vector<64x128xbf16>
    %c0_64 = arith.constant 0 : index
    %c0_65 = arith.constant 0 : index
    %c0_66 = arith.constant 0 : index
    %109 = vector.load %arg12[%c0_64, %c0_65, %c0_66] : memref<3x128x128xbf16, #tpu.memory_space<vmem>>, vector<1x128x128xbf16>
    %110 = vector.shape_cast %109 : vector<1x128x128xbf16> to vector<128x128xbf16>
    %cst_67 = arith.constant dense<0.000000e+00> : vector<64x128xf32>
    %111 = tpu.matmul %108, %110, %cst_67 {dimension_numbers = #tpu.dot_dimension_numbers<[1], [0], [0], [1], [0, 0, 1, 1], [], []>} : vector<64x128xbf16>, vector<128x128xbf16>, vector<64x128xf32> -> vector<64x128xf32>
    %112 = vector.extract_strided_slice %107 {offsets = [16, 0], sizes = [64, 128], strides = [1, 1]} : vector<96x128xbf16> to vector<64x128xbf16>
    %c1_68 = arith.constant 1 : index
    %c0_69 = arith.constant 0 : index
    %c0_70 = arith.constant 0 : index
    %113 = vector.load %arg12[%c1_68, %c0_69, %c0_70] : memref<3x128x128xbf16, #tpu.memory_space<vmem>>, vector<1x128x128xbf16>
    %114 = vector.shape_cast %113 : vector<1x128x128xbf16> to vector<128x128xbf16>
    %cst_71 = arith.constant dense<0.000000e+00> : vector<64x128xf32>
    %115 = tpu.matmul %112, %114, %cst_71 {dimension_numbers = #tpu.dot_dimension_numbers<[1], [0], [0], [1], [0, 0, 1, 1], [], []>} : vector<64x128xbf16>, vector<128x128xbf16>, vector<64x128xf32> -> vector<64x128xf32>
    %116 = arith.addf %111, %115 : vector<64x128xf32>
    %117 = vector.extract_strided_slice %107 {offsets = [32, 0], sizes = [64, 128], strides = [1, 1]} : vector<96x128xbf16> to vector<64x128xbf16>
    %c2_72 = arith.constant 2 : index
    %c0_73 = arith.constant 0 : index
    %c0_74 = arith.constant 0 : index
    %118 = vector.load %arg12[%c2_72, %c0_73, %c0_74] : memref<3x128x128xbf16, #tpu.memory_space<vmem>>, vector<1x128x128xbf16>
    %119 = vector.shape_cast %118 : vector<1x128x128xbf16> to vector<128x128xbf16>
    %cst_75 = arith.constant dense<0.000000e+00> : vector<64x128xf32>
    %120 = tpu.matmul %117, %119, %cst_75 {dimension_numbers = #tpu.dot_dimension_numbers<[1], [0], [0], [1], [0, 0, 1, 1], [], []>} : vector<64x128xbf16>, vector<128x128xbf16>, vector<64x128xf32> -> vector<64x128xf32>
    %121 = arith.addf %116, %120 : vector<64x128xf32>
    %c0_76 = arith.constant 0 : index
    %c0_77 = arith.constant 0 : index
    %122 = vector.load %arg13[%c0_76, %c0_77] : memref<1x128xf32, #tpu.memory_space<vmem>>, vector<1x128xf32>
    %123 = vector.broadcast %122 : vector<1x128xf32> to vector<64x128xf32>
    %124 = arith.addf %121, %123 : vector<64x128xf32>
    %cst_78 = arith.constant 0.000000e+00 : f32
    %125 = vector.broadcast %cst_78 : f32 to vector<64x128xf32>
    %126 = arith.maximumf %124, %125 : vector<64x128xf32>
    %127 = tpu.concatenate %105, %126, %105 in 0 : vector<16x128xf32>, vector<64x128xf32>, vector<16x128xf32> -> vector<96x128xf32>
    %128 = arith.truncf %127 : vector<96x128xf32> to vector<96x128xbf16>
    %129 = vector.extract_strided_slice %128 {offsets = [0, 0], sizes = [64, 128], strides = [1, 1]} : vector<96x128xbf16> to vector<64x128xbf16>
    %c0_79 = arith.constant 0 : index
    %c0_80 = arith.constant 0 : index
    %c0_81 = arith.constant 0 : index
    %130 = vector.load %arg14[%c0_79, %c0_80, %c0_81] : memref<3x128x128xbf16, #tpu.memory_space<vmem>>, vector<1x128x128xbf16>
    %131 = vector.shape_cast %130 : vector<1x128x128xbf16> to vector<128x128xbf16>
    %cst_82 = arith.constant dense<0.000000e+00> : vector<64x128xf32>
    %132 = tpu.matmul %129, %131, %cst_82 {dimension_numbers = #tpu.dot_dimension_numbers<[1], [0], [0], [1], [0, 0, 1, 1], [], []>} : vector<64x128xbf16>, vector<128x128xbf16>, vector<64x128xf32> -> vector<64x128xf32>
    %133 = vector.extract_strided_slice %128 {offsets = [16, 0], sizes = [64, 128], strides = [1, 1]} : vector<96x128xbf16> to vector<64x128xbf16>
    %c1_83 = arith.constant 1 : index
    %c0_84 = arith.constant 0 : index
    %c0_85 = arith.constant 0 : index
    %134 = vector.load %arg14[%c1_83, %c0_84, %c0_85] : memref<3x128x128xbf16, #tpu.memory_space<vmem>>, vector<1x128x128xbf16>
    %135 = vector.shape_cast %134 : vector<1x128x128xbf16> to vector<128x128xbf16>
    %cst_86 = arith.constant dense<0.000000e+00> : vector<64x128xf32>
    %136 = tpu.matmul %133, %135, %cst_86 {dimension_numbers = #tpu.dot_dimension_numbers<[1], [0], [0], [1], [0, 0, 1, 1], [], []>} : vector<64x128xbf16>, vector<128x128xbf16>, vector<64x128xf32> -> vector<64x128xf32>
    %137 = arith.addf %132, %136 : vector<64x128xf32>
    %138 = vector.extract_strided_slice %128 {offsets = [32, 0], sizes = [64, 128], strides = [1, 1]} : vector<96x128xbf16> to vector<64x128xbf16>
    %c2_87 = arith.constant 2 : index
    %c0_88 = arith.constant 0 : index
    %c0_89 = arith.constant 0 : index
    %139 = vector.load %arg14[%c2_87, %c0_88, %c0_89] : memref<3x128x128xbf16, #tpu.memory_space<vmem>>, vector<1x128x128xbf16>
    %140 = vector.shape_cast %139 : vector<1x128x128xbf16> to vector<128x128xbf16>
    %cst_90 = arith.constant dense<0.000000e+00> : vector<64x128xf32>
    %141 = tpu.matmul %138, %140, %cst_90 {dimension_numbers = #tpu.dot_dimension_numbers<[1], [0], [0], [1], [0, 0, 1, 1], [], []>} : vector<64x128xbf16>, vector<128x128xbf16>, vector<64x128xf32> -> vector<64x128xf32>
    %142 = arith.addf %137, %141 : vector<64x128xf32>
    %c0_91 = arith.constant 0 : index
    %c0_92 = arith.constant 0 : index
    %143 = vector.load %arg15[%c0_91, %c0_92] : memref<1x128xf32, #tpu.memory_space<vmem>>, vector<1x128xf32>
    %144 = vector.broadcast %143 : vector<1x128xf32> to vector<64x128xf32>
    %145 = arith.addf %142, %144 : vector<64x128xf32>
    %146 = arith.addf %145, %104 : vector<64x128xf32>
    %cst_93 = arith.constant 0.000000e+00 : f32
    %147 = vector.broadcast %cst_93 : f32 to vector<64x128xf32>
    %148 = arith.maximumf %146, %147 : vector<64x128xf32>
    %149 = vector.extract_strided_slice %148 {offsets = [0, 0], sizes = [16, 128], strides = [1, 1]} : vector<64x128xf32> to vector<16x128xf32>
    %150 = vector.extract_strided_slice %148 {offsets = [16, 0], sizes = [16, 128], strides = [1, 1]} : vector<64x128xf32> to vector<16x128xf32>
    %151 = vector.extract_strided_slice %148 {offsets = [32, 0], sizes = [16, 128], strides = [1, 1]} : vector<64x128xf32> to vector<16x128xf32>
    %152 = vector.extract_strided_slice %148 {offsets = [48, 0], sizes = [16, 128], strides = [1, 1]} : vector<64x128xf32> to vector<16x128xf32>
    %153 = tpu.concatenate %149, %150, %151, %152 in 1 : vector<16x128xf32>, vector<16x128xf32>, vector<16x128xf32>, vector<16x128xf32> -> vector<16x512xf32>
    %154 = arith.truncf %153 : vector<16x512xf32> to vector<16x512xbf16>
    %c0_94 = arith.constant 0 : index
    %c0_95 = arith.constant 0 : index
    %155 = vector.load %arg16[%c0_94, %c0_95] : memref<512x10xbf16, #tpu.memory_space<vmem>>, vector<512x10xbf16>
    %cst_96 = arith.constant dense<0.000000e+00> : vector<16x10xf32>
    %156 = tpu.matmul %154, %155, %cst_96 {dimension_numbers = #tpu.dot_dimension_numbers<[1], [0], [0], [1], [0, 0, 1, 1], [], []>} : vector<16x512xbf16>, vector<512x10xbf16>, vector<16x10xf32> -> vector<16x10xf32>
    %c0_97 = arith.constant 0 : index
    %c0_98 = arith.constant 0 : index
    %157 = vector.load %arg17[%c0_97, %c0_98] : memref<1x10xf32, #tpu.memory_space<vmem>>, vector<1x10xf32>
    %158 = vector.broadcast %157 : vector<1x10xf32> to vector<16x10xf32>
    %159 = arith.addf %156, %158 : vector<16x10xf32>
    %c0_99 = arith.constant 0 : index
    %c0_100 = arith.constant 0 : index
    %160 = vector.load %arg18[%c0_99, %c0_100] : memref<16x10xf32, #tpu.memory_space<vmem>>, vector<16x10xf32>
    tpu.vector_store %arg18[%c0_99, %c0_100], %159 {strides = array<i32>} : memref<16x10xf32, #tpu.memory_space<vmem>>, vector<16x10xf32>,
    return
  }
  func.func @transform_0(%arg0: i32) -> (i32, i32, i32) {
    %c0_i32 = arith.constant 0 : i32
    %c0_i32_0 = arith.constant 0 : i32
    %c0_i32_1 = arith.constant 0 : i32
    return %arg0, %c0_i32, %c0_i32_0 : i32, i32, i32
  }
  func.func @transform_1(%arg0: i32) -> (i32, i32) {
    %c0_i32 = arith.constant 0 : i32
    %c0_i32_0 = arith.constant 0 : i32
    %c0_i32_1 = arith.constant 0 : i32
    return %c0_i32, %c0_i32_0 : i32, i32
  }
  func.func @transform_2(%arg0: i32) -> (i32, i32) {
    %c0_i32 = arith.constant 0 : i32
    %c0_i32_0 = arith.constant 0 : i32
    %c0_i32_1 = arith.constant 0 : i32
    return %c0_i32, %c0_i32_0 : i32, i32
  }
  func.func @transform_3(%arg0: i32) -> (i32, i32) {
    %c0_i32 = arith.constant 0 : i32
    %c0_i32_0 = arith.constant 0 : i32
    %c0_i32_1 = arith.constant 0 : i32
    return %c0_i32, %c0_i32_0 : i32, i32
  }
  func.func @transform_4(%arg0: i32) -> (i32, i32, i32) {
    %c0_i32 = arith.constant 0 : i32
    %c0_i32_0 = arith.constant 0 : i32
    %c0_i32_1 = arith.constant 0 : i32
    %c0_i32_2 = arith.constant 0 : i32
    return %c0_i32, %c0_i32_0, %c0_i32_1 : i32, i32, i32
  }
  func.func @transform_5(%arg0: i32) -> (i32, i32) {
    %c0_i32 = arith.constant 0 : i32
    %c0_i32_0 = arith.constant 0 : i32
    %c0_i32_1 = arith.constant 0 : i32
    return %c0_i32, %c0_i32_0 : i32, i32
  }
  func.func @transform_6(%arg0: i32) -> (i32, i32, i32) {
    %c0_i32 = arith.constant 0 : i32
    %c0_i32_0 = arith.constant 0 : i32
    %c0_i32_1 = arith.constant 0 : i32
    %c0_i32_2 = arith.constant 0 : i32
    return %c0_i32, %c0_i32_0, %c0_i32_1 : i32, i32, i32
  }
  func.func @transform_7(%arg0: i32) -> (i32, i32) {
    %c0_i32 = arith.constant 0 : i32
    %c0_i32_0 = arith.constant 0 : i32
    %c0_i32_1 = arith.constant 0 : i32
    return %c0_i32, %c0_i32_0 : i32, i32
  }
  func.func @transform_8(%arg0: i32) -> (i32, i32, i32) {
    %c0_i32 = arith.constant 0 : i32
    %c0_i32_0 = arith.constant 0 : i32
    %c0_i32_1 = arith.constant 0 : i32
    %c0_i32_2 = arith.constant 0 : i32
    return %c0_i32, %c0_i32_0, %c0_i32_1 : i32, i32, i32
  }
  func.func @transform_9(%arg0: i32) -> (i32, i32) {
    %c0_i32 = arith.constant 0 : i32
    %c0_i32_0 = arith.constant 0 : i32
    %c0_i32_1 = arith.constant 0 : i32
    return %c0_i32, %c0_i32_0 : i32, i32
  }
  func.func @transform_10(%arg0: i32) -> (i32, i32) {
    %c0_i32 = arith.constant 0 : i32
    %c0_i32_0 = arith.constant 0 : i32
    %c0_i32_1 = arith.constant 0 : i32
    return %c0_i32, %c0_i32_0 : i32, i32
  }
  func.func @transform_11(%arg0: i32) -> (i32, i32, i32) {
    %c0_i32 = arith.constant 0 : i32
    %c0_i32_0 = arith.constant 0 : i32
    %c0_i32_1 = arith.constant 0 : i32
    %c0_i32_2 = arith.constant 0 : i32
    return %c0_i32, %c0_i32_0, %c0_i32_1 : i32, i32, i32
  }
  func.func @transform_12(%arg0: i32) -> (i32, i32) {
    %c0_i32 = arith.constant 0 : i32
    %c0_i32_0 = arith.constant 0 : i32
    %c0_i32_1 = arith.constant 0 : i32
    return %c0_i32, %c0_i32_0 : i32, i32
  }
  func.func @transform_13(%arg0: i32) -> (i32, i32, i32) {
    %c0_i32 = arith.constant 0 : i32
    %c0_i32_0 = arith.constant 0 : i32
    %c0_i32_1 = arith.constant 0 : i32
    %c0_i32_2 = arith.constant 0 : i32
    return %c0_i32, %c0_i32_0, %c0_i32_1 : i32, i32, i32
  }
  func.func @transform_14(%arg0: i32) -> (i32, i32) {
    %c0_i32 = arith.constant 0 : i32
    %c0_i32_0 = arith.constant 0 : i32
    %c0_i32_1 = arith.constant 0 : i32
    return %c0_i32, %c0_i32_0 : i32, i32
  }
  func.func @transform_15(%arg0: i32) -> (i32, i32) {
    %c0_i32 = arith.constant 0 : i32
    %c0_i32_0 = arith.constant 0 : i32
    %c0_i32_1 = arith.constant 0 : i32
    return %c0_i32, %c0_i32_0 : i32, i32
  }
  func.func @transform_16(%arg0: i32) -> (i32, i32) {
    %c0_i32 = arith.constant 0 : i32
    %c0_i32_0 = arith.constant 0 : i32
    %c0_i32_1 = arith.constant 0 : i32
    return %c0_i32, %c0_i32_0 : i32, i32
  }
  func.func @transform_17(%arg0: i32) -> (i32, i32) {
    %c0_i32 = arith.constant 0 : i32
    %c0_i32_0 = arith.constant 0 : i32
    return %arg0, %c0_i32 : i32, i32
  }
}

</mosaic_0001>

<bundles_post_ra>
// kernel: net_forward.1
= control target key start
LH: loop header
LB: loop body
LE: loop exit
PB: predicated region body
PF: predicated region fallthrough
CT: control target
= control target key end

     0   :  { %s10410_s24 = smov 0   ;;  %s14208_s0 = inlined_call_operand.vmem [shape: bf16[2,384,140], index: 0, kind: input, shape index: {}]   ;;  %s14209_s1 = inlined_call_operand.vmem [shape: bf16[140,384], index: 1, kind: input, shape index: {}]   ;;  %s14210_s2 = inlined_call_operand.vmem [shape: f32[1,384], index: 2, kind: input, shape index: {}]   ;;  %s14211_s3 = inlined_call_operand.vmem [shape: bf16[368,192], index: 3, kind: input, shape index: {}]   ;;  %s14212_s4 = inlined_call_operand.vmem [shape: bf16[3,192,192], index: 4, kind: input, shape index: {}]   ;;  %s14213_s5 = inlined_call_operand.vmem [shape: f32[1,192], index: 5, kind: input, shape index: {}]   ;;  %s14214_s6 = inlined_call_operand.vmem [shape: bf16[3,192,192], index: 6, kind: input, shape index: {}]   ;;  %s14215_s7 = inlined_call_operand.vmem [shape: f32[1,192], index: 7, kind: input, shape index: {}]   ;;  %s14216_s8 = inlined_call_operand.vmem [shape: bf16[5,192,256], index: 8, kind: input, shape index: {}]   ;;  %s14217_s9 = inlined_call_operand.vmem [shape: f32[1,256], index: 9, kind: input, shape index: {}]   ;;  %s14218_s10 = inlined_call_operand.vmem [shape: bf16[224,128], index: 10, kind: input, shape index: {}]   ;;  %s14219_s11 = inlined_call_operand.vmem [shape: bf16[3,128,128], index: 11, kind: input, shape index: {}]   ;;  %s14220_s12 = inlined_call_operand.vmem [shape: f32[1,128], index: 12, kind: input, shape index: {}]   ;;  %s14221_s13 = inlined_call_operand.vmem [shape: bf16[3,128,128], index: 13, kind: input, shape index: {}]   ;;  %s14222_s14 = inlined_call_operand.vmem [shape: f32[1,128], index: 14, kind: input, shape index: {}]   ;;  %s14223_s15 = inlined_call_operand.vmem [shape: bf16[512,10], index: 15, kind: input, shape index: {}]   ;;  %s14224_s16 = inlined_call_operand.vmem [shape: f32[1,10], index: 16, kind: input, shape index: {}]   ;;  %s14225_s17 = inlined_call_operand.vmem [shape: f32[32,10], index: 17, kind: output, shape index: {}]  }
   0x1   :  { %14307 = sst [smem:[#allocation77_spill]] %s14208_s0 }
   0x2   :  { %14308 = sst [smem:[#allocation78_spill]] %s14209_s1 }
   0x3 LB: > { %14309 = sst [smem:[#allocation2_spill]] %s10314_s24  ;;  %s10416_s25 = sadd.s32 4294967295, %s10314_s24   ;;  %s10314_s24 = sphi %s10410_s24, %s27_s24  }
   0x4   : > { %p8231_p0 = scmp.ge.s32.totalorder %s10314_s24, 1  ;;  %p487_p1 = scmp.lt.s32.totalorder %s10314_s24, 3 }
   0x6   : > { %p488_p2 = pnand %p8231_p0, %p487_p1 }
   0x8   : > { %491 = sbr.rel (%p488_p2) target bundleno = 2687 (0xa7f), region = 88 }
   0xd   : > { %s14310_s28 = sld [smem:[#allocation78_spill]]  ;;  %v14228_v1 = vmov 0   ;;  %p539_p3 = scmp.lt.s32.totalorder %s10416_s25, 1  ;;  %vm1009_vm0 = vcmask 97280   ;;  %vm1082_vm1 = vcmask 1045504   ;;  %vm2022_vm2 = vcmask 916480  }
   0xe   : > { %1365 = vmatprep.subr.bf16.mxu1 %v14228_v1  ;;  %s14311_s29 = sld [smem:[#allocation77_spill]]  ;;  %v9749_v61 = vld [vmem:[%s14211_s3 + $0x70] ss:$8 sps:$4 sm:$0xff]   ;;  %v9751_v62 = vld [vmem:[%s14211_s3 + $0x74] ss:$8 sps:$4 sm:$0xff]   ;;  %s10317_s19 = smov 112  }
   0xf   : > { %s540_s20 = scalar_select %p539_p3, %s10416_s25, 1  ;;  %v9752_v63 = vld [vmem:[%s14211_s3 + $0x160] ss:$8 sps:$4 sm:$0xff]   ;;  %vm3063_vm3 = vcmask 523264   ;;  %vm6725_vm4 = vcmask 785408   ;;  %vm8168_vm5 = vcmask 80896  }
  0x10   : > { %s8233_s22 = sshll.u32 %s10416_s25, 1 }
  0x11   : > { %s9408_s0 = smul.u32 384, %s540_s20  ;;  %p545_p4 = scmp.lt.s32.totalorder %s8233_s22, 3 }
  0x13   : > { %v9641_v0 = vld [vmem:[%s14310_s28 + $0xac] ss:$12 sps:$4 sm:$0xff]   ;;  %v9643_v2 = vld [vmem:[%s14310_s28 + $0xb0] ss:$12 sps:$4 sm:$0xff]   ;;  %v9644_v3 = vld [vmem:[%s14310_s28 + $0xa8] ss:$12 sps:$4 sm:$0xff]  }
  0x14   : > { %1092 = vmatprep.subr.bf16.mxu0 %v9641_v0  ;;  %1366 = vmatpush1.bf16.msra.mxu1 %v9643_v2  ;;  %v9645_v4 = vld [vmem:[%s14310_s28 + $0x94] ss:$12 sps:$4 sm:$0xff]   ;;  %v9647_v5 = vld [vmem:[%s14310_s28 + $0x98] ss:$12 sps:$4 sm:$0xff]   ;;  %v9648_v6 = vld [vmem:[%s14310_s28 + $0x90] ss:$12 sps:$4 sm:$0xff]   ;;  %s10481_s30 = scalar_lea.vmem %s14311_s29, %s9408_s0 }
  0x15   : > { %1093 = vmatpush1.bf16.msra.mxu0 %v9644_v3  ;;  %1367 = vmatprep.subr.bf16.mxu1 %v14228_v1  ;;  %v9649_v7 = vld [vmem:[%s14310_s28 + $0x7c] ss:$12 sps:$4 sm:$0xff]   ;;  %v9651_v8 = vld [vmem:[%s14310_s28 + $0x80] ss:$12 sps:$4 sm:$0xff]   ;;  %v9652_v9 = vld [vmem:[%s14310_s28 + $0x78] ss:$12 sps:$4 sm:$0xff]  }
  0x16   : > { %1094 = vmatprep.subr.bf16.mxu0 %v9645_v4  ;;  %v9653_v10 = vld [vmem:[%s14310_s28 + $0x64] ss:$12 sps:$4 sm:$0xff]   ;;  %v9655_v11 = vld [vmem:[%s14310_s28 + $0x68] ss:$12 sps:$4 sm:$0xff]   ;;  %v9656_v12 = vld [vmem:[%s14310_s28 + $0x60] ss:$12 sps:$4 sm:$0xff]   ;;  %v637_v4 = vlaneseq }
  0x17   : > { %v9657_v13 = vld [vmem:[%s14310_s28 + $0x4c] ss:$12 sps:$4 sm:$0xff]   ;;  %v9659_v14 = vld [vmem:[%s14310_s28 + $0x50] ss:$12 sps:$4 sm:$0xff]   ;;  %v9660_v15 = vld [vmem:[%s14310_s28 + $0x48] ss:$12 sps:$4 sm:$0xff]  }
  0x18   : > { %1368 = vmatpush1.bf16.msra.mxu1 %v9647_v5  ;;  %v9661_v16 = vld [vmem:[%s14310_s28 + $0x34] ss:$12 sps:$4 sm:$0xff]   ;;  %v9663_v17 = vld [vmem:[%s14310_s28 + $0x38] ss:$12 sps:$4 sm:$0xff]   ;;  %v9664_v18 = vld [vmem:[%s14310_s28 + $0x30] ss:$12 sps:$4 sm:$0xff]  }
  0x19   : > { %1095 = vmatpush1.bf16.msra.mxu0 %v9648_v6  ;;  %1369 = vmatprep.subr.bf16.mxu1 %v14228_v1  ;;  %v9665_v19 = vld [vmem:[%s14310_s28 + $0x1c] ss:$12 sps:$4 sm:$0xff]   ;;  %v9679_v20 = vld [vmem:[%s10481_s30 + $0x4] ss:$8 sps:$4 sm:$0xff]   ;;  %v9682_v33 = vld [vmem:[%s10481_s30 + $0x10] ss:$8 sps:$4 sm:$0xff]  }
  0x1a   : > { %1096 = vmatprep.subr.bf16.mxu0 %v9649_v7  ;;  %v9667_v21 = vld [vmem:[%s14310_s28 + $0x20] ss:$12 sps:$4 sm:$0xff]   ;;  %v9668_v22 = vld [vmem:[%s14310_s28 + $0x18] ss:$12 sps:$4 sm:$0xff]   ;;  %8335 = vmatprep.mubr.msk.bf16.mxu1 %vm1009_vm0, %v9679_v20  ;;  %v9671_v24 = vld [vmem:[%s14310_s28 + $0x8] ss:$12 sps:$4 sm:$0xff]  }
  0x1b   : > { %v9669_v23 = vld [vmem:[%s14310_s28 + $0x4] ss:$12 sps:$4 sm:$0xff]   ;;  %8311 = vmatprep.mubr.msk.bf16.mxu0 %vm1009_vm0, %v9679_v20  ;;  %v9672_v25 = vld [vmem:[%s14310_s28] ss:$12 sps:$4 sm:$0xff]   ;;  %v9680_v32 = vld [vmem:[%s10481_s30 + $0x14] ss:$8 sps:$4 sm:$0xff]  }
  0x1c   : > { %1370 = vmatpush1.bf16.msra.mxu1 %v9651_v8  ;;  %v9673_v26 = vld [vmem:[%s14310_s28 + $0xc4] ss:$12 sps:$4 sm:$0x3f]   ;;  %v9675_v27 = vld [vmem:[%s14310_s28 + $0xc8] ss:$12 sps:$4 sm:$0x3f]  }
  0x1d   : > { %1097 = vmatpush1.bf16.msra.mxu0 %v9652_v9  ;;  %1371 = vmatprep.subr.bf16.mxu1 %v14228_v1  ;;  %v9676_v28 = vld [vmem:[%s14310_s28 + $0xc0] ss:$12 sps:$4 sm:$0x3f]   ;;  %v1090_v29 = vsel %vm1082_vm1, %v9675_v27, 0  ;;  %v9686_v36 = vld [vmem:[%s10481_s30 + $0x34] ss:$8 sps:$4 sm:$0xff]  }
  0x1e   : > { %1098 = vmatprep.subr.bf16.mxu0 %v9653_v10  ;;  %v1084_v30 = vsel %vm1082_vm1, %v9676_v28, 0  ;;  %v9677_v31 = vld [vmem:[%s10481_s30] ss:$8 sps:$4 sm:$0xff]   ;;  %v9683_v34 = vld [vmem:[%s10481_s30 + $0x24] ss:$8 sps:$4 sm:$0xff]   ;;  %v10594_v5 = vshrl.u32 %v637_v4, 7 }
  0x1f   : > { %v9685_v35 = vld [vmem:[%s10481_s30 + $0x20] ss:$8 sps:$4 sm:$0xff]   ;;  %v9688_v37 = vld [vmem:[%s10481_s30 + $0x30] ss:$8 sps:$4 sm:$0xff]   ;;  %v9689_v38 = vld [vmem:[%s10481_s30 + $0x44] ss:$8 sps:$4 sm:$0xff]  }
  0x20   : > { %1372 = vmatpush1.bf16.msra.mxu1 %v9655_v11  ;;  %v9691_v39 = vld [vmem:[%s10481_s30 + $0x40] ss:$8 sps:$4 sm:$0xff]   ;;  %v9692_v40 = vld [vmem:[%s10481_s30 + $0x54] ss:$8 sps:$4 sm:$0xff]   ;;  %v9694_v41 = vld [vmem:[%s10481_s30 + $0x50] ss:$8 sps:$4 sm:$0xff]  }
  0x21   : > { %1099 = vmatpush1.bf16.msra.mxu0 %v9656_v12  ;;  %1373 = vmatprep.subr.bf16.mxu1 %v14228_v1  ;;  %v9695_v42 = vld [vmem:[%s10481_s30 + $0x64] ss:$8 sps:$4 sm:$0xff]   ;;  %v9697_v43 = vld [vmem:[%s10481_s30 + $0x60] ss:$8 sps:$4 sm:$0xff]   ;;  %v9698_v44 = vld [vmem:[%s10481_s30 + $0x74] ss:$8 sps:$4 sm:$0xff]  }
  0x22   : > { %1100 = vmatprep.subr.bf16.mxu0 %v9657_v13  ;;  %v9700_v45 = vld [vmem:[%s10481_s30 + $0x70] ss:$8 sps:$4 sm:$0xff]   ;;  %v9701_v46 = vld [vmem:[%s10481_s30 + $0x84] ss:$8 sps:$4 sm:$0xff]   ;;  %v9703_v47 = vld [vmem:[%s10481_s30 + $0x80] ss:$8 sps:$4 sm:$0xff]  }
  0x23   : > { %v9704_v48 = vld [vmem:[%s10481_s30 + $0x94] ss:$8 sps:$4 sm:$0xff]   ;;  %v9706_v49 = vld [vmem:[%s10481_s30 + $0x90] ss:$8 sps:$4 sm:$0xff]   ;;  %v9707_v50 = vld [vmem:[%s10481_s30 + $0xa4] ss:$8 sps:$4 sm:$0xff]  }
  0x24   : > { %1374 = vmatpush1.bf16.msra.mxu1 %v9659_v14  ;;  %v9709_v51 = vld [vmem:[%s10481_s30 + $0xa0] ss:$8 sps:$4 sm:$0xff]   ;;  %v9710_v52 = vld [vmem:[%s10481_s30 + $0xb4] ss:$8 sps:$4 sm:$0xff]   ;;  %v9712_v53 = vld [vmem:[%s10481_s30 + $0xb0] ss:$8 sps:$4 sm:$0xff]  }
  0x25   : > { %1101 = vmatpush1.bf16.msra.mxu0 %v9660_v15  ;;  %1375 = vmatprep.subr.bf16.mxu1 %v14228_v1  ;;  %v9713_v54 = vld [vmem:[%s10481_s30 + $0xc4] ss:$8 sps:$4 sm:$0xff]   ;;  %v9715_v55 = vld [vmem:[%s10481_s30 + $0xc0] ss:$8 sps:$4 sm:$0xff]   ;;  %v9716_v56 = vld [vmem:[%s10481_s30 + $0xd4] ss:$8 sps:$4 sm:$0xff]  }
  0x26   : > { %1102 = vmatprep.subr.bf16.mxu0 %v9661_v16  ;;  %v9718_v57 = vld [vmem:[%s10481_s30 + $0xd0] ss:$8 sps:$4 sm:$0xff]   ;;  %v9719_v58 = vld [vmem:[%s10481_s30 + $0xe4] ss:$8 sps:$4 sm:$0xff]   ;;  %v9721_v59 = vld [vmem:[%s10481_s30 + $0xe0] ss:$8 sps:$4 sm:$0xff]  }
  0x27   : > { %v9722_v60 = vld [vmem:[%s10481_s30 + $0xf4] ss:$8 sps:$4 sm:$0xff]   ;;  %v9754_v0 = vld [vmem:[%s14211_s3 + $0x164] ss:$8 sps:$4 sm:$0xff]   ;;  %v9724_v2 = vld [vmem:[%s10481_s30 + $0xf0] ss:$8 sps:$4 sm:$0xff]  }
  0x28   : > { %1376 = vmatpush1.bf16.msra.mxu1 %v9663_v17  ;;  %v9725_v3 = vld [vmem:[%s10481_s30 + $0x104] ss:$8 sps:$4 sm:$0xff]   ;;  %v9755_v6 = vld [vmem:[%s14211_s3 + $0x60] ss:$8 sps:$4 sm:$0xff]   ;;  %v9728_v9 = vld [vmem:[%s10481_s30 + $0x114] ss:$8 sps:$4 sm:$0xff]  }
  0x29   : > { %1103 = vmatpush1.bf16.msra.mxu0 %v9664_v18  ;;  %1377 = vmatprep.subr.bf16.mxu1 %v14228_v1  ;;  %v9757_v7 = vld [vmem:[%s14211_s3 + $0x64] ss:$8 sps:$4 sm:$0xff]   ;;  %v9727_v8 = vld [vmem:[%s10481_s30 + $0x100] ss:$8 sps:$4 sm:$0xff]   ;;  %v9730_v10 = vld [vmem:[%s10481_s30 + $0x110] ss:$8 sps:$4 sm:$0xff]  }
  0x2a   : > { %1104 = vmatprep.subr.bf16.mxu0 %v9665_v19  ;;  %v9731_v11 = vld [vmem:[%s10481_s30 + $0x124] ss:$8 sps:$4 sm:$0xff]   ;;  %v9758_v12 = vld [vmem:[%s14211_s3 + $0x50] ss:$8 sps:$4 sm:$0xff]   ;;  %v9760_v13 = vld [vmem:[%s14211_s3 + $0x54] ss:$8 sps:$4 sm:$0xff]  }
  0x2b   : > { %v9761_v14 = vld [vmem:[%s14211_s3 + $0x150] ss:$8 sps:$4 sm:$0xff]   ;;  %v9763_v15 = vld [vmem:[%s14211_s3 + $0x154] ss:$8 sps:$4 sm:$0xff]   ;;  %v9733_v16 = vld [vmem:[%s10481_s30 + $0x120] ss:$8 sps:$4 sm:$0xff]  }
  0x2c   : > { %1378 = vmatpush1.bf16.msra.mxu1 %v9667_v21  ;;  %v9734_v17 = vld [vmem:[%s10481_s30 + $0x134] ss:$8 sps:$4 sm:$0xff]   ;;  %v9736_v18 = vld [vmem:[%s10481_s30 + $0x130] ss:$8 sps:$4 sm:$0xff]   ;;  %v9764_v19 = vld [vmem:[%s14211_s3 + $0x40] ss:$8 sps:$4 sm:$0xff]  }
  0x2d   : > { %1105 = vmatpush1.bf16.msra.mxu0 %v9668_v22  ;;  %1379 = vmatprep.subr.bf16.mxu1 %v14228_v1  ;;  %v9766_v20 = vld [vmem:[%s14211_s3 + $0x44] ss:$8 sps:$4 sm:$0xff]   ;;  %v9739_v22 = vld [vmem:[%s10481_s30 + $0x140] ss:$8 sps:$4 sm:$0xff]   ;;  %s14613_s22 = smov (!%p545_p4, %s8233_s22), 3 }
  0x2e   : > { %1106 = vmatprep.subr.bf16.mxu0 %v9669_v23  ;;  %v9737_v21 = vld [vmem:[%s10481_s30 + $0x144] ss:$8 sps:$4 sm:$0xff]   ;;  %v9740_v23 = vld [vmem:[%s10481_s30 + $0x154] ss:$8 sps:$4 sm:$0xff]   ;;  %v9770_v28 = vld [vmem:[%s14211_s3 + $0x140] ss:$8 sps:$4 sm:$0xff]  }
  0x2f   : > { %v9743_v27 = vld [vmem:[%s10481_s30 + $0x164] ss:$8 sps:$4 sm:$0xff]   ;;  %v9803_v4 = vld [vmem:[%s14211_s3 + $0xa0] ss:$8 sps:$4 sm:$0xff]   ;;  %s8234_s20 = sshll.u32 %s14613_s22, 3 }
  0x30   : > { %1380 = vmatpush1.bf16.msra.mxu1 %v9671_v24  ;;  %v9767_v24 = vld [vmem:[%s14211_s3 + $0x30] ss:$8 sps:$4 sm:$0xff]   ;;  %s548_s25 = scalar_lea.vmem %s14225_s17, %s8234_s20 }
  0x31   : > { %1107 = vmatpush1.bf16.msra.mxu0 %v9672_v25  ;;  %1395 = vmatprep.subr.bf16.mxu1 %v14228_v1  ;;  %v9769_v25 = vld [vmem:[%s14211_s3 + $0x34] ss:$8 sps:$4 sm:$0xff]  }
  0x32   : > { %8310 = vmatprep.subr.msk.bf16.mxu0 %vm1082_vm1, %v9673_v26  ;;  %v9742_v26 = vld [vmem:[%s10481_s30 + $0x150] ss:$8 sps:$4 sm:$0xff]  }
  0x34   : > { %1396 = vmatpush2.bf16.msra.mxu1 %v1090_v29  ;;  %v9772_v29 = vld [vmem:[%s14211_s3 + $0x144] ss:$8 sps:$4 sm:$0xff]  }
  0x35   : > { %1123 = vmatpush2.bf16.msra.mxu0 %v1084_v30  ;;  %2718 = vmatprep.subr.bf16.mxu1 %v9754_v0  ;;  %v9775_v30 = vld [vmem:[%s14211_s3 + $0x24] ss:$8 sps:$4 sm:$0xff]  }
  0x36   : > { %2563 = vmatprep.subr.bf16.mxu0 %v9751_v62  ;;  %v9805_v0 = vld [vmem:[%s14211_s3 + $0xa4] ss:$8 sps:$4 sm:$0xff]  }
  0x37   : > { %1398 = vmatmul.mubr.bf16.vlgmr.msra.gmra.mxu1 %v9677_v31 }
  0x38   : > { %1125 = vmatmul.mubr.bf16.vlgmr.msra.gmra.mxu0 %v9677_v31  ;;  %8336 = vmatprep.mubr.msk.bf16.mxu1 %vm1009_vm0, %v9680_v32  ;;  %v9773_v31 = vld [vmem:[%s14211_s3 + $0x20] ss:$8 sps:$4 sm:$0xff]  }
  0x39   : > { %8312 = vmatprep.mubr.msk.bf16.mxu0 %vm1009_vm0, %v9680_v32  ;;  %2564 = vmatpush1.bf16.msra.mxu0 %v9749_v61  ;;  %v9778_v32 = vld [vmem:[%s14211_s3 + $0x14] ss:$8 sps:$4 sm:$0xff]   ;;  %v9800_v61 = vld [vmem:[%s14211_s3 + $0x120] ss:$8 sps:$4 sm:$0xff]  }
  0x3a   : > { %2719 = vmatpush1.bf16.msra.mxu1 %v9752_v63  ;;  %2565 = vmatprep.subr.bf16.mxu0 %v9757_v7 }
  0x3b   : > { %2720 = vmatprep.subr.bf16.mxu1 %v9763_v15 }
  0x3d   : > { %2566 = vmatpush1.bf16.msra.mxu0 %v9755_v6 }
  0x3e   : > { %2567 = vmatprep.subr.bf16.mxu0 %v9760_v13  ;;  %2721 = vmatpush1.bf16.msra.mxu1 %v9761_v14 }
  0x3f   : > { %1406 = vmatmul.mubr.bf16.gmra.mxu1 %v9682_v33  ;;  %2722 = vmatprep.subr.bf16.mxu1 %v9772_v29  ;;  %v9814_v29 = vld [vmem:[%s14211_s3 + $0x104] ss:$8 sps:$4 sm:$0xff]  }
  0x40   : > { %1135 = vmatmul.mubr.bf16.gmra.mxu0 %v9682_v33  ;;  %8337 = vmatprep.mubr.msk.bf16.mxu1 %vm1009_vm0, %v9683_v34  ;;  %v9745_v33 = vld [vmem:[%s10481_s30 + $0x160] ss:$8 sps:$4 sm:$0xff]  }
  0x41   : > { %8313 = vmatprep.mubr.msk.bf16.mxu0 %vm1009_vm0, %v9683_v34  ;;  %2568 = vmatpush1.bf16.msra.mxu0 %v9758_v12  ;;  %v9776_v34 = vld [vmem:[%s14211_s3 + $0x10] ss:$8 sps:$4 sm:$0xff]  }
  0x42   : > { %2569 = vmatprep.subr.bf16.mxu0 %v9766_v20  ;;  %2723 = vmatpush1.bf16.msra.mxu1 %v9770_v28  ;;  %v9806_v12 = vld [vmem:[%s14211_s3 + $0x110] ss:$8 sps:$4 sm:$0xff]  }
  0x45   : > { %2570 = vmatpush1.bf16.msra.mxu0 %v9764_v19 }
  0x46   : > { %2571 = vmatprep.subr.bf16.mxu0 %v9769_v25 }
  0x47   : > { %1414 = vmatmul.mubr.bf16.gmra.mxu1 %v9685_v35 }
  0x48   : > { %1145 = vmatmul.mubr.bf16.gmra.mxu0 %v9685_v35  ;;  %8338 = vmatprep.mubr.msk.bf16.mxu1 %vm1009_vm0, %v9686_v36  ;;  %v9746_v35 = vld [vmem:[%s10481_s30 + $0x174] ss:$8 sps:$4 sm:$0xff]  }
  0x49   : > { %8314 = vmatprep.mubr.msk.bf16.mxu0 %vm1009_vm0, %v9686_v36  ;;  %2572 = vmatpush1.bf16.msra.mxu0 %v9767_v24  ;;  %v9781_v36 = vld [vmem:[%s14211_s3 + $0x4] ss:$8 sps:$4 sm:$0xff]  }
  0x4a   : > { %2573 = vmatprep.subr.bf16.mxu0 %v9775_v30 }
  0x4d   : > { %2574 = vmatpush1.bf16.msra.mxu0 %v9773_v31 }
  0x4e   : > { %2575 = vmatprep.subr.bf16.mxu0 %v9778_v32 }
  0x4f   : > { %1422 = vmatmul.mubr.bf16.gmra.mxu1 %v9688_v37 }
  0x50   : > { %1155 = vmatmul.mubr.bf16.gmra.mxu0 %v9688_v37  ;;  %8339 = vmatprep.mubr.msk.bf16.mxu1 %vm1009_vm0, %v9689_v38  ;;  %v9779_v37 = vld [vmem:[%s14211_s3] ss:$8 sps:$4 sm:$0xff]  }
  0x51   : > { %8315 = vmatprep.mubr.msk.bf16.mxu0 %vm1009_vm0, %v9689_v38  ;;  %2576 = vmatpush1.bf16.msra.mxu0 %v9776_v34  ;;  %v9784_v38 = vld [vmem:[%s14211_s3 + $0xf4] ss:$8 sps:$4 sm:$0xff]  }
  0x52   : > { %2577 = vmatprep.subr.bf16.mxu0 %v9781_v36 }
  0x55   : > { %2578 = vmatpush1.bf16.msra.mxu0 %v9779_v37 }
  0x56   : > { %2579 = vmatprep.subr.bf16.mxu0 %v9784_v38 }
  0x57   : > { %1430 = vmatmul.mubr.bf16.gmra.mxu1 %v9691_v39 }
  0x58   : > { %1165 = vmatmul.mubr.bf16.gmra.mxu0 %v9691_v39  ;;  %8340 = vmatprep.mubr.msk.bf16.mxu1 %vm1009_vm0, %v9692_v40  ;;  %v9748_v39 = vld [vmem:[%s10481_s30 + $0x170] ss:$8 sps:$4 sm:$0xff]  }
  0x59   : > { %8316 = vmatprep.mubr.msk.bf16.mxu0 %vm1009_vm0, %v9692_v40  ;;  %v9782_v40 = vld [vmem:[%s14211_s3 + $0xf0] ss:$8 sps:$4 sm:$0xff]  }
  0x5a   : > { %2580 = vmatpush2.bf16.msra.mxu0 %v9782_v40  ;;  %v9817_v40 = vld [vmem:[%s14211_s3 + $0x84] ss:$8 sps:$4 sm:$0xff]  }
  0x5f   : > { %1438 = vmatmul.mubr.bf16.gmra.mxu1 %v9694_v41 }
  0x60   : > { %1175 = vmatmul.mubr.bf16.gmra.mxu0 %v9694_v41  ;;  %8341 = vmatprep.mubr.msk.bf16.mxu1 %vm1009_vm0, %v9695_v42  ;;  %v9787_v41 = vld [vmem:[%s14211_s3 + $0xe4] ss:$8 sps:$4 sm:$0xff]  }
  0x61   : > { %8317 = vmatprep.mubr.msk.bf16.mxu0 %vm1009_vm0, %v9695_v42  ;;  %v9785_v42 = vld [vmem:[%s14211_s3 + $0xe0] ss:$8 sps:$4 sm:$0xff]   ;;  %2581 = vmatprep.subr.bf16.mxu0 %v9787_v41 }
  0x62   : > { %2582 = vmatpush2.bf16.msra.mxu0 %v9785_v42 }
  0x67   : > { %1446 = vmatmul.mubr.bf16.gmra.mxu1 %v9697_v43 }
  0x68   : > { %1185 = vmatmul.mubr.bf16.gmra.mxu0 %v9697_v43  ;;  %8342 = vmatprep.mubr.msk.bf16.mxu1 %vm1009_vm0, %v9698_v44  ;;  %v9790_v43 = vld [vmem:[%s14211_s3 + $0xd4] ss:$8 sps:$4 sm:$0xff]  }
  0x69   : > { %8318 = vmatprep.mubr.msk.bf16.mxu0 %vm1009_vm0, %v9698_v44  ;;  %v9788_v44 = vld [vmem:[%s14211_s3 + $0xd0] ss:$8 sps:$4 sm:$0xff]   ;;  %2583 = vmatprep.subr.bf16.mxu0 %v9790_v43 }
  0x6a   : > { %2584 = vmatpush2.bf16.msra.mxu0 %v9788_v44 }
  0x6f   : > { %1454 = vmatmul.mubr.bf16.gmra.mxu1 %v9700_v45 }
  0x70   : > { %1195 = vmatmul.mubr.bf16.gmra.mxu0 %v9700_v45  ;;  %8343 = vmatprep.mubr.msk.bf16.mxu1 %vm1009_vm0, %v9701_v46  ;;  %v9796_v45 = vld [vmem:[%s14211_s3 + $0xc4] ss:$8 sps:$4 sm:$0xff]  }
  0x71   : > { %8319 = vmatprep.mubr.msk.bf16.mxu0 %vm1009_vm0, %v9701_v46  ;;  %v9794_v46 = vld [vmem:[%s14211_s3 + $0xc0] ss:$8 sps:$4 sm:$0xff]   ;;  %2585 = vmatprep.subr.bf16.mxu0 %v9796_v45 }
  0x72   : > { %2586 = vmatpush2.bf16.msra.mxu0 %v9794_v46  ;;  %v9815_v46 = vld [vmem:[%s14211_s3 + $0x80] ss:$8 sps:$4 sm:$0xff]  }
  0x77   : > { %1462 = vmatmul.mubr.bf16.gmra.mxu1 %v9703_v47 }
  0x78   : > { %1205 = vmatmul.mubr.bf16.gmra.mxu0 %v9703_v47  ;;  %8344 = vmatprep.mubr.msk.bf16.mxu1 %vm1009_vm0, %v9704_v48  ;;  %v9793_v47 = vld [vmem:[%s14211_s3 + $0x134] ss:$8 sps:$4 sm:$0xff]  }
  0x79   : > { %8320 = vmatprep.mubr.msk.bf16.mxu0 %vm1009_vm0, %v9704_v48  ;;  %2724 = vmatprep.subr.bf16.mxu1 %v9793_v47 }
  0x7f   : > { %1470 = vmatmul.mubr.bf16.gmra.mxu1 %v9706_v49 }
  0x80   : > { %1215 = vmatmul.mubr.bf16.gmra.mxu0 %v9706_v49  ;;  %8345 = vmatprep.mubr.msk.bf16.mxu1 %vm1009_vm0, %v9707_v50  ;;  %v9791_v49 = vld [vmem:[%s14211_s3 + $0x130] ss:$8 sps:$4 sm:$0xff]  }
  0x81   : > { %8321 = vmatprep.mubr.msk.bf16.mxu0 %vm1009_vm0, %v9707_v50  ;;  %v647_v50 = vsub.s32 2, %v10594_v5  ;;  %2725 = vmatpush1.bf16.msra.mxu1 %v9791_v49 }
  0x87   : > { %1478 = vmatmul.mubr.bf16.gmra.mxu1 %v9709_v51 }
  0x88   : > { %1225 = vmatmul.mubr.bf16.gmra.mxu0 %v9709_v51  ;;  %8346 = vmatprep.mubr.msk.bf16.mxu1 %vm1009_vm0, %v9710_v52 }
  0x89   : > { %8322 = vmatprep.mubr.msk.bf16.mxu0 %vm1009_vm0, %v9710_v52  ;;  %v9799_v52 = vld [vmem:[%s14211_s3 + $0xb4] ss:$8 sps:$4 sm:$0xff]  }
  0x8a   : > { %2587 = vmatprep.subr.bf16.mxu0 %v9799_v52 }
  0x8f   : > { %1486 = vmatmul.mubr.bf16.gmra.mxu1 %v9712_v53 }
  0x90   : > { %1235 = vmatmul.mubr.bf16.gmra.mxu0 %v9712_v53  ;;  %8347 = vmatprep.mubr.msk.bf16.mxu1 %vm1009_vm0, %v9713_v54 }
  0x91   : > { %8323 = vmatprep.mubr.msk.bf16.mxu0 %vm1009_vm0, %v9713_v54  ;;  %v10717_v54 = vsub.s32 1, %v10594_v5 }
  0x93   : > { %14312 = vst [vmem:[#allocation3_spill] sm:$0xff] %v10717_v54 }
  0x97   : > { %1494 = vmatmul.mubr.bf16.gmra.mxu1 %v9715_v55 }
  0x98   : > { %1245 = vmatmul.mubr.bf16.gmra.mxu0 %v9715_v55  ;;  %8348 = vmatprep.mubr.msk.bf16.mxu1 %vm1009_vm0, %v9716_v56  ;;  %v9797_v55 = vld [vmem:[%s14211_s3 + $0xb0] ss:$8 sps:$4 sm:$0xff]  }
  0x99   : > { %8324 = vmatprep.mubr.msk.bf16.mxu0 %vm1009_vm0, %v9716_v56  ;;  %v10723_v56 = vsub.s32 0, %v10594_v5  ;;  %2588 = vmatpush2.bf16.msra.mxu0 %v9797_v55 }
  0x9a   : > { %2589 = vmatprep.subr.bf16.mxu0 %v9805_v0 }
  0x9b   : > { %14313 = vst [vmem:[#allocation4_spill] sm:$0xff] %v10723_v56 }
  0x9d   : > { %2590 = vmatpush2.bf16.msra.mxu0 %v9803_v4 }
  0x9f   : > { %1502 = vmatmul.mubr.bf16.gmra.mxu1 %v9718_v57 }
  0xa0   : > { %1255 = vmatmul.mubr.bf16.gmra.mxu0 %v9718_v57  ;;  %8349 = vmatprep.mubr.msk.bf16.mxu1 %vm1009_vm0, %v9719_v58 }
  0xa1   : > { %8325 = vmatprep.mubr.msk.bf16.mxu0 %vm1009_vm0, %v9719_v58  ;;  %v9802_v58 = vld [vmem:[%s14211_s3 + $0x124] ss:$8 sps:$4 sm:$0xff]  }
  0xa2   : > { %2726 = vmatprep.subr.bf16.mxu1 %v9802_v58 }
  0xa3   : > { %2727 = vmatpush1.bf16.msra.mxu1 %v9800_v61 }
  0xa7   : > { %1510 = vmatmul.mubr.bf16.gmra.mxu1 %v9721_v59 }
  0xa8   : > { %1265 = vmatmul.mubr.bf16.gmra.mxu0 %v9721_v59  ;;  %8350 = vmatprep.mubr.msk.bf16.mxu1 %vm1009_vm0, %v9722_v60  ;;  %v635_v59 = vld [vmem:[%s14210_s2] sm:$0x7] }
  0xa9   : > { %8326 = vmatprep.mubr.msk.bf16.mxu0 %vm1009_vm0, %v9722_v60  ;;  %v10734_v62 = vrot.slane %v635_v59, %v647_v50  ;;  %v10746_v5 = vrot.slane %v635_v59, %v10723_v56 }
  0xaf   : > { %1518 = vmatmul.mubr.bf16.gmra.mxu1 %v9724_v2 }
  0xb0   : > { %1275 = vmatmul.mubr.bf16.gmra.mxu0 %v9724_v2  ;;  %8351 = vmatprep.mubr.msk.bf16.mxu1 %vm1009_vm0, %v9725_v3  ;;  %v10740_v2 = vrot.slane %v635_v59, %v10717_v54 }
  0xb1   : > { %8327 = vmatprep.mubr.msk.bf16.mxu0 %vm1009_vm0, %v9725_v3 }
  0xb7   : > { %1526 = vmatmul.mubr.bf16.gmra.mxu1 %v9727_v8 }
  0xb8   : > { %1285 = vmatmul.mubr.bf16.gmra.mxu0 %v9727_v8  ;;  %8352 = vmatprep.mubr.msk.bf16.mxu1 %vm1009_vm0, %v9728_v9  ;;  %v9808_v8 = vld [vmem:[%s14211_s3 + $0x114] ss:$8 sps:$4 sm:$0xff]  }
  0xb9   : > { %8328 = vmatprep.mubr.msk.bf16.mxu0 %vm1009_vm0, %v9728_v9  ;;  %2728 = vmatprep.subr.bf16.mxu1 %v9808_v8 }
  0xba   : > { %2729 = vmatpush1.bf16.msra.mxu1 %v9806_v12 }
  0xbb   : > { %2730 = vmatprep.subr.bf16.mxu1 %v9814_v29 }
  0xbf   : > { %1534 = vmatmul.mubr.bf16.gmra.mxu1 %v9730_v10 }
  0xc0   : > { %1295 = vmatmul.mubr.bf16.gmra.mxu0 %v9730_v10  ;;  %8353 = vmatprep.mubr.msk.bf16.mxu1 %vm1009_vm0, %v9731_v11 }
  0xc1   : > { %8329 = vmatprep.mubr.msk.bf16.mxu0 %vm1009_vm0, %v9731_v11 }
  0xc7   : > { %1542 = vmatmul.mubr.bf16.gmra.mxu1 %v9733_v16 }
  0xc8   : > { %1305 = vmatmul.mubr.bf16.gmra.mxu0 %v9733_v16  ;;  %8354 = vmatprep.mubr.msk.bf16.mxu1 %vm1009_vm0, %v9734_v17  ;;  %v9811_v16 = vld [vmem:[%s14211_s3 + $0x94] ss:$8 sps:$4 sm:$0xff]  }
  0xc9   : > { %8330 = vmatprep.mubr.msk.bf16.mxu0 %vm1009_vm0, %v9734_v17  ;;  %2591 = vmatprep.subr.bf16.mxu0 %v9811_v16 }
  0xcf   : > { %1550 = vmatmul.mubr.bf16.gmra.mxu1 %v9736_v18 }
  0xd0   : > { %1315 = vmatmul.mubr.bf16.gmra.mxu0 %v9736_v18  ;;  %8355 = vmatprep.mubr.msk.bf16.mxu1 %vm1009_vm0, %v9737_v21 }
  0xd1   : > { %8331 = vmatprep.mubr.msk.bf16.mxu0 %vm1009_vm0, %v9737_v21  ;;  %v9809_v21 = vld [vmem:[%s14211_s3 + $0x90] ss:$8 sps:$4 sm:$0xff]  }
  0xd2   : > { %2592 = vmatpush2.bf16.msra.mxu0 %v9809_v21 }
  0xd3   : > { %2593 = vmatprep.subr.bf16.mxu0 %v9817_v40 }
  0xd6   : > { %2594 = vmatpush2.bf16.msra.mxu0 %v9815_v46 }
  0xd7   : > { %1558 = vmatmul.mubr.bf16.gmra.mxu1 %v9739_v22 }
  0xd8   : > { %1325 = vmatmul.mubr.bf16.gmra.mxu0 %v9739_v22  ;;  %8356 = vmatprep.mubr.msk.bf16.mxu1 %vm1009_vm0, %v9740_v23 }
  0xd9   : > { %8332 = vmatprep.mubr.msk.bf16.mxu0 %vm1009_vm0, %v9740_v23 }
  0xdf   : > { %1566 = vmatmul.mubr.bf16.gmra.mxu1 %v9742_v26 }
  0xe0   : > { %1335 = vmatmul.mubr.bf16.gmra.mxu0 %v9742_v26  ;;  %8357 = vmatprep.mubr.msk.bf16.mxu1 %vm1009_vm0, %v9743_v27 }
  0xe1   : > { %8333 = vmatprep.mubr.msk.bf16.mxu0 %vm1009_vm0, %v9743_v27 }
  0xe7   : > { %1574 = vmatmul.mubr.bf16.gmra.mxu1 %v9745_v33 }
  0xe8   : > { %1345 = vmatmul.mubr.bf16.gmra.mxu0 %v9745_v33  ;;  %8358 = vmatprep.mubr.msk.bf16.mxu1 %vm1009_vm0, %v9746_v35 }
  0xe9   : > { %8334 = vmatprep.mubr.msk.bf16.mxu0 %vm1009_vm0, %v9746_v35  ;;  %v9812_v35 = vld [vmem:[%s14211_s3 + $0x100] ss:$8 sps:$4 sm:$0xff]  }
  0xea   : > { %2731 = vmatpush1.bf16.msra.mxu1 %v9812_v35 }
  0xef   : > { %1582 = vmatmul.mubr.bf16.gmra.mxu1 %v9748_v39 }
  0xf0   : > { %1355 = vmatmul.mubr.bf16.gmra.mxu0 %v9748_v39  ;;  %2748 = vmatprep.mubr.bf16.mxu1 %v14228_v1 }
  0xf7   : > { %v1399_v48 = vpop.f32.mrf.mxu1 }
  0xf8   : > { %v1126_v51 = vpop.f32.mrf.mxu0  ;;  %v1400_v9 = vadd.f32 %v1399_v48, %v10734_v62 }
  0xf9   : > { %v1401_v53 = vpop.f32.mrf.mxu1  ;;  %v1127_v17 = vadd.f32 %v1126_v51, %v10746_v5 }
  0xfa   : > { %v1128_v57 = vpop.f32.mrf.mxu0  ;;  %v1592_v24 = vmax.f32 %v1400_v9, 0.0 }
  0xfb   : > { %v1402_v60 = vpop.f32.mrf.mxu1  ;;  %v1129_v13 = vadd.f32 %v1128_v57, %v10740_v2  ;;  %v1590_v36 = vmax.f32 %v1127_v17, 0.0 }
  0xfc   : > { %v1130_v63 = vpop.f32.mrf.mxu0  ;;  %v1403_v25 = vadd.f32 %v1402_v60, %v10734_v62 }
  0xfd   : > { %v1404_v3 = vpop.f32.mrf.mxu1  ;;  %v1131_v18 = vadd.f32 %v1130_v63, %v10746_v5  ;;  %v1591_v30 = vmax.f32 %v1129_v13, 0.0 }
  0xfe   : > { %v1132_v6 = vpop.f32.mrf.mxu0  ;;  %v1595_v47 = vmax.f32 %v1403_v25, 0.0 }
  0xff   : > { %v1407_v7 = vpop.f32.mrf.mxu1  ;;  %v1133_v26 = vadd.f32 %v1132_v6, %v10740_v2  ;;  %v1593_v37 = vmax.f32 %v1131_v18, 0.0 }
 0x100   : > { %v1408_v10 = vadd.f32 %v1407_v7, %v10734_v62  ;;  %v1136_v11 = vpop.f32.mrf.mxu0 }
 0x101   : > { %v1137_v14 = vadd.f32 %v1136_v11, %v10746_v5  ;;  %v1409_v15 = vpop.f32.mrf.mxu1  ;;  %v1594_v48 = vmax.f32 %v1133_v26, 0.0 }
 0x102   : > { %v1598_v19 = vmax.f32 %v1408_v10, 0.0  ;;  %v1138_v20 = vpop.f32.mrf.mxu0 }
 0x103   : > { %v1139_v22 = vadd.f32 %v1138_v20, %v10740_v2  ;;  %v1410_v23 = vpop.f32.mrf.mxu1  ;;  %v1596_v31 = vmax.f32 %v1137_v14, 0.0 }
 0x104   : > { %v1411_v27 = vadd.f32 %v1410_v23, %v10734_v62  ;;  %v1140_v28 = vpop.f32.mrf.mxu0  ;;  %v10777_v38 = vmax.f32 %v1592_v24, %v1598_v19 }
 0x105   : > { %v1597_v32 = vmax.f32 %v1139_v22, 0.0  ;;  %v1141_v33 = vadd.f32 %v1140_v28, %v10746_v5  ;;  %v1412_v34 = vpop.f32.mrf.mxu1  ;;  %v10788_v50 = vmax.f32 %v1590_v36, %v1596_v31 }
 0x106   : > { %v1142_v39 = vpop.f32.mrf.mxu0  ;;  %v1601_v42 = vmax.f32 %v1411_v27, 0.0 }
 0x107   : > { %v10782_v41 = vmax.f32 %v1591_v30, %v1597_v32  ;;  %v1599_v43 = vmax.f32 %v1141_v33, 0.0  ;;  %v1143_v44 = vadd.f32 %v1142_v39, %v10740_v2  ;;  %v1415_v45 = vpop.f32.mrf.mxu1 }
 0x108   : > { %v1146_v49 = vpop.f32.mrf.mxu0  ;;  %v10794_v58 = vmax.f32 %v1595_v47, %v1601_v42  ;;  %v1416_v7 = vadd.f32 %v1415_v45, %v10734_v62 }
 0x109   : > { %v10790_v51 = vmax.f32 %v1593_v37, %v1599_v43  ;;  %v1600_v52 = vmax.f32 %v1143_v44, 0.0  ;;  %v1417_v53 = vpop.f32.mrf.mxu1  ;;  %v9421_v55 = vpack.i.bf16 %v10777_v38, %v10782_v41  ;;  %v1147_v19 = vadd.f32 %v1146_v49, %v10746_v5 }
 0x10a   : > { %v1148_v57 = vpop.f32.mrf.mxu0  ;;  %v1604_v18 = vmax.f32 %v1416_v7, 0.0 }
 0x10b   : > { %v10796_v59 = vmax.f32 %v1594_v48, %v1600_v52  ;;  %v1418_v60 = vpop.f32.mrf.mxu1  ;;  %9422 = vrot.lane.b32.xlu0 %v9421_v55, %s10317_s19  ;;  %v9431_v61 = vpack.i.bf16 %v10790_v51, %v10788_v50  ;;  %v1149_v10 = vadd.f32 %v1148_v57, %v10740_v2  ;;  %v1602_v37 = vmax.f32 %v1147_v19, 0.0 }
 0x10c   : > { %v1150_v63 = vpop.f32.mrf.mxu0  ;;  %v1419_v20 = vadd.f32 %v1418_v60, %v10734_v62 }
 0x10d   : > { %v1420_v0 = vpop.f32.mrf.mxu1  ;;  %9432 = vrot.lane.b32.xlu1 %v9431_v61, %s10317_s19  ;;  %v9426_v3 = vpack.i.bf16 %v10794_v58, %v10796_v59  ;;  %v1151_v12 = vadd.f32 %v1150_v63, %v10746_v5  ;;  %v1603_v23 = vmax.f32 %v1149_v10, 0.0 }
 0x10e   : > { %v1152_v4 = vpop.f32.mrf.mxu0  ;;  %v1607_v39 = vmax.f32 %v1419_v20, 0.0 }
 0x10f   : > { %v1423_v6 = vpop.f32.mrf.mxu1  ;;  %9427 = vrot.lane.b32.xlu0 %v9426_v3, %s10317_s19  ;;  %v1153_v24 = vadd.f32 %v1152_v4, %v10740_v2  ;;  %v1605_v28 = vmax.f32 %v1151_v12, 0.0 }
 0x110   : > { %v1424_v8 = vadd.f32 %v1423_v6, %v10734_v62  ;;  %v1156_v9 = vpop.f32.mrf.mxu0 }
 0x111   : > { %v1425_v11 = vpop.f32.mrf.mxu1  ;;  %v1157_v14 = vadd.f32 %v1156_v9, %v10746_v5  ;;  %v1606_v42 = vmax.f32 %v1153_v24, 0.0 }
 0x112   : > { %v1610_v13 = vmax.f32 %v1424_v8, 0.0  ;;  %v1158_v15 = vpop.f32.mrf.mxu0 }
 0x113   : > { %v1159_v16 = vadd.f32 %v1158_v15, %v10740_v2  ;;  %v1426_v17 = vpop.f32.mrf.mxu1  ;;  %v1608_v30 = vmax.f32 %v1157_v14, 0.0 }
 0x114   : > { %v1427_v21 = vadd.f32 %v1426_v17, %v10734_v62  ;;  %v1160_v22 = vpop.f32.mrf.mxu0  ;;  %v10816_v29 = vmax.f32 %v1604_v18, %v1610_v13 }
 0x115   : > { %v1609_v25 = vmax.f32 %v1159_v16, 0.0  ;;  %v1161_v26 = vadd.f32 %v1160_v22, %v10746_v5  ;;  %v1428_v27 = vpop.f32.mrf.mxu1  ;;  %v10825_v48 = vmax.f32 %v1602_v37, %v1608_v30 }
 0x116   : > { %v1162_v31 = vpop.f32.mrf.mxu0  ;;  %v1613_v33 = vmax.f32 %v1427_v21, 0.0 }
 0x117   : > { %v10818_v32 = vmax.f32 %v1603_v23, %v1609_v25  ;;  %v1611_v34 = vmax.f32 %v1161_v26, 0.0  ;;  %v1163_v35 = vadd.f32 %v1162_v31, %v10740_v2  ;;  %v1431_v36 = vpop.f32.mrf.mxu1 }
 0x118   : > { %v1166_v40 = vpop.f32.mrf.mxu0  ;;  %v10827_v49 = vmax.f32 %v1607_v39, %v1613_v33  ;;  %v1432_v3 = vadd.f32 %v1431_v36, %v10734_v62 }
 0x119   : > { %v10821_v43 = vmax.f32 %v1605_v28, %v1611_v34  ;;  %v1612_v44 = vmax.f32 %v1163_v35, 0.0  ;;  %v1433_v45 = vpop.f32.mrf.mxu1  ;;  %v9436_v46 = vpack.i.bf16 %v10816_v29, %v10818_v32  ;;  %v1167_v16 = vadd.f32 %v1166_v40, %v10746_v5 }
 0x11a   : > { %v1168_v47 = vpop.f32.mrf.mxu0  ;;  %v1616_v15 = vmax.f32 %v1432_v3, 0.0 }
 0x11b   : > { %v10829_v52 = vmax.f32 %v1606_v42, %v1612_v44  ;;  %v1434_v53 = vpop.f32.mrf.mxu1  ;;  %9437 = vrot.lane.b32.xlu1 %v9436_v46, %s10317_s19  ;;  %v9446_v61 = vpack.i.bf16 %v10821_v43, %v10825_v48  ;;  %v1169_v7 = vadd.f32 %v1168_v47, %v10740_v2  ;;  %v1614_v36 = vmax.f32 %v1167_v16, 0.0 }
 0x11c   : > { %v1170_v55 = vpop.f32.mrf.mxu0  ;;  %v1435_v17 = vadd.f32 %v1434_v53, %v10734_v62 }
 0x11d   : > { %v1436_v57 = vpop.f32.mrf.mxu1  ;;  %v9441_v60 = vpack.i.bf16 %v10827_v49, %v10829_v52  ;;  %v1171_v9 = vadd.f32 %v1170_v55, %v10746_v5  ;;  %v1615_v20 = vmax.f32 %v1169_v7, 0.0 }
 0x11e   : > { %v1172_v63 = vpop.f32.mrf.mxu0  ;;  %v1619_v37 = vmax.f32 %v1435_v17, 0.0 }
 0x11f   : > { %v1439_v0 = vpop.f32.mrf.mxu1  ;;  %9442 = vrot.lane.b32.xlu0 %v9441_v60, %s10317_s19  ;;  %9447 = vrot.lane.b32.xlu1 %v9446_v61, %s10317_s19  ;;  %v1173_v21 = vadd.f32 %v1172_v63, %v10740_v2  ;;  %v1617_v25 = vmax.f32 %v1171_v9, 0.0 }
 0x120   : > { %v1440_v4 = vadd.f32 %v1439_v0, %v10734_v62  ;;  %v1176_v6 = vpop.f32.mrf.mxu0 }
 0x121   : > { %v1441_v8 = vpop.f32.mrf.mxu1  ;;  %v1177_v11 = vadd.f32 %v1176_v6, %v10746_v5  ;;  %v1618_v40 = vmax.f32 %v1173_v21, 0.0 }
 0x122   : > { %v1622_v10 = vmax.f32 %v1440_v4, 0.0  ;;  %v1178_v12 = vpop.f32.mrf.mxu0 }
 0x123   : > { %v1179_v13 = vadd.f32 %v1178_v12, %v10740_v2  ;;  %v1442_v14 = vpop.f32.mrf.mxu1  ;;  %v1620_v27 = vmax.f32 %v1177_v11, 0.0 }
 0x124   : > { %v1443_v18 = vadd.f32 %v1442_v14, %v10734_v62  ;;  %v1180_v19 = vpop.f32.mrf.mxu0  ;;  %v10849_v26 = vmax.f32 %v1616_v15, %v1622_v10 }
 0x125   : > { %v1621_v22 = vmax.f32 %v1179_v13, 0.0  ;;  %v1181_v23 = vadd.f32 %v1180_v19, %v10746_v5  ;;  %v1444_v24 = vpop.f32.mrf.mxu1  ;;  %v10858_v53 = vmax.f32 %v1614_v36, %v1620_v27 }
 0x126   : > { %v1182_v28 = vpop.f32.mrf.mxu0  ;;  %v1625_v31 = vmax.f32 %v1443_v18, 0.0 }
 0x127   : > { %v10851_v30 = vmax.f32 %v1615_v20, %v1621_v22  ;;  %v1623_v33 = vmax.f32 %v1181_v23, 0.0  ;;  %v1183_v34 = vadd.f32 %v1182_v28, %v10740_v2  ;;  %v1447_v35 = vpop.f32.mrf.mxu1 }
 0x128   : > { %v1186_v39 = vpop.f32.mrf.mxu0  ;;  %v10860_v55 = vmax.f32 %v1619_v37, %v1625_v31  ;;  %v1448_v7 = vadd.f32 %v1447_v35, %v10734_v62 }
 0x129   : > { %v10854_v42 = vmax.f32 %v1617_v25, %v1623_v33  ;;  %v1624_v44 = vmax.f32 %v1183_v34, 0.0  ;;  %v1449_v45 = vpop.f32.mrf.mxu1  ;;  %v9451_v46 = vpack.i.bf16 %v10849_v26, %v10851_v30  ;;  %v1187_v19 = vadd.f32 %v1186_v39, %v10746_v5 }
 0x12a   : > { %v1188_v47 = vpop.f32.mrf.mxu0  ;;  %v1628_v18 = vmax.f32 %v1448_v7, 0.0 }
 0x12b   : > { %v10862_v57 = vmax.f32 %v1618_v40, %v1624_v44  ;;  %v1450_v60 = vpop.f32.mrf.mxu1  ;;  %9452 = vrot.lane.b32.xlu0 %v9451_v46, %s10317_s19  ;;  %v9461_v0 = vpack.i.bf16 %v10854_v42, %v10858_v53  ;;  %v1189_v10 = vadd.f32 %v1188_v47, %v10740_v2  ;;  %v1626_v45 = vmax.f32 %v1187_v19, 0.0 }
 0x12c   : > { %v1190_v61 = vpop.f32.mrf.mxu0  ;;  %v1451_v20 = vadd.f32 %v1450_v60, %v10734_v62 }
 0x12d   : > { %v1452_v63 = vpop.f32.mrf.mxu1  ;;  %v9456_v3 = vpack.i.bf16 %v10860_v55, %v10862_v57  ;;  %v1191_v12 = vadd.f32 %v1190_v61, %v10746_v5  ;;  %v1627_v23 = vmax.f32 %v1189_v10, 0.0 }
 0x12e   : > { %v1192_v4 = vpop.f32.mrf.mxu0  ;;  %v1631_v46 = vmax.f32 %v1451_v20, 0.0 }
 0x12f   : > { %v1455_v6 = vpop.f32.mrf.mxu1  ;;  %9462 = vrot.lane.b32.xlu0 %v9461_v0, %s10317_s19  ;;  %9457 = vrot.lane.b32.xlu1 %v9456_v3, %s10317_s19  ;;  %v1193_v24 = vadd.f32 %v1192_v4, %v10740_v2  ;;  %v1629_v31 = vmax.f32 %v1191_v12, 0.0 }
 0x130   : > { %v1456_v8 = vadd.f32 %v1455_v6, %v10734_v62  ;;  %v1196_v9 = vpop.f32.mrf.mxu0 }
 0x131   : > { %v1457_v11 = vpop.f32.mrf.mxu1  ;;  %v1197_v14 = vadd.f32 %v1196_v9, %v10746_v5  ;;  %v1630_v60 = vmax.f32 %v1193_v24, 0.0 }
 0x132   : > { %v1634_v13 = vmax.f32 %v1456_v8, 0.0  ;;  %v1198_v15 = vpop.f32.mrf.mxu0 }
 0x133   : > { %v1199_v16 = vadd.f32 %v1198_v15, %v10740_v2  ;;  %v1458_v17 = vpop.f32.mrf.mxu1  ;;  %v1632_v34 = vmax.f32 %v1197_v14, 0.0 }
 0x134   : > { %v1459_v21 = vadd.f32 %v1458_v17, %v10734_v62  ;;  %v1200_v22 = vpop.f32.mrf.mxu0  ;;  %v10882_v33 = vmax.f32 %v1628_v18, %v1634_v13 }
 0x135   : > { %v1633_v25 = vmax.f32 %v1199_v16, 0.0  ;;  %v1201_v27 = vadd.f32 %v1200_v22, %v10746_v5  ;;  %v1460_v28 = vpop.f32.mrf.mxu1  ;;  %v10891_v6 = vmax.f32 %v1626_v45, %v1632_v34 }
 0x136   : > { %v1202_v35 = vpop.f32.mrf.mxu0  ;;  %v1637_v37 = vmax.f32 %v1459_v21, 0.0 }
 0x137   : > { %v10884_v36 = vmax.f32 %v1627_v23, %v1633_v25  ;;  %v1635_v39 = vmax.f32 %v1201_v27, 0.0  ;;  %v1203_v40 = vadd.f32 %v1202_v35, %v10740_v2  ;;  %v1463_v44 = vpop.f32.mrf.mxu1 }
 0x138   : > { %v1206_v47 = vpop.f32.mrf.mxu0  ;;  %v10893_v7 = vmax.f32 %v1631_v46, %v1637_v37  ;;  %v1464_v16 = vadd.f32 %v1463_v44, %v10734_v62 }
 0x139   : > { %v10887_v61 = vmax.f32 %v1629_v31, %v1635_v39  ;;  %v1636_v63 = vmax.f32 %v1203_v40, 0.0  ;;  %v1465_v0 = vpop.f32.mrf.mxu1  ;;  %v9466_v3 = vpack.i.bf16 %v10882_v33, %v10884_v36  ;;  %v1207_v31 = vadd.f32 %v1206_v47, %v10746_v5 }
 0x13a   : > { %v1208_v4 = vpop.f32.mrf.mxu0  ;;  %v1640_v28 = vmax.f32 %v1464_v16, 0.0 }
 0x13b   : > { %v10895_v8 = vmax.f32 %v1630_v60, %v1636_v63  ;;  %v1466_v9 = vpop.f32.mrf.mxu1  ;;  %9467 = vrot.lane.b32.xlu1 %v9466_v3, %s10317_s19  ;;  %v9476_v13 = vpack.i.bf16 %v10887_v61, %v10891_v6  ;;  %v1209_v19 = vadd.f32 %v1208_v4, %v10740_v2 }
 0x13c   : > { %v1210_v10 = vpop.f32.mrf.mxu0  ;;  %v1467_v34 = vadd.f32 %v1466_v9, %v10734_v62 }
 0x13d   : > { %v1468_v11 = vpop.f32.mrf.mxu1  ;;  %v9471_v12 = vpack.i.bf16 %v10893_v7, %v10895_v8  ;;  %v1211_v21 = vadd.f32 %v1210_v10, %v10746_v5  ;;  %v1639_v39 = vmax.f32 %v1209_v19, 0.0 }
 0x13e   : > { %v1212_v14 = vpop.f32.mrf.mxu0 }
 0x13f   : > { %v1471_v15 = vpop.f32.mrf.mxu1  ;;  %9472 = vrot.lane.b32.xlu0 %v9471_v12, %s10317_s19  ;;  %9477 = vrot.lane.b32.xlu1 %v9476_v13, %s10317_s19  ;;  %v1213_v40 = vadd.f32 %v1212_v14, %v10740_v2  ;;  %v1641_v60 = vmax.f32 %v1211_v21, 0.0  ;;  %v1638_v12 = vmax.f32 %v1207_v31, 0.0  ;;  %v1643_v13 = vmax.f32 %v1467_v34, 0.0 }
 0x140   : > { %v1472_v17 = vadd.f32 %v1471_v15, %v10734_v62  ;;  %v1216_v18 = vpop.f32.mrf.mxu0 }
 0x141   : > { %v1473_v20 = vpop.f32.mrf.mxu1  ;;  %v1217_v23 = vadd.f32 %v1216_v18, %v10746_v5  ;;  %v1642_v14 = vmax.f32 %v1213_v40, 0.0 }
 0x142   : > { %v1646_v22 = vmax.f32 %v1472_v17, 0.0  ;;  %v1218_v24 = vpop.f32.mrf.mxu0 }
 0x143   : > { %v1219_v25 = vadd.f32 %v1218_v24, %v10740_v2  ;;  %v1474_v27 = vpop.f32.mrf.mxu1  ;;  %v1644_v0 = vmax.f32 %v1217_v23, 0.0 }
 0x144   : > { %v1475_v35 = vadd.f32 %v1474_v27, %v10734_v62  ;;  %v1220_v37 = vpop.f32.mrf.mxu0  ;;  %v10915_v63 = vmax.f32 %v1640_v28, %v1646_v22 }
 0x145   : > { %v1645_v44 = vmax.f32 %v1219_v25, 0.0  ;;  %v1221_v45 = vadd.f32 %v1220_v37, %v10746_v5  ;;  %v1476_v46 = vpop.f32.mrf.mxu1  ;;  %v10924_v21 = vmax.f32 %v1638_v12, %v1644_v0 }
 0x146   : > { %v1222_v3 = vpop.f32.mrf.mxu0  ;;  %v1649_v47 = vmax.f32 %v1475_v35, 0.0 }
 0x147   : > { %v10917_v4 = vmax.f32 %v1639_v39, %v1645_v44  ;;  %v1647_v10 = vmax.f32 %v1221_v45, 0.0  ;;  %v1223_v9 = vadd.f32 %v1222_v3, %v10740_v2  ;;  %v1479_v11 = vpop.f32.mrf.mxu1 }
 0x148   : > { %v1226_v15 = vpop.f32.mrf.mxu0  ;;  %v10926_v22 = vmax.f32 %v1643_v13, %v1649_v47  ;;  %v1480_v37 = vadd.f32 %v1479_v11, %v10734_v62 }
 0x149   : > { %v10920_v16 = vmax.f32 %v1641_v60, %v1647_v10  ;;  %v1648_v17 = vmax.f32 %v1223_v9, 0.0  ;;  %v1481_v18 = vpop.f32.mrf.mxu1  ;;  %v9481_v19 = vpack.i.bf16 %v10915_v63, %v10917_v4  ;;  %v1227_v12 = vadd.f32 %v1226_v15, %v10746_v5 }
 0x14a   : > { %v1228_v20 = vpop.f32.mrf.mxu0  ;;  %v1652_v9 = vmax.f32 %v1480_v37, 0.0 }
 0x14b   : > { %v10928_v23 = vmax.f32 %v1642_v14, %v1648_v17  ;;  %v1482_v24 = vpop.f32.mrf.mxu1  ;;  %9482 = vrot.lane.b32.xlu0 %v9481_v19, %s10317_s19  ;;  %v9491_v28 = vpack.i.bf16 %v10920_v16, %v10924_v21  ;;  %v1229_v44 = vadd.f32 %v1228_v20, %v10740_v2 }
 0x14c   : > { %v1230_v25 = vpop.f32.mrf.mxu0  ;;  %v1483_v11 = vadd.f32 %v1482_v24, %v10734_v62 }
 0x14d   : > { %v1484_v27 = vpop.f32.mrf.mxu1  ;;  %v9486_v31 = vpack.i.bf16 %v10926_v22, %v10928_v23  ;;  %v1231_v46 = vadd.f32 %v1230_v25, %v10746_v5  ;;  %v1651_v17 = vmax.f32 %v1229_v44, 0.0 }
 0x14e   : > { %v1232_v34 = vpop.f32.mrf.mxu0  ;;  %v1655_v44 = vmax.f32 %v1483_v11, 0.0 }
 0x14f   : > { %v1487_v35 = vpop.f32.mrf.mxu1  ;;  %9492 = vrot.lane.b32.xlu0 %v9491_v28, %s10317_s19  ;;  %9487 = vrot.lane.b32.xlu1 %v9486_v31, %s10317_s19  ;;  %v1233_v18 = vadd.f32 %v1232_v34, %v10740_v2  ;;  %v1653_v27 = vmax.f32 %v1231_v46, 0.0 }
 0x150   : > { %v1488_v39 = vadd.f32 %v1487_v35, %v10734_v62  ;;  %v1236_v40 = vpop.f32.mrf.mxu0 }
 0x151   : > { %v1489_v45 = vpop.f32.mrf.mxu1  ;;  %v1237_v0 = vadd.f32 %v1236_v40, %v10746_v5  ;;  %v1654_v34 = vmax.f32 %v1233_v18, 0.0 }
 0x152   : > { %v1658_v60 = vmax.f32 %v1488_v39, 0.0  ;;  %v1238_v3 = vpop.f32.mrf.mxu0  ;;  %v1650_v45 = vmax.f32 %v1227_v12, 0.0 }
 0x153   : > { %v1239_v47 = vadd.f32 %v1238_v3, %v10740_v2  ;;  %v1490_v10 = vpop.f32.mrf.mxu1  ;;  %v1656_v31 = vmax.f32 %v1237_v0, 0.0 }
 0x154   : > { %v1491_v13 = vadd.f32 %v1490_v10, %v10734_v62  ;;  %v1240_v14 = vpop.f32.mrf.mxu0  ;;  %v10948_v28 = vmax.f32 %v1652_v9, %v1658_v60 }
 0x155   : > { %v1657_v19 = vmax.f32 %v1239_v47, 0.0  ;;  %v1241_v20 = vadd.f32 %v1240_v14, %v10746_v5  ;;  %v1492_v25 = vpop.f32.mrf.mxu1  ;;  %v10957_v0 = vmax.f32 %v1650_v45, %v1656_v31 }
 0x156   : > { %v1242_v35 = vpop.f32.mrf.mxu0  ;;  %v1661_v15 = vmax.f32 %v1491_v13, 0.0 }
 0x157   : > { %v10950_v37 = vmax.f32 %v1651_v17, %v1657_v19  ;;  %v1659_v39 = vmax.f32 %v1241_v20, 0.0  ;;  %v1243_v24 = vadd.f32 %v1242_v35, %v10740_v2  ;;  %v1495_v40 = vpop.f32.mrf.mxu1  ;;  %14316 = vst [vmem:[#allocation7_spill] sm:$0xff] %v10957_v0 }
 0x158   : > { %v1246_v3 = vpop.f32.mrf.mxu0  ;;  %v10959_v9 = vmax.f32 %v1655_v44, %v1661_v15 }
 0x159   : > { %14314 = vst [vmem:[#allocation5_spill] sm:$0xff] %v10950_v37  ;;  %v10953_v47 = vmax.f32 %v1653_v27, %v1659_v39  ;;  %v1660_v10 = vmax.f32 %v1243_v24, 0.0  ;;  %v1497_v14 = vpop.f32.mrf.mxu1  ;;  %v9496_v46 = vpack.i.bf16 %v10948_v28, %v10950_v37  ;;  %v1496_v27 = vadd.f32 %v1495_v40, %v10734_v62 }
 0x15a   : > { %v1248_v60 = vpop.f32.mrf.mxu0 }
 0x15b   : > { %14315 = vst [vmem:[#allocation6_spill] sm:$0xff] %v10953_v47  ;;  %v10961_v13 = vmax.f32 %v1654_v34, %v1660_v10  ;;  %v1498_v17 = vpop.f32.mrf.mxu1  ;;  %9497 = vrot.lane.b32.xlu1 %v9496_v46, %s10317_s19  ;;  %v9506_v19 = vpack.i.bf16 %v10953_v47, %v10957_v0  ;;  %v1249_v15 = vadd.f32 %v1248_v60, %v10740_v2  ;;  %v1664_v46 = vmax.f32 %v1496_v27, 0.0 }
 0x15c   : > { %v1250_v12 = vpop.f32.mrf.mxu0  ;;  %v1499_v40 = vadd.f32 %v1498_v17, %v10734_v62 }
 0x15d   : > { %14317 = vst [vmem:[#allocation8_spill] sm:$0xff] %v10961_v13  ;;  %v1500_v11 = vpop.f32.mrf.mxu1  ;;  %v9501_v18 = vpack.i.bf16 %v10959_v9, %v10961_v13  ;;  %v1251_v24 = vadd.f32 %v1250_v12, %v10746_v5 }
 0x15e   : > { %v1252_v20 = vpop.f32.mrf.mxu0  ;;  %v1247_v11 = vadd.f32 %v1246_v3, %v10746_v5 }
 0x15f   : > { %v1503_v25 = vpop.f32.mrf.mxu1  ;;  %9502 = vrot.lane.b32.xlu0 %v9501_v18, %s10317_s19  ;;  %9507 = vrot.lane.b32.xlu1 %v9506_v19, %s10317_s19  ;;  %v1253_v60 = vadd.f32 %v1252_v20, %v10740_v2 }
 0x160   : > { %v1504_v31 = vadd.f32 %v1503_v25, %v10734_v62  ;;  %v1256_v35 = vpop.f32.mrf.mxu0  ;;  %v1663_v25 = vmax.f32 %v1249_v15, 0.0  ;;  %v1662_v13 = vmax.f32 %v1247_v11, 0.0  ;;  %v1667_v15 = vmax.f32 %v1499_v40, 0.0 }
 0x161   : > { %v1505_v39 = vpop.f32.mrf.mxu1  ;;  %v1257_v44 = vadd.f32 %v1256_v35, %v10746_v5  ;;  %v1665_v35 = vmax.f32 %v1251_v24, 0.0  ;;  %v1666_v20 = vmax.f32 %v1253_v60, 0.0 }
 0x162   : > { %v1670_v45 = vmax.f32 %v1504_v31, 0.0  ;;  %v1258_v34 = vpop.f32.mrf.mxu0 }
 0x163   : > { %v1259_v10 = vadd.f32 %v1258_v34, %v10740_v2  ;;  %v1506_v14 = vpop.f32.mrf.mxu1  ;;  %v1668_v34 = vmax.f32 %v1257_v44, 0.0 }
 0x164   : > { %v1507_v18 = vadd.f32 %v1506_v14, %v10734_v62  ;;  %v1260_v19 = vpop.f32.mrf.mxu0  ;;  %v10981_v1 = vmax.f32 %v1664_v46, %v1670_v45 }
 0x165   : > { %v1669_v39 = vmax.f32 %v1259_v10, 0.0  ;;  %v1261_v12 = vadd.f32 %v1260_v19, %v10746_v5  ;;  %v1508_v31 = vpop.f32.mrf.mxu1  ;;  %v10990_v44 = vmax.f32 %v1662_v13, %v1668_v34 }
 0x166   : > { %14318 = vst [vmem:[#allocation9_spill] sm:$0xff] %v10981_v1  ;;  %v1262_v54 = vpop.f32.mrf.mxu0  ;;  %v1673_v3 = vmax.f32 %v1507_v18, 0.0 }
 0x167   : > { %v10983_v27 = vmax.f32 %v1663_v25, %v1669_v39  ;;  %v1671_v56 = vmax.f32 %v1261_v12, 0.0  ;;  %v1263_v17 = vadd.f32 %v1262_v54, %v10740_v2  ;;  %v1511_v14 = vpop.f32.mrf.mxu1  ;;  %14321 = vst [vmem:[#allocation12_spill] sm:$0xff] %v10990_v44 }
 0x168   : > { %v1266_v37 = vpop.f32.mrf.mxu0  ;;  %v10992_v46 = vmax.f32 %v1667_v15, %v1673_v3  ;;  %v1512_v13 = vadd.f32 %v1511_v14, %v10734_v62 }
 0x169   : > { %14319 = vst [vmem:[#allocation10_spill] sm:$0xff] %v10983_v27  ;;  %v10986_v10 = vmax.f32 %v1665_v35, %v1671_v56  ;;  %v1672_v19 = vmax.f32 %v1263_v17, 0.0  ;;  %v1513_v31 = vpop.f32.mrf.mxu1  ;;  %v9511_v24 = vpack.i.bf16 %v10981_v1, %v10983_v27 }
 0x16a   : > { %v1268_v45 = vpop.f32.mrf.mxu0  ;;  %14322 = vst [vmem:[#allocation13_spill] sm:$0xff] %v10992_v46 }
 0x16b   : > { %14320 = vst [vmem:[#allocation11_spill] sm:$0xff] %v10986_v10  ;;  %v10994_v18 = vmax.f32 %v1666_v20, %v1672_v19  ;;  %v1514_v54 = vpop.f32.mrf.mxu1  ;;  %9512 = vrot.lane.b32.xlu0 %v9511_v24, %s10317_s19  ;;  %v9521_v56 = vpack.i.bf16 %v10986_v10, %v10990_v44  ;;  %v1269_v34 = vadd.f32 %v1268_v45, %v10740_v2 }
 0x16c   : > { %v1270_v11 = vpop.f32.mrf.mxu0  ;;  %v1515_v14 = vadd.f32 %v1514_v54, %v10734_v62 }
 0x16d   : > { %14323 = vst [vmem:[#allocation14_spill] sm:$0xff] %v10994_v18  ;;  %v1516_v40 = vpop.f32.mrf.mxu1  ;;  %v9516_v25 = vpack.i.bf16 %v10992_v46, %v10994_v18  ;;  %v1271_v17 = vadd.f32 %v1270_v11, %v10746_v5  ;;  %v1675_v18 = vmax.f32 %v1269_v34, 0.0 }
 0x16e   : > { %v1272_v60 = vpop.f32.mrf.mxu0  ;;  %v1676_v40 = vmax.f32 %v1512_v13, 0.0  ;;  %v1679_v34 = vmax.f32 %v1515_v14, 0.0 }
 0x16f   : > { %v1519_v39 = vpop.f32.mrf.mxu1  ;;  %9522 = vrot.lane.b32.xlu0 %v9521_v56, %s10317_s19  ;;  %9517 = vrot.lane.b32.xlu1 %v9516_v25, %s10317_s19  ;;  %v1267_v56 = vadd.f32 %v1266_v37, %v10746_v5  ;;  %v1273_v45 = vadd.f32 %v1272_v60, %v10740_v2 }
 0x170   : > { %v1520_v12 = vadd.f32 %v1519_v39, %v10734_v62  ;;  %v1276_v35 = vpop.f32.mrf.mxu0 }
 0x171   : > { %v1521_v3 = vpop.f32.mrf.mxu1  ;;  %v1277_v20 = vadd.f32 %v1276_v35, %v10746_v5  ;;  %v1677_v35 = vmax.f32 %v1271_v17, 0.0  ;;  %v1674_v46 = vmax.f32 %v1267_v56, 0.0  ;;  %v1678_v60 = vmax.f32 %v1273_v45, 0.0 }
 0x172   : > { %v1682_v15 = vmax.f32 %v1520_v12, 0.0  ;;  %v1278_v19 = vpop.f32.mrf.mxu0 }
 0x173   : > { %v1279_v31 = vadd.f32 %v1278_v19, %v10740_v2  ;;  %v1522_v24 = vpop.f32.mrf.mxu1  ;;  %v1680_v19 = vmax.f32 %v1277_v20, 0.0 }
 0x174   : > { %v1523_v25 = vadd.f32 %v1522_v24, %v10734_v62  ;;  %v1280_v39 = vpop.f32.mrf.mxu0  ;;  %v11014_v27 = vmax.f32 %v1676_v40, %v1682_v15 }
 0x175   : > { %v1681_v3 = vmax.f32 %v1279_v31, 0.0  ;;  %v1281_v11 = vadd.f32 %v1280_v39, %v10746_v5  ;;  %v1524_v12 = vpop.f32.mrf.mxu1  ;;  %v11023_v20 = vmax.f32 %v1674_v46, %v1680_v19 }
 0x176   : > { %14324 = vst [vmem:[#allocation15_spill] sm:$0xff] %v11014_v27  ;;  %v1282_v10 = vpop.f32.mrf.mxu0  ;;  %v1685_v37 = vmax.f32 %v1523_v25, 0.0 }
 0x177   : > { %v11016_v13 = vmax.f32 %v1675_v18, %v1681_v3  ;;  %v1683_v44 = vmax.f32 %v1281_v11, 0.0  ;;  %v1283_v54 = vadd.f32 %v1282_v10, %v10740_v2  ;;  %v1527_v24 = vpop.f32.mrf.mxu1  ;;  %14327 = vst [vmem:[#allocation18_spill] sm:$0xff] %v11023_v20 }
 0x178   : > { %v1286_v1 = vpop.f32.mrf.mxu0  ;;  %v11025_v18 = vmax.f32 %v1679_v34, %v1685_v37  ;;  %v1528_v10 = vadd.f32 %v1527_v24, %v10734_v62 }
 0x179   : > { %14325 = vst [vmem:[#allocation16_spill] sm:$0xff] %v11016_v13  ;;  %v11019_v31 = vmax.f32 %v1677_v35, %v1683_v44  ;;  %v1684_v39 = vmax.f32 %v1283_v54, 0.0  ;;  %v1529_v12 = vpop.f32.mrf.mxu1  ;;  %v9526_v17 = vpack.i.bf16 %v11014_v27, %v11016_v13  ;;  %v11032_v44 = vadd.f32 %v1286_v1, %v10746_v5 }
 0x17a   : > { %v1288_v15 = vpop.f32.mrf.mxu0  ;;  %14328 = vst [vmem:[#allocation19_spill] sm:$0xff] %v11025_v18  ;;  %v1688_v54 = vmax.f32 %v1528_v10, 0.0 }
 0x17b   : > { %14326 = vst [vmem:[#allocation17_spill] sm:$0xff] %v11019_v31  ;;  %v11027_v40 = vmax.f32 %v1678_v60, %v1684_v39  ;;  %v1530_v56 = vpop.f32.mrf.mxu1  ;;  %9527 = vrot.lane.b32.xlu1 %v9526_v17, %s10317_s19  ;;  %v1289_v14 = vadd.f32 %v1288_v15, %v10740_v2  ;;  %v9536_v11 = vpack.i.bf16 %v11019_v31, %v11023_v20  ;;  %v1686_v34 = vmax.f32 %v11032_v44, 0.0 }
 0x17c   : > { %v1290_v25 = vpop.f32.mrf.mxu0  ;;  %v1531_v39 = vadd.f32 %v1530_v56, %v10734_v62 }
 0x17d   : > { %14329 = vst [vmem:[#allocation20_spill] sm:$0xff] %v11027_v40  ;;  %v1532_v45 = vpop.f32.mrf.mxu1  ;;  %v9423_v3 = vpop.permute.xlu0 %9422  ;;  %v9531_v46 = vpack.i.bf16 %v11025_v18, %v11027_v40  ;;  %v1687_v60 = vmax.f32 %v1289_v14, 0.0  ;;  %v1291_v15 = vadd.f32 %v1290_v25, %v10746_v5 }
 0x17e   : > { %v9425_v35 = vunpack.i.h.bf16 %v9423_v3  ;;  %v9424_v19 = vunpack.i.l.bf16 %v9423_v3  ;;  %v1292_v37 = vpop.f32.mrf.mxu0 }
 0x17f   : > { %v1535_v24 = vpop.f32.mrf.mxu1  ;;  %9532 = vrot.lane.b32.xlu0 %v9531_v46, %s10317_s19  ;;  %9537 = vrot.lane.b32.xlu1 %v9536_v11, %s10317_s19  ;;  %v9433_v1 = vpop.permute.xlu1 %9432  ;;  %v1293_v11 = vadd.f32 %v1292_v37, %v10740_v2 }
 0x180   : > { %v1536_v12 = vadd.f32 %v1535_v24, %v10734_v62  ;;  %v1296_v17 = vpop.f32.mrf.mxu0  ;;  %v2024_v45 = vsel %vm2022_vm2, %v9424_v19, %v9425_v35  ;;  %v9434_v3 = vunpack.i.l.bf16 %v9433_v1  ;;  %v9435_v13 = vunpack.i.h.bf16 %v9433_v1 }
 0x181   : > { %v1297_v10 = vadd.f32 %v1296_v17, %v10746_v5  ;;  %v1537_v40 = vpop.f32.mrf.mxu1  ;;  %v9428_v46 = vpop.permute.xlu0 %9427  ;;  %v2145_v56 = vmax.f32 %v10777_v38, %v9425_v35  ;;  %v2144_v37 = vmax.f32 %v10782_v41, %v2024_v45  ;;  %v1689_v45 = vmax.f32 %v1291_v15, 0.0 }
 0x182   : > { %v9430_v20 = vunpack.i.h.bf16 %v9428_v46  ;;  %v9429_v44 = vunpack.i.l.bf16 %v9428_v46  ;;  %v1298_v14 = vpop.f32.mrf.mxu0  ;;  %v1694_v31 = vmax.f32 %v1536_v12, 0.0  ;;  %v2023_v24 = vsel %vm2022_vm2, %v9434_v3, %v9424_v19 }
 0x183   : > { %v1299_v25 = vadd.f32 %v1298_v14, %v10740_v2  ;;  %v1538_v18 = vpop.f32.mrf.mxu1  ;;  %v1692_v27 = vmax.f32 %v1297_v10, 0.0  ;;  %v2143_v1 = vmax.f32 %v10788_v50, %v2023_v24 }
 0x184   : > { %v2148_v0 = vmax.f32 %v10794_v58, %v9430_v20  ;;  %v2025_v40 = vsel %vm2022_vm2, %v9435_v13, %v9429_v44  ;;  %v1300_v17 = vpop.f32.mrf.mxu0  ;;  %v2026_v46 = vsel %vm2022_vm2, %v9429_v44, %v9430_v20  ;;  %v1539_v3 = vadd.f32 %v1538_v18, %v10734_v62 }
 0x185   : > { %v2146_v38 = vmax.f32 %v10790_v51, %v2025_v40  ;;  %v1693_v35 = vmax.f32 %v1299_v25, 0.0  ;;  %v1540_v12 = vpop.f32.mrf.mxu1  ;;  %v1301_v10 = vadd.f32 %v1300_v17, %v10746_v5  ;;  %v2147_v58 = vmax.f32 %v10796_v59, %v2026_v46 }
 0x186   : > { %v2217_v19 = vpack.c.bf16 %v2148_v0, %v2145_v56  ;;  %v1302_v14 = vpop.f32.mrf.mxu0  ;;  %v11060_v13 = vmax.f32 %v1688_v54, %v1694_v31  ;;  %v1697_v51 = vmax.f32 %v1539_v3, 0.0  ;;  %v1691_v18 = vmax.f32 %v1531_v39, 0.0 }
 0x187   : > { %v2215_v47 = vpack.c.bf16 %v2146_v38, %v2143_v1  ;;  %v11062_v41 = vmax.f32 %v1687_v60, %v1693_v35  ;;  %v1303_v50 = vadd.f32 %v1302_v14, %v10740_v2  ;;  %v1543_v20 = vpop.f32.mrf.mxu1  ;;  %v1695_v44 = vmax.f32 %v1301_v10, 0.0 }
 0x188   : > { %v1306_v24 = vpop.f32.mrf.mxu0  ;;  %8405 = vmatmul.mubr.msk.bf16.vlgmr.msra.gmra.mxu1 %vm2022_vm2, %v2217_v19  ;;  %v2216_v0 = vpack.c.bf16 %v2147_v58, %v2144_v37  ;;  %v1690_v56 = vmax.f32 %v1293_v11, 0.0  ;;  %v14330_v31 = vmov 0   ;;  %v11069_v54 = vmax.f32 %v1686_v34, %v1692_v27 }
 0x189   : > { %v1696_v25 = vmax.f32 %v1303_v50, 0.0  ;;  %v1545_v40 = vpop.f32.mrf.mxu1  ;;  %v9541_v59 = vpack.i.bf16 %v11060_v13, %v11062_v41  ;;  %2758 = vmatprep.mubr.bf16.mxu1 %v14330_v31  ;;  %v11071_v60 = vmax.f32 %v1689_v45, %v1695_v44  ;;  %v11073_v17 = vmax.f32 %v1691_v18, %v1697_v51 }
 0x18a   : > { %2595 = vmatprep.mubr.bf16.mxu0 %v2216_v0  ;;  %v1308_v15 = vpop.f32.mrf.mxu0  ;;  %v1544_v39 = vadd.f32 %v1543_v20, %v10734_v62  ;;  %v11080_v37 = vadd.f32 %v1306_v24, %v10746_v5 }
 0x18b   : > { %v11075_v1 = vmax.f32 %v1690_v56, %v1696_v25  ;;  %2596 = vmatmul.mubr.bf16.vlgmr.msra.gmra.mxu0 %v2215_v47  ;;  %v1546_v11 = vpop.f32.mrf.mxu1  ;;  %9542 = vrot.lane.b32.xlu0 %v9541_v59, %s10317_s19  ;;  %v1309_v27 = vadd.f32 %v1308_v15, %v10740_v2  ;;  %v9551_v35 = vpack.i.bf16 %v11071_v60, %v11069_v54 }
 0x18c   : > { %v1310_v46 = vpop.f32.mrf.mxu0  ;;  %v1700_v10 = vmax.f32 %v1544_v39, 0.0  ;;  %v1698_v58 = vmax.f32 %v11080_v37, 0.0  ;;  %v1547_v50 = vadd.f32 %v1546_v11, %v10734_v62 }
 0x18d   : > { %14331 = vst [vmem:[#allocation21_spill] sm:$0xff] %v11075_v1  ;;  %v1548_v34 = vpop.f32.mrf.mxu1  ;;  %v9438_v38 = vpop.permute.xlu1 %9437  ;;  %v9546_v12 = vpack.i.bf16 %v11073_v17, %v11075_v1  ;;  %v1699_v44 = vmax.f32 %v1309_v27, 0.0  ;;  %v1311_v24 = vadd.f32 %v1310_v46, %v10746_v5 }
 0x18e   : > { %v9440_v19 = vunpack.i.h.bf16 %v9438_v38  ;;  %v9439_v3 = vunpack.i.l.bf16 %v9438_v38  ;;  %v1312_v47 = vpop.f32.mrf.mxu0 }
 0x18f   : > { %v1551_v14 = vpop.f32.mrf.mxu1  ;;  %9552 = vrot.lane.b32.xlu0 %v9551_v35, %s10317_s19  ;;  %9547 = vrot.lane.b32.xlu1 %v9546_v12, %s10317_s19  ;;  %v1313_v0 = vadd.f32 %v1312_v47, %v10740_v2 }
 0x190   : > { %v2028_v20 = vsel %vm2022_vm2, %v9439_v3, %v9440_v19  ;;  %v1552_v45 = vadd.f32 %v1551_v14, %v10734_v62  ;;  %v1316_v51 = vpop.f32.mrf.mxu0  ;;  %v2151_v40 = vmax.f32 %v10816_v29, %v9440_v19 }
 0x191   : > { %v1317_v18 = vadd.f32 %v1316_v51, %v10746_v5  ;;  %v1553_v56 = vpop.f32.mrf.mxu1  ;;  %v9443_v25 = vpop.permute.xlu0 %9442  ;;  %v2150_v46 = vmax.f32 %v10818_v32, %v2028_v20 }
 0x192   : > { %v1706_v59 = vmax.f32 %v1552_v45, 0.0  ;;  %v9445_v15 = vunpack.i.h.bf16 %v9443_v25  ;;  %v9444_v39 = vunpack.i.l.bf16 %v9443_v25  ;;  %v9448_v11 = vpop.permute.xlu1 %9447  ;;  %v1318_v37 = vpop.f32.mrf.mxu0 }
 0x193   : > { %v9450_v34 = vunpack.i.h.bf16 %v9448_v11  ;;  %v9449_v38 = vunpack.i.l.bf16 %v9448_v11  ;;  %v1319_v35 = vadd.f32 %v1318_v37, %v10740_v2  ;;  %v1554_v27 = vpop.f32.mrf.mxu1  ;;  %v1704_v12 = vmax.f32 %v1317_v18, 0.0 }
 0x194   : > { %v2154_v47 = vmax.f32 %v10827_v49, %v9445_v15  ;;  %v2030_v14 = vsel %vm2022_vm2, %v9444_v39, %v9445_v15  ;;  %v1555_v51 = vadd.f32 %v1554_v27, %v10734_v62  ;;  %v1320_v29 = vpop.f32.mrf.mxu0  ;;  %v11102_v19 = vmax.f32 %v1700_v10, %v1706_v59 }
 0x195   : > { %v2029_v45 = vsel %vm2022_vm2, %v9450_v34, %v9444_v39  ;;  %v2027_v56 = vsel %vm2022_vm2, %v9449_v38, %v9439_v3  ;;  %v1705_v25 = vmax.f32 %v1319_v35, 0.0  ;;  %v1556_v11 = vpop.f32.mrf.mxu1  ;;  %v1321_v32 = vadd.f32 %v1320_v29, %v10746_v5 }
 0x196   : > { %v2220_v37 = vpack.c.bf16 %v2154_v47, %v2151_v40  ;;  %v1709_v1 = vmax.f32 %v1555_v51, 0.0  ;;  %v1322_v20 = vpop.f32.mrf.mxu0  ;;  %v2153_v49 = vmax.f32 %v10829_v52, %v2030_v14  ;;  %v2149_v10 = vmax.f32 %v10825_v48, %v2027_v56 }
 0x197   : > { %v11108_v18 = vmax.f32 %v1699_v44, %v1705_v25  ;;  %v1323_v15 = vadd.f32 %v1322_v20, %v10740_v2  ;;  %v1559_v27 = vpop.f32.mrf.mxu1  ;;  %v2152_v59 = vmax.f32 %v10821_v43, %v2029_v45  ;;  %v1703_v39 = vmax.f32 %v1547_v50, 0.0 }
 0x198   : > { %v1701_v3 = vmax.f32 %v1311_v24, 0.0  ;;  %v1707_v34 = vmax.f32 %v1321_v32, 0.0  ;;  %v1326_v38 = vpop.f32.mrf.mxu0  ;;  %8406 = vmatmul.mubr.msk.bf16.gmra.mxu1 %vm2022_vm2, %v2220_v37  ;;  %v2219_v40 = vpack.c.bf16 %v2153_v49, %v2150_v46  ;;  %v1702_v35 = vmax.f32 %v1313_v0, 0.0  ;;  %v9820_v49 = vld [vmem:[%s14212_s4 + $0x74] ss:$8 sps:$4 sm:$0xff]  }
 0x199   : > { %v1708_v47 = vmax.f32 %v1323_v15, 0.0  ;;  %v1561_v51 = vpop.f32.mrf.mxu1  ;;  %v2218_v52 = vpack.c.bf16 %v2152_v59, %v2149_v10  ;;  %v9556_v44 = vpack.i.bf16 %v11102_v19, %v11108_v18  ;;  %2768 = vmatprep.mubr.bf16.mxu1 %v14330_v31  ;;  %v11119_v48 = vmax.f32 %v1698_v58, %v1704_v12  ;;  %3376 = vmatprep.subr.bf16.mxu1 %v9820_v49 }
 0x19a   : > { %v11117_v14 = vmax.f32 %v1701_v3, %v1707_v34  ;;  %2605 = vmatprep.mubr.bf16.mxu0 %v2219_v40  ;;  %v1328_v43 = vpop.f32.mrf.mxu0  ;;  %v11121_v50 = vmax.f32 %v1703_v39, %v1709_v1  ;;  %v11127_v46 = vadd.f32 %v1559_v27, %v10734_v62  ;;  %v9818_v27 = vld [vmem:[%s14212_s4 + $0x70] ss:$8 sps:$4 sm:$0xff]   ;;  %v11151_v10 = vadd.f32 %v1326_v38, %v10746_v5 }
 0x19b   : > { %v11123_v24 = vmax.f32 %v1702_v35, %v1708_v47  ;;  %2606 = vmatmul.mubr.bf16.gmra.mxu0 %v2218_v52  ;;  %v1562_v0 = vpop.f32.mrf.mxu1  ;;  %9557 = vrot.lane.b32.xlu1 %v9556_v44, %s10317_s19  ;;  %v11130_v29 = vadd.f32 %v1328_v43, %v10740_v2 }
 0x19c   : > { %v1330_v45 = vpop.f32.mrf.mxu0  ;;  %v11133_v56 = vadd.f32 %v1562_v0, %v10734_v62  ;;  %v9566_v11 = vpack.i.bf16 %v11117_v14, %v11119_v48  ;;  %v1712_v3 = vmax.f32 %v11127_v46, 0.0  ;;  %3377 = vmatpush1.bf16.msra.mxu1 %v9818_v27  ;;  %v9823_v46 = vld [vmem:[%s14212_s4 + $0x64] ss:$8 sps:$4 sm:$0xff]  }
 0x19d   : > { %14332 = vst [vmem:[#allocation22_spill] sm:$0xff] %v11123_v24  ;;  %v11136_v58 = vadd.f32 %v1330_v45, %v10746_v5  ;;  %v1564_v1 = vpop.f32.mrf.mxu1  ;;  %v9453_v12 = vpop.permute.xlu0 %9452  ;;  %v9561_v25 = vpack.i.bf16 %v11121_v50, %v11123_v24  ;;  %v1711_v34 = vmax.f32 %v11130_v29, 0.0  ;;  %3378 = vmatprep.subr.bf16.mxu1 %v9823_v46 }
 0x19e   : > { %v9455_v37 = vunpack.i.h.bf16 %v9453_v12  ;;  %v9454_v32 = vunpack.i.l.bf16 %v9453_v12  ;;  %v1332_v20 = vpop.f32.mrf.mxu0 }
 0x19f   : > { %v1567_v15 = vpop.f32.mrf.mxu1  ;;  %9562 = vrot.lane.b32.xlu0 %v9561_v25, %s10317_s19  ;;  %9567 = vrot.lane.b32.xlu1 %v9566_v11, %s10317_s19  ;;  %v1713_v35 = vmax.f32 %v11136_v58, 0.0  ;;  %v1333_v38 = vadd.f32 %v1332_v20, %v10740_v2  ;;  %v9821_v11 = vld [vmem:[%s14212_s4 + $0x60] ss:$8 sps:$4 sm:$0xff]  }
 0x1a0   : > { %v1568_v59 = vadd.f32 %v1567_v15, %v10734_v62  ;;  %v1336_v39 = vpop.f32.mrf.mxu0  ;;  %v2032_v52 = vsel %vm2022_vm2, %v9454_v32, %v9455_v37  ;;  %v2157_v29 = vmax.f32 %v10849_v26, %v9455_v37  ;;  %3379 = vmatpush1.bf16.msra.mxu1 %v9821_v11 }
 0x1a1   : > { %v1569_v47 = vpop.f32.mrf.mxu1  ;;  %v9463_v51 = vpop.permute.xlu0 %9462  ;;  %v1337_v49 = vadd.f32 %v1336_v39, %v10746_v5 }
 0x1a2   : > { %v9465_v44 = vunpack.i.h.bf16 %v9463_v51  ;;  %v9464_v43 = vunpack.i.l.bf16 %v9463_v51  ;;  %v9458_v0 = vpop.permute.xlu1 %9457  ;;  %v1338_v45 = vpop.f32.mrf.mxu0  ;;  %v1718_v20 = vmax.f32 %v1568_v59, 0.0 }
 0x1a3   : > { %v9460_v1 = vunpack.i.h.bf16 %v9458_v0  ;;  %v9459_v12 = vunpack.i.l.bf16 %v9458_v0  ;;  %v1339_v58 = vadd.f32 %v1338_v45, %v10740_v2  ;;  %v1570_v25 = vpop.f32.mrf.mxu1  ;;  %v2156_v45 = vmax.f32 %v10851_v30, %v2032_v52 }
 0x1a4   : > { %v2031_v15 = vsel %vm2022_vm2, %v9464_v43, %v9454_v32  ;;  %v1571_v27 = vadd.f32 %v1570_v25, %v10734_v62  ;;  %v1340_v47 = vpop.f32.mrf.mxu0  ;;  %v9824_v43 = vld [vmem:[%s14212_s4 + $0x130] ss:$8 sps:$4 sm:$0xff]   ;;  %v1716_v25 = vmax.f32 %v1337_v49, 0.0 }
 0x1a5   : > { %v2160_v26 = vmax.f32 %v10860_v55, %v9460_v1  ;;  %v2033_v37 = vsel %vm2022_vm2, %v9465_v44, %v9459_v12  ;;  %v2034_v51 = vsel %vm2022_vm2, %v9459_v12, %v9460_v1  ;;  %v1572_v0 = vpop.f32.mrf.mxu1  ;;  %v1717_v40 = vmax.f32 %v1339_v58, 0.0  ;;  %v9826_v55 = vld [vmem:[%s14212_s4 + $0x134] ss:$8 sps:$4 sm:$0xff]  }
 0x1a6   : > { %v1721_v59 = vmax.f32 %v1571_v27, 0.0  ;;  %v1341_v39 = vadd.f32 %v1340_v47, %v10746_v5  ;;  %v1342_v24 = vpop.f32.mrf.mxu0  ;;  %v2159_v32 = vmax.f32 %v10862_v57, %v2034_v51  ;;  %v2155_v52 = vmax.f32 %v10858_v53, %v2031_v15  ;;  %v9827_v57 = vld [vmem:[%s14212_s4 + $0x50] ss:$8 sps:$4 sm:$0xff]   ;;  %v9829_v12 = vld [vmem:[%s14212_s4 + $0x54] ss:$8 sps:$4 sm:$0xff]   ;;  %3100 = vmatprep.subr.bf16.mxu0 %v9826_v55 }
 0x1a7   : > { %v2223_v44 = vpack.c.bf16 %v2160_v26, %v2157_v29  ;;  %v1343_v46 = vadd.f32 %v1342_v24, %v10740_v2  ;;  %v1575_v30 = vpop.f32.mrf.mxu1  ;;  %v2158_v1 = vmax.f32 %v10854_v42, %v2033_v37  ;;  %v11192_v58 = vmax.f32 %v1712_v3, %v1718_v20  ;;  %3380 = vmatprep.subr.bf16.mxu1 %v9829_v12  ;;  %v9833_v0 = vld [vmem:[%s14212_s4 + $0x40] ss:$8 sps:$4 sm:$0xff]   ;;  %v9841_v12 = vld [vmem:[%s14212_s4 + $0x34] ss:$8 sps:$4 sm:$0xff]  }
 0x1a8   : > { %v11194_v11 = vmax.f32 %v1711_v34, %v1717_v40  ;;  %v1719_v29 = vmax.f32 %v1341_v39, 0.0  ;;  %v1346_v24 = vpop.f32.mrf.mxu0  ;;  %v1714_v27 = vmax.f32 %v1333_v38, 0.0  ;;  %v2222_v15 = vpack.c.bf16 %v2159_v32, %v2156_v45  ;;  %3101 = vmatpush1.bf16.msra.mxu0 %v9824_v43  ;;  %v9830_v40 = vld [vmem:[%s14212_s4 + $0x120] ss:$8 sps:$4 sm:$0xff]   ;;  %v9832_v38 = vld [vmem:[%s14212_s4 + $0x124] ss:$8 sps:$4 sm:$0xff]   ;;  %3381 = vmatpush1.bf16.msra.mxu1 %v9827_v57 }
 0x1a9   : > { %v1720_v53 = vmax.f32 %v1343_v46, 0.0  ;;  %8407 = vmatmul.mubr.msk.bf16.gmra.mxu1 %vm2022_vm2, %v2223_v44  ;;  %v1577_v42 = vpop.f32.mrf.mxu1  ;;  %v2221_v47 = vpack.c.bf16 %v2158_v1, %v2155_v52  ;;  %v1710_v26 = vmax.f32 %v11151_v10, 0.0  ;;  %v14334_v20 = vmax.f32 %v11133_v56, 0.0  ;;  %v9835_v45 = vld [vmem:[%s14212_s4 + $0x44] ss:$8 sps:$4 sm:$0xff]   ;;  %3102 = vmatprep.subr.bf16.mxu0 %v9832_v38 }
 0x1aa   : > { %v11198_v37 = vmax.f32 %v1713_v35, %v1719_v29  ;;  %v1348_v3 = vpop.f32.mrf.mxu0  ;;  %v9571_v34 = vpack.i.bf16 %v11192_v58, %v11194_v11  ;;  %2778 = vmatprep.mubr.bf16.mxu1 %v14330_v31  ;;  %v11216_v49 = vadd.f32 %v1575_v30, %v10734_v62  ;;  %2615 = vmatprep.mubr.bf16.mxu0 %v2222_v15  ;;  %v9838_v57 = vld [vmem:[%s14212_s4 + $0x114] ss:$8 sps:$4 sm:$0xff]  }
 0x1ab   : > { %v11211_v10 = vmax.f32 %v14334_v20, %v1721_v59  ;;  %v11213_v35 = vmax.f32 %v1714_v27, %v1720_v53  ;;  %v1578_v51 = vpop.f32.mrf.mxu1  ;;  %v11224_v39 = vmax.f32 %v1710_v26, %v1716_v25  ;;  %v11227_v56 = vadd.f32 %v1346_v24, %v10746_v5  ;;  %2616 = vmatmul.mubr.bf16.gmra.mxu0 %v2221_v47  ;;  %v9836_v24 = vld [vmem:[%s14212_s4 + $0x110] ss:$8 sps:$4 sm:$0xff]  }
 0x1ac   : > { %14333 = vst [vmem:[#allocation23_spill] sm:$0xff] %v11198_v37  ;;  %9572 = vrot.lane.b32.xlu0 %v9571_v34, %s10317_s19  ;;  %v1350_v59 = vpop.f32.mrf.mxu0  ;;  %v11231_v32 = vadd.f32 %v1348_v3, %v10740_v2  ;;  %3382 = vmatprep.subr.bf16.mxu1 %v9835_v45  ;;  %v1724_v25 = vmax.f32 %v11216_v49, 0.0  ;;  %v9839_v27 = vld [vmem:[%s14212_s4 + $0x30] ss:$8 sps:$4 sm:$0xff]   ;;  %v11253_v42 = vadd.f32 %v1578_v51, %v10734_v62 }
 0x1ad   : > { %v1580_v43 = vpop.f32.mrf.mxu1  ;;  %v9468_v55 = vpop.permute.xlu1 %9467  ;;  %v9576_v44 = vpack.i.bf16 %v11211_v10, %v11213_v35  ;;  %v9581_v1 = vpack.i.bf16 %v11198_v37, %v11224_v39  ;;  %3103 = vmatpush1.bf16.msra.mxu0 %v9830_v40  ;;  %3383 = vmatpush1.bf16.msra.mxu1 %v9833_v0  ;;  %v11260_v34 = vadd.f32 %v1350_v59, %v10746_v5  ;;  %v9844_v59 = vld [vmem:[%s14212_s4 + $0x104] ss:$8 sps:$4 sm:$0xff]  }
 0x1ae   : > { %v9470_v46 = vunpack.i.h.bf16 %v9468_v55  ;;  %v9469_v30 = vunpack.i.l.bf16 %v9468_v55  ;;  %v1352_v52 = vpop.f32.mrf.mxu0  ;;  %3104 = vmatprep.subr.bf16.mxu0 %v9838_v57  ;;  %v1723_v3 = vmax.f32 %v11231_v32, 0.0  ;;  %3384 = vmatprep.subr.bf16.mxu1 %v9841_v12  ;;  %v9847_v32 = vld [vmem:[%s14212_s4 + $0x24] ss:$8 sps:$4 sm:$0xff]  }
 0x1af   : > { %v1583_v29 = vpop.f32.mrf.mxu1  ;;  %9577 = vrot.lane.b32.xlu1 %v9576_v44, %s10317_s19  ;;  %v11263_v40 = vadd.f32 %v1352_v52, %v10740_v2 }
 0x1b0   : > { %v2036_v15 = vsel %vm2022_vm2, %v9469_v30, %v9470_v46  ;;  %v1584_v47 = vadd.f32 %v1583_v29, %v10734_v62  ;;  %9582 = vrot.lane.b32.xlu0 %v9581_v1, %s10317_s19  ;;  %v1356_v26 = vpop.f32.mrf.mxu0  ;;  %v2163_v51 = vmax.f32 %v10882_v33, %v9470_v46  ;;  %v9842_v46 = vld [vmem:[%s14212_s4 + $0x100] ss:$8 sps:$4 sm:$0xff]  }
 0x1b1   : > { %v11266_v38 = vadd.f32 %v1356_v26, %v10746_v5  ;;  %v1585_v20 = vpop.f32.mrf.mxu1  ;;  %v9473_v49 = vpop.permute.xlu0 %9472  ;;  %3105 = vmatpush1.bf16.msra.mxu0 %v9836_v24  ;;  %v2162_v33 = vmax.f32 %v10884_v36, %v2036_v15  ;;  %3385 = vmatpush1.bf16.msra.mxu1 %v9839_v27  ;;  %v9845_v29 = vld [vmem:[%s14212_s4 + $0x20] ss:$8 sps:$4 sm:$0xff]  }
 0x1b2   : > { %v1730_v0 = vmax.f32 %v1584_v47, 0.0  ;;  %v9475_v45 = vunpack.i.h.bf16 %v9473_v49  ;;  %v9474_v43 = vunpack.i.l.bf16 %v9473_v49  ;;  %v9478_v55 = vpop.permute.xlu1 %9477  ;;  %v1358_v44 = vpop.f32.mrf.mxu0  ;;  %3106 = vmatprep.subr.bf16.mxu0 %v9844_v59  ;;  %3386 = vmatprep.subr.bf16.mxu1 %v9847_v32  ;;  %v1725_v59 = vmax.f32 %v11260_v34, 0.0  ;;  %v9856_v34 = vld [vmem:[%s14212_s4 + $0xe4] ss:$8 sps:$4 sm:$0xff]  }
 0x1b3   : > { %v9480_v52 = vunpack.i.h.bf16 %v9478_v55  ;;  %v9479_v1 = vunpack.i.l.bf16 %v9478_v55  ;;  %v1359_v57 = vadd.f32 %v1358_v44, %v10740_v2  ;;  %v1586_v12 = vpop.f32.mrf.mxu1  ;;  %v1728_v24 = vmax.f32 %v11266_v38, 0.0 }
 0x1b4   : > { %v2166_v47 = vmax.f32 %v10893_v7, %v9475_v45  ;;  %v2038_v26 = vsel %vm2022_vm2, %v9474_v43, %v9475_v45  ;;  %v1587_v20 = vadd.f32 %v1586_v12, %v10734_v62  ;;  %v1360_v49 = vpop.f32.mrf.mxu0  ;;  %v11287_v36 = vmax.f32 %v1724_v25, %v1730_v0  ;;  %v9848_v62 = vld [vmem:[%s14212_s4 + $0xf0] ss:$8 sps:$4 sm:$0xff]   ;;  %v9850_v25 = vld [vmem:[%s14212_s4 + $0xf4] ss:$8 sps:$4 sm:$0xff]  }
 0x1b5   : > { %v2037_v27 = vsel %vm2022_vm2, %v9480_v52, %v9474_v43  ;;  %v2035_v15 = vsel %vm2022_vm2, %v9479_v1, %v9469_v30  ;;  %v1729_v55 = vmax.f32 %v1359_v57, 0.0  ;;  %v1588_v44 = vpop.f32.mrf.mxu1  ;;  %v1361_v38 = vadd.f32 %v1360_v49, %v10746_v5  ;;  %3107 = vmatpush1.bf16.msra.mxu0 %v9842_v46  ;;  %3387 = vmatpush1.bf16.msra.mxu1 %v9845_v29  ;;  %v9859_v46 = vld [vmem:[%s14212_s4 + $0x4] ss:$8 sps:$4 sm:$0xff]   ;;  %v9857_v29 = vld [vmem:[%s14212_s4] ss:$8 sps:$4 sm:$0xff]  }
 0x1b6   : > { %v2226_v53 = vpack.c.bf16 %v2166_v47, %v2163_v51  ;;  %v1733_v37 = vmax.f32 %v1587_v20, 0.0  ;;  %v1362_v7 = vpop.f32.mrf.mxu0  ;;  %v2165_v45 = vmax.f32 %v10895_v8, %v2038_v26  ;;  %v2161_v51 = vmax.f32 %v10891_v6, %v2035_v15  ;;  %v9853_v8 = vld [vmem:[%s14212_s4 + $0x14] ss:$8 sps:$4 sm:$0xff]   ;;  %3108 = vmatprep.subr.bf16.mxu0 %v9850_v25  ;;  %v9868_v15 = vld [vmem:[%s14212_s4 + $0xc4] ss:$8 sps:$4 sm:$0xff]  }
 0x1b7   : > { %v11299_v30 = vmax.f32 %v1723_v3, %v1729_v55  ;;  %v1363_v0 = vadd.f32 %v1362_v7, %v10740_v2  ;;  %v2164_v5 = vmax.f32 %v10887_v61, %v2037_v27  ;;  %v1727_v43 = vmax.f32 %v11253_v42, 0.0  ;;  %v9851_v2 = vld [vmem:[%s14212_s4 + $0x10] ss:$8 sps:$4 sm:$0xff]   ;;  %3388 = vmatprep.subr.bf16.mxu1 %v9853_v8  ;;  %v9865_v26 = vld [vmem:[%s14212_s4 + $0xb4] ss:$8 sps:$4 sm:$0xff]  }
 0x1b8   : > { %v1731_v32 = vmax.f32 %v1361_v38, 0.0  ;;  %8408 = vmatmul.mubr.msk.bf16.gmra.mxu1 %vm2022_vm2, %v2226_v53  ;;  %v2225_v3 = vpack.c.bf16 %v2165_v45, %v2162_v33  ;;  %v1726_v61 = vmax.f32 %v11263_v40, 0.0  ;;  %v9854_v53 = vld [vmem:[%s14212_s4 + $0xe0] ss:$8 sps:$4 sm:$0xff]   ;;  %v14335_v40 = vmax.f32 %v11227_v56, 0.0 }
 0x1b9   : > { %v1732_v6 = vmax.f32 %v1363_v0, 0.0  ;;  %v2224_v52 = vpack.c.bf16 %v2164_v5, %v2161_v51  ;;  %v9586_v1 = vpack.i.bf16 %v11287_v36, %v11299_v30  ;;  %2788 = vmatprep.mubr.bf16.mxu1 %v14330_v31  ;;  %3109 = vmatpush1.bf16.msra.mxu0 %v9848_v62  ;;  %v11329_v12 = vmax.f32 %v1727_v43, %v1733_v37  ;;  %v9862_v37 = vld [vmem:[%s14212_s4 + $0xd4] ss:$8 sps:$4 sm:$0xff]   ;;  %v9860_v27 = vld [vmem:[%s14212_s4 + $0xd0] ss:$8 sps:$4 sm:$0xff]  }
 0x1ba   : > { %v11317_v42 = vmax.f32 %v1725_v59, %v1731_v32  ;;  %2625 = vmatprep.mubr.bf16.mxu0 %v2225_v3  ;;  %v11327_v57 = vmax.f32 %v14335_v40, %v1728_v24  ;;  %3389 = vmatpush1.bf16.msra.mxu1 %v9851_v2  ;;  %v9863_v55 = vld [vmem:[%s14212_s4 + $0xb0] ss:$8 sps:$4 sm:$0xff]   ;;  %v9871_v45 = vld [vmem:[%s14212_s4 + $0xa4] ss:$8 sps:$4 sm:$0xff]   ;;  %v9866_v5 = vld [vmem:[%s14212_s4 + $0xc0] ss:$8 sps:$4 sm:$0xff]  }
 0x1bb   : > { %v11331_v33 = vmax.f32 %v1726_v61, %v1732_v6  ;;  %2626 = vmatmul.mubr.bf16.gmra.mxu0 %v2224_v52  ;;  %9587 = vrot.lane.b32.xlu1 %v9586_v1, %s10317_s19  ;;  %v9874_v43 = vld [vmem:[%s14212_s4 + $0x174] ss:$8 sps:$4 sm:$0xff]   ;;  %v9872_v40 = vld [vmem:[%s14212_s4 + $0x170] ss:$8 sps:$4 sm:$0xff]  }
 0x1bc   : > { %3110 = vmatprep.subr.bf16.mxu0 %v9856_v34  ;;  %v9596_v47 = vpack.i.bf16 %v11317_v42, %v11327_v57  ;;  %3390 = vmatprep.subr.bf16.mxu1 %v9859_v46  ;;  %v9883_v46 = vld [vmem:[%s14212_s4 + $0x84] ss:$8 sps:$4 sm:$0xff]  }
 0x1bd   : > { %v9483_v56 = vpop.permute.xlu0 %9482  ;;  %v9591_v24 = vpack.i.bf16 %v11329_v12, %v11331_v33  ;;  %3111 = vmatpush1.bf16.msra.mxu0 %v9854_v53  ;;  %v9869_v53 = vld [vmem:[%s14212_s4 + $0xa0] ss:$8 sps:$4 sm:$0xff]  }
 0x1be   : > { %v9485_v20 = vunpack.i.h.bf16 %v9483_v56  ;;  %v9484_v49 = vunpack.i.l.bf16 %v9483_v56  ;;  %3391 = vmatpush1.bf16.msra.mxu1 %v9857_v29  ;;  %3112 = vmatprep.subr.bf16.mxu0 %v9862_v37 }
 0x1bf   : > { %9592 = vrot.lane.b32.xlu0 %v9591_v24, %s10317_s19  ;;  %9597 = vrot.lane.b32.xlu1 %v9596_v47, %s10317_s19  ;;  %v9881_v24 = vld [vmem:[%s14212_s4 + $0x80] ss:$8 sps:$4 sm:$0xff]   ;;  %v9886_v47 = vld [vmem:[%s14212_s4 + $0x154] ss:$8 sps:$4 sm:$0xff]   ;;  %s10319_s19 = smov 96  }
 0x1c0   : > { %v2040_v44 = vsel %vm2022_vm2, %v9484_v49, %v9485_v20  ;;  %3400 = vmatprep.subr.bf16.mxu1 %v9865_v26  ;;  %v2169_v8 = vmax.f32 %v10915_v63, %v9485_v20  ;;  %v9884_v26 = vld [vmem:[%s14212_s4 + $0x150] ss:$8 sps:$4 sm:$0xff]  }
 0x1c1   : > { %v9493_v38 = vpop.permute.xlu0 %9492  ;;  %v9488_v7 = vpop.permute.xlu1 %9487  ;;  %3113 = vmatpush1.bf16.msra.mxu0 %v9860_v27  ;;  %v2168_v63 = vmax.f32 %v10917_v4, %v2040_v44  ;;  %v9877_v4 = vld [vmem:[%s14212_s4 + $0x94] ss:$8 sps:$4 sm:$0xff]  }
 0x1c2   : > { %v9495_v62 = vunpack.i.h.bf16 %v9493_v38  ;;  %v9494_v25 = vunpack.i.l.bf16 %v9493_v38  ;;  %v9490_v0 = vunpack.i.h.bf16 %v9488_v7  ;;  %v9489_v51 = vunpack.i.l.bf16 %v9488_v7  ;;  %3114 = vmatprep.subr.bf16.mxu0 %v9868_v15  ;;  %3401 = vmatpush2.bf16.msra.mxu1 %v9863_v55  ;;  %v9889_v7 = vld [vmem:[%s14212_s4 + $0x144] ss:$8 sps:$4 sm:$0xff]  }
 0x1c3   : > { %3402 = vmatprep.subr.bf16.mxu1 %v9871_v45 }
 0x1c4   : > { %v2039_v59 = vsel %vm2022_vm2, %v9494_v25, %v9484_v49  ;;  %v2172_v32 = vmax.f32 %v10926_v22, %v9490_v0  ;;  %v2041_v3 = vsel %vm2022_vm2, %v9495_v62, %v9489_v51  ;;  %v2042_v2 = vsel %vm2022_vm2, %v9489_v51, %v9490_v0  ;;  %v9887_v62 = vld [vmem:[%s14212_s4 + $0x140] ss:$8 sps:$4 sm:$0xff]  }
 0x1c5   : > { %v2167_v61 = vmax.f32 %v10924_v21, %v2039_v59  ;;  %v2170_v6 = vmax.f32 %v10920_v16, %v2041_v3  ;;  %v2171_v52 = vmax.f32 %v10928_v23, %v2042_v2  ;;  %3115 = vmatpush1.bf16.msra.mxu0 %v9866_v5  ;;  %v9875_v16 = vld [vmem:[%s14212_s4 + $0x90] ss:$8 sps:$4 sm:$0xff]   ;;  %v9880_v21 = vld [vmem:[%s14212_s4 + $0x164] ss:$8 sps:$4 sm:$0xff]   ;;  %v9878_v23 = vld [vmem:[%s14212_s4 + $0x160] ss:$8 sps:$4 sm:$0xff]  }
 0x1c6   : > { %v2229_v1 = vpack.c.bf16 %v2172_v32, %v2169_v8  ;;  %3124 = vmatprep.subr.bf16.mxu0 %v9874_v43  ;;  %3403 = vmatpush2.bf16.msra.mxu1 %v9869_v53  ;;  %v14336_v8 = vld [vmem:[#allocation6_spill] sm:$0xff]  ;;  %v14337_v59 = vld [vmem:[#allocation7_spill] sm:$0xff]  ;;  %v14338_v3 = vld [vmem:[#allocation5_spill] sm:$0xff] }
 0x1c7   : > { %v2228_v22 = vpack.c.bf16 %v2171_v52, %v2168_v63  ;;  %v2227_v34 = vpack.c.bf16 %v2170_v6, %v2167_v61  ;;  %3404 = vmatprep.subr.bf16.mxu1 %v9877_v4  ;;  %v14339_v2 = vld [vmem:[#allocation8_spill] sm:$0xff] }
 0x1c8   : > { %8409 = vmatmul.mubr.msk.bf16.gmra.mxu1 %vm2022_vm2, %v2229_v1 }
 0x1c9   : > { %2635 = vmatprep.mubr.bf16.mxu0 %v2228_v22  ;;  %2798 = vmatprep.mubr.bf16.mxu1 %v14330_v31 }
 0x1ca   : > { %2636 = vmatmul.mubr.bf16.gmra.mxu0 %v2227_v34  ;;  %3405 = vmatpush2.bf16.msra.mxu1 %v9875_v16 }
 0x1cb   : > { %3125 = vmatpush2.bf16.msra.mxu0 %v9872_v40  ;;  %3406 = vmatprep.subr.bf16.mxu1 %v9883_v46  ;;  %v14340_v46 = vld [vmem:[#allocation9_spill] sm:$0xff] }
 0x1cc   : > { %3126 = vmatprep.subr.bf16.mxu0 %v9880_v21 }
 0x1cd   : > { %v9498_v29 = vpop.permute.xlu1 %9497 }
 0x1ce   : > { %v9500_v37 = vunpack.i.h.bf16 %v9498_v29  ;;  %v9499_v56 = vunpack.i.l.bf16 %v9498_v29  ;;  %3407 = vmatpush2.bf16.msra.mxu1 %v9881_v24 }
 0x1cf   : > { %3127 = vmatpush2.bf16.msra.mxu0 %v9878_v23 }
 0x1d0   : > { %3128 = vmatprep.subr.bf16.mxu0 %v9886_v47  ;;  %v2044_v20 = vsel %vm2022_vm2, %v9499_v56, %v9500_v37  ;;  %v2175_v45 = vmax.f32 %v10948_v28, %v9500_v37 }
 0x1d1   : > { %v9503_v49 = vpop.permute.xlu0 %9502  ;;  %v9508_v27 = vpop.permute.xlu1 %9507  ;;  %v2174_v28 = vmax.f32 %v14338_v3, %v2044_v20  ;;  %v14342_v20 = vld [vmem:[#allocation12_spill] sm:$0xff] }
 0x1d2   : > { %v9505_v15 = vunpack.i.h.bf16 %v9503_v49  ;;  %v9504_v55 = vunpack.i.l.bf16 %v9503_v49  ;;  %v9510_v44 = vunpack.i.h.bf16 %v9508_v27  ;;  %v9509_v38 = vunpack.i.l.bf16 %v9508_v27  ;;  %v14343_v27 = vld [vmem:[#allocation11_spill] sm:$0xff] }
 0x1d3   : > { %3129 = vmatpush2.bf16.msra.mxu0 %v9884_v26 }
 0x1d4   : > { %v2178_v25 = vmax.f32 %v10959_v9, %v9505_v15  ;;  %v2046_v0 = vsel %vm2022_vm2, %v9504_v55, %v9505_v15  ;;  %v2045_v51 = vsel %vm2022_vm2, %v9510_v44, %v9504_v55  ;;  %v2043_v5 = vsel %vm2022_vm2, %v9509_v38, %v9499_v56  ;;  %3130 = vmatprep.subr.bf16.mxu0 %v9889_v7  ;;  %v14341_v56 = vld [vmem:[#allocation13_spill] sm:$0xff]  ;;  %v14344_v55 = vld [vmem:[#allocation10_spill] sm:$0xff] }
 0x1d5   : > { %v2176_v43 = vmax.f32 %v14336_v8, %v2045_v51  ;;  %v2173_v32 = vmax.f32 %v14337_v59, %v2043_v5  ;;  %v2177_v61 = vmax.f32 %v14339_v2, %v2046_v0  ;;  %v14345_v38 = vld [vmem:[#allocation14_spill] sm:$0xff] }
 0x1d6   : > { %v2232_v6 = vpack.c.bf16 %v2178_v25, %v2175_v45 }
 0x1d7   : > { %v2231_v63 = vpack.c.bf16 %v2177_v61, %v2174_v28  ;;  %v2230_v52 = vpack.c.bf16 %v2176_v43, %v2173_v32  ;;  %3131 = vmatpush2.bf16.msra.mxu0 %v9887_v62  ;;  %v14346_v61 = vld [vmem:[#allocation15_spill] sm:$0xff] }
 0x1d8   : > { %8410 = vmatmul.mubr.msk.bf16.gmra.mxu1 %vm2022_vm2, %v2232_v6 }
 0x1d9   : > { %2645 = vmatprep.mubr.bf16.mxu0 %v2231_v63  ;;  %2808 = vmatprep.mubr.bf16.mxu1 %v14330_v31  ;;  %v14347_v63 = vld [vmem:[#allocation19_spill] sm:$0xff] }
 0x1da   : > { %2646 = vmatmul.mubr.bf16.gmra.mxu0 %v2230_v52 }
 0x1dd   : > { %v9513_v9 = vpop.permute.xlu0 %9512 }
 0x1de   : > { %v9515_v1 = vunpack.i.h.bf16 %v9513_v9  ;;  %v9514_v53 = vunpack.i.l.bf16 %v9513_v9 }
 0x1e0   : > { %v2048_v22 = vsel %vm2022_vm2, %v9514_v53, %v9515_v1  ;;  %v2181_v29 = vmax.f32 %v14340_v46, %v9515_v1 }
 0x1e1   : > { %v9523_v34 = vpop.permute.xlu0 %9522  ;;  %v9518_v40 = vpop.permute.xlu1 %9517  ;;  %v2180_v44 = vmax.f32 %v14344_v55, %v2048_v22  ;;  %v14348_v22 = vld [vmem:[#allocation17_spill] sm:$0xff] }
 0x1e2   : > { %v9525_v4 = vunpack.i.h.bf16 %v9523_v34  ;;  %v9524_v16 = vunpack.i.l.bf16 %v9523_v34  ;;  %v9520_v21 = vunpack.i.h.bf16 %v9518_v40  ;;  %v9519_v23 = vunpack.i.l.bf16 %v9518_v40  ;;  %v14349_v40 = vld [vmem:[#allocation18_spill] sm:$0xff] }
 0x1e4   : > { %v2047_v37 = vsel %vm2022_vm2, %v9524_v16, %v9514_v53  ;;  %v2184_v24 = vmax.f32 %v14341_v56, %v9520_v21  ;;  %v2049_v47 = vsel %vm2022_vm2, %v9525_v4, %v9519_v23  ;;  %v2050_v26 = vsel %vm2022_vm2, %v9519_v23, %v9520_v21  ;;  %v14350_v16 = vld [vmem:[#allocation16_spill] sm:$0xff] }
 0x1e5   : > { %v2179_v49 = vmax.f32 %v14342_v20, %v2047_v37  ;;  %v2182_v15 = vmax.f32 %v14343_v27, %v2049_v47  ;;  %v2183_v7 = vmax.f32 %v14345_v38, %v2050_v26  ;;  %v14351_v23 = vld [vmem:[#allocation20_spill] sm:$0xff] }
 0x1e6   : > { %v2235_v45 = vpack.c.bf16 %v2184_v24, %v2181_v29 }
 0x1e7   : > { %v2234_v62 = vpack.c.bf16 %v2183_v7, %v2180_v44  ;;  %v2233_v25 = vpack.c.bf16 %v2182_v15, %v2179_v49 }
 0x1e8   : > { %8411 = vmatmul.mubr.msk.bf16.gmra.mxu1 %vm2022_vm2, %v2235_v45 }
 0x1e9   : > { %2655 = vmatprep.mubr.bf16.mxu0 %v2234_v62  ;;  %2818 = vmatprep.mubr.bf16.mxu1 %v14330_v31 }
 0x1ea   : > { %2656 = vmatmul.mubr.bf16.gmra.mxu0 %v2233_v25 }
 0x1ed   : > { %v9528_v0 = vpop.permute.xlu1 %9527 }
 0x1ee   : > { %v9530_v51 = vunpack.i.h.bf16 %v9528_v0  ;;  %v9529_v5 = vunpack.i.l.bf16 %v9528_v0 }
 0x1f0   : > { %v2052_v8 = vsel %vm2022_vm2, %v9529_v5, %v9530_v51  ;;  %v2187_v6 = vmax.f32 %v14346_v61, %v9530_v51 }
 0x1f1   : > { %v9533_v43 = vpop.permute.xlu0 %9532  ;;  %v9538_v59 = vpop.permute.xlu1 %9537  ;;  %v2186_v21 = vmax.f32 %v14350_v16, %v2052_v8 }
 0x1f2   : > { %v9535_v32 = vunpack.i.h.bf16 %v9533_v43  ;;  %v9534_v3 = vunpack.i.l.bf16 %v9533_v43  ;;  %v9540_v28 = vunpack.i.h.bf16 %v9538_v59  ;;  %v9539_v2 = vunpack.i.l.bf16 %v9538_v59  ;;  %v14352_v43 = vld [vmem:[#allocation21_spill] sm:$0xff] }
 0x1f4   : > { %v2190_v52 = vmax.f32 %v14347_v63, %v9535_v32  ;;  %v2054_v9 = vsel %vm2022_vm2, %v9534_v3, %v9535_v32  ;;  %v2053_v1 = vsel %vm2022_vm2, %v9540_v28, %v9534_v3  ;;  %v2051_v53 = vsel %vm2022_vm2, %v9539_v2, %v9529_v5 }
 0x1f5   : > { %v2188_v34 = vmax.f32 %v14348_v22, %v2053_v1  ;;  %v2185_v4 = vmax.f32 %v14349_v40, %v2051_v53  ;;  %v2189_v46 = vmax.f32 %v14351_v23, %v2054_v9 }
 0x1f6   : > { %v2238_v29 = vpack.c.bf16 %v2190_v52, %v2187_v6 }
 0x1f7   : > { %v2237_v37 = vpack.c.bf16 %v2189_v46, %v2186_v21  ;;  %v2236_v56 = vpack.c.bf16 %v2188_v34, %v2185_v4  ;;  %v14353_v21 = vld [vmem:[#allocation22_spill] sm:$0xff] }
 0x1f8   : > { %8412 = vmatmul.mubr.msk.bf16.gmra.mxu1 %vm2022_vm2, %v2238_v29 }
 0x1f9   : > { %2665 = vmatprep.mubr.bf16.mxu0 %v2237_v37  ;;  %2828 = vmatprep.mubr.bf16.mxu1 %v14330_v31 }
 0x1fa   : > { %2666 = vmatmul.mubr.bf16.gmra.mxu0 %v2236_v56 }
 0x1fd   : > { %v9543_v24 = vpop.permute.xlu0 %9542 }
 0x1fe   : > { %v9545_v47 = vunpack.i.h.bf16 %v9543_v24  ;;  %v9544_v26 = vunpack.i.l.bf16 %v9543_v24 }
 0x200   : > { %v2056_v20 = vsel %vm2022_vm2, %v9544_v26, %v9545_v47  ;;  %v2193_v7 = vmax.f32 %v11060_v13, %v9545_v47 }
 0x201   : > { %v9553_v49 = vpop.permute.xlu0 %9552  ;;  %v9548_v27 = vpop.permute.xlu1 %9547  ;;  %v2192_v8 = vmax.f32 %v11062_v41, %v2056_v20 }
 0x202   : > { %v9555_v15 = vunpack.i.h.bf16 %v9553_v49  ;;  %v9554_v55 = vunpack.i.l.bf16 %v9553_v49  ;;  %v9550_v44 = vunpack.i.h.bf16 %v9548_v27  ;;  %v9549_v38 = vunpack.i.l.bf16 %v9548_v27 }
 0x204   : > { %v2055_v45 = vsel %vm2022_vm2, %v9554_v55, %v9544_v26  ;;  %v2196_v62 = vmax.f32 %v11073_v17, %v9550_v44  ;;  %v2057_v25 = vsel %vm2022_vm2, %v9555_v15, %v9549_v38  ;;  %v2058_v0 = vsel %vm2022_vm2, %v9549_v38, %v9550_v44 }
 0x205   : > { %v2191_v51 = vmax.f32 %v11069_v54, %v2055_v45  ;;  %v2194_v5 = vmax.f32 %v11071_v60, %v2057_v25  ;;  %v2195_v59 = vmax.f32 %v14352_v43, %v2058_v0  ;;  %v14354_v25 = vld [vmem:[#allocation23_spill] sm:$0xff] }
 0x206   : > { %v2241_v32 = vpack.c.bf16 %v2196_v62, %v2193_v7 }
 0x207   : > { %v2240_v3 = vpack.c.bf16 %v2195_v59, %v2192_v8  ;;  %v2239_v28 = vpack.c.bf16 %v2194_v5, %v2191_v51 }
 0x208   : > { %8413 = vmatmul.mubr.msk.bf16.gmra.mxu1 %vm2022_vm2, %v2241_v32 }
 0x209   : > { %2675 = vmatprep.mubr.bf16.mxu0 %v2240_v3  ;;  %2838 = vmatprep.mubr.bf16.mxu1 %v14330_v31 }
 0x20a   : > { %2676 = vmatmul.mubr.bf16.gmra.mxu0 %v2239_v28 }
 0x20d   : > { %v9558_v13 = vpop.permute.xlu1 %9557 }
 0x20e   : > { %v9560_v17 = vunpack.i.h.bf16 %v9558_v13  ;;  %v9559_v2 = vunpack.i.l.bf16 %v9558_v13 }
 0x210   : > { %v2060_v54 = vsel %vm2022_vm2, %v9559_v2, %v9560_v17  ;;  %v2199_v9 = vmax.f32 %v11102_v19, %v9560_v17 }
 0x211   : > { %v9563_v61 = vpop.permute.xlu0 %9562  ;;  %v9568_v60 = vpop.permute.xlu1 %9567  ;;  %v2198_v16 = vmax.f32 %v11108_v18, %v2060_v54 }
 0x212   : > { %v9565_v6 = vunpack.i.h.bf16 %v9563_v61  ;;  %v9564_v41 = vunpack.i.l.bf16 %v9563_v61  ;;  %v9570_v63 = vunpack.i.h.bf16 %v9568_v60  ;;  %v9569_v52 = vunpack.i.l.bf16 %v9568_v60 }
 0x214   : > { %v2202_v1 = vmax.f32 %v11121_v50, %v9565_v6  ;;  %v2062_v53 = vsel %vm2022_vm2, %v9564_v41, %v9565_v6  ;;  %v2061_v22 = vsel %vm2022_vm2, %v9570_v63, %v9564_v41  ;;  %v2059_v34 = vsel %vm2022_vm2, %v9569_v52, %v9559_v2 }
 0x215   : > { %v2200_v40 = vmax.f32 %v11117_v14, %v2061_v22  ;;  %v2197_v4 = vmax.f32 %v11119_v48, %v2059_v34  ;;  %v2201_v23 = vmax.f32 %v14353_v21, %v2062_v53 }
 0x216   : > { %v2244_v46 = vpack.c.bf16 %v2202_v1, %v2199_v9 }
 0x217   : > { %v2243_v29 = vpack.c.bf16 %v2201_v23, %v2198_v16  ;;  %v2242_v37 = vpack.c.bf16 %v2200_v40, %v2197_v4 }
 0x218   : > { %8414 = vmatmul.mubr.msk.bf16.gmra.mxu1 %vm2022_vm2, %v2244_v46  ;;  %v9890_v46 = vld [vmem:[%s14212_s4 + $0x1f0] ss:$8 sps:$4 sm:$0xff]  }
 0x219   : > { %2685 = vmatprep.mubr.bf16.mxu0 %v2243_v29  ;;  %2848 = vmatprep.mubr.bf16.mxu1 %v14330_v31 }
 0x21a   : > { %2686 = vmatmul.mubr.bf16.gmra.mxu0 %v2242_v37  ;;  %v9895_v37 = vld [vmem:[%s14212_s4 + $0x1e4] ss:$8 sps:$4 sm:$0xff]  }
 0x21e   : > { %v9573_v19 = vpop.permute.xlu0 %9572 }
 0x21f   : > { %v9575_v50 = vunpack.i.h.bf16 %v9573_v19  ;;  %v9574_v56 = vunpack.i.l.bf16 %v9573_v19 }
 0x221   : > { %v9578_v24 = vpop.permute.xlu1 %9577  ;;  %v2064_v14 = vsel %vm2022_vm2, %v9574_v56, %v9575_v50  ;;  %v2205_v49 = vmax.f32 %v11192_v58, %v9575_v50  ;;  %v9893_v50 = vld [vmem:[%s14212_s4 + $0x1e0] ss:$8 sps:$4 sm:$0xff]  }
 0x222   : > { %v9583_v48 = vpop.permute.xlu0 %9582  ;;  %v9580_v47 = vunpack.i.h.bf16 %v9578_v24  ;;  %v9579_v18 = vunpack.i.l.bf16 %v9578_v24  ;;  %v2204_v38 = vmax.f32 %v11194_v11, %v2064_v14  ;;  %v9892_v11 = vld [vmem:[%s14212_s4 + $0x1f4] ss:$8 sps:$4 sm:$0xff]  }
 0x223   : > { %v9585_v26 = vunpack.i.h.bf16 %v9583_v48  ;;  %v9584_v20 = vunpack.i.l.bf16 %v9583_v48  ;;  %3674 = vmatprep.subr.bf16.mxu0 %v9892_v11  ;;  %v9896_v48 = vld [vmem:[%s14212_s4 + $0x1d0] ss:$8 sps:$4 sm:$0xff]   ;;  %v9910_v11 = vld [vmem:[%s14212_s4 + $0x194] ss:$8 sps:$4 sm:$0xff]  }
 0x224   : > { %v2208_v27 = vmax.f32 %v11211_v10, %v9580_v47  ;;  %v2066_v15 = vsel %vm2022_vm2, %v9579_v18, %v9580_v47 }
 0x225   : > { %v2063_v55 = vsel %vm2022_vm2, %v9584_v20, %v9574_v56  ;;  %v2065_v44 = vsel %vm2022_vm2, %v9585_v26, %v9579_v18  ;;  %v2207_v7 = vmax.f32 %v11213_v35, %v2066_v15  ;;  %v9898_v56 = vld [vmem:[%s14212_s4 + $0x1d4] ss:$8 sps:$4 sm:$0xff]   ;;  %v9901_v26 = vld [vmem:[%s14212_s4 + $0x1c4] ss:$8 sps:$4 sm:$0xff]  }
 0x226   : > { %v2203_v45 = vmax.f32 %v11224_v39, %v2063_v55  ;;  %v2247_v62 = vpack.c.bf16 %v2208_v27, %v2205_v49  ;;  %v2206_v0 = vmax.f32 %v14354_v25, %v2065_v44  ;;  %v9899_v49 = vld [vmem:[%s14212_s4 + $0x1c0] ss:$8 sps:$4 sm:$0xff]   ;;  %v9904_v44 = vld [vmem:[%s14212_s4 + $0x1b4] ss:$8 sps:$4 sm:$0xff]   ;;  %v9902_v25 = vld [vmem:[%s14212_s4 + $0x1b0] ss:$8 sps:$4 sm:$0xff]  }
 0x227   : > { %v2246_v51 = vpack.c.bf16 %v2207_v7, %v2204_v38 }
 0x228   : > { %8415 = vmatmul.mubr.msk.bf16.gmra.mxu1 %vm2022_vm2, %v2247_v62  ;;  %v2245_v58 = vpack.c.bf16 %v2206_v0, %v2203_v45 }
 0x229   : > { %2695 = vmatprep.mubr.bf16.mxu0 %v2246_v51  ;;  %2858 = vmatprep.mubr.bf16.mxu1 %v14330_v31  ;;  %v9907_v51 = vld [vmem:[%s14212_s4 + $0x1a4] ss:$8 sps:$4 sm:$0xff]   ;;  %v9929_v31 = vld [vmem:[%s14214_s6 + $0x120] ss:$8 sps:$4 sm:$0xff]  }
 0x22a   : > { %2696 = vmatmul.mubr.bf16.gmra.mxu0 %v2245_v58  ;;  %v9905_v58 = vld [vmem:[%s14212_s4 + $0x1a0] ss:$8 sps:$4 sm:$0xff]  }
 0x22d   : > { %v9588_v10 = vpop.permute.xlu1 %9587 }
 0x22e   : > { %v9590_v5 = vunpack.i.h.bf16 %v9588_v10  ;;  %v9589_v35 = vunpack.i.l.bf16 %v9588_v10 }
 0x230   : > { %v2068_v39 = vsel %vm2022_vm2, %v9589_v35, %v9590_v5  ;;  %v2211_v13 = vmax.f32 %v11287_v36, %v9590_v5  ;;  %v14253_v36 = vmov 0.0|0.0  }
 0x231   : > { %v9593_v8 = vpop.permute.xlu0 %9592  ;;  %v9598_v43 = vpop.permute.xlu1 %9597  ;;  %v2210_v41 = vmax.f32 %v11299_v30, %v2068_v39  ;;  %v9908_v39 = vld [vmem:[%s14212_s4 + $0x190] ss:$8 sps:$4 sm:$0xff]  }
 0x232   : > { %v9595_v59 = vunpack.i.h.bf16 %v9593_v8  ;;  %v9594_v32 = vunpack.i.l.bf16 %v9593_v8  ;;  %v9600_v3 = vunpack.i.h.bf16 %v9598_v43  ;;  %v9599_v28 = vunpack.i.l.bf16 %v9598_v43  ;;  %v9913_v8 = vld [vmem:[%s14212_s4 + $0x184] ss:$8 sps:$4 sm:$0xff]  }
 0x234   : > { %v2214_v17 = vmax.f32 %v11329_v12, %v9595_v59  ;;  %v2070_v2 = vsel %vm2022_vm2, %v9594_v32, %v9595_v59  ;;  %v2069_v54 = vsel %vm2022_vm2, %v9600_v3, %v9594_v32  ;;  %v2067_v61 = vsel %vm2022_vm2, %v9599_v28, %v9589_v35  ;;  %v9911_v3 = vld [vmem:[%s14212_s4 + $0x180] ss:$8 sps:$4 sm:$0xff]   ;;  %v9916_v28 = vld [vmem:[%s14212_s4 + $0x234] ss:$8 sps:$4 sm:$0xff]  }
 0x235   : > { %v2212_v60 = vmax.f32 %v11317_v42, %v2069_v54  ;;  %v2209_v6 = vmax.f32 %v11327_v57, %v2067_v61  ;;  %v2213_v63 = vmax.f32 %v11331_v33, %v2070_v2 }
 0x236   : > { %v2250_v52 = vpack.c.bf16 %v2214_v17, %v2211_v13 }
 0x237   : > { %v2249_v9 = vpack.c.bf16 %v2213_v63, %v2210_v41  ;;  %v2248_v1 = vpack.c.bf16 %v2212_v60, %v2209_v6  ;;  %v9914_v41 = vld [vmem:[%s14212_s4 + $0x230] ss:$8 sps:$4 sm:$0xff]  }
 0x238   : > { %8416 = vmatmul.mubr.msk.bf16.gmra.mxu1 %vm2022_vm2, %v2250_v52  ;;  %v9919_v52 = vld [vmem:[%s14212_s4 + $0x224] ss:$8 sps:$4 sm:$0xff]  }
 0x239   : > { %2705 = vmatprep.mubr.bf16.mxu0 %v2249_v9  ;;  %3408 = vmatprep.mubr.bf16.mxu1 %v14253_v36 }
 0x23a   : > { %2706 = vmatmul.mubr.bf16.gmra.mxu0 %v2248_v1  ;;  %v9917_v1 = vld [vmem:[%s14212_s4 + $0x220] ss:$8 sps:$4 sm:$0xff]  }
 0x240   : > { %3409 = vmatmul.mubr.bf16.vlgmr.msra.gmra.mxu1 %v14253_v36 }
 0x248   : > { %v2750_v12 = vpop.f32.mrf.mxu1 }
 0x24a   : > { %v2752_v42 = vpop.f32.mrf.mxu1 }
 0x24b   : > { %v2597_v53 = vpop.f32.mrf.mxu0 }
 0x24c   : > { %v2754_v22 = vpop.f32.mrf.mxu1  ;;  %v11512_v21 = vadd.f32 %v2750_v12, %v2597_v53 }
 0x24d   : > { %v2599_v57 = vpop.f32.mrf.mxu0 }
 0x24e   : > { %v2756_v33 = vpop.f32.mrf.mxu1  ;;  %v11508_v4 = vadd.f32 %v2752_v42, %v2599_v57  ;;  %14358 = vst [vmem:[#allocation8_spill] sm:$0xff] %v11512_v21 }
 0x24f   : > { %v2601_v30 = vpop.f32.mrf.mxu0 }
 0x250   : > { %v11506_v34 = vadd.f32 %v2754_v22, %v2601_v30  ;;  %14356 = vst [vmem:[#allocation7_spill] sm:$0xff] %v11508_v4  ;;  %v9920_v22 = vld [vmem:[%s14212_s4 + $0x210] ss:$8 sps:$4 sm:$0xff]   ;;  %v9922_v30 = vld [vmem:[%s14212_s4 + $0x214] ss:$8 sps:$4 sm:$0xff]  }
 0x251   : > { %v2603_v40 = vpop.f32.mrf.mxu0 }
 0x252   : > { %14355 = vst [vmem:[#allocation6_spill] sm:$0xff] %v11506_v34  ;;  %v11510_v16 = vadd.f32 %v2756_v33, %v2603_v40  ;;  %v2870_v29 = vpack.c.bf16 %v11506_v34, %v11512_v21 }
 0x254   : > { %14357 = vst [vmem:[#allocation5_spill] sm:$0xff] %v11510_v16  ;;  %v2871_v23 = vpack.c.bf16 %v11510_v16, %v11508_v4 }
 0x256   : > { %8465 = vmatprep.mubr.msk.bf16.mxu0 %vm3063_vm3, %v2871_v23  ;;  %8501 = vmatprep.mubr.msk.bf16.mxu1 %vm3063_vm3, %v2871_v23 }
 0x257   : > { %3133 = vmatmul.mubr.bf16.vlgmr.msra.gmra.mxu0 %v2870_v29  ;;  %3419 = vmatmul.mubr.bf16.gmra.mxu1 %v2870_v29 }
 0x258   : > { %v2760_v19 = vpop.f32.mrf.mxu1  ;;  %3675 = vmatpush1.bf16.msra.mxu0 %v9890_v46 }
 0x259   : > { %3676 = vmatprep.subr.bf16.mxu0 %v9895_v37 }
 0x25a   : > { %v2762_v24 = vpop.f32.mrf.mxu1 }
 0x25b   : > { %v2607_v14 = vpop.f32.mrf.mxu0 }
 0x25c   : > { %3677 = vmatpush1.bf16.msra.mxu0 %v9893_v50  ;;  %v2764_v18 = vpop.f32.mrf.mxu1  ;;  %v11550_v45 = vadd.f32 %v2760_v19, %v2607_v14  ;;  %v9925_v14 = vld [vmem:[%s14212_s4 + $0x204] ss:$8 sps:$4 sm:$0xff]  }
 0x25d   : > { %v2609_v47 = vpop.f32.mrf.mxu0  ;;  %3678 = vmatprep.subr.bf16.mxu0 %v9898_v56 }
 0x25e   : > { %v2766_v15 = vpop.f32.mrf.mxu1  ;;  %v11546_v38 = vadd.f32 %v2762_v24, %v2609_v47  ;;  %14362 = vst [vmem:[#allocation11_spill] sm:$0xff] %v11550_v45  ;;  %v9923_v24 = vld [vmem:[%s14212_s4 + $0x200] ss:$8 sps:$4 sm:$0xff]  }
 0x25f   : > { %v2611_v20 = vpop.f32.mrf.mxu0 }
 0x260   : > { %3679 = vmatpush1.bf16.msra.mxu0 %v9896_v48  ;;  %v11541_v27 = vadd.f32 %v2764_v18, %v2611_v20  ;;  %14360 = vst [vmem:[#allocation13_spill] sm:$0xff] %v11546_v38 }
 0x261   : > { %v2613_v55 = vpop.f32.mrf.mxu0  ;;  %3680 = vmatprep.subr.bf16.mxu0 %v9901_v26 }
 0x262   : > { %14359 = vst [vmem:[#allocation9_spill] sm:$0xff] %v11541_v27  ;;  %v11548_v7 = vadd.f32 %v2766_v15, %v2613_v55  ;;  %v11561_v0 = vpack.c.bf16 %v11541_v27, %v11550_v45 }
 0x264   : > { %14361 = vst [vmem:[#allocation12_spill] sm:$0xff] %v11548_v7  ;;  %v11554_v62 = vpack.c.bf16 %v11548_v7, %v11546_v38  ;;  %3681 = vmatpush1.bf16.msra.mxu0 %v9899_v49 }
 0x265   : > { %3682 = vmatprep.subr.bf16.mxu0 %v9904_v44 }
 0x266   : > { %8466 = vmatprep.mubr.msk.bf16.mxu0 %vm3063_vm3, %v11554_v62  ;;  %8502 = vmatprep.mubr.msk.bf16.mxu1 %vm3063_vm3, %v11554_v62 }
 0x267   : > { %3143 = vmatmul.mubr.bf16.gmra.mxu0 %v11561_v0  ;;  %3429 = vmatmul.mubr.bf16.gmra.mxu1 %v11561_v0 }
 0x268   : > { %3683 = vmatpush1.bf16.msra.mxu0 %v9902_v25 }
 0x269   : > { %v2770_v10 = vpop.f32.mrf.mxu1  ;;  %3684 = vmatprep.subr.bf16.mxu0 %v9907_v51 }
 0x26b   : > { %v2772_v5 = vpop.f32.mrf.mxu1  ;;  %v2617_v35 = vpop.f32.mrf.mxu0 }
 0x26c   : > { %3685 = vmatpush1.bf16.msra.mxu0 %v9905_v58  ;;  %v11596_v60 = vadd.f32 %v2770_v10, %v2617_v35 }
 0x26d   : > { %3686 = vmatprep.subr.bf16.mxu0 %v9910_v11  ;;  %v2619_v43 = vpop.f32.mrf.mxu0  ;;  %v2774_v59 = vpop.f32.mrf.mxu1 }
 0x26e   : > { %v11592_v54 = vadd.f32 %v2772_v5, %v2619_v43  ;;  %14366 = vst [vmem:[#allocation19_spill] sm:$0xff] %v11596_v60 }
 0x26f   : > { %v2621_v32 = vpop.f32.mrf.mxu0  ;;  %v2776_v17 = vpop.f32.mrf.mxu1 }
 0x270   : > { %3687 = vmatpush1.bf16.msra.mxu0 %v9908_v39  ;;  %v11590_v13 = vadd.f32 %v2774_v59, %v2621_v32  ;;  %14364 = vst [vmem:[#allocation14_spill] sm:$0xff] %v11592_v54 }
 0x271   : > { %3688 = vmatprep.subr.bf16.mxu0 %v9913_v8  ;;  %v2623_v2 = vpop.f32.mrf.mxu0 }
 0x272   : > { %14363 = vst [vmem:[#allocation10_spill] sm:$0xff] %v11590_v13  ;;  %v11594_v61 = vadd.f32 %v2776_v17, %v2623_v2  ;;  %v11607_v63 = vpack.c.bf16 %v11590_v13, %v11596_v60 }
 0x274   : > { %14365 = vst [vmem:[#allocation15_spill] sm:$0xff] %v11594_v61  ;;  %3689 = vmatpush1.bf16.msra.mxu0 %v9911_v3  ;;  %v11600_v6 = vpack.c.bf16 %v11594_v61, %v11592_v54 }
 0x275   : > { %3698 = vmatprep.subr.bf16.mxu0 %v9916_v28 }
 0x276   : > { %8467 = vmatprep.mubr.msk.bf16.mxu0 %vm3063_vm3, %v11600_v6  ;;  %8503 = vmatprep.mubr.msk.bf16.mxu1 %vm3063_vm3, %v11600_v6 }
 0x277   : > { %3153 = vmatmul.mubr.bf16.gmra.mxu0 %v11607_v63  ;;  %3439 = vmatmul.mubr.bf16.gmra.mxu1 %v11607_v63 }
 0x278   : > { %v2780_v9 = vpop.f32.mrf.mxu1  ;;  %3699 = vmatpush2.bf16.msra.mxu0 %v9914_v41 }
 0x279   : > { %3700 = vmatprep.subr.bf16.mxu0 %v9919_v52 }
 0x27a   : > { %v2782_v12 = vpop.f32.mrf.mxu1 }
 0x27b   : > { %v2627_v42 = vpop.f32.mrf.mxu0 }
 0x27c   : > { %v2784_v57 = vpop.f32.mrf.mxu1  ;;  %3701 = vmatpush2.bf16.msra.mxu0 %v9917_v1  ;;  %v11633_v19 = vadd.f32 %v2780_v9, %v2627_v42 }
 0x27d   : > { %v2629_v53 = vpop.f32.mrf.mxu0  ;;  %3702 = vmatprep.subr.bf16.mxu0 %v9922_v30 }
 0x27e   : > { %v2786_v23 = vpop.f32.mrf.mxu1  ;;  %v11629_v29 = vadd.f32 %v2782_v12, %v2629_v53  ;;  %14370 = vst [vmem:[#allocation20_spill] sm:$0xff] %v11633_v19 }
 0x27f   : > { %v2631_v33 = vpop.f32.mrf.mxu0 }
 0x280   : > { %v11627_v40 = vadd.f32 %v2784_v57, %v2631_v33  ;;  %3703 = vmatpush2.bf16.msra.mxu0 %v9920_v22  ;;  %14368 = vst [vmem:[#allocation18_spill] sm:$0xff] %v11629_v29 }
 0x281   : > { %v2633_v46 = vpop.f32.mrf.mxu0  ;;  %3704 = vmatprep.subr.bf16.mxu0 %v9925_v14 }
 0x282   : > { %14367 = vst [vmem:[#allocation17_spill] sm:$0xff] %v11627_v40  ;;  %v11631_v37 = vadd.f32 %v2786_v23, %v2633_v46  ;;  %v11641_v56 = vpack.c.bf16 %v11627_v40, %v11633_v19 }
 0x284   : > { %14369 = vst [vmem:[#allocation16_spill] sm:$0xff] %v11631_v37  ;;  %v11637_v50 = vpack.c.bf16 %v11631_v37, %v11629_v29  ;;  %3705 = vmatpush2.bf16.msra.mxu0 %v9923_v24 }
 0x286   : > { %8468 = vmatprep.mubr.msk.bf16.mxu0 %vm3063_vm3, %v11637_v50  ;;  %8504 = vmatprep.mubr.msk.bf16.mxu1 %vm3063_vm3, %v11637_v50 }
 0x287   : > { %3163 = vmatmul.mubr.bf16.gmra.mxu0 %v11641_v56  ;;  %3449 = vmatmul.mubr.bf16.gmra.mxu1 %v11641_v56 }
 0x288   : > { %v2790_v48 = vpop.f32.mrf.mxu1 }
 0x28a   : > { %v2637_v47 = vpop.f32.mrf.mxu0  ;;  %v2792_v18 = vpop.f32.mrf.mxu1 }
 0x28b   : > { %v11661_v58 = vadd.f32 %v2790_v48, %v2637_v47 }
 0x28c   : > { %v2639_v26 = vpop.f32.mrf.mxu0  ;;  %v2794_v20 = vpop.f32.mrf.mxu1 }
 0x28d   : > { %v11657_v25 = vadd.f32 %v2792_v18, %v2639_v26  ;;  %14374 = vst [vmem:[#allocation24_spill] sm:$0xff] %v11661_v58 }
 0x28e   : > { %v2641_v49 = vpop.f32.mrf.mxu0  ;;  %v2796_v55 = vpop.f32.mrf.mxu1 }
 0x28f   : > { %v11655_v15 = vadd.f32 %v2794_v20, %v2641_v49  ;;  %14372 = vst [vmem:[#allocation22_spill] sm:$0xff] %v11657_v25 }
 0x290   : > { %v2643_v44 = vpop.f32.mrf.mxu0 }
 0x291   : > { %14371 = vst [vmem:[#allocation21_spill] sm:$0xff] %v11655_v15  ;;  %v11659_v51 = vadd.f32 %v2796_v55, %v2643_v44  ;;  %v11669_v11 = vpack.c.bf16 %v11655_v15, %v11661_v58 }
 0x293   : > { %14373 = vst [vmem:[#allocation23_spill] sm:$0xff] %v11659_v51  ;;  %v11665_v10 = vpack.c.bf16 %v11659_v51, %v11657_v25 }
 0x295   : > { %8469 = vmatprep.mubr.msk.bf16.mxu0 %vm3063_vm3, %v11665_v10  ;;  %8505 = vmatprep.mubr.msk.bf16.mxu1 %vm3063_vm3, %v11665_v10 }
 0x296   : > { %3173 = vmatmul.mubr.bf16.gmra.mxu0 %v11669_v11  ;;  %3459 = vmatmul.mubr.bf16.gmra.mxu1 %v11669_v11 }
 0x298   : > { %v2800_v5 = vpop.f32.mrf.mxu1 }
 0x29a   : > { %v2647_v35 = vpop.f32.mrf.mxu0  ;;  %v2802_v39 = vpop.f32.mrf.mxu1 }
 0x29b   : > { %v11683_v41 = vadd.f32 %v2800_v5, %v2647_v35 }
 0x29c   : > { %v2649_v8 = vpop.f32.mrf.mxu0  ;;  %v2804_v43 = vpop.f32.mrf.mxu1 }
 0x29d   : > { %v11679_v17 = vadd.f32 %v2802_v39, %v2649_v8  ;;  %14378 = vst [vmem:[#allocation28_spill] sm:$0xff] %v11683_v41 }
 0x29e   : > { %v2651_v59 = vpop.f32.mrf.mxu0  ;;  %v2806_v3 = vpop.f32.mrf.mxu1 }
 0x29f   : > { %v11677_v32 = vadd.f32 %v2804_v43, %v2651_v59  ;;  %14376 = vst [vmem:[#allocation26_spill] sm:$0xff] %v11679_v17 }
 0x2a0   : > { %v2653_v28 = vpop.f32.mrf.mxu0 }
 0x2a1   : > { %14375 = vst [vmem:[#allocation25_spill] sm:$0xff] %v11677_v32  ;;  %v11681_v2 = vadd.f32 %v2806_v3, %v2653_v28  ;;  %v11691_v9 = vpack.c.bf16 %v11677_v32, %v11683_v41 }
 0x2a3   : > { %14377 = vst [vmem:[#allocation27_spill] sm:$0xff] %v11681_v2  ;;  %v11687_v52 = vpack.c.bf16 %v11681_v2, %v11679_v17 }
 0x2a5   : > { %8470 = vmatprep.mubr.msk.bf16.mxu0 %vm3063_vm3, %v11687_v52  ;;  %8506 = vmatprep.mubr.msk.bf16.mxu1 %vm3063_vm3, %v11687_v52 }
 0x2a6   : > { %3183 = vmatmul.mubr.bf16.gmra.mxu0 %v11691_v9  ;;  %3469 = vmatmul.mubr.bf16.gmra.mxu1 %v11691_v9 }
 0x2a8   : > { %v2810_v1 = vpop.f32.mrf.mxu1 }
 0x2aa   : > { %v2657_v12 = vpop.f32.mrf.mxu0  ;;  %v2812_v42 = vpop.f32.mrf.mxu1 }
 0x2ab   : > { %v11705_v14 = vadd.f32 %v2810_v1, %v2657_v12 }
 0x2ac   : > { %v2659_v53 = vpop.f32.mrf.mxu0  ;;  %v2814_v57 = vpop.f32.mrf.mxu1 }
 0x2ad   : > { %v11701_v46 = vadd.f32 %v2812_v42, %v2659_v53  ;;  %14382 = vst [vmem:[#allocation32_spill] sm:$0xff] %v11705_v14 }
 0x2ae   : > { %v2661_v22 = vpop.f32.mrf.mxu0  ;;  %v2816_v33 = vpop.f32.mrf.mxu1 }
 0x2af   : > { %v11699_v30 = vadd.f32 %v2814_v57, %v2661_v22  ;;  %14380 = vst [vmem:[#allocation30_spill] sm:$0xff] %v11701_v46 }
 0x2b0   : > { %v2663_v23 = vpop.f32.mrf.mxu0 }
 0x2b1   : > { %14379 = vst [vmem:[#allocation29_spill] sm:$0xff] %v11699_v30  ;;  %v11703_v24 = vadd.f32 %v2816_v33, %v2663_v23  ;;  %v11713_v47 = vpack.c.bf16 %v11699_v30, %v11705_v14 }
 0x2b3   : > { %14381 = vst [vmem:[#allocation31_spill] sm:$0xff] %v11703_v24  ;;  %v11709_v48 = vpack.c.bf16 %v11703_v24, %v11701_v46 }
 0x2b5   : > { %8471 = vmatprep.mubr.msk.bf16.mxu0 %vm3063_vm3, %v11709_v48  ;;  %8507 = vmatprep.mubr.msk.bf16.mxu1 %vm3063_vm3, %v11709_v48 }
 0x2b6   : > { %3193 = vmatmul.mubr.bf16.gmra.mxu0 %v11713_v47  ;;  %3479 = vmatmul.mubr.bf16.gmra.mxu1 %v11713_v47 }
 0x2b8   : > { %v2820_v18 = vpop.f32.mrf.mxu1 }
 0x2ba   : > { %v2667_v26 = vpop.f32.mrf.mxu0  ;;  %v2822_v20 = vpop.f32.mrf.mxu1 }
 0x2bb   : > { %v11727_v59 = vadd.f32 %v2820_v18, %v2667_v26 }
 0x2bc   : > { %v2669_v49 = vpop.f32.mrf.mxu0  ;;  %v2824_v55 = vpop.f32.mrf.mxu1 }
 0x2bd   : > { %v11723_v8 = vadd.f32 %v2822_v20, %v2669_v49  ;;  %14386 = vst [vmem:[#allocation36_spill] sm:$0xff] %v11727_v59 }
 0x2be   : > { %v2671_v44 = vpop.f32.mrf.mxu0  ;;  %v2826_v35 = vpop.f32.mrf.mxu1 }
 0x2bf   : > { %v11721_v5 = vadd.f32 %v2824_v55, %v2671_v44  ;;  %14384 = vst [vmem:[#allocation34_spill] sm:$0xff] %v11723_v8 }
 0x2c0   : > { %v2673_v39 = vpop.f32.mrf.mxu0 }
 0x2c1   : > { %14383 = vst [vmem:[#allocation33_spill] sm:$0xff] %v11721_v5  ;;  %v11725_v43 = vadd.f32 %v2826_v35, %v2673_v39  ;;  %v11735_v28 = vpack.c.bf16 %v11721_v5, %v11727_v59 }
 0x2c3   : > { %14385 = vst [vmem:[#allocation35_spill] sm:$0xff] %v11725_v43  ;;  %v11731_v3 = vpack.c.bf16 %v11725_v43, %v11723_v8 }
 0x2c5   : > { %8472 = vmatprep.mubr.msk.bf16.mxu0 %vm3063_vm3, %v11731_v3  ;;  %8508 = vmatprep.mubr.msk.bf16.mxu1 %vm3063_vm3, %v11731_v3 }
 0x2c6   : > { %3203 = vmatmul.mubr.bf16.gmra.mxu0 %v11735_v28  ;;  %3489 = vmatmul.mubr.bf16.gmra.mxu1 %v11735_v28 }
 0x2c8   : > { %v2830_v1 = vpop.f32.mrf.mxu1 }
 0x2ca   : > { %v2677_v12 = vpop.f32.mrf.mxu0  ;;  %v2832_v42 = vpop.f32.mrf.mxu1 }
 0x2cb   : > { %v11749_v49 = vadd.f32 %v2830_v1, %v2677_v12 }
 0x2cc   : > { %v2679_v53 = vpop.f32.mrf.mxu0  ;;  %v2834_v57 = vpop.f32.mrf.mxu1 }
 0x2cd   : > { %v11745_v26 = vadd.f32 %v2832_v42, %v2679_v53  ;;  %14390 = vst [vmem:[#allocation40_spill] sm:$0xff] %v11749_v49 }
 0x2ce   : > { %v2681_v22 = vpop.f32.mrf.mxu0  ;;  %v2836_v23 = vpop.f32.mrf.mxu1 }
 0x2cf   : > { %v11743_v33 = vadd.f32 %v2834_v57, %v2681_v22  ;;  %14388 = vst [vmem:[#allocation38_spill] sm:$0xff] %v11745_v26 }
 0x2d0   : > { %v2683_v18 = vpop.f32.mrf.mxu0 }
 0x2d1   : > { %14387 = vst [vmem:[#allocation37_spill] sm:$0xff] %v11743_v33  ;;  %v11747_v20 = vadd.f32 %v2836_v23, %v2683_v18  ;;  %v11757_v44 = vpack.c.bf16 %v11743_v33, %v11749_v49 }
 0x2d3   : > { %14389 = vst [vmem:[#allocation39_spill] sm:$0xff] %v11747_v20  ;;  %v11753_v55 = vpack.c.bf16 %v11747_v20, %v11745_v26 }
 0x2d5   : > { %8473 = vmatprep.mubr.msk.bf16.mxu0 %vm3063_vm3, %v11753_v55  ;;  %8509 = vmatprep.mubr.msk.bf16.mxu1 %vm3063_vm3, %v11753_v55 }
 0x2d6   : > { %3213 = vmatmul.mubr.bf16.gmra.mxu0 %v11757_v44  ;;  %3499 = vmatmul.mubr.bf16.gmra.mxu1 %v11757_v44 }
 0x2d8   : > { %v2840_v35 = vpop.f32.mrf.mxu1 }
 0x2da   : > { %v2687_v39 = vpop.f32.mrf.mxu0  ;;  %v2842_v1 = vpop.f32.mrf.mxu1 }
 0x2db   : > { %v11771_v20 = vadd.f32 %v2840_v35, %v2687_v39 }
 0x2dc   : > { %v2689_v12 = vpop.f32.mrf.mxu0  ;;  %v2844_v42 = vpop.f32.mrf.mxu1 }
 0x2dd   : > { %v11767_v18 = vadd.f32 %v2842_v1, %v2689_v12  ;;  %14394 = vst [vmem:[#allocation44_spill] sm:$0xff] %v11771_v20 }
 0x2de   : > { %v2691_v53 = vpop.f32.mrf.mxu0  ;;  %v2846_v22 = vpop.f32.mrf.mxu1 }
 0x2df   : > { %v11765_v57 = vadd.f32 %v2844_v42, %v2691_v53  ;;  %14392 = vst [vmem:[#allocation42_spill] sm:$0xff] %v11767_v18 }
 0x2e0   : > { %v2693_v23 = vpop.f32.mrf.mxu0 }
 0x2e1   : > { %14391 = vst [vmem:[#allocation41_spill] sm:$0xff] %v11765_v57  ;;  %v11769_v36 = vadd.f32 %v2846_v22, %v2693_v23  ;;  %v11779_v26 = vpack.c.bf16 %v11765_v57, %v11771_v20 }
 0x2e3   : > { %14393 = vst [vmem:[#allocation43_spill] sm:$0xff] %v11769_v36  ;;  %v11775_v33 = vpack.c.bf16 %v11769_v36, %v11767_v18 }
 0x2e5   : > { %8474 = vmatprep.mubr.msk.bf16.mxu0 %vm3063_vm3, %v11775_v33  ;;  %8510 = vmatprep.mubr.msk.bf16.mxu1 %vm3063_vm3, %v11775_v33 }
 0x2e6   : > { %3223 = vmatmul.mubr.bf16.gmra.mxu0 %v11779_v26  ;;  %3509 = vmatmul.mubr.bf16.gmra.mxu1 %v11779_v26 }
 0x2e8   : > { %v2850_v35 = vpop.f32.mrf.mxu1 }
 0x2ea   : > { %v2697_v39 = vpop.f32.mrf.mxu0  ;;  %v2852_v1 = vpop.f32.mrf.mxu1 }
 0x2eb   : > { %v11793_v20 = vadd.f32 %v2850_v35, %v2697_v39 }
 0x2ec   : > { %v2699_v12 = vpop.f32.mrf.mxu0  ;;  %v2854_v42 = vpop.f32.mrf.mxu1 }
 0x2ed   : > { %v11789_v36 = vadd.f32 %v2852_v1, %v2699_v12  ;;  %14398 = vst [vmem:[#allocation48_spill] sm:$0xff] %v11793_v20 }
 0x2ee   : > { %v2701_v53 = vpop.f32.mrf.mxu0  ;;  %v2856_v23 = vpop.f32.mrf.mxu1 }
 0x2ef   : > { %v11787_v22 = vadd.f32 %v2854_v42, %v2701_v53  ;;  %14396 = vst [vmem:[#allocation46_spill] sm:$0xff] %v11789_v36  ;;  %v9926_v42 = vld [vmem:[%s14214_s6 + $0x130] ss:$8 sps:$4 sm:$0xff]   ;;  %v9928_v53 = vld [vmem:[%s14214_s6 + $0x134] ss:$8 sps:$4 sm:$0xff]  }
 0x2f0   : > { %v2703_v18 = vpop.f32.mrf.mxu0  ;;  %4212 = vmatprep.subr.bf16.mxu1 %v9928_v53  ;;  %v9961_v53 = vld [vmem:[%s14214_s6 + $0xc4] ss:$8 sps:$4 sm:$0xff]  }
 0x2f1   : > { %14395 = vst [vmem:[#allocation45_spill] sm:$0xff] %v11787_v22  ;;  %v11791_v57 = vadd.f32 %v2856_v23, %v2703_v18  ;;  %v11801_v43 = vpack.c.bf16 %v11787_v22, %v11793_v20  ;;  %4213 = vmatpush1.bf16.msra.mxu1 %v9926_v42  ;;  %v9958_v42 = vld [vmem:[%s14214_s6 + $0x44] ss:$8 sps:$4 sm:$0xff]  }
 0x2f3   : > { %14397 = vst [vmem:[#allocation47_spill] sm:$0xff] %v11791_v57  ;;  %v11797_v49 = vpack.c.bf16 %v11791_v57, %v11789_v36  ;;  %v9931_v36 = vld [vmem:[%s14214_s6 + $0x124] ss:$8 sps:$4 sm:$0xff]  }
 0x2f4   : > { %4214 = vmatprep.subr.bf16.mxu1 %v9931_v36  ;;  %v9932_v36 = vld [vmem:[%s14214_s6 + $0x110] ss:$8 sps:$4 sm:$0xff]  }
 0x2f5   : > { %8475 = vmatprep.mubr.msk.bf16.mxu0 %vm3063_vm3, %v11797_v49  ;;  %8511 = vmatprep.mubr.msk.bf16.mxu1 %vm3063_vm3, %v11797_v49 }
 0x2f6   : > { %3233 = vmatmul.mubr.bf16.gmra.mxu0 %v11801_v43  ;;  %3519 = vmatmul.mubr.bf16.gmra.mxu1 %v11801_v43 }
 0x2f7   : > { %4215 = vmatpush1.bf16.msra.mxu1 %v9929_v31  ;;  %v9937_v31 = vld [vmem:[%s14214_s6 + $0x104] ss:$8 sps:$4 sm:$0xff]  }
 0x2f8   : > { %v2860_v18 = vpop.f32.mrf.mxu1 }
 0x2fa   : > { %v2707_v35 = vpop.f32.mrf.mxu0  ;;  %v2862_v39 = vpop.f32.mrf.mxu1 }
 0x2fb   : > { %v11827_v59 = vadd.f32 %v2860_v18, %v2707_v35  ;;  %v9952_v35 = vld [vmem:[%s14214_s6 + $0xd4] ss:$8 sps:$4 sm:$0xff]  }
 0x2fc   : > { %v2709_v1 = vpop.f32.mrf.mxu0  ;;  %v2864_v12 = vpop.f32.mrf.mxu1 }
 0x2fd   : > { %v11823_v5 = vadd.f32 %v2862_v39, %v2709_v1  ;;  %14402 = vst [vmem:[#allocation52_spill] sm:$0xff] %v11827_v59  ;;  %v9953_v39 = vld [vmem:[%s14214_s6 + $0x50] ss:$8 sps:$4 sm:$0xff]   ;;  %v9955_v1 = vld [vmem:[%s14214_s6 + $0x54] ss:$8 sps:$4 sm:$0xff]  }
 0x2fe   : > { %v2711_v23 = vpop.f32.mrf.mxu0  ;;  %v2866_v22 = vpop.f32.mrf.mxu1 }
 0x2ff   : > { %v11818_v57 = vadd.f32 %v2864_v12, %v2711_v23  ;;  %14400 = vst [vmem:[#allocation50_spill] sm:$0xff] %v11823_v5 }
 0x300   : > { %v2713_v20 = vpop.f32.mrf.mxu0 }
 0x301   : > { %14399 = vst [vmem:[#allocation49_spill] sm:$0xff] %v11818_v57  ;;  %v11825_v8 = vadd.f32 %v2866_v22, %v2713_v20  ;;  %v11835_v12 = vpack.c.bf16 %v11818_v57, %v11827_v59  ;;  %v9934_v20 = vld [vmem:[%s14214_s6 + $0x114] ss:$8 sps:$4 sm:$0xff]   ;;  %v9943_v22 = vld [vmem:[%s14214_s6 + $0xe4] ss:$8 sps:$4 sm:$0xff]  }
 0x302   : > { %4216 = vmatprep.subr.bf16.mxu1 %v9934_v20  ;;  %v9964_v20 = vld [vmem:[%s14214_s6 + $0x34] ss:$8 sps:$4 sm:$0xff]  }
 0x303   : > { %14401 = vst [vmem:[#allocation51_spill] sm:$0xff] %v11825_v8  ;;  %v11831_v24 = vpack.c.bf16 %v11825_v8, %v11823_v5  ;;  %4217 = vmatpush1.bf16.msra.mxu1 %v9932_v36  ;;  %v9956_v36 = vld [vmem:[%s14214_s6 + $0x40] ss:$8 sps:$4 sm:$0xff]  }
 0x304   : > { %4218 = vmatprep.subr.bf16.mxu1 %v9937_v31  ;;  %v9962_v31 = vld [vmem:[%s14214_s6 + $0x30] ss:$8 sps:$4 sm:$0xff]  }
 0x305   : > { %8476 = vmatprep.mubr.msk.bf16.mxu0 %vm3063_vm3, %v11831_v24 }
 0x306   : > { %3243 = vmatmul.mubr.bf16.gmra.mxu0 %v11835_v12 }
 0x307   : > { %8560 = vmatprep.mubr.msk.bf16.mxu0 %vm3063_vm3, %v11554_v62  ;;  %v9935_v62 = vld [vmem:[%s14214_s6 + $0x100] ss:$8 sps:$4 sm:$0xff]  }
 0x308   : > { %4219 = vmatpush1.bf16.msra.mxu1 %v9935_v62 }
 0x30e   : > { %3707 = vmatmul.mubr.bf16.vlgmr.msra.gmra.mxu0 %v11561_v0  ;;  %v9938_v0 = vld [vmem:[%s14214_s6 + $0xf0] ss:$8 sps:$4 sm:$0xff]  }
 0x30f   : > { %8561 = vmatprep.mubr.msk.bf16.mxu0 %vm3063_vm3, %v11600_v6  ;;  %v9940_v6 = vld [vmem:[%s14214_s6 + $0xf4] ss:$8 sps:$4 sm:$0xff]  }
 0x310   : > { %4220 = vmatprep.subr.bf16.mxu1 %v9940_v6  ;;  %v9965_v6 = vld [vmem:[%s14214_s6 + $0x20] ss:$8 sps:$4 sm:$0xff]  }
 0x311   : > { %4221 = vmatpush1.bf16.msra.mxu1 %v9938_v0 }
 0x312   : > { %4222 = vmatprep.subr.bf16.mxu1 %v9943_v22  ;;  %v9970_v22 = vld [vmem:[%s14214_s6 + $0x174] ss:$8 sps:$4 sm:$0xff]  }
 0x316   : > { %3717 = vmatmul.mubr.bf16.gmra.mxu0 %v11607_v63  ;;  %v9941_v63 = vld [vmem:[%s14214_s6 + $0xe0] ss:$8 sps:$4 sm:$0xff]  }
 0x317   : > { %8562 = vmatprep.mubr.msk.bf16.mxu0 %vm3063_vm3, %v11637_v50  ;;  %4223 = vmatpush1.bf16.msra.mxu1 %v9941_v63  ;;  %v9946_v50 = vld [vmem:[%s14214_s6 + $0x74] ss:$8 sps:$4 sm:$0xff]   ;;  %v11890_v18 = vpop.f32.mrf.mxu0  ;;  %v9971_v63 = vld [vmem:[%s14214_s6 + $0x10] ss:$8 sps:$4 sm:$0xff]  }
 0x318   : > { %4485 = vmatprep.subr.bf16.mxu0 %v9946_v50  ;;  %4224 = vmatprep.subr.bf16.mxu1 %v9952_v35 }
 0x319   : > { %v11913_v23 = vpop.f32.mrf.mxu0 }
 0x31e   : > { %3727 = vmatmul.mubr.bf16.gmra.mxu0 %v11641_v56  ;;  %v9944_v56 = vld [vmem:[%s14214_s6 + $0x70] ss:$8 sps:$4 sm:$0xff]  }
 0x31f   : > { %8563 = vmatprep.mubr.msk.bf16.mxu0 %vm3063_vm3, %v11665_v10  ;;  %4486 = vmatpush1.bf16.msra.mxu0 %v9944_v56  ;;  %v9949_v10 = vld [vmem:[%s14214_s6 + $0x64] ss:$8 sps:$4 sm:$0xff]   ;;  %v9973_v56 = vld [vmem:[%s14214_s6 + $0x14] ss:$8 sps:$4 sm:$0xff]  }
 0x320   : > { %4487 = vmatprep.subr.bf16.mxu0 %v9949_v10  ;;  %v9976_v10 = vld [vmem:[%s14214_s6 + $0x4] ss:$8 sps:$4 sm:$0xff]  }
 0x326   : > { %3737 = vmatmul.mubr.bf16.gmra.mxu0 %v11669_v11  ;;  %v9947_v11 = vld [vmem:[%s14214_s6 + $0x60] ss:$8 sps:$4 sm:$0xff]  }
 0x327   : > { %8564 = vmatprep.mubr.msk.bf16.mxu0 %vm3063_vm3, %v11687_v52  ;;  %4488 = vmatpush1.bf16.msra.mxu0 %v9947_v11  ;;  %v9950_v52 = vld [vmem:[%s14214_s6 + $0xd0] ss:$8 sps:$4 sm:$0xff]   ;;  %v9979_v11 = vld [vmem:[%s14214_s6 + $0x164] ss:$8 sps:$4 sm:$0xff]  }
 0x328   : > { %4225 = vmatpush1.bf16.msra.mxu1 %v9950_v52  ;;  %4489 = vmatprep.subr.bf16.mxu0 %v9955_v1  ;;  %v9974_v52 = vld [vmem:[%s14214_s6] ss:$8 sps:$4 sm:$0xff]   ;;  %v9980_v1 = vld [vmem:[%s14214_s6 + $0xb0] ss:$8 sps:$4 sm:$0xff]  }
 0x329   : > { %4226 = vmatprep.subr.bf16.mxu1 %v9961_v53  ;;  %v9985_v53 = vld [vmem:[%s14214_s6 + $0xa4] ss:$8 sps:$4 sm:$0xff]  }
 0x32b   : > { %4490 = vmatpush1.bf16.msra.mxu0 %v9953_v39  ;;  %v9982_v39 = vld [vmem:[%s14214_s6 + $0xb4] ss:$8 sps:$4 sm:$0xff]  }
 0x32c   : > { %4491 = vmatprep.subr.bf16.mxu0 %v9958_v42 }
 0x32e   : > { %3747 = vmatmul.mubr.bf16.gmra.mxu0 %v11691_v9  ;;  %v9959_v9 = vld [vmem:[%s14214_s6 + $0xc0] ss:$8 sps:$4 sm:$0xff]  }
 0x32f   : > { %8565 = vmatprep.mubr.msk.bf16.mxu0 %vm3063_vm3, %v11709_v48  ;;  %v11921_v48 = vpop.f32.mrf.mxu0  ;;  %4227 = vmatpush1.bf16.msra.mxu1 %v9959_v9 }
 0x330   : > { %4492 = vmatpush1.bf16.msra.mxu0 %v9956_v36  ;;  %4236 = vmatprep.subr.bf16.mxu1 %v9970_v22  ;;  %v9988_v36 = vld [vmem:[%s14214_s6 + $0x154] ss:$8 sps:$4 sm:$0xff]  }
 0x331   : > { %v11932_v62 = vpop.f32.mrf.mxu0  ;;  %4493 = vmatprep.subr.bf16.mxu0 %v9964_v20  ;;  %v9991_v20 = vld [vmem:[%s14214_s6 + $0x94] ss:$8 sps:$4 sm:$0xff]  }
 0x333   : > { %v11934_v0 = vpop.f32.mrf.mxu0 }
 0x334   : > { %4494 = vmatpush1.bf16.msra.mxu0 %v9962_v31  ;;  %v9989_v31 = vld [vmem:[%s14214_s6 + $0x90] ss:$8 sps:$4 sm:$0xff]  }
 0x335   : > { %v11951_v50 = vpop.f32.mrf.mxu0 }
 0x336   : > { %3757 = vmatmul.mubr.bf16.gmra.mxu0 %v11713_v47  ;;  %v9967_v47 = vld [vmem:[%s14214_s6 + $0x24] ss:$8 sps:$4 sm:$0xff]  }
 0x337   : > { %8566 = vmatprep.mubr.msk.bf16.mxu0 %vm3063_vm3, %v11731_v3  ;;  %4495 = vmatprep.subr.bf16.mxu0 %v9967_v47  ;;  %v9968_v3 = vld [vmem:[%s14214_s6 + $0x170] ss:$8 sps:$4 sm:$0xff]   ;;  %v11971_v35 = vpop.f32.mrf.mxu0 }
 0x338   : > { %4496 = vmatpush1.bf16.msra.mxu0 %v9965_v6  ;;  %4237 = vmatpush2.bf16.msra.mxu1 %v9968_v3  ;;  %v9992_v6 = vld [vmem:[%s14214_s6 + $0x80] ss:$8 sps:$4 sm:$0xff]  }
 0x339   : > { %4497 = vmatprep.subr.bf16.mxu0 %v9973_v56  ;;  %4238 = vmatprep.subr.bf16.mxu1 %v9979_v11  ;;  %v9995_v56 = vld [vmem:[%s14214_s6 + $0x140] ss:$8 sps:$4 sm:$0xff]  }
 0x33c   : > { %4498 = vmatpush1.bf16.msra.mxu0 %v9971_v63  ;;  %v9997_v63 = vld [vmem:[%s14214_s6 + $0x144] ss:$8 sps:$4 sm:$0xff]  }
 0x33d   : > { %4499 = vmatprep.subr.bf16.mxu0 %v9976_v10 }
 0x33e   : > { %3767 = vmatmul.mubr.bf16.gmra.mxu0 %v11735_v28  ;;  %v9977_v28 = vld [vmem:[%s14214_s6 + $0x160] ss:$8 sps:$4 sm:$0xff]  }
 0x33f   : > { %8567 = vmatprep.mubr.msk.bf16.mxu0 %vm3063_vm3, %v11753_v55  ;;  %4239 = vmatpush2.bf16.msra.mxu1 %v9977_v28  ;;  %v11973_v55 = vpop.f32.mrf.mxu0 }
 0x340   : > { %4500 = vmatpush1.bf16.msra.mxu0 %v9974_v52  ;;  %4240 = vmatprep.subr.bf16.mxu1 %v9988_v36 }
 0x341   : > { %v11984_v42 = vpop.f32.mrf.mxu0  ;;  %4509 = vmatprep.subr.bf16.mxu0 %v9982_v39 }
 0x343   : > { %v11992_v9 = vpop.f32.mrf.mxu0 }
 0x344   : > { %4510 = vmatpush2.bf16.msra.mxu0 %v9980_v1 }
 0x345   : > { %4511 = vmatprep.subr.bf16.mxu0 %v9985_v53  ;;  %v12009_v47 = vpop.f32.mrf.mxu0 }
 0x346   : > { %3777 = vmatmul.mubr.bf16.gmra.mxu0 %v11757_v44  ;;  %v9983_v44 = vld [vmem:[%s14214_s6 + $0xa0] ss:$8 sps:$4 sm:$0xff]  }
 0x347   : > { %8568 = vmatprep.mubr.msk.bf16.mxu0 %vm3063_vm3, %v11775_v33  ;;  %v9986_v33 = vld [vmem:[%s14214_s6 + $0x150] ss:$8 sps:$4 sm:$0xff]   ;;  %v12017_v3 = vpop.f32.mrf.mxu0 }
 0x348   : > { %4512 = vmatpush2.bf16.msra.mxu0 %v9983_v44  ;;  %4241 = vmatpush2.bf16.msra.mxu1 %v9986_v33 }
 0x349   : > { %4513 = vmatprep.subr.bf16.mxu0 %v9991_v20  ;;  %4242 = vmatprep.subr.bf16.mxu1 %v9997_v63  ;;  %v3410_v20 = vpop.f32.mrf.mxu1 }
 0x34c   : > { %4514 = vmatpush2.bf16.msra.mxu0 %v9989_v31  ;;  %4243 = vmatpush2.bf16.msra.mxu1 %v9995_v56 }
 0x34e   : > { %3787 = vmatmul.mubr.bf16.gmra.mxu0 %v11779_v26  ;;  %v9994_v26 = vld [vmem:[%s14214_s6 + $0x84] ss:$8 sps:$4 sm:$0xff]  }
 0x34f   : > { %8569 = vmatprep.mubr.msk.bf16.mxu0 %vm3063_vm3, %v11797_v49  ;;  %4515 = vmatprep.subr.bf16.mxu0 %v9994_v26  ;;  %v12019_v49 = vpop.f32.mrf.mxu0  ;;  %v3412_v26 = vpop.f32.mrf.mxu1 }
 0x350   : > { %4516 = vmatpush2.bf16.msra.mxu0 %v9992_v6 }
 0x351   : > { %v12024_v22 = vpop.f32.mrf.mxu0  ;;  %v3414_v63 = vpop.f32.mrf.mxu1 }
 0x353   : > { %v12032_v10 = vpop.f32.mrf.mxu0 }
 0x355   : > { %v12036_v11 = vpop.f32.mrf.mxu0 }
 0x356   : > { %3797 = vmatmul.mubr.bf16.gmra.mxu0 %v11801_v43  ;;  %v14403_v43 = vmov 0.0|0.0  }
 0x357   : > { %8570 = vmatprep.mubr.msk.bf16.mxu0 %vm3063_vm3, %v11831_v24  ;;  %v10000_v24 = vld [vmem:[%s14214_s6 + $0x1f4] ss:$8 sps:$4 sm:$0xff]   ;;  %v12041_v28 = vpop.f32.mrf.mxu0 }
 0x358   : > { %4783 = vmatprep.subr.bf16.mxu1 %v10000_v24  ;;  %v3416_v24 = vpop.f32.mrf.mxu1 }
 0x359   : > { %v12045_v52 = vpop.f32.mrf.mxu0 }
 0x35a   : > { %v3420_v8 = vpop.f32.mrf.mxu1 }
 0x35b   : > { %v12047_v39 = vpop.f32.mrf.mxu0 }
 0x35c   : > { %v3422_v59 = vpop.f32.mrf.mxu1 }
 0x35e   : > { %3807 = vmatmul.mubr.bf16.gmra.mxu0 %v11835_v12  ;;  %v12050_v12 = vpop.f32.mrf.mxu0  ;;  %v3424_v30 = vpop.f32.mrf.mxu1 }
 0x35f   : > { %3816 = vmatprep.mubr.bf16.mxu0 %v14403_v43 }
 0x360   : > { %v12078_v32 = vpop.f32.mrf.mxu1 }
 0x362   : > { %v12080_v17 = vpop.f32.mrf.mxu1 }
 0x364   : > { %v12084_v51 = vpop.f32.mrf.mxu1 }
 0x366   : > { %3817 = vmatmul.mubr.bf16.gmra.mxu0 %v14403_v43  ;;  %v12052_v1 = vpop.f32.mrf.mxu0  ;;  %v12088_v25 = vpop.f32.mrf.mxu1 }
 0x367   : > { %4517 = vmatprep.mubr.bf16.mxu0 %v14403_v43 }
 0x368   : > { %v12054_v53 = vpop.f32.mrf.mxu0  ;;  %v12094_v40 = vpop.f32.mrf.mxu1 }
 0x36a   : > { %v12056_v44 = vpop.f32.mrf.mxu0  ;;  %v12096_v29 = vpop.f32.mrf.mxu1 }
 0x36c   : > { %v12058_v33 = vpop.f32.mrf.mxu0  ;;  %v12100_v61 = vpop.f32.mrf.mxu1 }
 0x36e   : > { %4518 = vmatmul.mubr.bf16.vlgmr.msra.gmra.mxu0 %v14403_v43  ;;  %v12104_v54 = vpop.f32.mrf.mxu1 }
 0x370   : > { %v12110_v27 = vpop.f32.mrf.mxu1 }
 0x372   : > { %v12112_v38 = vpop.f32.mrf.mxu1 }
 0x374   : > { %v12116_v16 = vpop.f32.mrf.mxu1 }
 0x376   : > { %v12060_v36 = vpop.f32.mrf.mxu0  ;;  %v12120_v4 = vpop.f32.mrf.mxu1 }
 0x378   : > { %v12062_v31 = vpop.f32.mrf.mxu0 }
 0x37a   : > { %v12064_v6 = vpop.f32.mrf.mxu0 }
 0x37c   : > { %v12066_v56 = vpop.f32.mrf.mxu0 }
 0x37d   : > { %14404 = vst [vmem:[#allocation53_spill] sm:$0xff] %v12066_v56 }
 0x386   : > { %v12068_v5 = vpop.f32.mrf.mxu0 }
 0x387   : > { %14405 = vst [vmem:[#allocation54_spill] sm:$0xff] %v12068_v5 }
 0x388   : > { %v12070_v57 = vpop.f32.mrf.mxu0 }
 0x389   : > { %14406 = vst [vmem:[#allocation55_spill] sm:$0xff] %v12070_v57 }
 0x38a   : > { %v12072_v46 = vpop.f32.mrf.mxu0 }
 0x38b   : > { %14407 = vst [vmem:[#allocation56_spill] sm:$0xff] %v12072_v46 }
 0x38c   : > { %v12074_v14 = vpop.f32.mrf.mxu0 }
 0x38d   : > { %14408 = vst [vmem:[#allocation57_spill] sm:$0xff] %v12074_v14 }
 0x396   : > { %v12076_v2 = vpop.f32.mrf.mxu0 }
 0x397   : > { %14409 = vst [vmem:[#allocation58_spill] sm:$0xff] %v12076_v2 }
 0x398   : > { %v12082_v41 = vpop.f32.mrf.mxu0 }
 0x399   : > { %14410 = vst [vmem:[#allocation59_spill] sm:$0xff] %v12082_v41  ;;  %v14425_v41 = vld [vmem:[#allocation4_spill] sm:$0xff] }
 0x39a   : > { %v12086_v15 = vpop.f32.mrf.mxu0 }
 0x39b   : > { %14411 = vst [vmem:[#allocation60_spill] sm:$0xff] %v12086_v15 }
 0x39c   : > { %v12090_v58 = vpop.f32.mrf.mxu0 }
 0x39d   : > { %14412 = vst [vmem:[#allocation61_spill] sm:$0xff] %v12090_v58 }
 0x3a6   : > { %v12092_v37 = vpop.f32.mrf.mxu0 }
 0x3a7   : > { %14413 = vst [vmem:[#allocation62_spill] sm:$0xff] %v12092_v37 }
 0x3a8   : > { %v12098_v19 = vpop.f32.mrf.mxu0 }
 0x3a9   : > { %14414 = vst [vmem:[#allocation63_spill] sm:$0xff] %v12098_v19 }
 0x3aa   : > { %v12102_v13 = vpop.f32.mrf.mxu0 }
 0x3ab   : > { %14415 = vst [vmem:[#allocation64_spill] sm:$0xff] %v12102_v13  ;;  %v12126_v13 = vpop.f32.mrf.mxu1 }
 0x3ac   : > { %v12106_v60 = vpop.f32.mrf.mxu0 }
 0x3ad   : > { %14416 = vst [vmem:[#allocation65_spill] sm:$0xff] %v12106_v60 }
 0x3b6   : > { %v12108_v7 = vpop.f32.mrf.mxu0 }
 0x3b7   : > { %14417 = vst [vmem:[#allocation66_spill] sm:$0xff] %v12108_v7  ;;  %v12130_v7 = vpop.f32.mrf.mxu1 }
 0x3b8   : > { %v12114_v45 = vpop.f32.mrf.mxu0 }
 0x3b9   : > { %14418 = vst [vmem:[#allocation67_spill] sm:$0xff] %v12114_v45  ;;  %v3411_v45 = vadd.f32 %v3410_v20, %v11890_v18  ;;  %v12140_v58 = vpop.f32.mrf.mxu1  ;;  %v3417_v18 = vadd.f32 %v3416_v24, %v11932_v62 }
 0x3ba   : > { %v12118_v34 = vpop.f32.mrf.mxu0 }
 0x3bb   : > { %14419 = vst [vmem:[#allocation68_spill] sm:$0xff] %v12118_v34  ;;  %v3875_v34 = vld [vmem:[%s14213_s5] sm:$0x3]  ;;  %v12150_v57 = vpop.f32.mrf.mxu1 }
 0x3bc   : > { %v12122_v21 = vpop.f32.mrf.mxu0 }
 0x3bd   : > { %14420 = vst [vmem:[#allocation69_spill] sm:$0xff] %v12122_v21 }
 0x3c6   : > { %v12124_v43 = vpop.f32.mrf.mxu0 }
 0x3c7   : > { %14421 = vst [vmem:[#allocation70_spill] sm:$0xff] %v12124_v43  ;;  %v3413_v43 = vadd.f32 %v3412_v26, %v11913_v23 }
 0x3c8   : > { %v12128_v60 = vpop.f32.mrf.mxu0 }
 0x3c9   : > { %14422 = vst [vmem:[#allocation71_spill] sm:$0xff] %v12128_v60  ;;  %v12144_v60 = vrot.slane %v3875_v34, %v14425_v41 }
 0x3ca   : > { %v12132_v19 = vpop.f32.mrf.mxu0 }
 0x3cb   : > { %14423 = vst [vmem:[#allocation72_spill] sm:$0xff] %v12132_v19  ;;  %v3415_v19 = vadd.f32 %v3414_v63, %v11921_v48 }
 0x3cc   : > { %v12134_v37 = vpop.f32.mrf.mxu0 }
 0x3cd   : > { %14424 = vst [vmem:[#allocation73_spill] sm:$0xff] %v12134_v37  ;;  %v14426_v37 = vld [vmem:[#allocation3_spill] sm:$0xff] }
 0x3ce   : > { %v3708_v21 = vpop.f32.mrf.mxu0  ;;  %v12148_v46 = vrot.slane %v3875_v34, %v14426_v37  ;;  %v12158_v34 = vpop.f32.mrf.mxu1 }
 0x3cf   : > { %v3827_v15 = vadd.f32 %v3708_v21, %v3411_v45  ;;  %v3421_v21 = vadd.f32 %v3420_v8, %v11934_v0 }
 0x3d0   : > { %v3710_v2 = vpop.f32.mrf.mxu0 }
 0x3d1   : > { %v3828_v14 = vadd.f32 %v3710_v2, %v3413_v43  ;;  %v3887_v20 = vadd.f32 %v12144_v60, %v3827_v15  ;;  %v3423_v2 = vadd.f32 %v3422_v59, %v11951_v50  ;;  %v12162_v15 = vpop.f32.mrf.mxu1  ;;  %v3427_v59 = vadd.f32 %v12078_v32, %v11973_v55 }
 0x3d2   : > { %v3712_v5 = vpop.f32.mrf.mxu0 }
 0x3d3   : > { %v3829_v56 = vadd.f32 %v3712_v5, %v3415_v19  ;;  %v3888_v45 = vadd.f32 %v12148_v46, %v3828_v14  ;;  %v3935_v63 = vmax.f32 %v3887_v20, 0.0  ;;  %v3425_v19 = vadd.f32 %v3424_v30, %v11971_v35  ;;  %v12172_v35 = vpop.f32.mrf.mxu1 }
 0x3d4   : > { %v3714_v23 = vpop.f32.mrf.mxu0  ;;  %v3431_v30 = vadd.f32 %v12080_v17, %v11984_v42 }
 0x3d5   : > { %v3889_v26 = vadd.f32 %v12144_v60, %v3829_v56  ;;  %v3830_v48 = vadd.f32 %v3714_v23, %v3417_v18  ;;  %v3936_v8 = vmax.f32 %v3888_v45, 0.0  ;;  %v10003_v45 = vld [vmem:[%s14214_s6 + $0x1e4] ss:$8 sps:$4 sm:$0xff]  }
 0x3d6   : > { %v3718_v43 = vpop.f32.mrf.mxu0 }
 0x3d7   : > { %v3937_v37 = vmax.f32 %v3889_v26, 0.0  ;;  %v3890_v62 = vadd.f32 %v12148_v46, %v3830_v48  ;;  %v3831_v24 = vadd.f32 %v3718_v43, %v3421_v21  ;;  %v9998_v21 = vld [vmem:[%s14214_s6 + $0x1f0] ss:$8 sps:$4 sm:$0xff]   ;;  %v3433_v48 = vadd.f32 %v12084_v51, %v11992_v9  ;;  %v10006_v51 = vld [vmem:[%s14214_s6 + $0x1d4] ss:$8 sps:$4 sm:$0xff]  }
 0x3d8   : > { %v3720_v5 = vpop.f32.mrf.mxu0 }
 0x3d9   : > { %v3983_v14 = vpack.c.bf16 %v3937_v37, %v3935_v63  ;;  %v3938_v0 = vmax.f32 %v3890_v62, 0.0  ;;  %v3832_v56 = vadd.f32 %v3720_v5, %v3423_v2  ;;  %v3891_v20 = vadd.f32 %v12144_v60, %v3831_v24  ;;  %v10001_v62 = vld [vmem:[%s14214_s6 + $0x1e0] ss:$8 sps:$4 sm:$0xff]  }
 0x3da   : > { %v3722_v18 = vpop.f32.mrf.mxu0  ;;  %v3435_v24 = vadd.f32 %v12088_v25, %v12009_v47 }
 0x3db   : > { %v3984_v50 = vpack.c.bf16 %v3938_v0, %v3936_v8  ;;  %v3833_v23 = vadd.f32 %v3722_v18, %v3425_v19  ;;  %v3892_v32 = vadd.f32 %v12148_v46, %v3832_v56  ;;  %v3939_v42 = vmax.f32 %v3891_v20, 0.0  ;;  %v12189_v19 = vpop.f32.mrf.mxu1 }
 0x3dc   : > { %v3724_v37 = vpop.f32.mrf.mxu0  ;;  %v3437_v18 = vadd.f32 %v12094_v40, %v12017_v3  ;;  %v3441_v20 = vadd.f32 %v12096_v29, %v12019_v49  ;;  %v10009_v40 = vld [vmem:[%s14214_s6 + $0x1c4] ss:$8 sps:$4 sm:$0xff]   ;;  %v3443_v29 = vadd.f32 %v12100_v61, %v12024_v22  ;;  %v3445_v61 = vadd.f32 %v12104_v54, %v12032_v10 }
 0x3dd   : > { %v3893_v55 = vadd.f32 %v12144_v60, %v3833_v23  ;;  %v3834_v26 = vadd.f32 %v3724_v37, %v3427_v59  ;;  %8619 = vmatprep.mubr.msk.bf16.mxu1 %vm3063_vm3, %v3984_v50  ;;  %8655 = vmatprep.mubr.msk.bf16.mxu0 %vm3063_vm3, %v3984_v50  ;;  %v3940_v9 = vmax.f32 %v3892_v32, 0.0  ;;  %v10004_v50 = vld [vmem:[%s14214_s6 + $0x1d0] ss:$8 sps:$4 sm:$0xff]   ;;  %v12206_v23 = vpop.f32.mrf.mxu1 }
 0x3de   : > { %v3728_v17 = vpop.f32.mrf.mxu0  ;;  %4245 = vmatmul.mubr.bf16.vlgmr.msra.gmra.mxu1 %v3983_v14  ;;  %4528 = vmatmul.mubr.bf16.gmra.mxu0 %v3983_v14 }
 0x3df   : > { %v3941_v2 = vmax.f32 %v3893_v55, 0.0  ;;  %v3894_v43 = vadd.f32 %v12148_v46, %v3834_v26  ;;  %v3835_v63 = vadd.f32 %v3728_v17, %v3431_v30  ;;  %4784 = vmatpush1.bf16.msra.mxu1 %v9998_v21  ;;  %v12219_v49 = vpop.f32.mrf.mxu1  ;;  %v10007_v17 = vld [vmem:[%s14214_s6 + $0x1c0] ss:$8 sps:$4 sm:$0xff]  }
 0x3e0   : > { %v3730_v5 = vpop.f32.mrf.mxu0  ;;  %4785 = vmatprep.subr.bf16.mxu1 %v10003_v45 }
 0x3e1   : > { %v12194_v8 = vpack.c.bf16 %v3941_v2, %v3939_v42  ;;  %v3942_v14 = vmax.f32 %v3894_v43, 0.0  ;;  %v3836_v0 = vadd.f32 %v3730_v5, %v3433_v48  ;;  %v3895_v25 = vadd.f32 %v12144_v60, %v3835_v63  ;;  %v10012_v42 = vld [vmem:[%s14214_s6 + $0x1b4] ss:$8 sps:$4 sm:$0xff]  }
 0x3e2   : > { %v3732_v56 = vpop.f32.mrf.mxu0 }
 0x3e3   : > { %v12198_v59 = vpack.c.bf16 %v3942_v14, %v3940_v9  ;;  %v3837_v47 = vadd.f32 %v3732_v56, %v3435_v24  ;;  %4786 = vmatpush1.bf16.msra.mxu1 %v10001_v62  ;;  %v3896_v3 = vadd.f32 %v12148_v46, %v3836_v0  ;;  %v3943_v32 = vmax.f32 %v3895_v25, 0.0  ;;  %v12234_v24 = vpop.f32.mrf.mxu1  ;;  %v10010_v14 = vld [vmem:[%s14214_s6 + $0x1b0] ss:$8 sps:$4 sm:$0xff]  }
 0x3e4   : > { %v3734_v21 = vpop.f32.mrf.mxu0  ;;  %4787 = vmatprep.subr.bf16.mxu1 %v10006_v51  ;;  %v3447_v51 = vadd.f32 %v12110_v27, %v12036_v11  ;;  %v3451_v0 = vadd.f32 %v12112_v38, %v12041_v28  ;;  %v3453_v38 = vadd.f32 %v12116_v16, %v12045_v52  ;;  %v3455_v16 = vadd.f32 %v12120_v4, %v12047_v39 }
 0x3e5   : > { %v3897_v30 = vadd.f32 %v12144_v60, %v3837_v47  ;;  %v3838_v37 = vadd.f32 %v3734_v21, %v3437_v18  ;;  %8620 = vmatprep.mubr.msk.bf16.mxu1 %vm3063_vm3, %v12198_v59  ;;  %8656 = vmatprep.mubr.msk.bf16.mxu0 %vm3063_vm3, %v12198_v59  ;;  %v3944_v2 = vmax.f32 %v3896_v3, 0.0  ;;  %v10015_v18 = vld [vmem:[%s14214_s6 + $0x1a4] ss:$8 sps:$4 sm:$0xff]   ;;  %v12257_v28 = vpop.f32.mrf.mxu1  ;;  %v10013_v3 = vld [vmem:[%s14214_s6 + $0x1a0] ss:$8 sps:$4 sm:$0xff]  }
 0x3e6   : > { %v3738_v45 = vpop.f32.mrf.mxu0  ;;  %4255 = vmatmul.mubr.bf16.gmra.mxu1 %v12194_v8  ;;  %4538 = vmatmul.mubr.bf16.gmra.mxu0 %v12194_v8 }
 0x3e7   : > { %v3945_v55 = vmax.f32 %v3897_v30, 0.0  ;;  %v3898_v26 = vadd.f32 %v12148_v46, %v3838_v37  ;;  %v3839_v48 = vadd.f32 %v3738_v45, %v3441_v20  ;;  %4788 = vmatpush1.bf16.msra.mxu1 %v10004_v50  ;;  %v10018_v30 = vld [vmem:[%s14214_s6 + $0x194] ss:$8 sps:$4 sm:$0xff]  }
 0x3e8   : > { %v3740_v22 = vpop.f32.mrf.mxu0  ;;  %4789 = vmatprep.subr.bf16.mxu1 %v10009_v40 }
 0x3e9   : > { %v12232_v43 = vpack.c.bf16 %v3945_v55, %v3943_v32  ;;  %v3946_v63 = vmax.f32 %v3898_v26, 0.0  ;;  %v3840_v62 = vadd.f32 %v3740_v22, %v3443_v29  ;;  %v3899_v54 = vadd.f32 %v12144_v60, %v3839_v48  ;;  %v12272_v55 = vpop.f32.mrf.mxu1 }
 0x3ea   : > { %v3742_v5 = vpop.f32.mrf.mxu0  ;;  %v3457_v48 = vadd.f32 %v12126_v13, %v12050_v12  ;;  %v3461_v22 = vadd.f32 %v12130_v7, %v12052_v1  ;;  %v10021_v13 = vld [vmem:[%s14214_s6 + $0x184] ss:$8 sps:$4 sm:$0xff]   ;;  %v3463_v7 = vadd.f32 %v12140_v58, %v12054_v53  ;;  %v10024_v53 = vld [vmem:[%s14214_s6 + $0x234] ss:$8 sps:$4 sm:$0xff]  }
 0x3eb   : > { %v12238_v9 = vpack.c.bf16 %v3946_v63, %v3944_v2  ;;  %v3841_v10 = vadd.f32 %v3742_v5, %v3445_v61  ;;  %4790 = vmatpush1.bf16.msra.mxu1 %v10007_v17  ;;  %v3900_v27 = vadd.f32 %v12148_v46, %v3840_v62  ;;  %v3947_v50 = vmax.f32 %v3899_v54, 0.0  ;;  %v10016_v61 = vld [vmem:[%s14214_s6 + $0x190] ss:$8 sps:$4 sm:$0xff]  }
 0x3ec   : > { %v3744_v56 = vpop.f32.mrf.mxu0  ;;  %4791 = vmatprep.subr.bf16.mxu1 %v10012_v42  ;;  %v12284_v42 = vpop.f32.mrf.mxu1 }
 0x3ed   : > { %v3901_v11 = vadd.f32 %v12144_v60, %v3841_v10  ;;  %v3842_v25 = vadd.f32 %v3744_v56, %v3447_v51  ;;  %8621 = vmatprep.mubr.msk.bf16.mxu1 %vm3063_vm3, %v12238_v9  ;;  %8657 = vmatprep.mubr.msk.bf16.mxu0 %vm3063_vm3, %v12238_v9  ;;  %v3948_v37 = vmax.f32 %v3900_v27, 0.0 }
 0x3ee   : > { %v3748_v47 = vpop.f32.mrf.mxu0  ;;  %4265 = vmatmul.mubr.bf16.gmra.mxu1 %v12232_v43  ;;  %4548 = vmatmul.mubr.bf16.gmra.mxu0 %v12232_v43  ;;  %v12305_v56 = vpop.f32.mrf.mxu1 }
 0x3ef   : > { %v3949_v20 = vmax.f32 %v3901_v11, 0.0  ;;  %v3902_v21 = vadd.f32 %v12148_v46, %v3842_v25  ;;  %v3843_v40 = vadd.f32 %v3748_v47, %v3451_v0  ;;  %4792 = vmatpush1.bf16.msra.mxu1 %v10010_v14  ;;  %v10019_v14 = vld [vmem:[%s14214_s6 + $0x180] ss:$8 sps:$4 sm:$0xff]   ;;  %v3465_v0 = vadd.f32 %v12150_v57, %v12056_v44 }
 0x3f0   : > { %v3750_v52 = vpop.f32.mrf.mxu0  ;;  %4793 = vmatprep.subr.bf16.mxu1 %v10015_v18  ;;  %v3467_v47 = vadd.f32 %v12158_v34, %v12058_v33  ;;  %v10027_v33 = vld [vmem:[%s14214_s6 + $0x224] ss:$8 sps:$4 sm:$0xff]  }
 0x3f1   : > { %v12270_v29 = vpack.c.bf16 %v3949_v20, %v3947_v50  ;;  %v3950_v45 = vmax.f32 %v3902_v21, 0.0  ;;  %v3844_v32 = vadd.f32 %v3750_v52, %v3453_v38  ;;  %v3903_v4 = vadd.f32 %v12144_v60, %v3843_v40  ;;  %v10022_v20 = vld [vmem:[%s14214_s6 + $0x230] ss:$8 sps:$4 sm:$0xff]   ;;  %v12322_v40 = vpop.f32.mrf.mxu1 }
 0x3f2   : > { %v3752_v26 = vpop.f32.mrf.mxu0  ;;  %v3471_v21 = vadd.f32 %v12162_v15, %v12060_v36  ;;  %v3473_v36 = vadd.f32 %v12172_v35, %v12062_v31  ;;  %v10030_v35 = vld [vmem:[%s14214_s6 + $0x214] ss:$8 sps:$4 sm:$0xff]  }
 0x3f3   : > { %v12276_v17 = vpack.c.bf16 %v3950_v45, %v3948_v37  ;;  %v3845_v39 = vadd.f32 %v3752_v26, %v3455_v16  ;;  %4794 = vmatpush1.bf16.msra.mxu1 %v10013_v3  ;;  %v3904_v12 = vadd.f32 %v12148_v46, %v3844_v32  ;;  %v3951_v5 = vmax.f32 %v3903_v4, 0.0  ;;  %v10025_v26 = vld [vmem:[%s14214_s6 + $0x220] ss:$8 sps:$4 sm:$0xff]   ;;  %v12343_v4 = vpop.f32.mrf.mxu1 }
 0x3f4   : > { %v3754_v2 = vpop.f32.mrf.mxu0  ;;  %4795 = vmatprep.subr.bf16.mxu1 %v10018_v30 }
 0x3f5   : > { %v3905_v63 = vadd.f32 %v12144_v60, %v3845_v39  ;;  %v3846_v62 = vadd.f32 %v3754_v2, %v3457_v48  ;;  %8622 = vmatprep.mubr.msk.bf16.mxu1 %vm3063_vm3, %v12276_v17  ;;  %8658 = vmatprep.mubr.msk.bf16.mxu0 %vm3063_vm3, %v12276_v17  ;;  %v3952_v18 = vmax.f32 %v3904_v12, 0.0  ;;  %v3475_v48 = vadd.f32 %v12189_v19, %v12064_v6 }
 0x3f6   : > { %v3758_v1 = vpop.f32.mrf.mxu0  ;;  %4275 = vmatmul.mubr.bf16.gmra.mxu1 %v12270_v29  ;;  %4558 = vmatmul.mubr.bf16.gmra.mxu0 %v12270_v29 }
 0x3f7   : > { %v3953_v51 = vmax.f32 %v3905_v63, 0.0  ;;  %v3906_v54 = vadd.f32 %v12148_v46, %v3846_v62  ;;  %v3847_v10 = vadd.f32 %v3758_v1, %v3461_v22  ;;  %4796 = vmatpush1.bf16.msra.mxu1 %v10016_v61  ;;  %v14427_v63 = vld [vmem:[#allocation53_spill] sm:$0xff] }
 0x3f8   : > { %v3760_v58 = vpop.f32.mrf.mxu0  ;;  %4797 = vmatprep.subr.bf16.mxu1 %v10021_v13  ;;  %v12350_v13 = vpop.f32.mrf.mxu1  ;;  %v3477_v62 = vadd.f32 %v12206_v23, %v14427_v63  ;;  %v10028_v1 = vld [vmem:[%s14214_s6 + $0x210] ss:$8 sps:$4 sm:$0xff]  }
 0x3f9   : > { %v12310_v27 = vpack.c.bf16 %v3953_v51, %v3951_v5  ;;  %v3954_v11 = vmax.f32 %v3906_v54, 0.0  ;;  %v3848_v25 = vadd.f32 %v3760_v58, %v3463_v7  ;;  %v3907_v57 = vadd.f32 %v12144_v60, %v3847_v10  ;;  %v14428_v5 = vld [vmem:[#allocation54_spill] sm:$0xff]  ;;  %v10033_v10 = vld [vmem:[%s14214_s6 + $0x204] ss:$8 sps:$4 sm:$0xff]  }
 0x3fa   : > { %v3762_v38 = vpop.f32.mrf.mxu0  ;;  %v3481_v51 = vadd.f32 %v12219_v49, %v14428_v5  ;;  %v14429_v58 = vld [vmem:[#allocation55_spill] sm:$0xff] }
 0x3fb   : > { %v12314_v50 = vpack.c.bf16 %v3954_v11, %v3952_v18  ;;  %v3849_v44 = vadd.f32 %v3762_v38, %v3465_v0  ;;  %4798 = vmatpush1.bf16.msra.mxu1 %v10019_v14  ;;  %v3908_v34 = vadd.f32 %v12148_v46, %v3848_v25  ;;  %v3955_v30 = vmax.f32 %v3907_v57, 0.0  ;;  %v10031_v57 = vld [vmem:[%s14214_s6 + $0x200] ss:$8 sps:$4 sm:$0xff]  }
 0x3fc   : > { %v3764_v3 = vpop.f32.mrf.mxu0  ;;  %4807 = vmatprep.subr.bf16.mxu1 %v10024_v53  ;;  %v3483_v49 = vadd.f32 %v12234_v24, %v14429_v58  ;;  %v3502_v53 = vpop.f32.mrf.mxu1 }
 0x3fd   : > { %v3909_v16 = vadd.f32 %v12144_v60, %v3849_v44  ;;  %v3850_v52 = vadd.f32 %v3764_v3, %v3467_v47  ;;  %8623 = vmatprep.mubr.msk.bf16.mxu1 %vm3063_vm3, %v12314_v50  ;;  %8659 = vmatprep.mubr.msk.bf16.mxu0 %vm3063_vm3, %v12314_v50  ;;  %v3956_v39 = vmax.f32 %v3908_v34, 0.0  ;;  %v14430_v44 = vld [vmem:[#allocation56_spill] sm:$0xff] }
 0x3fe   : > { %v3768_v15 = vpop.f32.mrf.mxu0  ;;  %4285 = vmatmul.mubr.bf16.gmra.mxu1 %v12310_v27  ;;  %4568 = vmatmul.mubr.bf16.gmra.mxu0 %v12310_v27 }
 0x3ff   : > { %v3957_v37 = vmax.f32 %v3909_v16, 0.0  ;;  %v3910_v45 = vadd.f32 %v12148_v46, %v3850_v52  ;;  %v3851_v32 = vadd.f32 %v3768_v15, %v3471_v21  ;;  %4808 = vmatpush2.bf16.msra.mxu1 %v10022_v20  ;;  %v3485_v20 = vadd.f32 %v12257_v28, %v14430_v44  ;;  %v3504_v16 = vpop.f32.mrf.mxu1 }
 0x400   : > { %v3770_v31 = vpop.f32.mrf.mxu0  ;;  %4809 = vmatprep.subr.bf16.mxu1 %v10027_v33 }
 0x401   : > { %v12348_v61 = vpack.c.bf16 %v3957_v37, %v3955_v30  ;;  %v3958_v22 = vmax.f32 %v3910_v45, 0.0  ;;  %v3852_v2 = vadd.f32 %v3770_v31, %v3473_v36  ;;  %v3911_v19 = vadd.f32 %v12144_v60, %v3851_v32  ;;  %v14431_v36 = vld [vmem:[#allocation57_spill] sm:$0xff]  ;;  %v14432_v32 = vld [vmem:[#allocation58_spill] sm:$0xff] }
 0x402   : > { %v3772_v12 = vpop.f32.mrf.mxu0  ;;  %v3487_v15 = vadd.f32 %v12272_v55, %v14431_v36  ;;  %v3491_v28 = vadd.f32 %v12284_v42, %v14432_v32  ;;  %v14433_v55 = vld [vmem:[#allocation59_spill] sm:$0xff] }
 0x403   : > { %v12354_v6 = vpack.c.bf16 %v3958_v22, %v3956_v39  ;;  %v3853_v7 = vadd.f32 %v3772_v12, %v3475_v48  ;;  %4810 = vmatpush2.bf16.msra.mxu1 %v10025_v26  ;;  %v3912_v23 = vadd.f32 %v12148_v46, %v3852_v2  ;;  %v3959_v11 = vmax.f32 %v3911_v19, 0.0  ;;  %v3506_v22 = vpop.f32.mrf.mxu1  ;;  %v14434_v19 = vld [vmem:[#allocation60_spill] sm:$0xff] }
 0x404   : > { %v3774_v54 = vpop.f32.mrf.mxu0  ;;  %4811 = vmatprep.subr.bf16.mxu1 %v10030_v35  ;;  %v3493_v39 = vadd.f32 %v12305_v56, %v14433_v55 }
 0x405   : > { %v3913_v14 = vadd.f32 %v12144_v60, %v3853_v7  ;;  %v3854_v0 = vadd.f32 %v3774_v54, %v3477_v62  ;;  %8624 = vmatprep.mubr.msk.bf16.mxu1 %vm3063_vm3, %v12354_v6  ;;  %8660 = vmatprep.mubr.msk.bf16.mxu0 %vm3063_vm3, %v12354_v6  ;;  %v3960_v21 = vmax.f32 %v3912_v23, 0.0  ;;  %v3495_v7 = vadd.f32 %v12322_v40, %v14434_v19 }
 0x406   : > { %v3778_v18 = vpop.f32.mrf.mxu0  ;;  %4295 = vmatmul.mubr.bf16.gmra.mxu1 %v12348_v61  ;;  %4578 = vmatmul.mubr.bf16.gmra.mxu0 %v12348_v61 }
 0x407   : > { %v3961_v25 = vmax.f32 %v3913_v14, 0.0  ;;  %v3914_v38 = vadd.f32 %v12148_v46, %v3854_v0  ;;  %v3855_v47 = vadd.f32 %v3778_v18, %v3481_v51  ;;  %4812 = vmatpush2.bf16.msra.mxu1 %v10028_v1  ;;  %v3510_v1 = vpop.f32.mrf.mxu1  ;;  %v14435_v14 = vld [vmem:[#allocation61_spill] sm:$0xff] }
 0x408   : > { %v3780_v24 = vpop.f32.mrf.mxu0  ;;  %4813 = vmatprep.subr.bf16.mxu1 %v10033_v10  ;;  %v3497_v0 = vadd.f32 %v12343_v4, %v14435_v14  ;;  %v14437_v4 = vld [vmem:[#allocation63_spill] sm:$0xff]  ;;  %v14442_v14 = vld [vmem:[#allocation68_spill] sm:$0xff] }
 0x409   : > { %v12381_v3 = vpack.c.bf16 %v3961_v25, %v3959_v11  ;;  %v3962_v33 = vmax.f32 %v3914_v38, 0.0  ;;  %v3856_v34 = vadd.f32 %v3780_v24, %v3483_v49  ;;  %v3915_v37 = vadd.f32 %v12144_v60, %v3855_v47  ;;  %v14436_v11 = vld [vmem:[#allocation62_spill] sm:$0xff]  ;;  %v3512_v40 = vpop.f32.mrf.mxu1 }
 0x40a   : > { %v3782_v52 = vpop.f32.mrf.mxu0  ;;  %v3501_v25 = vadd.f32 %v12350_v13, %v14436_v11 }
 0x40b   : > { %v12385_v30 = vpack.c.bf16 %v3962_v33, %v3960_v21  ;;  %v3857_v45 = vadd.f32 %v3782_v52, %v3485_v20  ;;  %4814 = vmatpush2.bf16.msra.mxu1 %v10031_v57  ;;  %v3916_v48 = vadd.f32 %v12148_v46, %v3856_v34  ;;  %v3963_v42 = vmax.f32 %v3915_v37, 0.0  ;;  %v14438_v52 = vld [vmem:[#allocation64_spill] sm:$0xff] }
 0x40c   : > { %v3784_v26 = vpop.f32.mrf.mxu0  ;;  %v3503_v20 = vadd.f32 %v3502_v53, %v14437_v4  ;;  %v3505_v36 = vadd.f32 %v3504_v16, %v14438_v52 }
 0x40d   : > { %v3917_v31 = vadd.f32 %v12144_v60, %v3857_v45  ;;  %v3858_v35 = vadd.f32 %v3784_v26, %v3487_v15  ;;  %8625 = vmatprep.mubr.msk.bf16.mxu1 %vm3063_vm3, %v12385_v30  ;;  %8661 = vmatprep.mubr.msk.bf16.mxu0 %vm3063_vm3, %v12385_v30  ;;  %v3964_v51 = vmax.f32 %v3916_v48, 0.0  ;;  %v3514_v15 = vpop.f32.mrf.mxu1  ;;  %v14439_v48 = vld [vmem:[#allocation65_spill] sm:$0xff] }
 0x40e   : > { %v3788_v2 = vpop.f32.mrf.mxu0  ;;  %4305 = vmatmul.mubr.bf16.gmra.mxu1 %v12381_v3  ;;  %4588 = vmatmul.mubr.bf16.gmra.mxu0 %v12381_v3 }
 0x40f   : > { %v3965_v12 = vmax.f32 %v3917_v31, 0.0  ;;  %v3918_v63 = vadd.f32 %v12148_v46, %v3858_v35  ;;  %v3859_v62 = vadd.f32 %v3788_v2, %v3491_v28  ;;  %v3507_v31 = vadd.f32 %v3506_v22, %v14439_v48  ;;  %v3516_v2 = vpop.f32.mrf.mxu1 }
 0x410   : > { %v3790_v5 = vpop.f32.mrf.mxu0 }
 0x411   : > { %v12403_v54 = vpack.c.bf16 %v3965_v12, %v3963_v42  ;;  %v3966_v56 = vmax.f32 %v3918_v63, 0.0  ;;  %v3860_v10 = vadd.f32 %v3790_v5, %v3493_v39  ;;  %v3919_v49 = vadd.f32 %v12144_v60, %v3859_v62  ;;  %v14440_v42 = vld [vmem:[#allocation66_spill] sm:$0xff]  ;;  %v3520_v22 = vpop.f32.mrf.mxu1 }
 0x412   : > { %v3792_v23 = vpop.f32.mrf.mxu0  ;;  %v3511_v12 = vadd.f32 %v3510_v1, %v14440_v42 }
 0x413   : > { %v12407_v58 = vpack.c.bf16 %v3966_v56, %v3964_v51  ;;  %v3861_v18 = vadd.f32 %v3792_v23, %v3495_v7  ;;  %v3920_v47 = vadd.f32 %v12148_v46, %v3860_v10  ;;  %v3967_v13 = vmax.f32 %v3919_v49, 0.0  ;;  %v14441_v7 = vld [vmem:[#allocation67_spill] sm:$0xff] }
 0x414   : > { %v3794_v38 = vpop.f32.mrf.mxu0  ;;  %v3513_v5 = vadd.f32 %v3512_v40, %v14441_v7 }
 0x415   : > { %v3921_v57 = vadd.f32 %v12144_v60, %v3861_v18  ;;  %v3862_v44 = vadd.f32 %v3794_v38, %v3497_v0  ;;  %8626 = vmatprep.mubr.msk.bf16.mxu1 %vm3063_vm3, %v12407_v58  ;;  %8662 = vmatprep.mubr.msk.bf16.mxu0 %vm3063_vm3, %v12407_v58  ;;  %v3968_v45 = vmax.f32 %v3920_v47, 0.0  ;;  %v3515_v0 = vadd.f32 %v3514_v15, %v14442_v14  ;;  %v3522_v47 = vpop.f32.mrf.mxu1 }
 0x416   : > { %v3798_v24 = vpop.f32.mrf.mxu0  ;;  %4315 = vmatmul.mubr.bf16.gmra.mxu1 %v12403_v54  ;;  %4598 = vmatmul.mubr.bf16.gmra.mxu0 %v12403_v54 }
 0x417   : > { %v3969_v21 = vmax.f32 %v3921_v57, 0.0  ;;  %v3922_v33 = vadd.f32 %v12148_v46, %v3862_v44  ;;  %v3863_v34 = vadd.f32 %v3798_v24, %v3501_v25  ;;  %v14443_v57 = vld [vmem:[#allocation69_spill] sm:$0xff]  ;;  %v3524_v15 = vpop.f32.mrf.mxu1 }
 0x418   : > { %v3800_v37 = vpop.f32.mrf.mxu0  ;;  %v3517_v44 = vadd.f32 %v3516_v2, %v14443_v57  ;;  %v10037_v57 = vld [vmem:[%s14216_s8 + $0x120] ss:$8 sps:$4 sm:$0xff]  }
 0x419   : > { %v12423_v32 = vpack.c.bf16 %v3969_v21, %v3967_v13  ;;  %v3970_v28 = vmax.f32 %v3922_v33, 0.0  ;;  %v3864_v26 = vadd.f32 %v3800_v37, %v3503_v20  ;;  %v3923_v55 = vadd.f32 %v12144_v60, %v3863_v34  ;;  %v14444_v13 = vld [vmem:[#allocation70_spill] sm:$0xff]  ;;  %v14445_v37 = vld [vmem:[#allocation71_spill] sm:$0xff] }
 0x41a   : > { %v3802_v53 = vpop.f32.mrf.mxu0  ;;  %v3521_v21 = vadd.f32 %v3520_v22, %v14444_v13  ;;  %v14447_v22 = vld [vmem:[#allocation73_spill] sm:$0xff] }
 0x41b   : > { %v12426_v35 = vpack.c.bf16 %v3970_v28, %v3968_v45  ;;  %v3865_v39 = vadd.f32 %v3802_v53, %v3505_v36  ;;  %v3924_v16 = vadd.f32 %v12148_v46, %v3864_v26  ;;  %v3971_v1 = vmax.f32 %v3923_v55, 0.0  ;;  %v14446_v55 = vld [vmem:[#allocation72_spill] sm:$0xff]  ;;  %v10060_v13 = vld [vmem:[%s14216_s8 + $0xd4] ss:$8 sps:$4 sm:$0xff]  }
 0x41c   : > { %v3804_v63 = vpop.f32.mrf.mxu0  ;;  %v3523_v45 = vadd.f32 %v3522_v47, %v14445_v37  ;;  %v10076_v37 = vld [vmem:[%s14216_s8 + $0x170] ss:$8 sps:$4 sm:$0xff]  }
 0x41d   : > { %v3925_v62 = vadd.f32 %v12144_v60, %v3865_v39  ;;  %v3866_v19 = vadd.f32 %v3804_v63, %v3507_v31  ;;  %8627 = vmatprep.mubr.msk.bf16.mxu1 %vm3063_vm3, %v12426_v35  ;;  %8663 = vmatprep.mubr.msk.bf16.mxu0 %vm3063_vm3, %v12426_v35  ;;  %v3972_v18 = vmax.f32 %v3924_v16, 0.0  ;;  %v3525_v39 = vadd.f32 %v3524_v15, %v14446_v55  ;;  %v10073_v15 = vld [vmem:[%s14216_s8 + $0x20] ss:$8 sps:$4 sm:$0xff]   ;;  %v10087_v55 = vld [vmem:[%s14216_s8 + $0x164] ss:$8 sps:$4 sm:$0xff]  }
 0x41e   : > { %v3808_v51 = vpop.f32.mrf.mxu0  ;;  %4325 = vmatmul.mubr.bf16.gmra.mxu1 %v12423_v32  ;;  %4608 = vmatmul.mubr.bf16.gmra.mxu0 %v12423_v32 }
 0x41f   : > { %v3973_v56 = vmax.f32 %v3925_v62, 0.0  ;;  %v3926_v10 = vadd.f32 %v12148_v46, %v3866_v19  ;;  %v3867_v23 = vadd.f32 %v3808_v51, %v3511_v12  ;;  %v3526_v62 = vpop.f32.mrf.mxu1 }
 0x420   : > { %v3810_v49 = vpop.f32.mrf.mxu0  ;;  %v3527_v7 = vadd.f32 %v3526_v62, %v14447_v22  ;;  %v10100_v62 = vld [vmem:[%s14216_s8 + $0x80] ss:$8 sps:$4 sm:$0xff]   ;;  %v10105_v22 = vld [vmem:[%s14216_s8 + $0x144] ss:$8 sps:$4 sm:$0xff]  }
 0x421   : > { %v12441_v11 = vpack.c.bf16 %v3973_v56, %v3971_v1  ;;  %v3974_v25 = vmax.f32 %v3926_v10, 0.0  ;;  %v3868_v38 = vadd.f32 %v3810_v49, %v3513_v5  ;;  %v3927_v20 = vadd.f32 %v12144_v60, %v3867_v23 }
 0x422   : > { %v3812_v40 = vpop.f32.mrf.mxu0 }
 0x423   : > { %v12444_v4 = vpack.c.bf16 %v3974_v25, %v3972_v18  ;;  %v3869_v24 = vadd.f32 %v3812_v40, %v3515_v0  ;;  %v3928_v34 = vadd.f32 %v12148_v46, %v3868_v38  ;;  %v3975_v26 = vmax.f32 %v3927_v20, 0.0  ;;  %v10034_v40 = vld [vmem:[%s14216_s8 + $0x130] ss:$8 sps:$4 sm:$0xff]   ;;  %v10055_v20 = vld [vmem:[%s14216_s8 + $0x60] ss:$8 sps:$4 sm:$0xff]  }
 0x424   : > { %v3814_v33 = vpop.f32.mrf.mxu0 }
 0x425   : > { %v3929_v52 = vadd.f32 %v12144_v60, %v3869_v24  ;;  %v3870_v36 = vadd.f32 %v3814_v33, %v3517_v44  ;;  %8628 = vmatprep.mubr.msk.bf16.mxu1 %vm3063_vm3, %v12444_v4  ;;  %8664 = vmatprep.mubr.msk.bf16.mxu0 %vm3063_vm3, %v12444_v4  ;;  %v3976_v42 = vmax.f32 %v3928_v34, 0.0  ;;  %v10054_v44 = vld [vmem:[%s14216_s8 + $0x74] ss:$8 sps:$4 sm:$0xff]   ;;  %v10058_v24 = vld [vmem:[%s14216_s8 + $0xd0] ss:$8 sps:$4 sm:$0xff]  }
 0x426   : > { %v3818_v28 = vpop.f32.mrf.mxu0  ;;  %4335 = vmatmul.mubr.bf16.gmra.mxu1 %v12441_v11  ;;  %4618 = vmatmul.mubr.bf16.gmra.mxu0 %v12441_v11  ;;  %v10064_v33 = vld [vmem:[%s14216_s8 + $0x40] ss:$8 sps:$4 sm:$0xff]  }
 0x427   : > { %v3977_v53 = vmax.f32 %v3929_v52, 0.0  ;;  %v3930_v48 = vadd.f32 %v12148_v46, %v3870_v36  ;;  %v3871_v31 = vadd.f32 %v3818_v28, %v3521_v21  ;;  %5593 = vmatprep.subr.bf16.mxu1 %v10054_v44  ;;  %v10063_v21 = vld [vmem:[%s14216_s8 + $0x54] ss:$8 sps:$4 sm:$0xff]   ;;  %v10067_v34 = vld [vmem:[%s14216_s8 + $0xc0] ss:$8 sps:$4 sm:$0xff]  }
 0x428   : > { %v3820_v2 = vpop.f32.mrf.mxu0  ;;  %v10069_v52 = vld [vmem:[%s14216_s8 + $0xc4] ss:$8 sps:$4 sm:$0xff]   ;;  %v10072_v36 = vld [vmem:[%s14216_s8 + $0x34] ss:$8 sps:$4 sm:$0xff]  }
 0x429   : > { %v12459_v12 = vpack.c.bf16 %v3977_v53, %v3975_v26  ;;  %v3978_v63 = vmax.f32 %v3930_v48, 0.0  ;;  %v3872_v16 = vadd.f32 %v3820_v2, %v3523_v45  ;;  %v3931_v51 = vadd.f32 %v12144_v60, %v3871_v31  ;;  %v10078_v45 = vld [vmem:[%s14216_s8 + $0x174] ss:$8 sps:$4 sm:$0xff]   ;;  %v10082_v26 = vld [vmem:[%s14216_s8] ss:$8 sps:$4 sm:$0xff]  }
 0x42a   : > { %v3822_v19 = vpop.f32.mrf.mxu0  ;;  %v10081_v28 = vld [vmem:[%s14216_s8 + $0x14] ss:$8 sps:$4 sm:$0xff]   ;;  %v10088_v48 = vld [vmem:[%s14216_s8 + $0xb0] ss:$8 sps:$4 sm:$0xff]   ;;  %v10093_v31 = vld [vmem:[%s14216_s8 + $0xa4] ss:$8 sps:$4 sm:$0xff]  }
 0x42b   : > { %v12462_v5 = vpack.c.bf16 %v3978_v63, %v3976_v42  ;;  %v3873_v1 = vadd.f32 %v3822_v19, %v3525_v39  ;;  %v3932_v10 = vadd.f32 %v12148_v46, %v3872_v16  ;;  %v3979_v0 = vmax.f32 %v3931_v51, 0.0  ;;  %v10090_v53 = vld [vmem:[%s14216_s8 + $0xb4] ss:$8 sps:$4 sm:$0xff]   ;;  %v10091_v39 = vld [vmem:[%s14216_s8 + $0xa0] ss:$8 sps:$4 sm:$0xff]  }
 0x42c   : > { %v3824_v56 = vpop.f32.mrf.mxu0  ;;  %v10099_v2 = vld [vmem:[%s14216_s8 + $0x94] ss:$8 sps:$4 sm:$0xff]   ;;  %v10097_v42 = vld [vmem:[%s14216_s8 + $0x90] ss:$8 sps:$4 sm:$0xff]   ;;  %v14448_v19 = vmov 0.0|0.0  }
 0x42d   : > { %v3933_v23 = vadd.f32 %v12144_v60, %v3873_v1  ;;  %v3874_v14 = vadd.f32 %v3824_v56, %v3527_v7  ;;  %8629 = vmatprep.mubr.msk.bf16.mxu1 %vm3063_vm3, %v12462_v5  ;;  %8665 = vmatprep.mubr.msk.bf16.mxu0 %vm3063_vm3, %v12462_v5  ;;  %v3980_v25 = vmax.f32 %v3932_v10, 0.0  ;;  %v10094_v63 = vld [vmem:[%s14216_s8 + $0x150] ss:$8 sps:$4 sm:$0xff]   ;;  %v10096_v16 = vld [vmem:[%s14216_s8 + $0x154] ss:$8 sps:$4 sm:$0xff]  }
 0x42e   : > { %4345 = vmatmul.mubr.bf16.gmra.mxu1 %v12459_v12  ;;  %4628 = vmatmul.mubr.bf16.gmra.mxu0 %v12459_v12  ;;  %v10103_v7 = vld [vmem:[%s14216_s8 + $0x140] ss:$8 sps:$4 sm:$0xff]   ;;  %v12665_v1 = vpop.f32.mrf.mxu0  ;;  %v10114_v10 = vld [vmem:[%s14216_s8 + $0x2b4] ss:$8 sps:$4 sm:$0xff]  }
 0x42f   : > { %v3981_v49 = vmax.f32 %v3933_v23, 0.0  ;;  %v3934_v18 = vadd.f32 %v12148_v46, %v3874_v14  ;;  %v10036_v46 = vld [vmem:[%s14216_s8 + $0x134] ss:$8 sps:$4 sm:$0xff]  }
 0x430   : > { %5357 = vmatprep.subr.bf16.mxu0 %v10036_v46  ;;  %v12674_v14 = vpop.f32.mrf.mxu0 }
 0x431   : > { %v12474_v38 = vpack.c.bf16 %v3981_v49, %v3979_v0  ;;  %v3982_v47 = vmax.f32 %v3934_v18, 0.0  ;;  %5358 = vmatpush1.bf16.msra.mxu0 %v10034_v40 }
 0x432   : > { %v12680_v18 = vpop.f32.mrf.mxu0 }
 0x433   : > { %v12476_v60 = vpack.c.bf16 %v3982_v47, %v3980_v25 }
 0x434   : > { %v12686_v47 = vpop.f32.mrf.mxu0 }
 0x435   : > { %8630 = vmatprep.mubr.msk.bf16.mxu1 %vm3063_vm3, %v12476_v60 }
 0x436   : > { %4355 = vmatmul.mubr.bf16.gmra.mxu1 %v12474_v38 }
 0x437   : > { %8714 = vmatprep.mubr.msk.bf16.mxu1 %vm3063_vm3, %v12198_v59  ;;  %v10039_v59 = vld [vmem:[%s14216_s8 + $0x124] ss:$8 sps:$4 sm:$0xff]  }
 0x438   : > { %5359 = vmatprep.subr.bf16.mxu0 %v10039_v59 }
 0x439   : > { %5360 = vmatpush1.bf16.msra.mxu0 %v10037_v57 }
 0x43e   : > { %4816 = vmatmul.mubr.bf16.vlgmr.msra.gmra.mxu1 %v12194_v8  ;;  %v10040_v8 = vld [vmem:[%s14216_s8 + $0x110] ss:$8 sps:$4 sm:$0xff]  }
 0x43f   : > { %8715 = vmatprep.mubr.msk.bf16.mxu1 %vm3063_vm3, %v12238_v9  ;;  %v10042_v9 = vld [vmem:[%s14216_s8 + $0x114] ss:$8 sps:$4 sm:$0xff]  }
 0x440   : > { %5361 = vmatprep.subr.bf16.mxu0 %v10042_v9 }
 0x441   : > { %5362 = vmatpush1.bf16.msra.mxu0 %v10040_v8 }
 0x446   : > { %4826 = vmatmul.mubr.bf16.gmra.mxu1 %v12232_v43  ;;  %v10043_v43 = vld [vmem:[%s14216_s8 + $0x100] ss:$8 sps:$4 sm:$0xff]  }
 0x447   : > { %8716 = vmatprep.mubr.msk.bf16.mxu1 %vm3063_vm3, %v12276_v17  ;;  %v10045_v17 = vld [vmem:[%s14216_s8 + $0x104] ss:$8 sps:$4 sm:$0xff]  }
 0x448   : > { %5363 = vmatprep.subr.bf16.mxu0 %v10045_v17 }
 0x449   : > { %5364 = vmatpush1.bf16.msra.mxu0 %v10043_v43 }
 0x44e   : > { %4836 = vmatmul.mubr.bf16.gmra.mxu1 %v12270_v29  ;;  %v10046_v29 = vld [vmem:[%s14216_s8 + $0xf0] ss:$8 sps:$4 sm:$0xff]  }
 0x44f   : > { %8717 = vmatprep.mubr.msk.bf16.mxu1 %vm3063_vm3, %v12314_v50  ;;  %v10048_v50 = vld [vmem:[%s14216_s8 + $0xf4] ss:$8 sps:$4 sm:$0xff]  }
 0x450   : > { %5365 = vmatprep.subr.bf16.mxu0 %v10048_v50 }
 0x451   : > { %5366 = vmatpush1.bf16.msra.mxu0 %v10046_v29 }
 0x456   : > { %4846 = vmatmul.mubr.bf16.gmra.mxu1 %v12310_v27  ;;  %v10049_v27 = vld [vmem:[%s14216_s8 + $0xe0] ss:$8 sps:$4 sm:$0xff]  }
 0x457   : > { %8718 = vmatprep.mubr.msk.bf16.mxu1 %vm3063_vm3, %v12354_v6  ;;  %v10051_v6 = vld [vmem:[%s14216_s8 + $0xe4] ss:$8 sps:$4 sm:$0xff]  }
 0x458   : > { %5367 = vmatprep.subr.bf16.mxu0 %v10051_v6 }
 0x459   : > { %5368 = vmatpush1.bf16.msra.mxu0 %v10049_v27 }
 0x45a   : > { %5369 = vmatprep.subr.bf16.mxu0 %v10060_v13 }
 0x45d   : > { %5370 = vmatpush1.bf16.msra.mxu0 %v10058_v24 }
 0x45e   : > { %4856 = vmatmul.mubr.bf16.gmra.mxu1 %v12348_v61  ;;  %v10052_v61 = vld [vmem:[%s14216_s8 + $0x70] ss:$8 sps:$4 sm:$0xff]   ;;  %5371 = vmatprep.subr.bf16.mxu0 %v10069_v52 }
 0x45f   : > { %8719 = vmatprep.mubr.msk.bf16.mxu1 %vm3063_vm3, %v12385_v30  ;;  %5594 = vmatpush1.bf16.msra.mxu1 %v10052_v61  ;;  %v10057_v30 = vld [vmem:[%s14216_s8 + $0x64] ss:$8 sps:$4 sm:$0xff]  }
 0x460   : > { %5595 = vmatprep.subr.bf16.mxu1 %v10057_v30 }
 0x461   : > { %5372 = vmatpush1.bf16.msra.mxu0 %v10067_v34 }
 0x462   : > { %5381 = vmatprep.subr.bf16.mxu0 %v10078_v45 }
 0x463   : > { %5596 = vmatpush1.bf16.msra.mxu1 %v10055_v20 }
 0x464   : > { %5597 = vmatprep.subr.bf16.mxu1 %v10063_v21 }
 0x465   : > { %5382 = vmatpush2.bf16.msra.mxu0 %v10076_v37 }
 0x466   : > { %4866 = vmatmul.mubr.bf16.gmra.mxu1 %v12381_v3  ;;  %v10061_v3 = vld [vmem:[%s14216_s8 + $0x50] ss:$8 sps:$4 sm:$0xff]   ;;  %5383 = vmatprep.subr.bf16.mxu0 %v10087_v55 }
 0x467   : > { %8720 = vmatprep.mubr.msk.bf16.mxu1 %vm3063_vm3, %v12407_v58  ;;  %5598 = vmatpush1.bf16.msra.mxu1 %v10061_v3  ;;  %v10066_v58 = vld [vmem:[%s14216_s8 + $0x44] ss:$8 sps:$4 sm:$0xff]  }
 0x468   : > { %5599 = vmatprep.subr.bf16.mxu1 %v10066_v58 }
 0x46b   : > { %5600 = vmatpush1.bf16.msra.mxu1 %v10064_v33 }
 0x46c   : > { %5601 = vmatprep.subr.bf16.mxu1 %v10072_v36 }
 0x46e   : > { %4876 = vmatmul.mubr.bf16.gmra.mxu1 %v12403_v54  ;;  %v10070_v54 = vld [vmem:[%s14216_s8 + $0x30] ss:$8 sps:$4 sm:$0xff]  }
 0x46f   : > { %8721 = vmatprep.mubr.msk.bf16.mxu1 %vm3063_vm3, %v12426_v35  ;;  %5602 = vmatpush1.bf16.msra.mxu1 %v10070_v54  ;;  %v10075_v35 = vld [vmem:[%s14216_s8 + $0x24] ss:$8 sps:$4 sm:$0xff]  }
 0x470   : > { %5603 = vmatprep.subr.bf16.mxu1 %v10075_v35 }
 0x473   : > { %5604 = vmatpush1.bf16.msra.mxu1 %v10073_v15 }
 0x474   : > { %5605 = vmatprep.subr.bf16.mxu1 %v10081_v28 }
 0x476   : > { %4886 = vmatmul.mubr.bf16.gmra.mxu1 %v12423_v32  ;;  %v10079_v32 = vld [vmem:[%s14216_s8 + $0x10] ss:$8 sps:$4 sm:$0xff]  }
 0x477   : > { %8722 = vmatprep.mubr.msk.bf16.mxu1 %vm3063_vm3, %v12444_v4  ;;  %5606 = vmatpush1.bf16.msra.mxu1 %v10079_v32  ;;  %v10084_v4 = vld [vmem:[%s14216_s8 + $0x4] ss:$8 sps:$4 sm:$0xff]  }
 0x478   : > { %5607 = vmatprep.subr.bf16.mxu1 %v10084_v4 }
 0x47b   : > { %5608 = vmatpush1.bf16.msra.mxu1 %v10082_v26 }
 0x47c   : > { %5617 = vmatprep.subr.bf16.mxu1 %v10090_v53 }
 0x47e   : > { %4896 = vmatmul.mubr.bf16.gmra.mxu1 %v12441_v11  ;;  %v10085_v11 = vld [vmem:[%s14216_s8 + $0x160] ss:$8 sps:$4 sm:$0xff]  }
 0x47f   : > { %8723 = vmatprep.mubr.msk.bf16.mxu1 %vm3063_vm3, %v12462_v5  ;;  %5618 = vmatpush2.bf16.msra.mxu1 %v10088_v48  ;;  %v10108_v5 = vld [vmem:[%s14216_s8 + $0x1f4] ss:$8 sps:$4 sm:$0xff]  }
 0x480   : > { %5619 = vmatprep.subr.bf16.mxu1 %v10093_v31  ;;  %5384 = vmatpush2.bf16.msra.mxu0 %v10085_v11 }
 0x481   : > { %5385 = vmatprep.subr.bf16.mxu0 %v10096_v16 }
 0x483   : > { %5620 = vmatpush2.bf16.msra.mxu1 %v10091_v39 }
 0x484   : > { %5621 = vmatprep.subr.bf16.mxu1 %v10099_v2  ;;  %5386 = vmatpush2.bf16.msra.mxu0 %v10094_v63 }
 0x485   : > { %5387 = vmatprep.subr.bf16.mxu0 %v10105_v22 }
 0x486   : > { %4906 = vmatmul.mubr.bf16.gmra.mxu1 %v12459_v12  ;;  %v10102_v12 = vld [vmem:[%s14216_s8 + $0x84] ss:$8 sps:$4 sm:$0xff]  }
 0x487   : > { %8724 = vmatprep.mubr.msk.bf16.mxu1 %vm3063_vm3, %v12476_v60  ;;  %5622 = vmatpush2.bf16.msra.mxu1 %v10097_v42 }
 0x488   : > { %5623 = vmatprep.subr.bf16.mxu1 %v10102_v12  ;;  %5388 = vmatpush2.bf16.msra.mxu0 %v10103_v7 }
 0x489   : > { %5854 = vmatprep.subr.bf16.mxu0 %v10108_v5 }
 0x48b   : > { %5624 = vmatpush2.bf16.msra.mxu1 %v10100_v62 }
 0x48c   : > { %6147 = vmatprep.subr.bf16.mxu1 %v10114_v10 }
 0x48e   : > { %4916 = vmatmul.mubr.bf16.gmra.mxu1 %v12474_v38 }
 0x48f   : > { %4925 = vmatprep.mubr.bf16.mxu1 %v14448_v19 }
 0x496   : > { %4926 = vmatmul.mubr.bf16.gmra.mxu1 %v14448_v19 }
 0x49e   : > { %v12663_v51 = vpop.f32.mrf.mxu1  ;;  %v12692_v46 = vpop.f32.mrf.mxu0 }
 0x4a0   : > { %v12667_v56 = vpop.f32.mrf.mxu1  ;;  %v12698_v8 = vpop.f32.mrf.mxu0 }
 0x4a2   : > { %v12672_v23 = vpop.f32.mrf.mxu1  ;;  %v12704_v17 = vpop.f32.mrf.mxu0 }
 0x4a4   : > { %v12676_v0 = vpop.f32.mrf.mxu1  ;;  %v12710_v27 = vpop.f32.mrf.mxu0 }
 0x4a6   : > { %v12678_v49 = vpop.f32.mrf.mxu1  ;;  %v12716_v61 = vpop.f32.mrf.mxu0 }
 0x4a8   : > { %v12682_v25 = vpop.f32.mrf.mxu1  ;;  %v12722_v24 = vpop.f32.mrf.mxu0 }
 0x4aa   : > { %v12684_v38 = vpop.f32.mrf.mxu1  ;;  %v12728_v3 = vpop.f32.mrf.mxu0 }
 0x4ac   : > { %v12688_v60 = vpop.f32.mrf.mxu1  ;;  %v12734_v34 = vpop.f32.mrf.mxu0 }
 0x4ae   : > { %v12690_v40 = vpop.f32.mrf.mxu1  ;;  %v12740_v54 = vpop.f32.mrf.mxu0 }
 0x4b0   : > { %v12694_v57 = vpop.f32.mrf.mxu1  ;;  %v12746_v37 = vpop.f32.mrf.mxu0 }
 0x4b2   : > { %v12696_v59 = vpop.f32.mrf.mxu1  ;;  %v12752_v32 = vpop.f32.mrf.mxu0 }
 0x4b4   : > { %v12700_v9 = vpop.f32.mrf.mxu1  ;;  %v12758_v53 = vpop.f32.mrf.mxu0 }
 0x4b6   : > { %v12702_v43 = vpop.f32.mrf.mxu1  ;;  %v12764_v11 = vpop.f32.mrf.mxu0 }
 0x4b8   : > { %v12706_v29 = vpop.f32.mrf.mxu1  ;;  %v12770_v2 = vpop.f32.mrf.mxu0 }
 0x4ba   : > { %v12708_v50 = vpop.f32.mrf.mxu1  ;;  %v12776_v63 = vpop.f32.mrf.mxu0 }
 0x4bc   : > { %v12712_v6 = vpop.f32.mrf.mxu1  ;;  %v12782_v22 = vpop.f32.mrf.mxu0 }
 0x4be   : > { %v12714_v44 = vpop.f32.mrf.mxu1  ;;  %v12788_v10 = vpop.f32.mrf.mxu0 }
 0x4c0   : > { %v12718_v30 = vpop.f32.mrf.mxu1 }
 0x4c2   : > { %v12720_v20 = vpop.f32.mrf.mxu1 }
 0x4c4   : > { %v12724_v13 = vpop.f32.mrf.mxu1 }
 0x4c6   : > { %v12726_v21 = vpop.f32.mrf.mxu1 }
 0x4c8   : > { %v12730_v58 = vpop.f32.mrf.mxu1 }
 0x4ca   : > { %v12732_v33 = vpop.f32.mrf.mxu1 }
 0x4cc   : > { %v12736_v52 = vpop.f32.mrf.mxu1 }
 0x4ce   : > { %v12738_v36 = vpop.f32.mrf.mxu1 }
 0x4d0   : > { %v12742_v35 = vpop.f32.mrf.mxu1 }
 0x4d1   : > { %14449 = vst [vmem:[#allocation53_spill] sm:$0xff] %v12742_v35 }
 0x4d2   : > { %v12744_v15 = vpop.f32.mrf.mxu1 }
 0x4d3   : > { %14450 = vst [vmem:[#allocation54_spill] sm:$0xff] %v12744_v15 }
 0x4d4   : > { %v12748_v45 = vpop.f32.mrf.mxu1 }
 0x4d5   : > { %14451 = vst [vmem:[#allocation55_spill] sm:$0xff] %v12748_v45 }
 0x4d6   : > { %v12750_v28 = vpop.f32.mrf.mxu1 }
 0x4d7   : > { %14452 = vst [vmem:[#allocation56_spill] sm:$0xff] %v12750_v28 }
 0x4d8   : > { %v12754_v4 = vpop.f32.mrf.mxu1 }
 0x4d9   : > { %14453 = vst [vmem:[#allocation57_spill] sm:$0xff] %v12754_v4 }
 0x4da   : > { %v12756_v26 = vpop.f32.mrf.mxu1 }
 0x4db   : > { %14454 = vst [vmem:[#allocation58_spill] sm:$0xff] %v12756_v26 }
 0x4dc   : > { %v12760_v48 = vpop.f32.mrf.mxu1 }
 0x4dd   : > { %14455 = vst [vmem:[#allocation59_spill] sm:$0xff] %v12760_v48 }
 0x4de   : > { %v12762_v31 = vpop.f32.mrf.mxu1 }
 0x4df   : > { %14456 = vst [vmem:[#allocation60_spill] sm:$0xff] %v12762_v31 }
 0x4e0   : > { %v12766_v55 = vpop.f32.mrf.mxu1 }
 0x4e1   : > { %14457 = vst [vmem:[#allocation61_spill] sm:$0xff] %v12766_v55 }
 0x4e2   : > { %v12768_v39 = vpop.f32.mrf.mxu1 }
 0x4e3   : > { %14458 = vst [vmem:[#allocation62_spill] sm:$0xff] %v12768_v39 }
 0x4e4   : > { %v12772_v42 = vpop.f32.mrf.mxu1 }
 0x4e5   : > { %14459 = vst [vmem:[#allocation63_spill] sm:$0xff] %v12772_v42  ;;  %v12794_v42 = vpop.f32.mrf.mxu0 }
 0x4e6   : > { %v12774_v12 = vpop.f32.mrf.mxu1 }
 0x4e7   : > { %14460 = vst [vmem:[#allocation64_spill] sm:$0xff] %v12774_v12 }
 0x4e8   : > { %v12778_v16 = vpop.f32.mrf.mxu1 }
 0x4e9   : > { %14461 = vst [vmem:[#allocation65_spill] sm:$0xff] %v12778_v16  ;;  %v12800_v16 = vpop.f32.mrf.mxu0 }
 0x4ea   : > { %v12780_v62 = vpop.f32.mrf.mxu1 }
 0x4eb   : > { %14462 = vst [vmem:[#allocation66_spill] sm:$0xff] %v12780_v62 }
 0x4ec   : > { %v12784_v7 = vpop.f32.mrf.mxu1 }
 0x4ed   : > { %14463 = vst [vmem:[#allocation67_spill] sm:$0xff] %v12784_v7  ;;  %v4984_v7 = vld [vmem:[%s14215_s7] sm:$0x3] }
 0x4ee   : > { %v12786_v5 = vpop.f32.mrf.mxu1 }
 0x4ef   : > { %14464 = vst [vmem:[#allocation68_spill] sm:$0xff] %v12786_v5  ;;  %v12809_v5 = vpop.f32.mrf.mxu0 }
 0x4f0   : > { %v12790_v19 = vpop.f32.mrf.mxu1 }
 0x4f1   : > { %14465 = vst [vmem:[#allocation69_spill] sm:$0xff] %v12790_v19  ;;  %v12823_v4 = vpop.f32.mrf.mxu0 }
 0x4f2   : > { %v12792_v39 = vpop.f32.mrf.mxu1 }
 0x4f3   : > { %14466 = vst [vmem:[#allocation70_spill] sm:$0xff] %v12792_v39  ;;  %v4520_v39 = vadd.f32 %v12665_v1, %v12663_v51 }
 0x4f4   : > { %v12796_v12 = vpop.f32.mrf.mxu1 }
 0x4f5   : > { %14467 = vst [vmem:[#allocation71_spill] sm:$0xff] %v12796_v12  ;;  %v12816_v12 = vrot.slane %v4984_v7, %v14425_v41  ;;  %v4526_v41 = vadd.f32 %v12686_v47, %v12676_v0  ;;  %v14476_v47 = vld [vmem:[#allocation6_spill] sm:$0xff] }
 0x4f6   : > { %v12798_v55 = vpop.f32.mrf.mxu1 }
 0x4f7   : > { %14468 = vst [vmem:[#allocation72_spill] sm:$0xff] %v12798_v55 }
 0x4f8   : > { %v12802_v62 = vpop.f32.mrf.mxu1 }
 0x4f9   : > { %14469 = vst [vmem:[#allocation73_spill] sm:$0xff] %v12802_v62  ;;  %v4522_v62 = vadd.f32 %v12674_v14, %v12667_v56  ;;  %v12831_v14 = vpop.f32.mrf.mxu0 }
 0x4fa   : > { %v12804_v31 = vpop.f32.mrf.mxu1  ;;  %14473 = vst [vmem:[#allocation76_spill] sm:$0xff] %v12831_v14 }
 0x4fb   : > { %14470 = vst [vmem:[#allocation74_spill] sm:$0xff] %v12804_v31  ;;  %v14472_v31 = vld [vmem:[#allocation3_spill] sm:$0xff]  ;;  %v12842_v14 = vpop.f32.mrf.mxu0 }
 0x4fc   : > { %v12811_v19 = vpop.f32.mrf.mxu1  ;;  %v12821_v26 = vrot.slane %v4984_v7, %v14472_v31  ;;  %v14474_v7 = vld [vmem:[#allocation8_spill] sm:$0xff] }
 0x4fd   : > { %14471 = vst [vmem:[#allocation75_spill] sm:$0xff] %v12811_v19  ;;  %v4524_v19 = vadd.f32 %v12680_v18, %v12672_v23 }
 0x4fe   : > { %v4817_v55 = vpop.f32.mrf.mxu1 }
 0x4ff   : > { %v4936_v48 = vadd.f32 %v4817_v55, %v4520_v39  ;;  %v4530_v39 = vadd.f32 %v12692_v46, %v12678_v49 }
 0x500   : > { %v4819_v28 = vpop.f32.mrf.mxu1 }
 0x501   : > { %v4996_v45 = vadd.f32 %v12816_v12, %v4936_v48  ;;  %v4937_v51 = vadd.f32 %v4819_v28, %v4522_v62  ;;  %v4532_v28 = vadd.f32 %v12698_v8, %v12682_v25  ;;  %v14475_v62 = vld [vmem:[#allocation7_spill] sm:$0xff] }
 0x502   : > { %v4821_v1 = vpop.f32.mrf.mxu1 }
 0x503   : > { %v4997_v15 = vadd.f32 %v12821_v26, %v4937_v51  ;;  %v4938_v56 = vadd.f32 %v4821_v1, %v4524_v19  ;;  %v5044_v31 = vadd.f32 %v4996_v45, %v14474_v7  ;;  %v14477_v45 = vld [vmem:[#allocation5_spill] sm:$0xff] }
 0x504   : > { %v4823_v55 = vpop.f32.mrf.mxu1 }
 0x505   : > { %v4998_v23 = vadd.f32 %v12816_v12, %v4938_v56  ;;  %v4939_v18 = vadd.f32 %v4823_v55, %v4526_v41  ;;  %v5045_v0 = vadd.f32 %v4997_v15, %v14475_v62  ;;  %v5092_v49 = vmax.f32 %v5044_v31, 0.0 }
 0x506   : > { %v4827_v48 = vpop.f32.mrf.mxu1  ;;  %v4534_v41 = vadd.f32 %v12704_v17, %v12684_v38  ;;  %v4536_v15 = vadd.f32 %v12710_v27, %v12688_v60  ;;  %v10112_v17 = vld [vmem:[%s14216_s8 + $0x2b0] ss:$8 sps:$4 sm:$0xff]  }
 0x507   : > { %v5046_v51 = vadd.f32 %v4998_v23, %v14476_v47  ;;  %v4999_v19 = vadd.f32 %v12821_v26, %v4939_v18  ;;  %v4940_v1 = vadd.f32 %v4827_v48, %v4530_v39  ;;  %v5093_v55 = vmax.f32 %v5045_v0, 0.0  ;;  %v12850_v18 = vpop.f32.mrf.mxu0  ;;  %v14478_v47 = vld [vmem:[#allocation11_spill] sm:$0xff] }
 0x508   : > { %v4829_v35 = vpop.f32.mrf.mxu1 }
 0x509   : > { %v5094_v46 = vmax.f32 %v5046_v51, 0.0  ;;  %v5047_v7 = vadd.f32 %v4999_v19, %v14477_v45  ;;  %v4941_v56 = vadd.f32 %v4829_v35, %v4532_v28  ;;  %v5000_v25 = vadd.f32 %v12816_v12, %v4940_v1  ;;  %v10120_v51 = vld [vmem:[%s14216_s8 + $0x2a4] ss:$8 sps:$4 sm:$0xff]   ;;  %v12867_v1 = vpop.f32.mrf.mxu0  ;;  %v14480_v45 = vld [vmem:[#allocation9_spill] sm:$0xff] }
 0x50a   : > { %v4831_v8 = vpop.f32.mrf.mxu1  ;;  %v4540_v35 = vadd.f32 %v12716_v61, %v12690_v40  ;;  %v4542_v19 = vadd.f32 %v12722_v24, %v12694_v57 }
 0x50b   : > { %v5140_v23 = vpack.c.bf16 %v5094_v46, %v5092_v49  ;;  %v5095_v39 = vmax.f32 %v5047_v7, 0.0  ;;  %v5001_v31 = vadd.f32 %v12821_v26, %v4941_v56  ;;  %v4942_v48 = vadd.f32 %v4831_v8, %v4534_v41  ;;  %v14479_v49 = vld [vmem:[#allocation13_spill] sm:$0xff] }
 0x50c   : > { %v4833_v62 = vpop.f32.mrf.mxu1  ;;  %v5048_v60 = vadd.f32 %v5000_v25, %v14478_v47  ;;  %v4544_v41 = vadd.f32 %v12728_v3, %v12696_v59  ;;  %v14481_v25 = vld [vmem:[#allocation12_spill] sm:$0xff]  ;;  %v4546_v59 = vadd.f32 %v12734_v34, %v12700_v9  ;;  %v4550_v47 = vadd.f32 %v12740_v54, %v12702_v43  ;;  %v14483_v43 = vld [vmem:[#allocation14_spill] sm:$0xff] }
 0x50d   : > { %v4943_v28 = vadd.f32 %v4833_v62, %v4536_v15  ;;  %v5141_v38 = vpack.c.bf16 %v5095_v39, %v5093_v55  ;;  %v5002_v27 = vadd.f32 %v12816_v12, %v4942_v48  ;;  %v5049_v46 = vadd.f32 %v5001_v31, %v14479_v49  ;;  %v10118_v15 = vld [vmem:[%s14216_s8 + $0x2a0] ss:$8 sps:$4 sm:$0xff]   ;;  %v14484_v49 = vld [vmem:[#allocation10_spill] sm:$0xff] }
 0x50e   : > { %v4837_v0 = vpop.f32.mrf.mxu1  ;;  %v5096_v55 = vmax.f32 %v5048_v60, 0.0  ;;  %v14482_v60 = vld [vmem:[#allocation19_spill] sm:$0xff]  ;;  %v4552_v9 = vadd.f32 %v12746_v37, %v12706_v29 }
 0x50f   : > { %v5003_v40 = vadd.f32 %v12821_v26, %v4943_v28  ;;  %v4944_v61 = vadd.f32 %v4837_v0, %v4540_v35  ;;  %8805 = vmatprep.mubr.msk.bf16.mxu1 %vm3063_vm3, %v5141_v38  ;;  %v5050_v7 = vadd.f32 %v5002_v27, %v14480_v45  ;;  %v12884_v35 = vpop.f32.mrf.mxu0  ;;  %v5097_v28 = vmax.f32 %v5049_v46, 0.0  ;;  %v10111_v29 = vld [vmem:[%s14216_s8 + $0x1e4] ss:$8 sps:$4 sm:$0xff]  }
 0x510   : > { %v4839_v56 = vpop.f32.mrf.mxu1  ;;  %5626 = vmatmul.mubr.bf16.vlgmr.msra.gmra.mxu1 %v5140_v23  ;;  %v10126_v23 = vld [vmem:[%s14216_s8 + $0x294] ss:$8 sps:$4 sm:$0xff]   ;;  %v10129_v37 = vld [vmem:[%s14216_s8 + $0x284] ss:$8 sps:$4 sm:$0xff]  }
 0x511   : > { %v5051_v8 = vadd.f32 %v5003_v40, %v14481_v25  ;;  %v5004_v57 = vadd.f32 %v12816_v12, %v4944_v61  ;;  %v4945_v24 = vadd.f32 %v4839_v56, %v4542_v19  ;;  %6148 = vmatpush1.bf16.msra.mxu1 %v10112_v17  ;;  %v5098_v39 = vmax.f32 %v5050_v7, 0.0  ;;  %v10106_v40 = vld [vmem:[%s14216_s8 + $0x1f0] ss:$8 sps:$4 sm:$0xff]   ;;  %v12907_v56 = vpop.f32.mrf.mxu0 }
 0x512   : > { %v4841_v31 = vpop.f32.mrf.mxu1  ;;  %6149 = vmatprep.subr.bf16.mxu1 %v10120_v51  ;;  %v10124_v61 = vld [vmem:[%s14216_s8 + $0x290] ss:$8 sps:$4 sm:$0xff]  }
 0x513   : > { %v5099_v3 = vmax.f32 %v5051_v8, 0.0  ;;  %v5005_v48 = vadd.f32 %v12821_v26, %v4945_v24  ;;  %v4946_v62 = vadd.f32 %v4841_v31, %v4544_v41  ;;  %v5142_v38 = vpack.c.bf16 %v5098_v39, %v5096_v55 }
 0x514   : > { %v4843_v17 = vpop.f32.mrf.mxu1  ;;  %v5052_v27 = vadd.f32 %v5004_v57, %v14482_v60  ;;  %v14485_v57 = vld [vmem:[#allocation15_spill] sm:$0xff]  ;;  %v4554_v55 = vadd.f32 %v12752_v32, %v12708_v50  ;;  %v12925_v32 = vpop.f32.mrf.mxu0 }
 0x515   : > { %v5006_v0 = vadd.f32 %v12816_v12, %v4946_v62  ;;  %v4947_v51 = vadd.f32 %v4843_v17, %v4546_v59  ;;  %6150 = vmatpush1.bf16.msra.mxu1 %v10118_v15  ;;  %v5143_v19 = vpack.c.bf16 %v5099_v3, %v5097_v28  ;;  %v5053_v54 = vadd.f32 %v5005_v48, %v14483_v43  ;;  %v10127_v59 = vld [vmem:[%s14216_s8 + $0x280] ss:$8 sps:$4 sm:$0xff]   ;;  %v10123_v43 = vld [vmem:[%s14216_s8 + $0x1c4] ss:$8 sps:$4 sm:$0xff]  }
 0x516   : > { %v4847_v34 = vpop.f32.mrf.mxu1  ;;  %6151 = vmatprep.subr.bf16.mxu1 %v10126_v23  ;;  %v5100_v25 = vmax.f32 %v5052_v27, 0.0  ;;  %v10109_v23 = vld [vmem:[%s14216_s8 + $0x1e0] ss:$8 sps:$4 sm:$0xff]   ;;  %v4556_v3 = vadd.f32 %v12758_v53, %v12712_v6  ;;  %v10135_v6 = vld [vmem:[%s14216_s8 + $0x274] ss:$8 sps:$4 sm:$0xff]   ;;  %v4560_v53 = vadd.f32 %v12764_v11, %v12714_v44  ;;  %v4562_v44 = vadd.f32 %v12770_v2, %v12718_v30  ;;  %v12961_v2 = vpop.f32.mrf.mxu0 }
 0x517   : > { %v5054_v46 = vadd.f32 %v5006_v0, %v14484_v49  ;;  %v5007_v45 = vadd.f32 %v12821_v26, %v4947_v51  ;;  %v4948_v7 = vadd.f32 %v4847_v34, %v4550_v47  ;;  %8773 = vmatprep.mubr.msk.bf16.mxu0 %vm3063_vm3, %v5143_v19  ;;  %8806 = vmatprep.mubr.msk.bf16.mxu1 %vm3063_vm3, %v5143_v19  ;;  %v5101_v48 = vmax.f32 %v5053_v54, 0.0  ;;  %v10117_v47 = vld [vmem:[%s14216_s8 + $0x1d4] ss:$8 sps:$4 sm:$0xff]   ;;  %v14486_v0 = vld [vmem:[#allocation20_spill] sm:$0xff]  ;;  %v10115_v19 = vld [vmem:[%s14216_s8 + $0x1d0] ss:$8 sps:$4 sm:$0xff]  }
 0x518   : > { %v4849_v41 = vpop.f32.mrf.mxu1  ;;  %5390 = vmatmul.mubr.bf16.vlgmr.msra.gmra.mxu0 %v5142_v38  ;;  %5636 = vmatmul.mubr.bf16.gmra.mxu1 %v5142_v38  ;;  %v10141_v54 = vld [vmem:[%s14216_s8 + $0x264] ss:$8 sps:$4 sm:$0xff]   ;;  %v4564_v30 = vadd.f32 %v12776_v63, %v12720_v20  ;;  %v14487_v49 = vld [vmem:[#allocation18_spill] sm:$0xff] }
 0x519   : > { %v5102_v8 = vmax.f32 %v5054_v46, 0.0  ;;  %v5055_v24 = vadd.f32 %v5007_v45, %v14485_v57  ;;  %v4949_v15 = vadd.f32 %v4849_v41, %v4552_v9  ;;  %v5008_v39 = vadd.f32 %v12816_v12, %v4948_v7  ;;  %5855 = vmatpush1.bf16.msra.mxu0 %v10106_v40  ;;  %6152 = vmatpush1.bf16.msra.mxu1 %v10124_v61  ;;  %v10133_v40 = vld [vmem:[%s14216_s8 + $0x270] ss:$8 sps:$4 sm:$0xff]  }
 0x51a   : > { %v4851_v31 = vpop.f32.mrf.mxu1  ;;  %5856 = vmatprep.subr.bf16.mxu0 %v10111_v29  ;;  %6153 = vmatprep.subr.bf16.mxu1 %v10129_v37  ;;  %v14488_v45 = vld [vmem:[#allocation17_spill] sm:$0xff]  ;;  %v14489_v37 = vld [vmem:[#allocation16_spill] sm:$0xff] }
 0x51b   : > { %v12923_v62 = vpack.c.bf16 %v5102_v8, %v5100_v25  ;;  %v5103_v50 = vmax.f32 %v5055_v24, 0.0  ;;  %v5009_v28 = vadd.f32 %v12821_v26, %v4949_v15  ;;  %v4950_v38 = vadd.f32 %v4851_v31, %v4554_v55  ;;  %v10121_v24 = vld [vmem:[%s14216_s8 + $0x1c0] ss:$8 sps:$4 sm:$0xff]  }
 0x51c   : > { %v4853_v17 = vpop.f32.mrf.mxu1  ;;  %v5056_v51 = vadd.f32 %v5008_v39, %v14486_v0  ;;  %v10139_v15 = vld [vmem:[%s14216_s8 + $0x260] ss:$8 sps:$4 sm:$0xff]   ;;  %v4566_v55 = vadd.f32 %v12782_v22, %v12724_v13  ;;  %v4570_v22 = vadd.f32 %v12788_v10, %v12726_v21  ;;  %v10145_v21 = vld [vmem:[%s14216_s8 + $0x250] ss:$8 sps:$4 sm:$0xff]  }
 0x51d   : > { %v4951_v60 = vadd.f32 %v4853_v17, %v4556_v3  ;;  %v12936_v27 = vpack.c.bf16 %v5103_v50, %v5101_v48  ;;  %v5010_v9 = vadd.f32 %v12816_v12, %v4950_v38  ;;  %5857 = vmatpush1.bf16.msra.mxu0 %v10109_v23  ;;  %6154 = vmatpush1.bf16.msra.mxu1 %v10127_v59  ;;  %v10132_v59 = vld [vmem:[%s14216_s8 + $0x1b4] ss:$8 sps:$4 sm:$0xff]   ;;  %v12984_v48 = vpop.f32.mrf.mxu0  ;;  %v14490_v38 = vld [vmem:[#allocation24_spill] sm:$0xff] }
 0x51e   : > { %v4857_v34 = vpop.f32.mrf.mxu1  ;;  %v5057_v46 = vadd.f32 %v5009_v28, %v14487_v49  ;;  %5858 = vmatprep.subr.bf16.mxu0 %v10117_v47  ;;  %6155 = vmatprep.subr.bf16.mxu1 %v10135_v6  ;;  %v5104_v57 = vmax.f32 %v5056_v51, 0.0  ;;  %v10147_v3 = vld [vmem:[%s14216_s8 + $0x254] ss:$8 sps:$4 sm:$0xff]  }
 0x51f   : > { %v5011_v11 = vadd.f32 %v12821_v26, %v4951_v60  ;;  %v4952_v61 = vadd.f32 %v4857_v34, %v4560_v53  ;;  %8774 = vmatprep.mubr.msk.bf16.mxu0 %vm3063_vm3, %v12936_v27  ;;  %8807 = vmatprep.mubr.msk.bf16.mxu1 %vm3063_vm3, %v12936_v27  ;;  %v5058_v7 = vadd.f32 %v5010_v9, %v14488_v45  ;;  %v14491_v60 = vld [vmem:[#allocation22_spill] sm:$0xff]  ;;  %v14492_v10 = vld [vmem:[#allocation21_spill] sm:$0xff] }
 0x520   : > { %v4859_v29 = vpop.f32.mrf.mxu1  ;;  %5400 = vmatmul.mubr.bf16.gmra.mxu0 %v12923_v62  ;;  %5646 = vmatmul.mubr.bf16.gmra.mxu1 %v12923_v62  ;;  %v5105_v50 = vmax.f32 %v5057_v46, 0.0  ;;  %v4572_v53 = vadd.f32 %v12794_v42, %v12730_v58  ;;  %v10130_v34 = vld [vmem:[%s14216_s8 + $0x1b0] ss:$8 sps:$4 sm:$0xff]   ;;  %v10138_v42 = vld [vmem:[%s14216_s8 + $0x1a4] ss:$8 sps:$4 sm:$0xff]   ;;  %v4574_v45 = vadd.f32 %v12800_v16, %v12732_v33 }
 0x521   : > { %v5059_v41 = vadd.f32 %v5011_v11, %v14489_v37  ;;  %v5012_v25 = vadd.f32 %v12816_v12, %v4952_v61  ;;  %v4953_v8 = vadd.f32 %v4859_v29, %v4562_v44  ;;  %v5106_v20 = vmax.f32 %v5058_v7, 0.0  ;;  %5859 = vmatpush1.bf16.msra.mxu0 %v10115_v19  ;;  %6156 = vmatpush1.bf16.msra.mxu1 %v10133_v40  ;;  %v10150_v44 = vld [vmem:[%s14216_s8 + $0x244] ss:$8 sps:$4 sm:$0xff]   ;;  %v13011_v11 = vpop.f32.mrf.mxu0 }
 0x522   : > { %v4861_v63 = vpop.f32.mrf.mxu1  ;;  %5860 = vmatprep.subr.bf16.mxu0 %v10123_v43  ;;  %6157 = vmatprep.subr.bf16.mxu1 %v10141_v54  ;;  %v4576_v7 = vadd.f32 %v12809_v5, %v12736_v52 }
 0x523   : > { %v5107_v39 = vmax.f32 %v5059_v41, 0.0  ;;  %v5013_v31 = vadd.f32 %v12821_v26, %v4953_v8  ;;  %v4954_v23 = vadd.f32 %v4861_v63, %v4564_v30  ;;  %v12986_v28 = vpack.c.bf16 %v5106_v20, %v5104_v57  ;;  %v14493_v30 = vld [vmem:[#allocation23_spill] sm:$0xff]  ;;  %v13034_v52 = vpop.f32.mrf.mxu0  ;;  %v10144_v63 = vld [vmem:[%s14216_s8 + $0x194] ss:$8 sps:$4 sm:$0xff]  }
 0x524   : > { %v4863_v13 = vpop.f32.mrf.mxu1  ;;  %v5060_v17 = vadd.f32 %v5012_v25, %v14490_v38  ;;  %v10136_v41 = vld [vmem:[%s14216_s8 + $0x1a0] ss:$8 sps:$4 sm:$0xff]   ;;  %v10142_v38 = vld [vmem:[%s14216_s8 + $0x190] ss:$8 sps:$4 sm:$0xff]  }
 0x525   : > { %v5014_v47 = vadd.f32 %v12816_v12, %v4954_v23  ;;  %v4955_v6 = vadd.f32 %v4863_v13, %v4566_v55  ;;  %v5061_v0 = vadd.f32 %v5013_v31, %v14491_v60  ;;  %v12995_v9 = vpack.c.bf16 %v5107_v39, %v5105_v50  ;;  %5861 = vmatpush1.bf16.msra.mxu0 %v10121_v24  ;;  %v10148_v25 = vld [vmem:[%s14216_s8 + $0x240] ss:$8 sps:$4 sm:$0xff]   ;;  %v10156_v24 = vld [vmem:[%s14216_s8 + $0x2f4] ss:$8 sps:$4 sm:$0xff]   ;;  %v10162_v60 = vld [vmem:[%s14216_s8 + $0x2e4] ss:$8 sps:$4 sm:$0xff]  }
 0x526   : > { %v4867_v51 = vpop.f32.mrf.mxu1  ;;  %6158 = vmatpush1.bf16.msra.mxu1 %v10139_v15  ;;  %5862 = vmatprep.subr.bf16.mxu0 %v10132_v59  ;;  %v5108_v43 = vmax.f32 %v5060_v17, 0.0  ;;  %v4580_v15 = vadd.f32 %v12823_v4, %v12738_v36  ;;  %v14494_v31 = vld [vmem:[#allocation53_spill] sm:$0xff]  ;;  %v14495_v23 = vld [vmem:[#allocation76_spill] sm:$0xff]  ;;  %v14497_v4 = vld [vmem:[#allocation26_spill] sm:$0xff] }
 0x527   : > { %v5062_v19 = vadd.f32 %v5014_v47, %v14492_v10  ;;  %v5015_v40 = vadd.f32 %v12821_v26, %v4955_v6  ;;  %v4956_v58 = vadd.f32 %v4867_v51, %v4570_v22  ;;  %6159 = vmatprep.subr.bf16.mxu1 %v10147_v3  ;;  %8775 = vmatprep.mubr.msk.bf16.mxu0 %vm3063_vm3, %v12995_v9  ;;  %v5109_v8 = vmax.f32 %v5061_v0, 0.0  ;;  %v14496_v3 = vld [vmem:[#allocation28_spill] sm:$0xff]  ;;  %v10154_v36 = vld [vmem:[%s14216_s8 + $0x2f0] ss:$8 sps:$4 sm:$0xff]  }
 0x528   : > { %8808 = vmatprep.mubr.msk.bf16.mxu1 %vm3063_vm3, %v12995_v9  ;;  %v4869_v61 = vpop.f32.mrf.mxu1  ;;  %5410 = vmatmul.mubr.bf16.gmra.mxu0 %v12986_v28  ;;  %v4582_v59 = vadd.f32 %v14495_v23, %v14494_v31  ;;  %v14498_v0 = vld [vmem:[#allocation54_spill] sm:$0xff] }
 0x529   : > { %v5110_v54 = vmax.f32 %v5062_v19, 0.0  ;;  %v5063_v49 = vadd.f32 %v5015_v40, %v14493_v30  ;;  %v4957_v46 = vadd.f32 %v4869_v61, %v4572_v53  ;;  %5656 = vmatmul.mubr.bf16.gmra.mxu1 %v12986_v28  ;;  %v5016_v29 = vadd.f32 %v12816_v12, %v4956_v58  ;;  %5863 = vmatpush1.bf16.msra.mxu0 %v10130_v34  ;;  %v10153_v53 = vld [vmem:[%s14216_s8 + $0x184] ss:$8 sps:$4 sm:$0xff]   ;;  %v13070_v34 = vpop.f32.mrf.mxu0  ;;  %v10160_v30 = vld [vmem:[%s14216_s8 + $0x2e0] ss:$8 sps:$4 sm:$0xff]  }
 0x52a   : > { %v4871_v37 = vpop.f32.mrf.mxu1  ;;  %6160 = vmatpush1.bf16.msra.mxu1 %v10145_v21  ;;  %5864 = vmatprep.subr.bf16.mxu0 %v10138_v42  ;;  %v4584_v51 = vadd.f32 %v12842_v14, %v14498_v0  ;;  %v14499_v21 = vld [vmem:[#allocation25_spill] sm:$0xff]  ;;  %v14500_v40 = vld [vmem:[#allocation27_spill] sm:$0xff] }
 0x52b   : > { %v13031_v57 = vpack.c.bf16 %v5110_v54, %v5108_v43  ;;  %v5111_v33 = vmax.f32 %v5063_v49, 0.0  ;;  %v5017_v16 = vadd.f32 %v12821_v26, %v4957_v46  ;;  %6161 = vmatprep.subr.bf16.mxu1 %v10150_v44  ;;  %v4958_v5 = vadd.f32 %v4871_v37, %v4574_v45  ;;  %v10151_v14 = vld [vmem:[%s14216_s8 + $0x180] ss:$8 sps:$4 sm:$0xff]   ;;  %v13085_v37 = vpop.f32.mrf.mxu0  ;;  %v10157_v23 = vld [vmem:[%s14216_s8 + $0x230] ss:$8 sps:$4 sm:$0xff]  }
 0x52c   : > { %v4873_v20 = vpop.f32.mrf.mxu1  ;;  %v5064_v50 = vadd.f32 %v5016_v29, %v14496_v3  ;;  %v14504_v3 = vld [vmem:[#allocation57_spill] sm:$0xff] }
 0x52d   : > { %v13044_v55 = vpack.c.bf16 %v5111_v33, %v5109_v8  ;;  %v4959_v39 = vadd.f32 %v4873_v20, %v4576_v7  ;;  %v5018_v13 = vadd.f32 %v12816_v12, %v4958_v5  ;;  %5865 = vmatpush1.bf16.msra.mxu0 %v10136_v41  ;;  %v5065_v17 = vadd.f32 %v5017_v16, %v14497_v4  ;;  %v14501_v7 = vld [vmem:[#allocation55_spill] sm:$0xff]  ;;  %v10159_v33 = vld [vmem:[%s14216_s8 + $0x234] ss:$8 sps:$4 sm:$0xff]   ;;  %v14502_v5 = vld [vmem:[#allocation56_spill] sm:$0xff] }
 0x52e   : > { %v4877_v22 = vpop.f32.mrf.mxu1  ;;  %6162 = vmatpush1.bf16.msra.mxu1 %v10148_v25  ;;  %5866 = vmatprep.subr.bf16.mxu0 %v10144_v63  ;;  %v5112_v61 = vmax.f32 %v5064_v50, 0.0  ;;  %v4586_v29 = vadd.f32 %v12850_v18, %v14501_v7  ;;  %v10168_v16 = vld [vmem:[%s14216_s8 + $0x2d4] ss:$8 sps:$4 sm:$0xff]   ;;  %v4590_v20 = vadd.f32 %v12867_v1, %v14502_v5  ;;  %v14503_v18 = vld [vmem:[#allocation32_spill] sm:$0xff]  ;;  %v4592_v1 = vadd.f32 %v12884_v35, %v14504_v3 }
 0x52f   : > { %v5019_v47 = vadd.f32 %v12821_v26, %v4959_v39  ;;  %v4960_v6 = vadd.f32 %v4877_v22, %v4580_v15  ;;  %8776 = vmatprep.mubr.msk.bf16.mxu0 %vm3063_vm3, %v13044_v55  ;;  %8809 = vmatprep.mubr.msk.bf16.mxu1 %vm3063_vm3, %v13044_v55  ;;  %v5066_v10 = vadd.f32 %v5018_v13, %v14499_v21  ;;  %v5113_v49 = vmax.f32 %v5065_v17, 0.0  ;;  %v14505_v50 = vld [vmem:[#allocation29_spill] sm:$0xff]  ;;  %v13120_v17 = vpop.f32.mrf.mxu0 }
 0x530   : > { %v4879_v19 = vpop.f32.mrf.mxu1  ;;  %6171 = vmatprep.subr.bf16.mxu1 %v10156_v24  ;;  %5420 = vmatmul.mubr.bf16.gmra.mxu0 %v13031_v57  ;;  %v14512_v5 = vld [vmem:[#allocation61_spill] sm:$0xff] }
 0x531   : > { %v5067_v58 = vadd.f32 %v5019_v47, %v14500_v40  ;;  %v5020_v42 = vadd.f32 %v12816_v12, %v4960_v6  ;;  %v4961_v44 = vadd.f32 %v4879_v19, %v4582_v59  ;;  %5666 = vmatmul.mubr.bf16.gmra.mxu1 %v13031_v57  ;;  %v5114_v43 = vmax.f32 %v5066_v10, 0.0  ;;  %5867 = vmatpush1.bf16.msra.mxu0 %v10142_v38  ;;  %v10166_v59 = vld [vmem:[%s14216_s8 + $0x2d0] ss:$8 sps:$4 sm:$0xff]   ;;  %v10165_v38 = vld [vmem:[%s14216_s8 + $0x224] ss:$8 sps:$4 sm:$0xff]  }
 0x532   : > { %v4881_v54 = vpop.f32.mrf.mxu1  ;;  %6172 = vmatpush2.bf16.msra.mxu1 %v10154_v36  ;;  %5868 = vmatprep.subr.bf16.mxu0 %v10153_v53  ;;  %v14506_v36 = vld [vmem:[#allocation58_spill] sm:$0xff] }
 0x533   : > { %v5115_v46 = vmax.f32 %v5067_v58, 0.0  ;;  %v4962_v45 = vadd.f32 %v4881_v54, %v4584_v51  ;;  %6173 = vmatprep.subr.bf16.mxu1 %v10162_v60  ;;  %v13087_v41 = vpack.c.bf16 %v5114_v43, %v5112_v61  ;;  %v5021_v25 = vadd.f32 %v12821_v26, %v4961_v44  ;;  %v14507_v47 = vld [vmem:[#allocation30_spill] sm:$0xff]  ;;  %v10171_v60 = vld [vmem:[%s14216_s8 + $0x2c4] ss:$8 sps:$4 sm:$0xff]   ;;  %v10163_v58 = vld [vmem:[%s14216_s8 + $0x220] ss:$8 sps:$4 sm:$0xff]  }
 0x534   : > { %v4883_v8 = vpop.f32.mrf.mxu1  ;;  %v5068_v24 = vadd.f32 %v5020_v42, %v14503_v18  ;;  %v4594_v4 = vadd.f32 %v12907_v56, %v14506_v36  ;;  %v14508_v56 = vld [vmem:[#allocation31_spill] sm:$0xff] }
 0x535   : > { %v13098_v63 = vpack.c.bf16 %v5115_v46, %v5113_v49  ;;  %v5022_v15 = vadd.f32 %v12816_v12, %v4962_v45  ;;  %v4963_v39 = vadd.f32 %v4883_v8, %v4586_v29  ;;  %5869 = vmatpush1.bf16.msra.mxu0 %v10151_v14  ;;  %v5069_v35 = vadd.f32 %v5021_v25, %v14507_v47  ;;  %v10169_v42 = vld [vmem:[%s14216_s8 + $0x2c0] ss:$8 sps:$4 sm:$0xff]   ;;  %v13145_v49 = vpop.f32.mrf.mxu0 }
 0x536   : > { %v4887_v31 = vpop.f32.mrf.mxu1  ;;  %6174 = vmatpush2.bf16.msra.mxu1 %v10160_v30  ;;  %5878 = vmatprep.subr.bf16.mxu0 %v10159_v33  ;;  %v5116_v0 = vmax.f32 %v5068_v24, 0.0  ;;  %v14509_v44 = vld [vmem:[#allocation59_spill] sm:$0xff]  ;;  %v10174_v30 = vld [vmem:[%s14216_s8 + $0x214] ss:$8 sps:$4 sm:$0xff]   ;;  %v14510_v29 = vld [vmem:[#allocation60_spill] sm:$0xff] }
 0x537   : > { %v5070_v13 = vadd.f32 %v5022_v15, %v14505_v50  ;;  %v4964_v22 = vadd.f32 %v4887_v31, %v4590_v20  ;;  %8777 = vmatprep.mubr.msk.bf16.mxu0 %vm3063_vm3, %v13098_v63  ;;  %8810 = vmatprep.mubr.msk.bf16.mxu1 %vm3063_vm3, %v13098_v63  ;;  %v5023_v6 = vadd.f32 %v12821_v26, %v4963_v39  ;;  %v5117_v46 = vmax.f32 %v5069_v35, 0.0  ;;  %v14513_v24 = vld [vmem:[#allocation34_spill] sm:$0xff]  ;;  %v4619_v50 = vpop.f32.mrf.mxu0  ;;  %v14516_v36 = vld [vmem:[#allocation35_spill] sm:$0xff] }
 0x538   : > { %v4889_v53 = vpop.f32.mrf.mxu1  ;;  %6175 = vmatprep.subr.bf16.mxu1 %v10168_v16  ;;  %5430 = vmatmul.mubr.bf16.gmra.mxu0 %v13087_v41  ;;  %v4596_v61 = vadd.f32 %v12925_v32, %v14509_v44  ;;  %v4600_v25 = vadd.f32 %v12961_v2, %v14510_v29  ;;  %v14511_v32 = vld [vmem:[#allocation36_spill] sm:$0xff]  ;;  %v4602_v20 = vadd.f32 %v12984_v48, %v14512_v5  ;;  %v10172_v31 = vld [vmem:[%s14216_s8 + $0x210] ss:$8 sps:$4 sm:$0xff]   ;;  %v10180_v44 = vld [vmem:[%s14216_s8 + $0x374] ss:$8 sps:$4 sm:$0xff]  }
 0x539   : > { %v5118_v51 = vmax.f32 %v5070_v13, 0.0  ;;  %v5024_v21 = vadd.f32 %v12816_v12, %v4964_v22  ;;  %v4965_v10 = vadd.f32 %v4889_v53, %v4592_v1  ;;  %5676 = vmatmul.mubr.bf16.gmra.mxu1 %v13087_v41  ;;  %v5071_v19 = vadd.f32 %v5023_v6, %v14508_v56  ;;  %5879 = vmatpush2.bf16.msra.mxu0 %v10157_v23  ;;  %v14514_v2 = vld [vmem:[#allocation33_spill] sm:$0xff]  ;;  %v10177_v48 = vld [vmem:[%s14216_s8 + $0x204] ss:$8 sps:$4 sm:$0xff]   ;;  %v14517_v35 = vld [vmem:[#allocation62_spill] sm:$0xff] }
 0x53a   : > { %v4891_v40 = vpop.f32.mrf.mxu1  ;;  %6176 = vmatpush2.bf16.msra.mxu1 %v10166_v59  ;;  %5880 = vmatprep.subr.bf16.mxu0 %v10165_v38  ;;  %v14515_v1 = vmov 0   ;;  %v4604_v6 = vadd.f32 %v13011_v11, %v14517_v35 }
 0x53b   : > { %v13139_v43 = vpack.c.bf16 %v5118_v51, %v5116_v0  ;;  %v5025_v54 = vadd.f32 %v12821_v26, %v4965_v10  ;;  %v4966_v14 = vadd.f32 %v4891_v40, %v4594_v4  ;;  %v5119_v45 = vmax.f32 %v5071_v19, 0.0  ;;  %6177 = vmatprep.subr.bf16.mxu1 %v10171_v60  ;;  %v10175_v0 = vld [vmem:[%s14216_s8 + $0x200] ss:$8 sps:$4 sm:$0xff]   ;;  %v13182_v40 = vpop.f32.mrf.mxu0 }
 0x53c   : > { %v4893_v7 = vpop.f32.mrf.mxu1  ;;  %v5072_v8 = vadd.f32 %v5024_v21, %v14511_v32  ;;  %v14518_v51 = vld [vmem:[#allocation63_spill] sm:$0xff] }
 0x53d   : > { %v5026_v33 = vadd.f32 %v12816_v12, %v4966_v14  ;;  %v4967_v16 = vadd.f32 %v4893_v7, %v4596_v61  ;;  %v13153_v18 = vpack.c.bf16 %v5119_v45, %v5117_v46  ;;  %v5073_v15 = vadd.f32 %v5025_v54, %v14513_v24  ;;  %5881 = vmatpush2.bf16.msra.mxu0 %v10163_v58  ;;  %v14519_v61 = vld [vmem:[#allocation64_spill] sm:$0xff]  ;;  %v4623_v32 = vpop.f32.mrf.mxu0 }
 0x53e   : > { %v4897_v39 = vpop.f32.mrf.mxu1  ;;  %6178 = vmatpush2.bf16.msra.mxu1 %v10169_v42  ;;  %5882 = vmatprep.subr.bf16.mxu0 %v10174_v30  ;;  %v5120_v22 = vmax.f32 %v5072_v8, 0.0  ;;  %v4606_v21 = vadd.f32 %v13034_v52, %v14518_v51  ;;  %v4610_v54 = vadd.f32 %v13070_v34, %v14519_v61  ;;  %v14520_v30 = vld [vmem:[#allocation40_spill] sm:$0xff]  ;;  %v14521_v34 = vld [vmem:[#allocation38_spill] sm:$0xff] }
 0x53f   : > { %v5074_v23 = vadd.f32 %v5026_v33, %v14514_v2  ;;  %v5027_v59 = vadd.f32 %v12821_v26, %v4967_v16  ;;  %v4968_v3 = vadd.f32 %v4897_v39, %v4600_v25  ;;  %6898 = vmatprep.subr.bf16.mxu1 %v14515_v1  ;;  %8778 = vmatprep.mubr.msk.bf16.mxu0 %vm3063_vm3, %v13153_v18  ;;  %v5121_v10 = vmax.f32 %v5073_v15, 0.0  ;;  %v14522_v33 = vld [vmem:[#allocation37_spill] sm:$0xff]  ;;  %v14524_v15 = vld [vmem:[#allocation39_spill] sm:$0xff] }
 0x540   : > { %8811 = vmatprep.mubr.msk.bf16.mxu1 %vm3063_vm3, %v13153_v18  ;;  %v4899_v13 = vpop.f32.mrf.mxu1  ;;  %5440 = vmatmul.mubr.bf16.gmra.mxu0 %v13139_v43 }
 0x541   : > { %v5122_v38 = vmax.f32 %v5074_v23, 0.0  ;;  %v5075_v4 = vadd.f32 %v5027_v59, %v14516_v36  ;;  %v4969_v47 = vadd.f32 %v4899_v13, %v4602_v20  ;;  %5686 = vmatmul.mubr.bf16.gmra.mxu1 %v13139_v43  ;;  %v5028_v53 = vadd.f32 %v12816_v12, %v4968_v3  ;;  %5883 = vmatpush2.bf16.msra.mxu0 %v10172_v31  ;;  %v14523_v20 = vld [vmem:[#allocation66_spill] sm:$0xff]  ;;  %v13211_v13 = vpop.f32.mrf.mxu0  ;;  %v14525_v36 = vld [vmem:[#allocation68_spill] sm:$0xff] }
 0x542   : > { %v4901_v60 = vpop.f32.mrf.mxu1  ;;  %5884 = vmatprep.subr.bf16.mxu0 %v10177_v48  ;;  %v4614_v24 = vadd.f32 %v13120_v17, %v14523_v20  ;;  %v14531_v20 = vld [vmem:[#allocation45_spill] sm:$0xff] }
 0x543   : > { %v13180_v56 = vpack.c.bf16 %v5122_v38, %v5120_v22  ;;  %v5123_v19 = vmax.f32 %v5075_v4, 0.0  ;;  %v5029_v11 = vadd.f32 %v12821_v26, %v4969_v47  ;;  %v4970_v58 = vadd.f32 %v4901_v60, %v4604_v6  ;;  %v14526_v47 = vld [vmem:[#allocation44_spill] sm:$0xff] }
 0x544   : > { %v4903_v42 = vpop.f32.mrf.mxu1  ;;  %v5076_v46 = vadd.f32 %v5028_v53, %v14520_v30  ;;  %v4620_v4 = vadd.f32 %v4619_v50, %v14525_v36  ;;  %v14528_v50 = vld [vmem:[#allocation70_spill] sm:$0xff] }
 0x545   : > { %v13190_v14 = vpack.c.bf16 %v5123_v19, %v5121_v10  ;;  %v4971_v52 = vadd.f32 %v4903_v42, %v4606_v21  ;;  %v5030_v45 = vadd.f32 %v12816_v12, %v4970_v58  ;;  %5885 = vmatpush2.bf16.msra.mxu0 %v10175_v0  ;;  %v5077_v8 = vadd.f32 %v5029_v11, %v14521_v34  ;;  %v14527_v0 = vld [vmem:[#allocation41_spill] sm:$0xff]  ;;  %v4629_v10 = vpop.f32.mrf.mxu0 }
 0x546   : > { %v4907_v7 = vpop.f32.mrf.mxu1  ;;  %6440 = vmatprep.subr.bf16.mxu0 %v10180_v44  ;;  %v5124_v2 = vmax.f32 %v5076_v46, 0.0  ;;  %v4624_v42 = vadd.f32 %v4623_v32, %v14528_v50  ;;  %v10190_v50 = vld [vmem:[%s14216_s8 + $0x330] ss:$8 sps:$4 sm:$0xff]  }
 0x547   : > { %v5031_v29 = vadd.f32 %v12821_v26, %v4971_v52  ;;  %v4972_v25 = vadd.f32 %v4907_v7, %v4610_v54  ;;  %8779 = vmatprep.mubr.msk.bf16.mxu0 %vm3063_vm3, %v13190_v14  ;;  %8812 = vmatprep.mubr.msk.bf16.mxu1 %vm3063_vm3, %v13190_v14  ;;  %v5078_v16 = vadd.f32 %v5030_v45, %v14522_v33  ;;  %v5125_v22 = vmax.f32 %v5077_v8, 0.0  ;;  %v13237_v52 = vpop.f32.mrf.mxu0  ;;  %v14529_v45 = vld [vmem:[#allocation72_spill] sm:$0xff] }
 0x548   : > { %v13201_v5 = vpop.f32.mrf.mxu1  ;;  %5450 = vmatmul.mubr.bf16.gmra.mxu0 %v13180_v56  ;;  %v4630_v7 = vadd.f32 %v4629_v10, %v14529_v45  ;;  %v10183_v33 = vld [vmem:[%s14216_s8 + $0x364] ss:$8 sps:$4 sm:$0xff]   ;;  %v10187_v10 = vld [vmem:[%s14216_s8 + $0x340] ss:$8 sps:$4 sm:$0xff]   ;;  %v10198_v45 = vld [vmem:[%s14216_s8 + $0x314] ss:$8 sps:$4 sm:$0xff]  }
 0x549   : > { %v5079_v39 = vadd.f32 %v5031_v29, %v14524_v15  ;;  %v5032_v31 = vadd.f32 %v12816_v12, %v4972_v25  ;;  %5696 = vmatmul.mubr.bf16.gmra.mxu1 %v13180_v56  ;;  %v5126_v23 = vmax.f32 %v5078_v16, 0.0  ;;  %v14530_v29 = vld [vmem:[#allocation48_spill] sm:$0xff]  ;;  %v4633_v16 = vpop.f32.mrf.mxu0 }
 0x54a   : > { %8917 = vmatprep.mubr.msk.bf16.mxu1 %vm3063_vm3, %v12995_v9  ;;  %v4911_v59 = vpop.f32.mrf.mxu1 }
 0x54b   : > { %v5127_v3 = vmax.f32 %v5079_v39, 0.0  ;;  %v4974_v48 = vadd.f32 %v4911_v59, %v4614_v24  ;;  %v13213_v17 = vpack.c.bf16 %v5126_v23, %v5124_v2  ;;  %v5080_v35 = vadd.f32 %v5032_v31, %v14526_v47  ;;  %v14532_v39 = vld [vmem:[#allocation74_spill] sm:$0xff] }
 0x54c   : > { %v13215_v38 = vpop.f32.mrf.mxu1  ;;  %v4634_v31 = vadd.f32 %v4633_v16, %v14532_v39  ;;  %v10201_v16 = vld [vmem:[%s14216_s8 + $0x304] ss:$8 sps:$4 sm:$0xff]  }
 0x54d   : > { %v5034_v6 = vadd.f32 %v12816_v12, %v4974_v48  ;;  %v13220_v60 = vpack.c.bf16 %v5127_v3, %v5125_v22  ;;  %v5128_v11 = vmax.f32 %v5080_v35, 0.0  ;;  %v10181_v48 = vld [vmem:[%s14216_s8 + $0x360] ss:$8 sps:$4 sm:$0xff]   ;;  %v14534_v35 = vld [vmem:[#allocation49_spill] sm:$0xff] }
 0x54e   : > { %v4917_v53 = vpop.f32.mrf.mxu1 }
 0x54f   : > { %v5082_v51 = vadd.f32 %v5034_v6, %v14527_v0  ;;  %v4976_v21 = vadd.f32 %v4917_v53, %v4620_v4  ;;  %8780 = vmatprep.mubr.msk.bf16.mxu0 %vm3063_vm3, %v13220_v60  ;;  %v14533_v4 = vld [vmem:[#allocation52_spill] sm:$0xff]  ;;  %v10184_v53 = vld [vmem:[%s14216_s8 + $0x350] ss:$8 sps:$4 sm:$0xff]  }
 0x550   : > { %v13225_v19 = vpop.f32.mrf.mxu1  ;;  %5460 = vmatmul.mubr.bf16.gmra.mxu0 %v13213_v17  ;;  %v10189_v0 = vld [vmem:[%s14216_s8 + $0x344] ss:$8 sps:$4 sm:$0xff]  }
 0x551   : > { %v5130_v58 = vmax.f32 %v5082_v51, 0.0  ;;  %6180 = vmatmul.mubr.bf16.vlgmr.msra.gmra.mxu1 %v12986_v28  ;;  %v5036_v44 = vadd.f32 %v12816_v12, %v4976_v21  ;;  %8861 = vmatprep.mubr.msk.bf16.mxu0 %vm3063_vm3, %v12936_v27  ;;  %v10178_v27 = vld [vmem:[%s14216_s8 + $0x370] ss:$8 sps:$4 sm:$0xff]  }
 0x552   : > { %8918 = vmatprep.mubr.msk.bf16.mxu1 %vm3063_vm3, %v13044_v55  ;;  %v4921_v61 = vpop.f32.mrf.mxu1 }
 0x553   : > { %v13235_v54 = vpack.c.bf16 %v5130_v58, %v5128_v11  ;;  %v4978_v30 = vadd.f32 %v4921_v61, %v4624_v42  ;;  %v5084_v25 = vadd.f32 %v5036_v44, %v14530_v29  ;;  %v14535_v11 = vld [vmem:[#allocation67_spill] sm:$0xff]  ;;  %v14536_v42 = vld [vmem:[#allocation65_spill] sm:$0xff] }
 0x554   : > { %v13239_v46 = vpop.f32.mrf.mxu1  ;;  %v4616_v58 = vadd.f32 %v13145_v49, %v14535_v11  ;;  %v4612_v44 = vadd.f32 %v13085_v37, %v14536_v42  ;;  %v10193_v37 = vld [vmem:[%s14216_s8 + $0x320] ss:$8 sps:$4 sm:$0xff]  }
 0x555   : > { %v5038_v32 = vadd.f32 %v12816_v12, %v4978_v30  ;;  %v5132_v23 = vmax.f32 %v5084_v25, 0.0  ;;  %v10195_v30 = vld [vmem:[%s14216_s8 + $0x324] ss:$8 sps:$4 sm:$0xff]   ;;  %v10196_v25 = vld [vmem:[%s14216_s8 + $0x310] ss:$8 sps:$4 sm:$0xff]  }
 0x556   : > { %v4927_v34 = vpop.f32.mrf.mxu1  ;;  %v4975_v61 = vadd.f32 %v13215_v38, %v4616_v58  ;;  %v4973_v49 = vadd.f32 %v13201_v5, %v4612_v44  ;;  %v14546_v58 = vld [vmem:[#allocation50_spill] sm:$0xff] }
 0x557   : > { %v4980_v8 = vadd.f32 %v4927_v34, %v4630_v7  ;;  %v5086_v24 = vadd.f32 %v5038_v32, %v14531_v20  ;;  %v14537_v7 = vld [vmem:[#allocation71_spill] sm:$0xff]  ;;  %v14538_v32 = vld [vmem:[#allocation69_spill] sm:$0xff] }
 0x558   : > { %v13251_v15 = vpop.f32.mrf.mxu1  ;;  %5887 = vmatmul.mubr.bf16.vlgmr.msra.gmra.mxu0 %v12923_v62  ;;  %v10186_v62 = vld [vmem:[%s14216_s8 + $0x354] ss:$8 sps:$4 sm:$0xff]   ;;  %v5035_v38 = vadd.f32 %v12821_v26, %v4975_v61  ;;  %v4626_v5 = vadd.f32 %v13211_v13, %v14537_v7  ;;  %v5033_v29 = vadd.f32 %v12821_v26, %v4973_v49  ;;  %v4622_v34 = vadd.f32 %v13182_v40, %v14538_v32  ;;  %v10199_v40 = vld [vmem:[%s14216_s8 + $0x300] ss:$8 sps:$4 sm:$0xff]  }
 0x559   : > { %v5040_v2 = vadd.f32 %v12816_v12, %v4980_v8  ;;  %6190 = vmatmul.mubr.bf16.gmra.mxu1 %v13031_v57  ;;  %v5134_v59 = vmax.f32 %v5086_v24, 0.0  ;;  %6441 = vmatpush1.bf16.msra.mxu0 %v10178_v27  ;;  %v14539_v27 = vld [vmem:[#allocation43_spill] sm:$0xff]  ;;  %v14540_v13 = vld [vmem:[#allocation42_spill] sm:$0xff] }
 0x55a   : > { %8862 = vmatprep.mubr.msk.bf16.mxu0 %vm3063_vm3, %v12995_v9  ;;  %v4931_v3 = vpop.f32.mrf.mxu1  ;;  %8919 = vmatprep.mubr.msk.bf16.mxu1 %vm3063_vm3, %v13098_v63  ;;  %v5083_v8 = vadd.f32 %v5035_v38, %v14539_v27  ;;  %v5081_v20 = vadd.f32 %v5033_v29, %v14540_v13  ;;  %v4977_v24 = vadd.f32 %v13225_v19, %v4622_v34 }
 0x55b   : > { %v4982_v22 = vadd.f32 %v4931_v3, %v4634_v31  ;;  %6442 = vmatprep.subr.bf16.mxu0 %v10183_v33  ;;  %v13267_v36 = vpack.c.bf16 %v5134_v59, %v5132_v23  ;;  %v5088_v47 = vadd.f32 %v5040_v2, %v14533_v4  ;;  %v4979_v33 = vadd.f32 %v13239_v46, %v4626_v5  ;;  %v10204_v31 = vld [vmem:[%s14216_s8 + $0x3b4] ss:$8 sps:$4 sm:$0xff]   ;;  %v10202_v23 = vld [vmem:[%s14216_s8 + $0x3b0] ss:$8 sps:$4 sm:$0xff]   ;;  %v14541_v59 = vld [vmem:[#allocation47_spill] sm:$0xff] }
 0x55c   : > { %v5131_v46 = vmax.f32 %v5083_v8, 0.0  ;;  %v5129_v19 = vmax.f32 %v5081_v20, 0.0  ;;  %v5037_v2 = vadd.f32 %v12821_v26, %v4977_v24 }
 0x55d   : > { %v5042_v9 = vadd.f32 %v12816_v12, %v4982_v22  ;;  %6443 = vmatpush1.bf16.msra.mxu0 %v10181_v48  ;;  %v5136_v51 = vmax.f32 %v5088_v47, 0.0  ;;  %v5039_v39 = vadd.f32 %v12821_v26, %v4979_v33  ;;  %v10207_v22 = vld [vmem:[%s14216_s8 + $0x3a4] ss:$8 sps:$4 sm:$0xff]   ;;  %v10205_v47 = vld [vmem:[%s14216_s8 + $0x3a0] ss:$8 sps:$4 sm:$0xff]  }
 0x55e   : > { %6444 = vmatprep.subr.bf16.mxu0 %v10186_v62  ;;  %v5159_v48 = vpack.c.bf16 %v5131_v46, %v5129_v19  ;;  %v14542_v62 = vld [vmem:[#allocation46_spill] sm:$0xff] }
 0x55f   : > { %v5090_v6 = vadd.f32 %v5042_v9, %v14534_v35  ;;  %v5087_v3 = vadd.f32 %v5039_v39, %v14541_v59  ;;  %v5085_v4 = vadd.f32 %v5037_v2, %v14542_v62  ;;  %v10210_v35 = vld [vmem:[%s14216_s8 + $0x394] ss:$8 sps:$4 sm:$0xff]  }
 0x560   : > { %5897 = vmatmul.mubr.bf16.gmra.mxu0 %v12986_v28  ;;  %v10192_v28 = vld [vmem:[%s14216_s8 + $0x334] ss:$8 sps:$4 sm:$0xff]  }
 0x561   : > { %v5138_v21 = vmax.f32 %v5090_v6, 0.0  ;;  %6200 = vmatmul.mubr.bf16.gmra.mxu1 %v13087_v41  ;;  %8863 = vmatprep.mubr.msk.bf16.mxu0 %vm3063_vm3, %v13044_v55  ;;  %v5135_v9 = vmax.f32 %v5087_v3, 0.0  ;;  %v5133_v6 = vmax.f32 %v5085_v4, 0.0 }
 0x562   : > { %8920 = vmatprep.mubr.msk.bf16.mxu1 %vm3063_vm3, %v13153_v18  ;;  %6445 = vmatpush1.bf16.msra.mxu0 %v10184_v53  ;;  %v10208_v53 = vld [vmem:[%s14216_s8 + $0x390] ss:$8 sps:$4 sm:$0xff]  }
 0x563   : > { %v13284_v12 = vpack.c.bf16 %v5138_v21, %v5136_v51  ;;  %6446 = vmatprep.subr.bf16.mxu0 %v10189_v0  ;;  %v5161_v0 = vpack.c.bf16 %v5135_v9, %v5133_v6  ;;  %v10213_v51 = vld [vmem:[%s14216_s8 + $0x384] ss:$8 sps:$4 sm:$0xff]   ;;  %v10211_v21 = vld [vmem:[%s14216_s8 + $0x380] ss:$8 sps:$4 sm:$0xff]  }
 0x566   : > { %6447 = vmatpush1.bf16.msra.mxu0 %v10187_v10  ;;  %v14543_v10 = vld [vmem:[#allocation75_spill] sm:$0xff] }
 0x567   : > { %6448 = vmatprep.subr.bf16.mxu0 %v10192_v28 }
 0x568   : > { %5907 = vmatmul.mubr.bf16.gmra.mxu0 %v13031_v57 }
 0x569   : > { %6210 = vmatmul.mubr.bf16.gmra.mxu1 %v13139_v43  ;;  %8864 = vmatprep.mubr.msk.bf16.mxu0 %vm3063_vm3, %v13098_v63 }
 0x56a   : > { %8921 = vmatprep.mubr.msk.bf16.mxu1 %vm3063_vm3, %v13190_v14  ;;  %6449 = vmatpush1.bf16.msra.mxu0 %v10190_v50 }
 0x56b   : > { %6450 = vmatprep.subr.bf16.mxu0 %v10195_v30 }
 0x56e   : > { %6451 = vmatpush1.bf16.msra.mxu0 %v10193_v37 }
 0x56f   : > { %6452 = vmatprep.subr.bf16.mxu0 %v10198_v45 }
 0x570   : > { %5917 = vmatmul.mubr.bf16.gmra.mxu0 %v13087_v41 }
 0x571   : > { %6220 = vmatmul.mubr.bf16.gmra.mxu1 %v13180_v56  ;;  %8865 = vmatprep.mubr.msk.bf16.mxu0 %vm3063_vm3, %v13153_v18 }
 0x572   : > { %8922 = vmatprep.mubr.msk.bf16.mxu1 %vm3063_vm3, %v13220_v60  ;;  %6453 = vmatpush1.bf16.msra.mxu0 %v10196_v25 }
 0x573   : > { %6454 = vmatprep.subr.bf16.mxu0 %v10201_v16 }
 0x576   : > { %6455 = vmatpush1.bf16.msra.mxu0 %v10199_v40 }
 0x577   : > { %6464 = vmatprep.subr.bf16.mxu0 %v10204_v31 }
 0x578   : > { %5927 = vmatmul.mubr.bf16.gmra.mxu0 %v13139_v43 }
 0x579   : > { %6230 = vmatmul.mubr.bf16.gmra.mxu1 %v13213_v17  ;;  %8866 = vmatprep.mubr.msk.bf16.mxu0 %vm3063_vm3, %v13190_v14 }
 0x57a   : > { %8923 = vmatprep.mubr.msk.bf16.mxu1 %vm3063_vm3, %v5159_v48  ;;  %6465 = vmatpush2.bf16.msra.mxu0 %v10202_v23 }
 0x57b   : > { %6466 = vmatprep.subr.bf16.mxu0 %v10207_v22 }
 0x57e   : > { %6467 = vmatpush2.bf16.msra.mxu0 %v10205_v47 }
 0x57f   : > { %6468 = vmatprep.subr.bf16.mxu0 %v10210_v35 }
 0x580   : > { %5937 = vmatmul.mubr.bf16.gmra.mxu0 %v13180_v56 }
 0x581   : > { %6240 = vmatmul.mubr.bf16.gmra.mxu1 %v13235_v54  ;;  %8867 = vmatprep.mubr.msk.bf16.mxu0 %vm3063_vm3, %v13220_v60 }
 0x582   : > { %8924 = vmatprep.mubr.msk.bf16.mxu1 %vm3063_vm3, %v5161_v0  ;;  %6469 = vmatpush2.bf16.msra.mxu0 %v10208_v53 }
 0x583   : > { %6470 = vmatprep.subr.bf16.mxu0 %v10213_v51 }
 0x586   : > { %6471 = vmatpush2.bf16.msra.mxu0 %v10211_v21 }
 0x588   : > { %5947 = vmatmul.mubr.bf16.gmra.mxu0 %v13213_v17 }
 0x589   : > { %6250 = vmatmul.mubr.bf16.gmra.mxu1 %v13267_v36  ;;  %8868 = vmatprep.mubr.msk.bf16.mxu0 %vm3063_vm3, %v5159_v48 }
 0x590   : > { %5957 = vmatmul.mubr.bf16.gmra.mxu0 %v13235_v54 }
 0x591   : > { %8973 = vmatprep.mubr.msk.bf16.mxu0 %vm3063_vm3, %v13044_v55  ;;  %v4635_v55 = vpop.f32.mrf.mxu0 }
 0x592   : > { %v4636_v28 = vadd.f32 %v4635_v55, %v14543_v10 }
 0x598   : > { %6473 = vmatmul.mubr.bf16.vlgmr.msra.gmra.mxu0 %v13031_v57  ;;  %v4933_v57 = vpop.f32.mrf.mxu1 }
 0x599   : > { %8974 = vmatprep.mubr.msk.bf16.mxu0 %vm3063_vm3, %v13098_v63  ;;  %v14544_v63 = vld [vmem:[#allocation73_spill] sm:$0xff]  ;;  %v4983_v11 = vadd.f32 %v4933_v57, %v4636_v28 }
 0x5a0   : > { %6483 = vmatmul.mubr.bf16.gmra.mxu0 %v13087_v41  ;;  %v4632_v41 = vadd.f32 %v13237_v52, %v14544_v63 }
 0x5a1   : > { %8975 = vmatprep.mubr.msk.bf16.mxu0 %vm3063_vm3, %v13153_v18  ;;  %v5043_v18 = vadd.f32 %v12821_v26, %v4983_v11 }
 0x5a8   : > { %6493 = vmatmul.mubr.bf16.gmra.mxu0 %v13139_v43  ;;  %v4981_v43 = vadd.f32 %v13251_v15, %v4632_v41 }
 0x5a9   : > { %8976 = vmatprep.mubr.msk.bf16.mxu0 %vm3063_vm3, %v13190_v14  ;;  %v14545_v14 = vld [vmem:[#allocation51_spill] sm:$0xff] }
 0x5b0   : > { %6503 = vmatmul.mubr.bf16.gmra.mxu0 %v13180_v56  ;;  %v5041_v56 = vadd.f32 %v12821_v26, %v4981_v43  ;;  %v14547_v26 = vmov 0.0|0.0  }
 0x5b1   : > { %8977 = vmatprep.mubr.msk.bf16.mxu0 %vm3063_vm3, %v13220_v60  ;;  %v5091_v60 = vadd.f32 %v5043_v18, %v14545_v14 }
 0x5b2   : > { %v5089_v50 = vadd.f32 %v5041_v56, %v14546_v58 }
 0x5b3   : > { %v5139_v52 = vmax.f32 %v5091_v60, 0.0 }
 0x5b4   : > { %v5137_v42 = vmax.f32 %v5089_v50, 0.0 }
 0x5b6   : > { %v5163_v44 = vpack.c.bf16 %v5139_v52, %v5137_v42 }
 0x5b8   : > { %6513 = vmatmul.mubr.bf16.gmra.mxu0 %v13213_v17 }
 0x5b9   : > { %8978 = vmatprep.mubr.msk.bf16.mxu0 %vm3063_vm3, %v5159_v48 }
 0x5c0   : > { %6523 = vmatmul.mubr.bf16.gmra.mxu0 %v13235_v54 }
 0x5c1   : > { %8979 = vmatprep.mubr.msk.bf16.mxu0 %vm3063_vm3, %v5161_v0 }
 0x5c8   : > { %6533 = vmatmul.mubr.bf16.gmra.mxu0 %v13267_v36 }
 0x5c9   : > { %8980 = vmatprep.mubr.msk.bf16.mxu0 %vm3063_vm3, %v5163_v44 }
 0x5d0   : > { %v5627_v17 = vpop.f32.mrf.mxu1  ;;  %6543 = vmatmul.mubr.bf16.gmra.mxu0 %v13284_v12 }
 0x5d1   : > { %9304 = vmatprep.mubr.bf16.mxu0 %v14547_v26 }
 0x5d2   : > { %v5629_v15 = vpop.f32.mrf.mxu1 }
 0x5d4   : > { %v5631_v61 = vpop.f32.mrf.mxu1 }
 0x5d6   : > { %v13413_v30 = vpop.f32.mrf.mxu1 }
 0x5d8   : > { %v5391_v54 = vpop.f32.mrf.mxu0  ;;  %v13415_v49 = vpop.f32.mrf.mxu1 }
 0x5d9   : > { %v13417_v37 = vadd.f32 %v5627_v17, %v5391_v54 }
 0x5da   : > { %v5393_v38 = vpop.f32.mrf.mxu0  ;;  %v13419_v45 = vpop.f32.mrf.mxu1 }
 0x5db   : > { %v13421_v36 = vadd.f32 %v5629_v15, %v5393_v38 }
 0x5dc   : > { %v5395_v7 = vpop.f32.mrf.mxu0  ;;  %v13423_v5 = vpop.f32.mrf.mxu1 }
 0x5dd   : > { %v13425_v12 = vadd.f32 %v5631_v61, %v5395_v7 }
 0x5de   : > { %v13427_v29 = vpop.f32.mrf.mxu0  ;;  %v13429_v25 = vpop.f32.mrf.mxu1 }
 0x5e0   : > { %v13431_v32 = vpop.f32.mrf.mxu0  ;;  %v5647_v34 = vpop.f32.mrf.mxu1 }
 0x5e2   : > { %v13433_v27 = vpop.f32.mrf.mxu0  ;;  %v5649_v8 = vpop.f32.mrf.mxu1 }
 0x5e4   : > { %v13435_v33 = vpop.f32.mrf.mxu0  ;;  %v5651_v16 = vpop.f32.mrf.mxu1 }
 0x5e6   : > { %v13437_v13 = vpop.f32.mrf.mxu0  ;;  %v13439_v20 = vpop.f32.mrf.mxu1 }
 0x5e8   : > { %v5411_v24 = vpop.f32.mrf.mxu0 }
 0x5e9   : > { %v13441_v40 = vpop.f32.mrf.mxu1  ;;  %v13443_v46 = vadd.f32 %v5647_v34, %v5411_v24 }
 0x5ea   : > { %v5413_v39 = vpop.f32.mrf.mxu0 }
 0x5eb   : > { %v13445_v31 = vpop.f32.mrf.mxu1  ;;  %v13447_v19 = vadd.f32 %v5649_v8, %v5413_v39 }
 0x5ec   : > { %v5415_v2 = vpop.f32.mrf.mxu0 }
 0x5ed   : > { %v13449_v23 = vpop.f32.mrf.mxu1  ;;  %v13451_v59 = vadd.f32 %v5651_v16, %v5415_v2 }
 0x5ee   : > { %v13453_v3 = vpop.f32.mrf.mxu0 }
 0x5ef   : > { %v13455_v48 = vpop.f32.mrf.mxu1 }
 0x5f0   : > { %v13457_v22 = vpop.f32.mrf.mxu0 }
 0x5f1   : > { %v5667_v62 = vpop.f32.mrf.mxu1 }
 0x5f2   : > { %v13459_v4 = vpop.f32.mrf.mxu0 }
 0x5f3   : > { %v5669_v47 = vpop.f32.mrf.mxu1 }
 0x5f4   : > { %v13461_v9 = vpop.f32.mrf.mxu0 }
 0x5f5   : > { %v5671_v35 = vpop.f32.mrf.mxu1 }
 0x5f6   : > { %v13463_v6 = vpop.f32.mrf.mxu0 }
 0x5f7   : > { %v5673_v53 = vpop.f32.mrf.mxu1 }
 0x5f8   : > { %v5431_v0 = vpop.f32.mrf.mxu0 }
 0x5f9   : > { %v13465_v51 = vpop.f32.mrf.mxu1  ;;  %v13467_v21 = vadd.f32 %v5667_v62, %v5431_v0 }
 0x5fa   : > { %v5433_v55 = vpop.f32.mrf.mxu0 }
 0x5fb   : > { %v13469_v57 = vpop.f32.mrf.mxu1  ;;  %v13471_v10 = vadd.f32 %v5669_v47, %v5433_v55 }
 0x5fc   : > { %14548 = vst [vmem:[#allocation8_spill] sm:$0xff] %v13469_v57  ;;  %v5435_v28 = vpop.f32.mrf.mxu0 }
 0x5fd   : > { %v13473_v63 = vpop.f32.mrf.mxu1  ;;  %v13475_v41 = vadd.f32 %v5671_v35, %v5435_v28 }
 0x5fe   : > { %14549 = vst [vmem:[#allocation7_spill] sm:$0xff] %v13473_v63  ;;  %v5437_v11 = vpop.f32.mrf.mxu0 }
 0x5ff   : > { %v13477_v43 = vpop.f32.mrf.mxu1  ;;  %v13479_v18 = vadd.f32 %v5673_v53, %v5437_v11 }
 0x600   : > { %14550 = vst [vmem:[#allocation6_spill] sm:$0xff] %v13477_v43  ;;  %v13481_v56 = vpop.f32.mrf.mxu0 }
 0x601   : > { %v5687_v14 = vpop.f32.mrf.mxu1 }
 0x602   : > { %v13483_v60 = vpop.f32.mrf.mxu0 }
 0x603   : > { %v5689_v58 = vpop.f32.mrf.mxu1 }
 0x604   : > { %v13485_v50 = vpop.f32.mrf.mxu0 }
 0x605   : > { %14551 = vst [vmem:[#allocation5_spill] sm:$0xff] %v13485_v50  ;;  %v5691_v52 = vpop.f32.mrf.mxu1 }
 0x606   : > { %v13487_v42 = vpop.f32.mrf.mxu0 }
 0x607   : > { %14552 = vst [vmem:[#allocation11_spill] sm:$0xff] %v13487_v42  ;;  %v5693_v44 = vpop.f32.mrf.mxu1 }
 0x608   : > { %v5451_v17 = vpop.f32.mrf.mxu0 }
 0x609   : > { %v13489_v15 = vpop.f32.mrf.mxu1  ;;  %v13491_v61 = vadd.f32 %v5687_v14, %v5451_v17 }
 0x60a   : > { %14553 = vst [vmem:[#allocation13_spill] sm:$0xff] %v13489_v15  ;;  %v5453_v54 = vpop.f32.mrf.mxu0 }
 0x60b   : > { %v13493_v38 = vadd.f32 %v5689_v58, %v5453_v54  ;;  %v13495_v7 = vpop.f32.mrf.mxu1 }
 0x60c   : > { %14554 = vst [vmem:[#allocation9_spill] sm:$0xff] %v13495_v7  ;;  %v5455_v34 = vpop.f32.mrf.mxu0 }
 0x60d   : > { %v13497_v8 = vadd.f32 %v5691_v52, %v5455_v34  ;;  %v13499_v24 = vpop.f32.mrf.mxu1 }
 0x60e   : > { %v5457_v16 = vpop.f32.mrf.mxu0  ;;  %14555 = vst [vmem:[#allocation12_spill] sm:$0xff] %v13499_v24 }
 0x60f   : > { %v13501_v39 = vadd.f32 %v5693_v44, %v5457_v16  ;;  %v13507_v47 = vpop.f32.mrf.mxu1  ;;  %v5634_v44 = vadd.f32 %v13413_v30, %v13427_v29  ;;  %v10215_v30 = vld [vmem:[%s14218_s10 + $0x30] sm:$0xff]  }
 0x610   : > { %v13503_v2 = vpop.f32.mrf.mxu0  ;;  %14558 = vst [vmem:[#allocation10_spill] sm:$0xff] %v13507_v47 }
 0x611   : > { %14556 = vst [vmem:[#allocation19_spill] sm:$0xff] %v13503_v2  ;;  %v13513_v0 = vpop.f32.mrf.mxu1 }
 0x612   : > { %v13505_v62 = vpop.f32.mrf.mxu0 }
 0x613   : > { %14557 = vst [vmem:[#allocation14_spill] sm:$0xff] %v13505_v62  ;;  %v13518_v14 = vpop.f32.mrf.mxu1 }
 0x614   : > { %v13509_v35 = vpop.f32.mrf.mxu0 }
 0x615   : > { %14559 = vst [vmem:[#allocation15_spill] sm:$0xff] %v13509_v35  ;;  %v13528_v34 = vpop.f32.mrf.mxu1  ;;  %v5654_v35 = vadd.f32 %v13439_v20, %v13453_v3 }
 0x616   : > { %v13511_v53 = vpop.f32.mrf.mxu0 }
 0x617   : > { %14560 = vst [vmem:[#allocation20_spill] sm:$0xff] %v13511_v53 }
 0x618   : > { %v5888_v55 = vpop.f32.mrf.mxu0 }
 0x619   : > { %v13516_v28 = vadd.f32 %v5888_v55, %v13417_v37  ;;  %v10214_v55 = vld [vmem:[%s14218_s10 + $0x38] sm:$0xff]  }
 0x61a   : > { %v5890_v11 = vpop.f32.mrf.mxu0  ;;  %6899 = vmatpush1.bf16.msra.mxu1 %v10214_v55 }
 0x61b   : > { %v13521_v58 = vadd.f32 %v5890_v11, %v13421_v36  ;;  %v13539_v11 = vpop.f32.mrf.mxu1  ;;  %6900 = vmatprep.subr.bf16.mxu1 %v14515_v1 }
 0x61c   : > { %v5892_v52 = vpop.f32.mrf.mxu0 }
 0x61d   : > { %v13526_v17 = vadd.f32 %v5892_v52, %v13425_v12  ;;  %v13549_v52 = vpop.f32.mrf.mxu1 }
 0x61e   : > { %v5894_v54 = vpop.f32.mrf.mxu0  ;;  %6901 = vmatpush1.bf16.msra.mxu1 %v10215_v30  ;;  %v10217_v30 = vld [vmem:[%s14218_s10 + $0x20] sm:$0xff]  }
 0x61f   : > { %v13530_v16 = vadd.f32 %v5894_v54, %v5634_v44  ;;  %v10216_v44 = vld [vmem:[%s14218_s10 + $0x28] sm:$0xff]   ;;  %6902 = vmatprep.subr.bf16.mxu1 %v14515_v1  ;;  %v13558_v47 = vpop.f32.mrf.mxu1 }
 0x620   : > { %v13532_v37 = vpop.f32.mrf.mxu0 }
 0x621   : > { %v13572_v7 = vpop.f32.mrf.mxu1 }
 0x622   : > { %v13537_v36 = vpop.f32.mrf.mxu0  ;;  %6903 = vmatpush1.bf16.msra.mxu1 %v10216_v44 }
 0x623   : > { %6904 = vmatprep.subr.bf16.mxu1 %v14515_v1  ;;  %v13584_v20 = vpop.f32.mrf.mxu1 }
 0x624   : > { %v13544_v12 = vpop.f32.mrf.mxu0 }
 0x626   : > { %v13547_v29 = vpop.f32.mrf.mxu0  ;;  %6905 = vmatpush1.bf16.msra.mxu1 %v10217_v30  ;;  %v10220_v30 = vld [vmem:[%s14218_s10 + $0x8] sm:$0xff]  }
 0x627   : > { %6906 = vmatprep.subr.bf16.mxu1 %v14515_v1 }
 0x628   : > { %v5908_v54 = vpop.f32.mrf.mxu0 }
 0x629   : > { %v13556_v55 = vadd.f32 %v5908_v54, %v13443_v46 }
 0x62a   : > { %v5910_v26 = vpop.f32.mrf.mxu0 }
 0x62b   : > { %v13561_v53 = vadd.f32 %v5910_v26, %v13447_v19  ;;  %v10218_v26 = vld [vmem:[%s14218_s10 + $0x18] sm:$0xff]  }
 0x62c   : > { %v5912_v24 = vpop.f32.mrf.mxu0  ;;  %6907 = vmatpush1.bf16.msra.mxu1 %v10218_v26 }
 0x62d   : > { %v13570_v46 = vadd.f32 %v5912_v24, %v13451_v59  ;;  %v10219_v59 = vld [vmem:[%s14218_s10 + $0x10] sm:$0xff]   ;;  %6908 = vmatprep.subr.bf16.mxu1 %v14515_v1 }
 0x62e   : > { %v5914_v54 = vpop.f32.mrf.mxu0 }
 0x62f   : > { %v13574_v62 = vadd.f32 %v5914_v54, %v5654_v35  ;;  %v13594_v35 = vpop.f32.mrf.mxu1 }
 0x630   : > { %v13579_v19 = vpop.f32.mrf.mxu0  ;;  %6909 = vmatpush1.bf16.msra.mxu1 %v10219_v59  ;;  %v10221_v59 = vld [vmem:[%s14218_s10] sm:$0xff]  }
 0x631   : > { %6910 = vmatprep.subr.bf16.mxu1 %v14515_v1  ;;  %v13603_v2 = vpop.f32.mrf.mxu1 }
 0x632   : > { %v13582_v44 = vpop.f32.mrf.mxu0 }
 0x634   : > { %v13589_v3 = vpop.f32.mrf.mxu0  ;;  %6911 = vmatpush1.bf16.msra.mxu1 %v10220_v30 }
 0x635   : > { %6912 = vmatprep.subr.bf16.mxu1 %v14515_v1 }
 0x636   : > { %v13592_v24 = vpop.f32.mrf.mxu0 }
 0x638   : > { %v5928_v54 = vpop.f32.mrf.mxu0  ;;  %6913 = vmatpush1.bf16.msra.mxu1 %v10221_v59  ;;  %v10224_v59 = vld [vmem:[%s14218_s10 + $0x58] sm:$0xff]  }
 0x639   : > { %v13601_v26 = vadd.f32 %v5928_v54, %v13467_v21  ;;  %v13615_v21 = vpop.f32.mrf.mxu1  ;;  %6918 = vmatprep.subr.bf16.mxu1 %v14515_v1 }
 0x63a   : > { %v5930_v15 = vpop.f32.mrf.mxu0 }
 0x63b   : > { %14561 = vst [vmem:[#allocation18_spill] sm:$0xff] %v13601_v26  ;;  %v13606_v43 = vadd.f32 %v5930_v15, %v13471_v10  ;;  %v10222_v10 = vld [vmem:[%s14218_s10 + $0x68] sm:$0xff]  }
 0x63c   : > { %v5932_v42 = vpop.f32.mrf.mxu0  ;;  %6919 = vmatpush2.bf16.msra.mxu1 %v10222_v10 }
 0x63d   : > { %14562 = vst [vmem:[#allocation17_spill] sm:$0xff] %v13606_v43  ;;  %v13613_v63 = vadd.f32 %v5932_v42, %v13475_v41  ;;  %v13628_v43 = vpop.f32.mrf.mxu1  ;;  %v10223_v41 = vld [vmem:[%s14218_s10 + $0x60] sm:$0xff]   ;;  %6920 = vmatprep.subr.bf16.mxu1 %v14515_v1 }
 0x63e   : > { %v5934_v50 = vpop.f32.mrf.mxu0 }
 0x63f   : > { %14563 = vst [vmem:[#allocation16_spill] sm:$0xff] %v13613_v63  ;;  %v13618_v54 = vadd.f32 %v5934_v50, %v13479_v18  ;;  %v13638_v42 = vpop.f32.mrf.mxu1 }
 0x640   : > { %v13623_v15 = vpop.f32.mrf.mxu0  ;;  %6921 = vmatpush2.bf16.msra.mxu1 %v10223_v41 }
 0x641   : > { %14564 = vst [vmem:[#allocation24_spill] sm:$0xff] %v13618_v54  ;;  %14565 = vst [vmem:[#allocation22_spill] sm:$0xff] %v13623_v15  ;;  %6922 = vmatprep.subr.bf16.mxu1 %v14515_v1 }
 0x642   : > { %v13626_v30 = vpop.f32.mrf.mxu0 }
 0x643   : > { %14566 = vst [vmem:[#allocation21_spill] sm:$0xff] %v13626_v30  ;;  %v13647_v30 = vpop.f32.mrf.mxu1 }
 0x644   : > { %v13633_v18 = vpop.f32.mrf.mxu0  ;;  %6923 = vmatpush2.bf16.msra.mxu1 %v10224_v59 }
 0x645   : > { %14567 = vst [vmem:[#allocation23_spill] sm:$0xff] %v13633_v18  ;;  %6924 = vmatprep.subr.bf16.mxu1 %v14515_v1  ;;  %v13656_v26 = vpop.f32.mrf.mxu1 }
 0x646   : > { %v13636_v50 = vpop.f32.mrf.mxu0 }
 0x647   : > { %14568 = vst [vmem:[#allocation53_spill] sm:$0xff] %v13636_v50 }
 0x648   : > { %v5948_v54 = vpop.f32.mrf.mxu0 }
 0x649   : > { %v13645_v10 = vadd.f32 %v5948_v54, %v13491_v61 }
 0x64a   : > { %v5950_v63 = vpop.f32.mrf.mxu0 }
 0x64b   : > { %14569 = vst [vmem:[#allocation76_spill] sm:$0xff] %v13645_v10  ;;  %v13650_v18 = vadd.f32 %v5950_v63, %v13493_v38  ;;  %v13665_v10 = vpop.f32.mrf.mxu1 }
 0x64c   : > { %v5952_v50 = vpop.f32.mrf.mxu0 }
 0x64d   : > { %14570 = vst [vmem:[#allocation28_spill] sm:$0xff] %v13650_v18  ;;  %v13654_v41 = vadd.f32 %v5952_v50, %v13497_v8  ;;  %v13671_v59 = vpop.f32.mrf.mxu1  ;;  %v5638_v50 = vadd.f32 %v13415_v49, %v13431_v32  ;;  %v14578_v18 = vld [vmem:[#allocation4_spill] sm:$0xff]  ;;  %v6261_v49 = vadd.f32 %v13518_v14, %v13521_v58  ;;  %v6262_v14 = vadd.f32 %v13528_v34, %v13526_v17 }
 0x64e   : > { %v5954_v15 = vpop.f32.mrf.mxu0  ;;  %14577 = vst [vmem:[#allocation32_spill] sm:$0xff] %v13671_v59  ;;  %v5642_v59 = vadd.f32 %v13423_v5, %v13435_v33  ;;  %v10225_v5 = vld [vmem:[%s14218_s10 + $0x50] sm:$0xff]  }
 0x64f   : > { %14571 = vst [vmem:[#allocation26_spill] sm:$0xff] %v13654_v41  ;;  %v13659_v57 = vadd.f32 %v5954_v15, %v13501_v39  ;;  %v6585_v39 = vld [vmem:[%s14217_s9] sm:$0x3]  ;;  %v6260_v15 = vadd.f32 %v13513_v0, %v13516_v28  ;;  %v5640_v41 = vadd.f32 %v13419_v45, %v13433_v27  ;;  %v5644_v45 = vadd.f32 %v13429_v25, %v13437_v13 }
 0x650   : > { %v13661_v61 = vpop.f32.mrf.mxu0  ;;  %v14579_v28 = vld [vmem:[#allocation3_spill] sm:$0xff]  ;;  %v6263_v13 = vadd.f32 %v13539_v11, %v13530_v16  ;;  %6925 = vmatpush2.bf16.msra.mxu1 %v10225_v5  ;;  %v10226_v16 = vld [vmem:[%s14218_s10 + $0x48] sm:$0xff]   ;;  %v5658_v5 = vadd.f32 %v13441_v40, %v13457_v22 }
 0x651   : > { %14572 = vst [vmem:[#allocation54_spill] sm:$0xff] %v13659_v57  ;;  %14573 = vst [vmem:[#allocation25_spill] sm:$0xff] %v13661_v61  ;;  %v13686_v61 = vrot.slane %v6585_v39, %v14578_v18  ;;  %v5972_v0 = vadd.f32 %v13537_v36, %v5640_v41  ;;  %v5973_v18 = vadd.f32 %v13544_v12, %v5642_v59  ;;  %6926 = vmatprep.subr.bf16.mxu1 %v14515_v1 }
 0x652   : > { %v13663_v54 = vpop.f32.mrf.mxu0  ;;  %v5974_v25 = vadd.f32 %v13547_v29, %v5644_v45 }
 0x653   : > { %14574 = vst [vmem:[#allocation27_spill] sm:$0xff] %v13663_v54  ;;  %v6265_v41 = vadd.f32 %v13558_v47, %v5972_v0  ;;  %v6266_v59 = vadd.f32 %v13572_v7, %v5973_v18 }
 0x654   : > { %v13667_v63 = vpop.f32.mrf.mxu0  ;;  %6927 = vmatpush2.bf16.msra.mxu1 %v10226_v16 }
 0x655   : > { %14575 = vst [vmem:[#allocation55_spill] sm:$0xff] %v13667_v63  ;;  %v5971_v63 = vadd.f32 %v13532_v37, %v5638_v50  ;;  %v13696_v37 = vrot.slane %v6585_v39, %v14579_v28  ;;  %v6267_v39 = vadd.f32 %v13584_v20, %v5974_v25  ;;  %6928 = vmatprep.subr.bf16.mxu1 %v14515_v1 }
 0x656   : > { %v13669_v38 = vpop.f32.mrf.mxu0 }
 0x657   : > { %14576 = vst [vmem:[#allocation56_spill] sm:$0xff] %v13669_v38  ;;  %v13683_v38 = vpop.f32.mrf.mxu1  ;;  %v6264_v58 = vadd.f32 %v13549_v52, %v5971_v63 }
 0x658   : > { %v6474_v8 = vpop.f32.mrf.mxu0 }
 0x659   : > { %v6553_v54 = vadd.f32 %v6474_v8, %v6260_v15  ;;  %v13699_v50 = vpop.f32.mrf.mxu1 }
 0x65a   : > { %v6476_v57 = vpop.f32.mrf.mxu0 }
 0x65b   : > { %v6554_v27 = vadd.f32 %v6476_v57, %v6261_v49  ;;  %v6597_v33 = vadd.f32 %v13686_v61, %v6553_v54  ;;  %v13714_v63 = vpop.f32.mrf.mxu1 }
 0x65c   : > { %v6478_v32 = vpop.f32.mrf.mxu0 }
 0x65d   : > { %v6555_v36 = vadd.f32 %v6478_v32, %v6262_v14  ;;  %v6598_v17 = vadd.f32 %v13696_v37, %v6554_v27  ;;  %v6629_v11 = vmax.f32 %v6597_v33, 0.0  ;;  %v13726_v7 = vpop.f32.mrf.mxu1 }
 0x65e   : > { %v6480_v8 = vpop.f32.mrf.mxu0 }
 0x65f   : > { %v6556_v34 = vadd.f32 %v6480_v8, %v6263_v13  ;;  %v6599_v15 = vadd.f32 %v13686_v61, %v6555_v36  ;;  %v6630_v45 = vmax.f32 %v6598_v17, 0.0  ;;  %v5660_v36 = vadd.f32 %v13445_v31, %v13459_v4 }
 0x660   : > { %v6484_v57 = vpop.f32.mrf.mxu0  ;;  %v5979_v17 = vadd.f32 %v13579_v19, %v5658_v5  ;;  %v5662_v4 = vadd.f32 %v13449_v23, %v13461_v9 }
 0x661   : > { %v6557_v12 = vadd.f32 %v6484_v57, %v6264_v58  ;;  %v6600_v27 = vadd.f32 %v13696_v37, %v6556_v34  ;;  %v10227_v58 = vld [vmem:[%s14218_s10 + $0x40] sm:$0xff]   ;;  %v6631_v33 = vmax.f32 %v6599_v15, 0.0  ;;  %v13744_v34 = vpop.f32.mrf.mxu1 }
 0x662   : > { %v6486_v52 = vpop.f32.mrf.mxu0  ;;  %6929 = vmatpush2.bf16.msra.mxu1 %v10227_v58  ;;  %v6272_v23 = vadd.f32 %v13638_v42, %v5979_v17 }
 0x663   : > { %v6601_v29 = vadd.f32 %v13686_v61, %v6557_v12  ;;  %v6558_v54 = vadd.f32 %v6486_v52, %v6265_v41  ;;  %v6268_v12 = vadd.f32 %v13594_v35, %v13556_v55  ;;  %v6632_v40 = vmax.f32 %v6600_v27, 0.0 }
 0x664   : > { %v6488_v47 = vpop.f32.mrf.mxu0  ;;  %v5980_v55 = vadd.f32 %v13582_v44, %v5660_v36  ;;  %v5664_v35 = vadd.f32 %v13455_v48, %v13463_v6  ;;  %v6271_v6 = vadd.f32 %v13628_v43, %v13574_v62 }
 0x665   : > { %v6633_v49 = vmax.f32 %v6601_v29, 0.0  ;;  %v6602_v32 = vadd.f32 %v13696_v37, %v6558_v54  ;;  %v6559_v0 = vadd.f32 %v6488_v47, %v6266_v59  ;;  %v6269_v54 = vadd.f32 %v13603_v2, %v13561_v53  ;;  %v13761_v53 = vpop.f32.mrf.mxu1 }
 0x666   : > { %v6490_v28 = vpop.f32.mrf.mxu0  ;;  %v5981_v2 = vadd.f32 %v13589_v3, %v5662_v4  ;;  %v6270_v47 = vadd.f32 %v13615_v21, %v13570_v46  ;;  %v5982_v44 = vadd.f32 %v13592_v24, %v5664_v35 }
 0x667   : > { %v13728_v8 = vmax.f32 %v6629_v11, %v6633_v49  ;;  %v6634_v18 = vmax.f32 %v6602_v32, 0.0  ;;  %v6603_v20 = vadd.f32 %v13686_v61, %v6559_v0  ;;  %v6560_v14 = vadd.f32 %v6490_v28, %v6267_v39  ;;  %v13775_v32 = vpop.f32.mrf.mxu1 }
 0x668   : > { %v6494_v25 = vpop.f32.mrf.mxu0  ;;  %v6273_v49 = vadd.f32 %v13647_v30, %v5980_v55  ;;  %v6275_v62 = vadd.f32 %v13665_v10, %v5982_v44  ;;  %v5678_v10 = vadd.f32 %v13465_v51, %v13481_v56  ;;  %v14583_v55 = vld [vmem:[#allocation22_spill] sm:$0xff]  ;;  %v14585_v44 = vld [vmem:[#allocation5_spill] sm:$0xff] }
 0x669   : > { %v13736_v13 = vmax.f32 %v6630_v45, %v6634_v18  ;;  %v6635_v1 = vmax.f32 %v6603_v20, 0.0  ;;  %v6604_v57 = vadd.f32 %v13696_v37, %v6560_v14  ;;  %v6561_v29 = vadd.f32 %v6494_v25, %v6268_v12  ;;  %v13783_v25 = vpop.f32.mrf.mxu1 }
 0x66a   : > { %v6496_v41 = vpop.f32.mrf.mxu0  ;;  %v6274_v45 = vadd.f32 %v13656_v26, %v5981_v2  ;;  %v5987_v35 = vadd.f32 %v14583_v55, %v5678_v10 }
 0x66b   : > { %v13746_v22 = vmax.f32 %v6631_v33, %v6635_v1  ;;  %v6636_v52 = vmax.f32 %v6604_v57, 0.0  ;;  %v9601_v31 = vpack.i.bf16 %v13736_v13, %v13728_v8  ;;  %v6562_v16 = vadd.f32 %v6496_v41, %v6269_v54  ;;  %v14581_v54 = vld [vmem:[#allocation18_spill] sm:$0xff] }
 0x66c   : > { %v6498_v59 = vpop.f32.mrf.mxu0  ;;  %v6605_v48 = vadd.f32 %v13686_v61, %v6561_v29 }
 0x66d   : > { %v13755_v19 = vmax.f32 %v6632_v40, %v6636_v52  ;;  %9602 = vrot.lane.b32.xlu0 %v9601_v31, %s10319_s19  ;;  %v6563_v15 = vadd.f32 %v6498_v59, %v6270_v47  ;;  %v6606_v46 = vadd.f32 %v13696_v37, %v6562_v16  ;;  %v14580_v52 = vld [vmem:[#allocation8_spill] sm:$0xff]  ;;  %v13798_v16 = vpop.f32.mrf.mxu1  ;;  %v14584_v47 = vld [vmem:[#allocation17_spill] sm:$0xff] }
 0x66e   : > { %v6500_v11 = vpop.f32.mrf.mxu0  ;;  %v6637_v27 = vmax.f32 %v6605_v48, 0.0  ;;  %v5680_v29 = vadd.f32 %v14580_v52, %v13483_v60  ;;  %v14582_v59 = vld [vmem:[#allocation32_spill] sm:$0xff]  ;;  %v14586_v48 = vld [vmem:[#allocation7_spill] sm:$0xff] }
 0x66f   : > { %v9606_v9 = vpack.i.bf16 %v13755_v19, %v13746_v22  ;;  %v6564_v21 = vadd.f32 %v6500_v11, %v6271_v6  ;;  %v6607_v28 = vadd.f32 %v13686_v61, %v6563_v15  ;;  %v6638_v14 = vmax.f32 %v6606_v46, 0.0  ;;  %v14589_v46 = vld [vmem:[#allocation6_spill] sm:$0xff] }
 0x670   : > { %v6504_v39 = vpop.f32.mrf.mxu0  ;;  %v6276_v31 = vadd.f32 %v14582_v59, %v14581_v54  ;;  %v5682_v6 = vadd.f32 %v14586_v48, %v14585_v44 }
 0x671   : > { %v6565_v3 = vadd.f32 %v6504_v39, %v6272_v23  ;;  %9607 = vrot.lane.b32.xlu1 %v9606_v9, %s10319_s19  ;;  %v6608_v58 = vadd.f32 %v13696_v37, %v6564_v21  ;;  %v6639_v12 = vmax.f32 %v6607_v28, 0.0  ;;  %v6277_v23 = vadd.f32 %v13683_v38, %v14584_v47  ;;  %v14587_v39 = vld [vmem:[#allocation21_spill] sm:$0xff] }
 0x672   : > { %v6506_v42 = vpop.f32.mrf.mxu0  ;;  %v5988_v15 = vadd.f32 %v14587_v39, %v5680_v29 }
 0x673   : > { %v6609_v24 = vadd.f32 %v13686_v61, %v6565_v3  ;;  %v6566_v0 = vadd.f32 %v6506_v42, %v6273_v49  ;;  %v6640_v11 = vmax.f32 %v6608_v58, 0.0  ;;  %v14588_v49 = vld [vmem:[#allocation11_spill] sm:$0xff] }
 0x674   : > { %v6508_v43 = vpop.f32.mrf.mxu0  ;;  %v5684_v21 = vadd.f32 %v14589_v46, %v14588_v49  ;;  %v14597_v49 = vld [vmem:[#allocation9_spill] sm:$0xff] }
 0x675   : > { %v6641_v18 = vmax.f32 %v6609_v24, 0.0  ;;  %v6610_v30 = vadd.f32 %v13696_v37, %v6566_v0  ;;  %v6567_v20 = vadd.f32 %v6508_v43, %v6274_v45  ;;  %v14590_v0 = vld [vmem:[#allocation23_spill] sm:$0xff]  ;;  %v6245_v45 = vpop.f32.mrf.mxu1 }
 0x676   : > { %v6510_v5 = vpop.f32.mrf.mxu0  ;;  %v5989_v38 = vadd.f32 %v14590_v0, %v5682_v6 }
 0x677   : > { %v13785_v33 = vmax.f32 %v6637_v27, %v6641_v18  ;;  %v6642_v1 = vmax.f32 %v6610_v30, 0.0  ;;  %v6611_v26 = vadd.f32 %v13686_v61, %v6567_v20  ;;  %v6568_v57 = vadd.f32 %v6510_v5, %v6275_v62  ;;  %v14591_v27 = vld [vmem:[#allocation16_spill] sm:$0xff]  ;;  %v14592_v18 = vld [vmem:[#allocation53_spill] sm:$0xff] }
 0x678   : > { %v6514_v36 = vpop.f32.mrf.mxu0  ;;  %v6278_v43 = vadd.f32 %v13699_v50, %v14591_v27  ;;  %v6280_v62 = vadd.f32 %v13726_v7, %v5987_v35  ;;  %v5990_v30 = vadd.f32 %v14592_v18, %v5684_v21  ;;  %v14598_v21 = vld [vmem:[#allocation76_spill] sm:$0xff] }
 0x679   : > { %v13790_v41 = vmax.f32 %v6638_v14, %v6642_v1  ;;  %v6643_v17 = vmax.f32 %v6611_v26, 0.0  ;;  %v6612_v40 = vadd.f32 %v13696_v37, %v6568_v57  ;;  %v6569_v2 = vadd.f32 %v6514_v36, %v6276_v31  ;;  %v14593_v14 = vld [vmem:[#allocation24_spill] sm:$0xff]  ;;  %v6247_v36 = vpop.f32.mrf.mxu1 }
 0x67a   : > { %v6516_v4 = vpop.f32.mrf.mxu0  ;;  %v6279_v58 = vadd.f32 %v13714_v63, %v14593_v14  ;;  %v6281_v57 = vadd.f32 %v13744_v34, %v5988_v15  ;;  %v6283_v63 = vadd.f32 %v13775_v32, %v5990_v30  ;;  %v14596_v15 = vld [vmem:[#allocation14_spill] sm:$0xff]  ;;  %v14600_v30 = vld [vmem:[#allocation28_spill] sm:$0xff] }
 0x67b   : > { %v13800_v51 = vmax.f32 %v6639_v12, %v6643_v17  ;;  %v6644_v56 = vmax.f32 %v6612_v40, 0.0  ;;  %v9611_v60 = vpack.i.bf16 %v13790_v41, %v13785_v33  ;;  %v6570_v42 = vadd.f32 %v6516_v4, %v6277_v23  ;;  %v14594_v23 = vld [vmem:[#allocation19_spill] sm:$0xff] }
 0x67c   : > { %v6518_v9 = vpop.f32.mrf.mxu0  ;;  %v6613_v20 = vadd.f32 %v13686_v61, %v6569_v2  ;;  %v6282_v40 = vadd.f32 %v13761_v53, %v5989_v38  ;;  %v5700_v46 = vadd.f32 %v14597_v49, %v14596_v15  ;;  %v14599_v38 = vld [vmem:[#allocation25_spill] sm:$0xff] }
 0x67d   : > { %v13809_v3 = vmax.f32 %v6640_v11, %v6644_v56  ;;  %9612 = vrot.lane.b32.xlu0 %v9611_v60, %s10319_s19  ;;  %v6571_v1 = vadd.f32 %v6518_v9, %v6278_v43  ;;  %v6614_v50 = vadd.f32 %v13696_v37, %v6570_v42  ;;  %v6251_v11 = vpop.f32.mrf.mxu1  ;;  %v14595_v9 = vld [vmem:[#allocation13_spill] sm:$0xff]  ;;  %v6284_v42 = vadd.f32 %v13783_v25, %v14598_v21  ;;  %v14603_v25 = vld [vmem:[#allocation27_spill] sm:$0xff] }
 0x67e   : > { %v6520_v24 = vpop.f32.mrf.mxu0  ;;  %v6645_v52 = vmax.f32 %v6613_v20, 0.0  ;;  %v5698_v32 = vadd.f32 %v14595_v9, %v14594_v23  ;;  %v6285_v20 = vadd.f32 %v13798_v16, %v14600_v30  ;;  %v14606_v16 = vld [vmem:[#allocation55_spill] sm:$0xff] }
 0x67f   : > { %v9616_v28 = vpack.i.bf16 %v13809_v3, %v13800_v51  ;;  %v6572_v7 = vadd.f32 %v6520_v24, %v6279_v58  ;;  %v6615_v54 = vadd.f32 %v13686_v61, %v6571_v1  ;;  %v6646_v4 = vmax.f32 %v6614_v50, 0.0  ;;  %v6253_v0 = vpop.f32.mrf.mxu1  ;;  %v14602_v1 = vld [vmem:[#allocation12_spill] sm:$0xff] }
 0x680   : > { %v6524_v5 = vpop.f32.mrf.mxu0  ;;  %v5995_v27 = vadd.f32 %v14599_v38, %v5698_v32 }
 0x681   : > { %v6573_v26 = vadd.f32 %v6524_v5, %v6280_v62  ;;  %9617 = vrot.lane.b32.xlu1 %v9616_v28, %s10319_s19  ;;  %v6616_v55 = vadd.f32 %v13696_v37, %v6572_v7  ;;  %v6647_v44 = vmax.f32 %v6615_v54, 0.0  ;;  %v14601_v5 = vld [vmem:[#allocation15_spill] sm:$0xff]  ;;  %v14604_v7 = vld [vmem:[#allocation20_spill] sm:$0xff] }
 0x682   : > { %v6526_v10 = vpop.f32.mrf.mxu0 }
 0x683   : > { %v6617_v12 = vadd.f32 %v13686_v61, %v6573_v26  ;;  %v6574_v17 = vadd.f32 %v6526_v10, %v6281_v57  ;;  %v6648_v43 = vmax.f32 %v6616_v55, 0.0  ;;  %v5702_v26 = vadd.f32 %v14602_v1, %v14601_v5  ;;  %v14605_v10 = vld [vmem:[#allocation10_spill] sm:$0xff] }
 0x684   : > { %v6528_v29 = vpop.f32.mrf.mxu0  ;;  %v5996_v57 = vadd.f32 %v14603_v25, %v5700_v46 }
 0x685   : > { %v6649_v59 = vmax.f32 %v6617_v12, 0.0  ;;  %v6618_v31 = vadd.f32 %v13696_v37, %v6574_v17  ;;  %v6575_v34 = vadd.f32 %v6528_v29, %v6282_v40  ;;  %v5704_v12 = vadd.f32 %v14605_v10, %v14604_v7  ;;  %v10228_v7 = vld [vmem:[%s14219_s11 + $0x38] sm:$0xff]  }
 0x686   : > { %v6530_v35 = vpop.f32.mrf.mxu0  ;;  %v5997_v29 = vadd.f32 %v14606_v16, %v5702_v26  ;;  %v6289_v9 = vadd.f32 %v6253_v0, %v5996_v57  ;;  %v10232_v10 = vld [vmem:[%s14219_s11 + $0x78] sm:$0xff]   ;;  %9288 = vmatprep.subr.bf16.mxu0 %v10228_v7  ;;  %v10235_v16 = vld [vmem:[%s14219_s11 + $0x10] sm:$0xff]  }
 0x687   : > { %v13833_v56 = vmax.f32 %v6645_v52, %v6649_v59  ;;  %v6650_v2 = vmax.f32 %v6618_v31, 0.0  ;;  %v6619_v53 = vadd.f32 %v13686_v61, %v6575_v34  ;;  %v6576_v47 = vadd.f32 %v6530_v35, %v6283_v63  ;;  %v6255_v52 = vpop.f32.mrf.mxu1  ;;  %v14607_v63 = vld [vmem:[#allocation26_spill] sm:$0xff]  ;;  %v14608_v34 = vld [vmem:[#allocation56_spill] sm:$0xff]  ;;  %9289 = vmatpush3.bf16.msra.mxu0 %v10228_v7  ;;  %9264 = vmatprep.subr.bf16.mxu1 %v10232_v10 }
 0x688   : > { %v6534_v60 = vpop.f32.mrf.mxu0  ;;  %v6286_v54 = vadd.f32 %v6245_v45, %v14607_v63  ;;  %v6288_v59 = vadd.f32 %v6251_v11, %v5995_v27  ;;  %v14609_v35 = vld [vmem:[#allocation54_spill] sm:$0xff] }
 0x689   : > { %v13838_v48 = vmax.f32 %v6646_v4, %v6650_v2  ;;  %v6651_v6 = vmax.f32 %v6619_v53, 0.0  ;;  %v6620_v39 = vadd.f32 %v13696_v37, %v6576_v47  ;;  %v6577_v18 = vadd.f32 %v6534_v60, %v6284_v42  ;;  %v6257_v11 = vpop.f32.mrf.mxu1 }
 0x68a   : > { %v6536_v24 = vpop.f32.mrf.mxu0  ;;  %v5998_v4 = vadd.f32 %v14608_v34, %v5704_v12  ;;  %v6287_v2 = vadd.f32 %v6247_v36, %v14609_v35 }
 0x68b   : > { %v13846_v62 = vmax.f32 %v6647_v44, %v6651_v6  ;;  %v6652_v28 = vmax.f32 %v6620_v39, 0.0  ;;  %v9621_v58 = vpack.i.bf16 %v13838_v48, %v13833_v56  ;;  %v6578_v17 = vadd.f32 %v6536_v24, %v6285_v20 }
 0x68c   : > { %v6538_v14 = vpop.f32.mrf.mxu0  ;;  %v6621_v55 = vadd.f32 %v13686_v61, %v6577_v18  ;;  %v6290_v39 = vadd.f32 %v6255_v52, %v5997_v29  ;;  %v6291_v46 = vadd.f32 %v6257_v11, %v5998_v4  ;;  %v10233_v52 = vld [vmem:[%s14219_s11 + $0x18] sm:$0xff]   ;;  %v10237_v29 = vld [vmem:[%s14219_s11 + $0x8] sm:$0xff]  }
 0x68d   : > { %v13855_v50 = vmax.f32 %v6648_v43, %v6652_v28  ;;  %9622 = vrot.lane.b32.xlu0 %v9621_v58, %s10319_s19  ;;  %v6579_v47 = vadd.f32 %v6538_v14, %v6286_v54  ;;  %v6622_v32 = vadd.f32 %v13696_v37, %v6578_v17  ;;  %v10230_v17 = vld [vmem:[%s14219_s11 + $0x28] sm:$0xff]  }
 0x68e   : > { %v6540_v40 = vpop.f32.mrf.mxu0  ;;  %v6653_v15 = vmax.f32 %v6621_v55, 0.0 }
 0x68f   : > { %v9626_v31 = vpack.i.bf16 %v13855_v50, %v13846_v62  ;;  %v6580_v60 = vadd.f32 %v6540_v40, %v6287_v2  ;;  %v6623_v36 = vadd.f32 %v13686_v61, %v6579_v47  ;;  %v6654_v38 = vmax.f32 %v6622_v32, 0.0  ;;  %v10231_v40 = vld [vmem:[%s14219_s11 + $0x20] sm:$0xff]  }
 0x690   : > { %v6544_v53 = vpop.f32.mrf.mxu0 }
 0x691   : > { %v6581_v23 = vadd.f32 %v6544_v53, %v6288_v59  ;;  %9627 = vrot.lane.b32.xlu1 %v9626_v31, %s10319_s19  ;;  %v6624_v0 = vadd.f32 %v13696_v37, %v6580_v60  ;;  %v6655_v20 = vmax.f32 %v6623_v36, 0.0  ;;  %v10234_v60 = vld [vmem:[%s14219_s11 + $0x70] sm:$0xff]  }
 0x692   : > { %v6546_v45 = vpop.f32.mrf.mxu0 }
 0x693   : > { %v6625_v44 = vadd.f32 %v13686_v61, %v6581_v23  ;;  %v6582_v6 = vadd.f32 %v6546_v45, %v6289_v9  ;;  %v6656_v1 = vmax.f32 %v6624_v0, 0.0 }
 0x694   : > { %v6548_v49 = vpop.f32.mrf.mxu0 }
 0x695   : > { %v6657_v21 = vmax.f32 %v6625_v44, 0.0  ;;  %v6626_v42 = vadd.f32 %v13696_v37, %v6582_v6  ;;  %v6583_v24 = vadd.f32 %v6548_v49, %v6290_v39 }
 0x696   : > { %v6550_v27 = vpop.f32.mrf.mxu0 }
 0x697   : > { %v13873_v43 = vmax.f32 %v6653_v15, %v6657_v21  ;;  %v6658_v28 = vmax.f32 %v6626_v42, 0.0  ;;  %v6627_v18 = vadd.f32 %v13686_v61, %v6583_v24  ;;  %v6584_v30 = vadd.f32 %v6550_v27, %v6291_v46  ;;  %v10229_v61 = vld [vmem:[%s14219_s11 + $0x30] sm:$0xff]  }
 0x698   : > { %9290 = vmatprep.subr.bf16.mxu0 %v10229_v61 }
 0x699   : > { %v13876_v14 = vmax.f32 %v6654_v38, %v6658_v28  ;;  %v6659_v58 = vmax.f32 %v6627_v18, 0.0  ;;  %v6628_v5 = vadd.f32 %v13696_v37, %v6584_v30  ;;  %9291 = vmatpush3.bf16.msra.mxu0 %v10229_v61 }
 0x69a   : > { %9292 = vmatprep.subr.bf16.mxu0 %v10230_v17 }
 0x69b   : > { %v13879_v26 = vmax.f32 %v6655_v20, %v6659_v58  ;;  %v6660_v25 = vmax.f32 %v6628_v5, 0.0  ;;  %v9631_v57 = vpack.i.bf16 %v13876_v14, %v13873_v43 }
 0x69d   : > { %v13892_v37 = vmax.f32 %v6656_v1, %v6660_v25  ;;  %9632 = vrot.lane.b32.xlu0 %v9631_v57, %s10319_s19  ;;  %9293 = vmatpush3.bf16.msra.mxu0 %v10230_v17 }
 0x69e   : > { %9294 = vmatprep.subr.bf16.mxu0 %v10231_v40 }
 0x69f   : > { %v9636_v12 = vpack.i.bf16 %v13892_v37, %v13879_v26 }
 0x6a1   : > { %9637 = vrot.lane.b32.xlu1 %v9636_v12, %s10319_s19  ;;  %9295 = vmatpush3.bf16.msra.mxu0 %v10231_v40 }
 0x6a2   : > { %9296 = vmatprep.subr.bf16.mxu0 %v10233_v52 }
 0x6a5   : > { %9297 = vmatpush3.bf16.msra.mxu0 %v10233_v52 }
 0x6a6   : > { %9298 = vmatprep.subr.bf16.mxu0 %v10235_v16 }
 0x6a9   : > { %9299 = vmatpush3.bf16.msra.mxu0 %v10235_v16  ;;  %v10238_v16 = vld [vmem:[%s14219_s11 + $0x60] sm:$0xff]  }
 0x6aa   : > { %9300 = vmatprep.subr.bf16.mxu0 %v10237_v29 }
 0x6ad   : > { %9301 = vmatpush3.bf16.msra.mxu0 %v10237_v29  ;;  %v10243_v29 = vld [vmem:[%s14219_s11 + $0x40] sm:$0xff]  }
 0x6df   : > { %v9603_v63 = vpop.permute.xlu0 %9602 }
 0x6e0   : > { %v9605_v54 = vunpack.i.h.bf16 %v9603_v63  ;;  %v9604_v59 = vunpack.i.l.bf16 %v9603_v63  ;;  %v10244_v63 = vld [vmem:[%s14219_s11 + $0xb8] sm:$0xff]  }
 0x6e2   : > { %v6726_v34 = vsel %vm6725_vm4, %v9604_v59, %v9605_v54  ;;  %v6751_v35 = vmax.f32 %v13736_v13, %v9605_v54  ;;  %v10236_v13 = vld [vmem:[%s14219_s11 + $0x68] sm:$0xff]  }
 0x6e3   : > { %v9608_v31 = vpop.permute.xlu1 %9607  ;;  %v6750_v47 = vmax.f32 %v13728_v8, %v6726_v34 }
 0x6e4   : > { %v9610_v4 = vunpack.i.h.bf16 %v9608_v31  ;;  %v9609_v55 = vunpack.i.l.bf16 %v9608_v31 }
 0x6e6   : > { %v6753_v2 = vmax.f32 %v13755_v19, %v9610_v4  ;;  %v6727_v53 = vsel %vm6725_vm4, %v9609_v55, %v9610_v4 }
 0x6e7   : > { %v6752_v23 = vmax.f32 %v13746_v22, %v6727_v53 }
 0x6e8   : > { %v6767_v9 = vpack.c.bf16 %v6753_v2, %v6751_v35 }
 0x6e9   : > { %v6766_v32 = vpack.c.bf16 %v6752_v23, %v6750_v47  ;;  %v10245_v47 = vld [vmem:[%s14219_s11 + $0xb0] sm:$0xff]  }
 0x6ea   : > { %8995 = vmatprep.mubr.msk.bf16.mxu1 %vm6725_vm4, %v6767_v9  ;;  %v10246_v9 = vld [vmem:[%s14219_s11 + $0xa8] sm:$0xff]  }
 0x6eb   : > { %6931 = vmatmul.mubr.bf16.vlgmr.msra.gmra.mxu1 %v6766_v32  ;;  %v10247_v32 = vld [vmem:[%s14219_s11 + $0xa0] sm:$0xff]  }
 0x6ec   : > { %9265 = vmatpush3.bf16.msra.mxu1 %v10232_v10 }
 0x6ed   : > { %9266 = vmatprep.subr.bf16.mxu1 %v10234_v60 }
 0x6ef   : > { %v9613_v19 = vpop.permute.xlu0 %9612 }
 0x6f0   : > { %9267 = vmatpush3.bf16.msra.mxu1 %v10234_v60  ;;  %v9615_v8 = vunpack.i.h.bf16 %v9613_v19  ;;  %v9614_v45 = vunpack.i.l.bf16 %v9613_v19 }
 0x6f1   : > { %9268 = vmatprep.subr.bf16.mxu1 %v10236_v13 }
 0x6f2   : > { %v6728_v11 = vsel %vm6725_vm4, %v9614_v45, %v9615_v8  ;;  %v6755_v39 = vmax.f32 %v13790_v41, %v9615_v8 }
 0x6f3   : > { %v9618_v22 = vpop.permute.xlu1 %9617  ;;  %v6754_v46 = vmax.f32 %v13785_v33, %v6728_v11 }
 0x6f4   : > { %v9620_v44 = vunpack.i.h.bf16 %v9618_v22  ;;  %v9619_v6 = vunpack.i.l.bf16 %v9618_v22  ;;  %9269 = vmatpush3.bf16.msra.mxu1 %v10236_v13  ;;  %v10248_v13 = vld [vmem:[%s14219_s11 + $0x98] sm:$0xff]   ;;  %v10249_v22 = vld [vmem:[%s14219_s11 + $0x90] sm:$0xff]  }
 0x6f5   : > { %9270 = vmatprep.subr.bf16.mxu1 %v10238_v16 }
 0x6f6   : > { %v6757_v15 = vmax.f32 %v13809_v3, %v9620_v44  ;;  %v6729_v49 = vsel %vm6725_vm4, %v9619_v6, %v9620_v44  ;;  %v10250_v44 = vld [vmem:[%s14219_s11 + $0x88] sm:$0xff]   ;;  %v10251_v6 = vld [vmem:[%s14219_s11 + $0x80] sm:$0xff]  }
 0x6f7   : > { %v6756_v36 = vmax.f32 %v13800_v51, %v6729_v49 }
 0x6f8   : > { %v6769_v21 = vpack.c.bf16 %v6757_v15, %v6755_v39  ;;  %9271 = vmatpush3.bf16.msra.mxu1 %v10238_v16 }
 0x6f9   : > { %v6768_v42 = vpack.c.bf16 %v6756_v36, %v6754_v46 }
 0x6fa   : > { %8996 = vmatprep.mubr.msk.bf16.mxu1 %vm6725_vm4, %v6769_v21  ;;  %v14610_v21 = vmov 0.0|0.0  }
 0x6fb   : > { %6939 = vmatmul.mubr.bf16.gmra.mxu1 %v6768_v42  ;;  %v10252_v42 = vld [vmem:[%s14221_s13 + $0x78] sm:$0xff]  }
 0x6ff   : > { %v9623_v24 = vpop.permute.xlu0 %9622 }
 0x700   : > { %v9625_v38 = vunpack.i.h.bf16 %v9623_v24  ;;  %v9624_v0 = vunpack.i.l.bf16 %v9623_v24  ;;  %v10253_v24 = vld [vmem:[%s14221_s13 + $0x38] sm:$0xff]  }
 0x702   : > { %v6730_v28 = vsel %vm6725_vm4, %v9624_v0, %v9625_v38  ;;  %v6759_v3 = vmax.f32 %v13838_v48, %v9625_v38  ;;  %v10254_v38 = vld [vmem:[%s14221_s13 + $0x70] sm:$0xff]  }
 0x703   : > { %v9628_v27 = vpop.permute.xlu1 %9627  ;;  %v6758_v51 = vmax.f32 %v13833_v56, %v6730_v28  ;;  %v10255_v0 = vld [vmem:[%s14221_s13 + $0x30] sm:$0xff]   ;;  %v10257_v28 = vld [vmem:[%s14221_s13 + $0x28] sm:$0xff]  }
 0x704   : > { %v9630_v41 = vunpack.i.h.bf16 %v9628_v27  ;;  %v9629_v18 = vunpack.i.l.bf16 %v9628_v27  ;;  %v10256_v27 = vld [vmem:[%s14221_s13 + $0x68] sm:$0xff]  }
 0x706   : > { %v6761_v30 = vmax.f32 %v13855_v50, %v9630_v41  ;;  %v6731_v33 = vsel %vm6725_vm4, %v9629_v18, %v9630_v41  ;;  %v10258_v41 = vld [vmem:[%s14221_s13 + $0x60] sm:$0xff]  }
 0x707   : > { %v6760_v20 = vmax.f32 %v13846_v62, %v6731_v33  ;;  %v10259_v18 = vld [vmem:[%s14221_s13 + $0x20] sm:$0xff]   ;;  %v10262_v33 = vld [vmem:[%s14221_s13 + $0x50] sm:$0xff]  }
 0x708   : > { %v6771_v58 = vpack.c.bf16 %v6761_v30, %v6759_v3  ;;  %v10260_v3 = vld [vmem:[%s14221_s13 + $0x58] sm:$0xff]  }
 0x709   : > { %v6770_v5 = vpack.c.bf16 %v6760_v20, %v6758_v51  ;;  %v10261_v30 = vld [vmem:[%s14221_s13 + $0x18] sm:$0xff]   ;;  %v10263_v51 = vld [vmem:[%s14221_s13 + $0x10] sm:$0xff]   ;;  %v10264_v20 = vld [vmem:[%s14221_s13 + $0x48] sm:$0xff]  }
 0x70a   : > { %8997 = vmatprep.mubr.msk.bf16.mxu1 %vm6725_vm4, %v6771_v58  ;;  %v10265_v58 = vld [vmem:[%s14221_s13 + $0x8] sm:$0xff]  }
 0x70b   : > { %6947 = vmatmul.mubr.bf16.gmra.mxu1 %v6770_v5  ;;  %v10266_v5 = vld [vmem:[%s14221_s13 + $0x40] sm:$0xff]  }
 0x70f   : > { %v9633_v1 = vpop.permute.xlu0 %9632 }
 0x710   : > { %v9635_v25 = vunpack.i.h.bf16 %v9633_v1  ;;  %v9634_v57 = vunpack.i.l.bf16 %v9633_v1  ;;  %v10267_v1 = vld [vmem:[%s14221_s13] sm:$0xff]  }
 0x712   : > { %v6732_v61 = vsel %vm6725_vm4, %v9634_v57, %v9635_v25  ;;  %v6763_v50 = vmax.f32 %v13876_v14, %v9635_v25  ;;  %v10239_v14 = vld [vmem:[%s14219_s11] sm:$0xff]   ;;  %v10268_v25 = vld [vmem:[%s14221_s13 + $0xb8] sm:$0xff]  }
 0x713   : > { %v9638_v7 = vpop.permute.xlu1 %9637  ;;  %v6762_v62 = vmax.f32 %v13873_v43, %v6732_v61  ;;  %9302 = vmatprep.subr.bf16.mxu0 %v10239_v14  ;;  %v10240_v43 = vld [vmem:[%s14219_s11 + $0x58] sm:$0xff]  }
 0x714   : > { %v9640_v48 = vunpack.i.h.bf16 %v9638_v7  ;;  %v9639_v10 = vunpack.i.l.bf16 %v9638_v7  ;;  %9303 = vmatpush3.bf16.msra.mxu0 %v10239_v14  ;;  %9272 = vmatprep.subr.bf16.mxu1 %v10240_v43 }
 0x715   : > { %9273 = vmatpush3.bf16.msra.mxu1 %v10240_v43  ;;  %9336 = vmatprep.subr.bf16.mxu0 %v10252_v42 }
 0x716   : > { %v6765_v12 = vmax.f32 %v13892_v37, %v9640_v48  ;;  %v6733_v56 = vsel %vm6725_vm4, %v9639_v10, %v9640_v48  ;;  %v10242_v37 = vld [vmem:[%s14219_s11 + $0x48] sm:$0xff]  }
 0x717   : > { %v6764_v17 = vmax.f32 %v13879_v26, %v6733_v56  ;;  %v10241_v26 = vld [vmem:[%s14219_s11 + $0x50] sm:$0xff]  }
 0x718   : > { %v6773_v40 = vpack.c.bf16 %v6765_v12, %v6763_v50  ;;  %9274 = vmatprep.subr.bf16.mxu1 %v10241_v26 }
 0x719   : > { %v6772_v52 = vpack.c.bf16 %v6764_v17, %v6762_v62  ;;  %9275 = vmatpush3.bf16.msra.mxu1 %v10241_v26 }
 0x71a   : > { %8998 = vmatprep.mubr.msk.bf16.mxu1 %vm6725_vm4, %v6773_v40  ;;  %9276 = vmatprep.subr.bf16.mxu1 %v10242_v37 }
 0x71b   : > { %6955 = vmatmul.mubr.bf16.gmra.mxu1 %v6772_v52 }
 0x71d   : > { %9277 = vmatpush3.bf16.msra.mxu1 %v10242_v37 }
 0x71e   : > { %9278 = vmatprep.subr.bf16.mxu1 %v10243_v29 }
 0x721   : > { %9279 = vmatpush3.bf16.msra.mxu1 %v10243_v29 }
 0x722   : > { %9312 = vmatprep.subr.bf16.mxu1 %v10244_v63 }
 0x7ab   : > { %v13968_v54 = vpop.f32.mrf.mxu1 }
 0x7ad   : > { %v6934_v59 = vpop.f32.mrf.mxu1 }
 0x7af   : > { %v13970_v31 = vpop.f32.mrf.mxu1 }
 0x7b0   : > { %v6963_v34 = vpack.c.bf16 %v13970_v31, %v13968_v54 }
 0x7b1   : > { %v6937_v4 = vpop.f32.mrf.mxu1 }
 0x7b2   : > { %9280 = vmatprep.mubr.bf16.mxu1 %v6963_v34  ;;  %9305 = vmatmul.mubr.bf16.vlgmr.msra.gmra.mxu0 %v6963_v34 }
 0x7b3   : > { %9337 = vmatpush3.bf16.msra.mxu0 %v10252_v42 }
 0x7b4   : > { %9338 = vmatprep.subr.bf16.mxu0 %v10254_v38 }
 0x7b7   : > { %9339 = vmatpush3.bf16.msra.mxu0 %v10254_v38 }
 0x7b8   : > { %9340 = vmatprep.subr.bf16.mxu0 %v10256_v27 }
 0x7bb   : > { %v13974_v55 = vpop.f32.mrf.mxu1  ;;  %9341 = vmatpush3.bf16.msra.mxu0 %v10256_v27 }
 0x7bc   : > { %9342 = vmatprep.subr.bf16.mxu0 %v10258_v41 }
 0x7bd   : > { %v6942_v35 = vpop.f32.mrf.mxu1 }
 0x7bf   : > { %v13976_v2 = vpop.f32.mrf.mxu1  ;;  %9343 = vmatpush3.bf16.msra.mxu0 %v10258_v41 }
 0x7c0   : > { %v6964_v53 = vpack.c.bf16 %v13976_v2, %v13974_v55  ;;  %9344 = vmatprep.subr.bf16.mxu0 %v10260_v3 }
 0x7c1   : > { %v6945_v23 = vpop.f32.mrf.mxu1 }
 0x7c2   : > { %9281 = vmatmul.mubr.bf16.vlgmr.msra.gmra.mxu1 %v6964_v53  ;;  %9308 = vmatprep.mubr.bf16.mxu0 %v6964_v53 }
 0x7c3   : > { %9313 = vmatpush3.bf16.msra.mxu1 %v10244_v63  ;;  %9345 = vmatpush3.bf16.msra.mxu0 %v10260_v3 }
 0x7c4   : > { %9314 = vmatprep.subr.bf16.mxu1 %v10245_v47  ;;  %9346 = vmatprep.subr.bf16.mxu0 %v10262_v33 }
 0x7c7   : > { %9315 = vmatpush3.bf16.msra.mxu1 %v10245_v47  ;;  %9347 = vmatpush3.bf16.msra.mxu0 %v10262_v33 }
 0x7c8   : > { %9316 = vmatprep.subr.bf16.mxu1 %v10246_v9  ;;  %9348 = vmatprep.subr.bf16.mxu0 %v10264_v20 }
 0x7cb   : > { %v13989_v60 = vpop.f32.mrf.mxu1  ;;  %9317 = vmatpush3.bf16.msra.mxu1 %v10246_v9  ;;  %9349 = vmatpush3.bf16.msra.mxu0 %v10264_v20  ;;  %v10269_v20 = vld [vmem:[%s14221_s13 + $0xb0] sm:$0xff]  }
 0x7cc   : > { %9318 = vmatprep.subr.bf16.mxu1 %v10247_v32  ;;  %9350 = vmatprep.subr.bf16.mxu0 %v10266_v5 }
 0x7cd   : > { %v6950_v19 = vpop.f32.mrf.mxu1 }
 0x7cf   : > { %v13994_v8 = vpop.f32.mrf.mxu1  ;;  %9319 = vmatpush3.bf16.msra.mxu1 %v10247_v32  ;;  %9351 = vmatpush3.bf16.msra.mxu0 %v10266_v5 }
 0x7d0   : > { %v6965_v45 = vpack.c.bf16 %v13994_v8, %v13989_v60  ;;  %9320 = vmatprep.subr.bf16.mxu1 %v10248_v13  ;;  %9384 = vmatprep.subr.bf16.mxu0 %v10268_v25 }
 0x7d1   : > { %v6953_v11 = vpop.f32.mrf.mxu1 }
 0x7d2   : > { %9284 = vmatprep.mubr.bf16.mxu1 %v6965_v45  ;;  %9309 = vmatmul.mubr.bf16.gmra.mxu0 %v6965_v45 }
 0x7d3   : > { %9321 = vmatpush3.bf16.msra.mxu1 %v10248_v13 }
 0x7d4   : > { %9322 = vmatprep.subr.bf16.mxu1 %v10249_v22 }
 0x7d7   : > { %9323 = vmatpush3.bf16.msra.mxu1 %v10249_v22 }
 0x7d8   : > { %9324 = vmatprep.subr.bf16.mxu1 %v10250_v44 }
 0x7db   : > { %v14007_v39 = vpop.f32.mrf.mxu1  ;;  %9325 = vmatpush3.bf16.msra.mxu1 %v10250_v44 }
 0x7dc   : > { %9326 = vmatprep.subr.bf16.mxu1 %v10251_v6 }
 0x7dd   : > { %v6958_v15 = vpop.f32.mrf.mxu1 }
 0x7df   : > { %v14009_v49 = vpop.f32.mrf.mxu1  ;;  %9327 = vmatpush3.bf16.msra.mxu1 %v10251_v6 }
 0x7e0   : > { %v6966_v46 = vpack.c.bf16 %v14009_v49, %v14007_v39  ;;  %9360 = vmatprep.subr.bf16.mxu1 %v10253_v24 }
 0x7e1   : > { %v6961_v36 = vpop.f32.mrf.mxu1 }
 0x7e2   : > { %9285 = vmatmul.mubr.bf16.gmra.mxu1 %v6966_v46 }
 0x7e3   : > { %9328 = vmatprep.mubr.bf16.mxu1 %v6964_v53  ;;  %v9055_v53 = vld [vmem:[%s14220_s12] ss:$0 sm:$0xff] }
 0x7ea   : > { %9329 = vmatmul.mubr.bf16.vlgmr.msra.gmra.mxu1 %v6965_v45 }
 0x7eb   : > { %9332 = vmatprep.mubr.bf16.mxu1 %v6966_v46  ;;  %9361 = vmatpush3.bf16.msra.mxu1 %v10253_v24 }
 0x7ec   : > { %9362 = vmatprep.subr.bf16.mxu1 %v10255_v0 }
 0x7ef   : > { %9363 = vmatpush3.bf16.msra.mxu1 %v10255_v0 }
 0x7f0   : > { %9364 = vmatprep.subr.bf16.mxu1 %v10257_v28 }
 0x7f2   : > { %9333 = vmatmul.mubr.bf16.gmra.mxu1 %v14610_v21 }
 0x7f3   : > { %9376 = vmatprep.mubr.bf16.mxu1 %v14610_v21  ;;  %9365 = vmatpush3.bf16.msra.mxu1 %v10257_v28 }
 0x7f4   : > { %9366 = vmatprep.subr.bf16.mxu1 %v10259_v18 }
 0x7f7   : > { %9367 = vmatpush3.bf16.msra.mxu1 %v10259_v18 }
 0x7f8   : > { %9368 = vmatprep.subr.bf16.mxu1 %v10261_v30 }
 0x7fb   : > { %9369 = vmatpush3.bf16.msra.mxu1 %v10261_v30 }
 0x7fc   : > { %9370 = vmatprep.subr.bf16.mxu1 %v10263_v51 }
 0x7ff   : > { %9371 = vmatpush3.bf16.msra.mxu1 %v10263_v51 }
 0x800   : > { %9372 = vmatprep.subr.bf16.mxu1 %v10265_v58 }
 0x803   : > { %9373 = vmatpush3.bf16.msra.mxu1 %v10265_v58 }
 0x804   : > { %9374 = vmatprep.subr.bf16.mxu1 %v10267_v1 }
 0x807   : > { %9375 = vmatpush3.bf16.msra.mxu1 %v10267_v1 }
 0x872   : > { %v9306_v61 = vpop.f32.mrf.mxu0 }
 0x874   : > { %v7195_v10 = vpop.f32.mrf.mxu0 }
 0x876   : > { %v9307_v56 = vpop.f32.mrf.mxu0 }
 0x878   : > { %v7198_v40 = vpop.f32.mrf.mxu0 }
 0x882   : > { %v9282_v57 = vpop.f32.mrf.mxu1 }
 0x883   : > { %v7204_v26 = vadd.f32 %v9306_v61, %v9282_v57 }
 0x884   : > { %v7082_v7 = vpop.f32.mrf.mxu1 }
 0x885   : > { %v7196_v43 = vadd.f32 %v7195_v10, %v7082_v7 }
 0x886   : > { %v9283_v48 = vpop.f32.mrf.mxu1 }
 0x887   : > { %v7207_v29 = vadd.f32 %v9307_v56, %v9283_v48  ;;  %v10270_v48 = vld [vmem:[%s14221_s13 + $0xa8] sm:$0xff]  }
 0x888   : > { %v7085_v50 = vpop.f32.mrf.mxu1 }
 0x889   : > { %v7199_v35 = vadd.f32 %v7198_v40, %v7085_v50  ;;  %v10273_v40 = vld [vmem:[%s14221_s13 + $0x90] sm:$0xff]  }
 0x892   : > { %v9310_v16 = vpop.f32.mrf.mxu0 }
 0x894   : > { %v7211_v59 = vpop.f32.mrf.mxu0 }
 0x896   : > { %v9311_v19 = vpop.f32.mrf.mxu0 }
 0x898   : > { %v7214_v0 = vpop.f32.mrf.mxu0 }
 0x8a2   : > { %v9286_v12 = vpop.f32.mrf.mxu1 }
 0x8a3   : > { %v7220_v6 = vadd.f32 %v9310_v16, %v9286_v12  ;;  %v10275_v16 = vld [vmem:[%s14221_s13 + $0x80] sm:$0xff]  }
 0x8a4   : > { %v7098_v62 = vpop.f32.mrf.mxu1 }
 0x8a5   : > { %v7212_v11 = vadd.f32 %v7211_v59, %v7098_v62  ;;  %v10280_v59 = vld [vmem:[%s14223_s15 + $0x68] sm:$0xff]  }
 0x8a6   : > { %v9287_v17 = vpop.f32.mrf.mxu1 }
 0x8a7   : > { %v7223_v36 = vadd.f32 %v9311_v19, %v9287_v17  ;;  %v10271_v17 = vld [vmem:[%s14221_s13 + $0xa0] sm:$0xff]  }
 0x8a8   : > { %v7101_v52 = vpop.f32.mrf.mxu1  ;;  %v10293_v19 = vld [vmem:[%s14223_s15 + $0xe0] sm:$0xff]  }
 0x8a9   : > { %v7215_v18 = vadd.f32 %v7214_v0, %v7101_v52  ;;  %v10274_v52 = vld [vmem:[%s14221_s13 + $0x88] sm:$0xff]  }
 0x8aa   : > { %v9330_v14 = vpop.f32.mrf.mxu1  ;;  %v10305_v0 = vld [vmem:[%s14223_s15 + $0x88] sm:$0xff]  }
 0x8ab   : > { %v7358_v34 = vadd.f32 %v9330_v14, %v7204_v26  ;;  %v10276_v14 = vld [vmem:[%s14223_s15 + $0x78] sm:$0xff]   ;;  %v10278_v26 = vld [vmem:[%s14223_s15 + $0x70] sm:$0xff]  }
 0x8ac   : > { %v7325_v37 = vpop.f32.mrf.mxu1  ;;  %9220 = vmatprep.subr.bf16.mxu1 %v10276_v14 }
 0x8ad   : > { %v7356_v63 = vadd.f32 %v7325_v37, %v7196_v43  ;;  %v7373_v45 = vadd.f32 %v9055_v53, %v7358_v34  ;;  %v10277_v43 = vld [vmem:[%s14223_s15 + $0x38] sm:$0xff]   ;;  %v10287_v34 = vld [vmem:[%s14223_s15 + $0xb0] sm:$0xff]  }
 0x8ae   : > { %v9331_v4 = vpop.f32.mrf.mxu1  ;;  %v10281_v37 = vld [vmem:[%s14223_s15 + $0xf8] sm:$0xff]  }
 0x8af   : > { %v7359_v47 = vadd.f32 %v9331_v4, %v7207_v29  ;;  %v7371_v9 = vadd.f32 %v9055_v53, %v7356_v63  ;;  %v7381_v27 = vmax.f32 %v7373_v45, 0.0  ;;  %v10279_v29 = vld [vmem:[%s14223_s15 + $0x30] sm:$0xff]   ;;  %v10282_v4 = vld [vmem:[%s14223_s15 + $0x28] sm:$0xff]  }
 0x8b0   : > { %v7328_v23 = vpop.f32.mrf.mxu1  ;;  %v10285_v63 = vld [vmem:[%s14223_s15 + $0xf0] sm:$0xff]  }
 0x8b1   : > { %v7374_v32 = vadd.f32 %v9055_v53, %v7359_v47  ;;  %v7357_v13 = vadd.f32 %v7328_v23, %v7199_v35  ;;  %v7379_v42 = vmax.f32 %v7371_v9, 0.0  ;;  %v10284_v35 = vld [vmem:[%s14223_s15 + $0x60] sm:$0xff]   ;;  %v10288_v47 = vld [vmem:[%s14223_s15 + $0x58] sm:$0xff]   ;;  %v10289_v23 = vld [vmem:[%s14223_s15 + $0xe8] sm:$0xff]  }
 0x8b2   : > { %v9334_v22 = vpop.f32.mrf.mxu1  ;;  %v10290_v9 = vld [vmem:[%s14223_s15 + $0x18] sm:$0xff]   ;;  %v10294_v45 = vld [vmem:[%s14223_s15 + $0x10] sm:$0xff]  }
 0x8b3   : > { %v7372_v44 = vadd.f32 %v9055_v53, %v7357_v13  ;;  %v7382_v15 = vmax.f32 %v7374_v32, 0.0  ;;  %v7362_v28 = vadd.f32 %v9334_v22, %v7220_v6  ;;  %v10291_v32 = vld [vmem:[%s14223_s15 + $0xa8] sm:$0xff]   ;;  %v10292_v13 = vld [vmem:[%s14223_s15 + $0x50] sm:$0xff]   ;;  %v10295_v22 = vld [vmem:[%s14223_s15 + $0xa0] sm:$0xff]  }
 0x8b4   : > { %v7341_v46 = vpop.f32.mrf.mxu1  ;;  %v10298_v6 = vld [vmem:[%s14223_s15 + $0x8] sm:$0xff]  }
 0x8b5   : > { %v7380_v24 = vmax.f32 %v7372_v44, 0.0  ;;  %v7360_v38 = vadd.f32 %v7341_v46, %v7212_v11  ;;  %v7388_v33 = vpack.c.bf16 %v7382_v15, %v7381_v27  ;;  %v7377_v57 = vadd.f32 %v9055_v53, %v7362_v28  ;;  %v10296_v11 = vld [vmem:[%s14223_s15 + $0x48] sm:$0xff]   ;;  %v10297_v44 = vld [vmem:[%s14223_s15 + $0xd8] sm:$0xff]   ;;  %v10300_v46 = vld [vmem:[%s14223_s15 + $0x40] sm:$0xff]  }
 0x8b6   : > { %v9335_v41 = vpop.f32.mrf.mxu1  ;;  %v10299_v15 = vld [vmem:[%s14223_s15 + $0x98] sm:$0xff]   ;;  %v10306_v27 = vld [vmem:[%s14223_s15 + $0xc0] sm:$0xff]  }
 0x8b7   : > { %v7363_v3 = vadd.f32 %v9335_v41, %v7223_v36  ;;  %v7387_v30 = vpack.c.bf16 %v7380_v24, %v7379_v42  ;;  %v7375_v58 = vadd.f32 %v9055_v53, %v7360_v38  ;;  %v7385_v12 = vmax.f32 %v7377_v57, 0.0  ;;  %v10301_v36 = vld [vmem:[%s14223_s15 + $0xd0] sm:$0xff]   ;;  %v10302_v42 = vld [vmem:[%s14223_s15] sm:$0xff]   ;;  %v10304_v38 = vld [vmem:[%s14223_s15 + $0xc8] sm:$0xff]  }
 0x8b8   : > { %v7344_v51 = vpop.f32.mrf.mxu1  ;;  %v10303_v24 = vld [vmem:[%s14223_s15 + $0x90] sm:$0xff]   ;;  %v10307_v28 = vld [vmem:[%s14223_s15 + $0x80] sm:$0xff]  }
 0x8b9   : > { %v7378_v5 = vadd.f32 %v9055_v53, %v7363_v3  ;;  %v7361_v1 = vadd.f32 %v7344_v51, %v7215_v18  ;;  %9352 = vmatprep.mubr.bf16.mxu0 %v7387_v30  ;;  %9377 = vmatmul.mubr.bf16.vlgmr.msra.gmra.mxu1 %v7387_v30  ;;  %v7383_v10 = vmax.f32 %v7375_v58, 0.0 }
 0x8ba   : > { %9353 = vmatmul.mubr.bf16.vlgmr.msra.gmra.mxu0 %v7388_v33  ;;  %9380 = vmatprep.mubr.bf16.mxu1 %v7388_v33 }
 0x8bb   : > { %v7376_v7 = vadd.f32 %v9055_v53, %v7361_v1  ;;  %9385 = vmatpush3.bf16.msra.mxu0 %v10268_v25  ;;  %v7386_v61 = vmax.f32 %v7378_v5, 0.0  ;;  %v10272_v25 = vld [vmem:[%s14221_s13 + $0x98] sm:$0xff]   ;;  %9221 = vmatpush3.bf16.msra.mxu1 %v10277_v43  ;;  %v10286_v53 = vld [vmem:[%s14223_s15 + $0x20] sm:$0xff]  }
 0x8bc   : > { %9386 = vmatprep.subr.bf16.mxu0 %v10269_v20  ;;  %9222 = vmatprep.subr.bf16.mxu1 %v10278_v26 }
 0x8bd   : > { %v7384_v50 = vmax.f32 %v7376_v7, 0.0  ;;  %v7390_v62 = vpack.c.bf16 %v7386_v61, %v7385_v12 }
 0x8bf   : > { %9387 = vmatpush3.bf16.msra.mxu0 %v10269_v20  ;;  %v7389_v56 = vpack.c.bf16 %v7384_v50, %v7383_v10  ;;  %9223 = vmatpush3.bf16.msra.mxu1 %v10279_v29 }
 0x8c0   : > { %9388 = vmatprep.subr.bf16.mxu0 %v10270_v48  ;;  %9224 = vmatprep.subr.bf16.mxu1 %v10280_v59 }
 0x8c1   : > { %9356 = vmatprep.mubr.bf16.mxu0 %v7389_v56  ;;  %9381 = vmatmul.mubr.bf16.gmra.mxu1 %v7389_v56 }
 0x8c2   : > { %9357 = vmatmul.mubr.bf16.gmra.mxu0 %v7390_v62 }
 0x8c3   : > { %9389 = vmatpush3.bf16.msra.mxu0 %v10270_v48  ;;  %9400 = vmatprep.mubr.bf16.mxu0 %v7388_v33 }
 0x8c4   : > { %9390 = vmatprep.subr.bf16.mxu0 %v10271_v17  ;;  %9225 = vmatpush3.bf16.msra.mxu1 %v10282_v4 }
 0x8c5   : > { %9226 = vmatprep.subr.bf16.mxu1 %v10284_v35 }
 0x8c7   : > { %9391 = vmatpush3.bf16.msra.mxu0 %v10271_v17 }
 0x8c8   : > { %9392 = vmatprep.subr.bf16.mxu0 %v10272_v25  ;;  %9227 = vmatpush3.bf16.msra.mxu1 %v10286_v53 }
 0x8c9   : > { %9228 = vmatprep.subr.bf16.mxu1 %v10288_v47 }
 0x8cb   : > { %9393 = vmatpush3.bf16.msra.mxu0 %v10272_v25 }
 0x8cc   : > { %9394 = vmatprep.subr.bf16.mxu0 %v10273_v40  ;;  %9229 = vmatpush3.bf16.msra.mxu1 %v10290_v9 }
 0x8cd   : > { %9230 = vmatprep.subr.bf16.mxu1 %v10292_v13 }
 0x8cf   : > { %9395 = vmatpush3.bf16.msra.mxu0 %v10273_v40 }
 0x8d0   : > { %9396 = vmatprep.subr.bf16.mxu0 %v10274_v52  ;;  %9231 = vmatpush3.bf16.msra.mxu1 %v10294_v45 }
 0x8d1   : > { %9232 = vmatprep.subr.bf16.mxu1 %v10296_v11 }
 0x8d3   : > { %9397 = vmatpush3.bf16.msra.mxu0 %v10274_v52 }
 0x8d4   : > { %9398 = vmatprep.subr.bf16.mxu0 %v10275_v16  ;;  %9233 = vmatpush3.bf16.msra.mxu1 %v10298_v6 }
 0x8d5   : > { %9234 = vmatprep.subr.bf16.mxu1 %v10300_v46 }
 0x8d7   : > { %9399 = vmatpush3.bf16.msra.mxu0 %v10275_v16 }
 0x8d8   : > { %9242 = vmatprep.subr.bf16.mxu0 %v10281_v37  ;;  %9235 = vmatpush3.bf16.msra.mxu1 %v10302_v42 }
 0x8da   : > { %9401 = vmatmul.mubr.bf16.vlgmr.msra.gmra.mxu0 %v7389_v56  ;;  %v9112_v56 = vld [vmem:[%s14222_s14] ss:$0 sm:$0xff] }
 0x8db   : > { %9404 = vmatprep.mubr.bf16.mxu0 %v7390_v62 }
 0x8e2   : > { %9405 = vmatmul.mubr.bf16.gmra.mxu0 %v14610_v21  ;;  %v10283_v21 = vld [vmem:[%s14223_s15 + $0xb8] sm:$0xff]  }
 0x8e3   : > { %9243 = vmatpush3.bf16.msra.mxu0 %v10283_v21 }
 0x8e4   : > { %9244 = vmatprep.subr.bf16.mxu0 %v10285_v63 }
 0x8e7   : > { %9245 = vmatpush3.bf16.msra.mxu0 %v10287_v34 }
 0x8e8   : > { %9246 = vmatprep.subr.bf16.mxu0 %v10289_v23 }
 0x8eb   : > { %9247 = vmatpush3.bf16.msra.mxu0 %v10291_v32 }
 0x8ec   : > { %9248 = vmatprep.subr.bf16.mxu0 %v10293_v19 }
 0x8ef   : > { %9249 = vmatpush3.bf16.msra.mxu0 %v10295_v22 }
 0x8f0   : > { %9250 = vmatprep.subr.bf16.mxu0 %v10297_v44 }
 0x8f3   : > { %9251 = vmatpush3.bf16.msra.mxu0 %v10299_v15 }
 0x8f4   : > { %9252 = vmatprep.subr.bf16.mxu0 %v10301_v36 }
 0x8f7   : > { %9253 = vmatpush3.bf16.msra.mxu0 %v10303_v24 }
 0x8f8   : > { %9254 = vmatprep.subr.bf16.mxu0 %v10304_v38 }
 0x8fb   : > { %9255 = vmatpush3.bf16.msra.mxu0 %v10305_v0 }
 0x8fc   : > { %9256 = vmatprep.subr.bf16.mxu0 %v10306_v27 }
 0x8ff   : > { %9257 = vmatpush3.bf16.msra.mxu0 %v10307_v28 }
 0x979   : > { %v9378_v33 = vpop.f32.mrf.mxu1 }
 0x97a   : > { %v9354_v41 = vpop.f32.mrf.mxu0 }
 0x97b   : > { %v7619_v20 = vpop.f32.mrf.mxu1  ;;  %v7628_v61 = vadd.f32 %v9378_v33, %v9354_v41 }
 0x97c   : > { %v7506_v18 = vpop.f32.mrf.mxu0 }
 0x97d   : > { %v9379_v5 = vpop.f32.mrf.mxu1  ;;  %v7620_v50 = vadd.f32 %v7619_v20, %v7506_v18 }
 0x97e   : > { %v9355_v3 = vpop.f32.mrf.mxu0 }
 0x97f   : > { %v7622_v57 = vpop.f32.mrf.mxu1  ;;  %v7631_v17 = vadd.f32 %v9379_v5, %v9355_v3 }
 0x980   : > { %v7509_v30 = vpop.f32.mrf.mxu0 }
 0x981   : > { %v9382_v48 = vpop.f32.mrf.mxu1  ;;  %v7623_v14 = vadd.f32 %v7622_v57, %v7509_v30 }
 0x982   : > { %v9358_v51 = vpop.f32.mrf.mxu0 }
 0x983   : > { %v7635_v25 = vpop.f32.mrf.mxu1  ;;  %v7644_v21 = vadd.f32 %v9382_v48, %v9358_v51 }
 0x984   : > { %v7522_v58 = vpop.f32.mrf.mxu0 }
 0x985   : > { %v9383_v29 = vpop.f32.mrf.mxu1  ;;  %v7636_v34 = vadd.f32 %v7635_v25, %v7522_v58 }
 0x986   : > { %v9359_v1 = vpop.f32.mrf.mxu0 }
 0x987   : > { %v7647_v32 = vadd.f32 %v9383_v29, %v9359_v1  ;;  %v7638_v19 = vpop.f32.mrf.mxu1 }
 0x988   : > { %v7525_v7 = vpop.f32.mrf.mxu0 }
 0x989   : > { %v7639_v42 = vadd.f32 %v7638_v19, %v7525_v7 }
 0x99a   : > { %v9402_v10 = vpop.f32.mrf.mxu0 }
 0x99b   : > { %v7782_v12 = vadd.f32 %v9402_v10, %v7628_v61 }
 0x99c   : > { %v7749_v62 = vpop.f32.mrf.mxu0 }
 0x99d   : > { %v7780_v40 = vadd.f32 %v7749_v62, %v7620_v50  ;;  %v7797_v52 = vadd.f32 %v9112_v56, %v7782_v12 }
 0x99e   : > { %v9403_v16 = vpop.f32.mrf.mxu0 }
 0x99f   : > { %v7795_v43 = vadd.f32 %v9112_v56, %v7780_v40  ;;  %v7783_v26 = vadd.f32 %v9403_v16, %v7631_v17  ;;  %v7805_v4 = vadd.f32 %v7797_v52, %v13974_v55 }
 0x9a0   : > { %v7752_v37 = vpop.f32.mrf.mxu0 }
 0x9a1   : > { %v7798_v63 = vadd.f32 %v9112_v56, %v7783_v26  ;;  %v7781_v59 = vadd.f32 %v7752_v37, %v7623_v14  ;;  %v7803_v53 = vadd.f32 %v7795_v43, %v13968_v54  ;;  %v7813_v6 = vmax.f32 %v7805_v4, 0.0 }
 0x9a2   : > { %v9406_v35 = vpop.f32.mrf.mxu0 }
 0x9a3   : > { %v7806_v47 = vadd.f32 %v7798_v63, %v13976_v2  ;;  %v7796_v23 = vadd.f32 %v9112_v56, %v7781_v59  ;;  %v7786_v9 = vadd.f32 %v9406_v35, %v7644_v21  ;;  %v7811_v46 = vmax.f32 %v7803_v53, 0.0 }
 0x9a4   : > { %v7765_v13 = vpop.f32.mrf.mxu0 }
 0x9a5   : > { %v7814_v45 = vmax.f32 %v7806_v47, 0.0  ;;  %v7804_v22 = vadd.f32 %v7796_v23, %v13970_v31  ;;  %v7801_v11 = vadd.f32 %v9112_v56, %v7786_v9  ;;  %v7784_v44 = vadd.f32 %v7765_v13, %v7636_v34 }
 0x9a6   : > { %v9407_v15 = vpop.f32.mrf.mxu0 }
 0x9a7   : > { %v7812_v36 = vmax.f32 %v7804_v22, 0.0  ;;  %v7787_v55 = vadd.f32 %v9407_v15, %v7647_v32  ;;  %v7799_v24 = vadd.f32 %v9112_v56, %v7784_v44  ;;  %v7820_v38 = vpack.c.bf16 %v7814_v45, %v7813_v6 }
 0x9a8   : > { %v7768_v54 = vpop.f32.mrf.mxu0  ;;  %v7809_v0 = vadd.f32 %v7801_v11, %v14007_v39 }
 0x9a9   : > { %v7819_v2 = vpack.c.bf16 %v7812_v36, %v7811_v46  ;;  %v7802_v27 = vadd.f32 %v9112_v56, %v7787_v55  ;;  %v7785_v28 = vadd.f32 %v7768_v54, %v7639_v42  ;;  %8118 = vmatprep.mubr.bf16.mxu1 %v7820_v38  ;;  %v7807_v41 = vadd.f32 %v7799_v24, %v13989_v60  ;;  %v9113_v60 = vld [vmem:[%s14224_s16] ss:$0 sm:$0xff] }
 0x9aa   : > { %v7817_v3 = vmax.f32 %v7809_v0, 0.0 }
 0x9ab   : > { %v7810_v31 = vadd.f32 %v7802_v27, %v14009_v49  ;;  %8119 = vmatmul.mubr.bf16.vlgmr.msra.gmra.mxu1 %v7819_v2  ;;  %v7800_v18 = vadd.f32 %v9112_v56, %v7785_v28  ;;  %v7815_v20 = vmax.f32 %v7807_v41, 0.0 }
 0x9ad   : > { %v7818_v30 = vmax.f32 %v7810_v31, 0.0  ;;  %v7808_v33 = vadd.f32 %v7800_v18, %v13994_v8 }
 0x9af   : > { %v7822_v51 = vpack.c.bf16 %v7818_v30, %v7817_v3  ;;  %v7816_v58 = vmax.f32 %v7808_v33, 0.0 }
 0x9b1   : > { %8159 = vmatprep.mubr.bf16.mxu0 %v7822_v51  ;;  %v7821_v5 = vpack.c.bf16 %v7816_v58, %v7815_v20 }
 0x9b3   : > { %8160 = vmatmul.mubr.bf16.vlgmr.msra.gmra.mxu0 %v7821_v5 }
 0xa6b   : > { %v9236_v39 = vpop.f32.mrf.mxu1 }
 0xa6d   : > { %v9237_v1 = vpop.f32.mrf.mxu1 }
 0xa6e   : > { %v9238_v49 = vadd.f32 %v9237_v1, %v9236_v39 }
 0xa6f   : > { %v9239_v57 = vpop.f32.mrf.mxu1 }
 0xa70   : > { %v8121_v48 = vadd.f32 %v9238_v49, %v9113_v60 }
 0xa71   : > { %v9240_v7 = vpop.f32.mrf.mxu1 }
 0xa72   : > { %v9241_v10 = vadd.f32 %v9240_v7, %v9239_v57 }
 0xa73   : > { %v9258_v61 = vpop.f32.mrf.mxu0 }
 0xa74   : > { %v8124_v17 = vadd.f32 %v9241_v10, %v9113_v60 }
 0xa75   : > { %v9259_v8 = vpop.f32.mrf.mxu0 }
 0xa76   : > { %v9260_v50 = vadd.f32 %v9259_v8, %v9258_v61 }
 0xa77   : > { %v9261_v12 = vpop.f32.mrf.mxu0 }
 0xa78   : > { %v8162_v56 = vadd.f32 %v9260_v50, %v8121_v48 }
 0xa79   : > { %v9262_v62 = vpop.f32.mrf.mxu0 }
 0xa7a   : > { %8169 = vst.msk [vmem:[%s548_s25] sm:$0xff] %vm8168_vm5, %v8162_v56  ;;  %v9263_v25 = vadd.f32 %v9262_v62, %v9261_v12 }
 0xa7c   : > { %v8165_v40 = vadd.f32 %v9263_v25, %v8124_v17 }
 0xa7e   : > { %8170 = vst.msk [vmem:[%s548_s25 + $0x8] sm:$0xff] %vm8168_vm5, %v8165_v40 }
 0xa7f PF: > { %s14611_s19 = sld [smem:[#allocation2_spill]] }
 0xa85   : > { %s27_s24 = sadd.s32 1, %s14611_s19  }
 0xa86   : > { %p24_p5 = scmp.ge.s32.totalorder %s27_s24, 4  }
 0xa88   :  { %26 = sbr.rel (!%p24_p5) target bundleno = 3 (0x3), region = 130 }

</bundles_post_ra>
